<compile_context>
chip_gen: v7x
topology: tpu7x:2x2x1
jax: 0.10.0
libtpu: 0.0.40
codegen_flags: <defaults>
</compile_context>

<pallas_src>
import functools

import jax
import jax.numpy as jnp
from jax.experimental import pallas as pl
from jax.experimental.pallas import tpu as pltpu


def _round_up(x, m):
    return ((x + m - 1) // m) * m


# ------------------------------------------------------------------
# Pallas kernels
# ------------------------------------------------------------------
def _matmul_bias_kernel(a_ref, w_ref, bias_ref, o_ref):
    # a: (tm, K) bf16, w: (K, tn) bf16, bias: (1, tn) f32 -> o: (tm, tn) f32
    o_ref[...] = (
        jnp.dot(a_ref[...], w_ref[...], preferred_element_type=jnp.float32)
        + bias_ref[...]
    ).astype(o_ref.dtype)


def _matmul_bias_res_kernel(a_ref, w_ref, bias_ref, r_ref, o_ref):
    # Same as above, plus a fused residual add (epilogue).
    o_ref[...] = (
        jnp.dot(a_ref[...], w_ref[...], preferred_element_type=jnp.float32)
        + bias_ref[...]
        + r_ref[...]
    ).astype(o_ref.dtype)


def pallas_matmul(a, w, bias=None, residual=None, tm=256, tn=128):
    """y = a @ w (+ bias) (+ residual).  a:(M,K)  w:(K,N) -> (M,N) float32.

    K is kept as a single full block (never padded to 128); output N is padded
    to a multiple of 128 so stores are lane-dense; M is tiled with a large tm.
    MXU operands are cast to bf16, accumulation stays f32.
    """
    M, K = a.shape
    K2, N = w.shape
    assert K == K2
    if bias is None:
        bias = jnp.zeros((N,), jnp.float32)

    tm = min(tm, _round_up(M, 8))
    Mp = _round_up(M, tm)
    Np = _round_up(N, tn)

    a_p = jnp.pad(a.astype(jnp.bfloat16), ((0, Mp - M), (0, 0)))
    w_p = jnp.pad(w.astype(jnp.bfloat16), ((0, 0), (0, Np - N)))
    b_p = jnp.pad(bias.astype(jnp.float32)[None, :], ((0, 0), (0, Np - N)))

    in_specs = [
        pl.BlockSpec((tm, K), lambda i, j: (i, 0)),
        pl.BlockSpec((K, tn), lambda i, j: (0, j)),
        pl.BlockSpec((1, tn), lambda i, j: (0, j)),
    ]
    args = [a_p, w_p, b_p]
    if residual is None:
        kern = _matmul_bias_kernel
    else:
        r_p = jnp.pad(residual.astype(jnp.float32),
                      ((0, Mp - M), (0, Np - N)))
        in_specs.append(pl.BlockSpec((tm, tn), lambda i, j: (i, j)))
        args.append(r_p)
        kern = _matmul_bias_res_kernel

    out = pl.pallas_call(
        kern,
        out_shape=jax.ShapeDtypeStruct((Mp, Np), jnp.float32),
        grid_spec=pltpu.PrefetchScalarGridSpec(
            num_scalar_prefetch=0,
            grid=(Mp // tm, Np // tn),
            in_specs=in_specs,
            out_specs=pl.BlockSpec((tm, tn), lambda i, j: (i, j)),
        ),
        compiler_params=pltpu.CompilerParams(
            dimension_semantics=("parallel", "parallel")),
    )(*args)
    return out[:M, :N]


def _ln_matmul_kernel(x_ref, g_ref, be_ref, w_ref, bias_ref, o_ref, *,
                      bias_free):
    # Fused LayerNorm (over channels) + matmul (+bias).
    x = x_ref[...]                                    # (tm, C) f32
    mu = jnp.mean(x, axis=-1, keepdims=True)
    xc = x - mu
    var = jnp.mean(xc * xc, axis=-1, keepdims=True)
    inv = jax.lax.rsqrt(var + 1e-5)
    if bias_free:
        y = x * inv * g_ref[...]                      # BiasFree_LayerNorm
    else:
        y = xc * inv * g_ref[...] + be_ref[...]       # WithBias_LayerNorm
    o_ref[...] = (
        jnp.dot(y.astype(jnp.bfloat16), w_ref[...],
                preferred_element_type=jnp.float32)
        + bias_ref[...]
    ).astype(o_ref.dtype)


def pallas_ln_matmul(x, gamma, beta, w, bias=None, ln_type="WithBias",
                     tm=256, tn=128):
    """(LayerNorm over last dim of x) @ w (+ bias).  x:(M,C) w:(C,N)."""
    M, C = x.shape
    C2, N = w.shape
    assert C == C2
    if bias is None:
        bias = jnp.zeros((N,), jnp.float32)

    tm = min(tm, _round_up(M, 8))
    Mp = _round_up(M, tm)
    Np = _round_up(N, tn)

    x_p = jnp.pad(x.astype(jnp.float32), ((0, Mp - M), (0, 0)))
    w_p = jnp.pad(w.astype(jnp.bfloat16), ((0, 0), (0, Np - N)))
    b_p = jnp.pad(bias.astype(jnp.float32)[None, :], ((0, 0), (0, Np - N)))
    g = gamma.astype(jnp.float32)[None, :]
    be = beta.astype(jnp.float32)[None, :]

    kern = functools.partial(_ln_matmul_kernel,
                             bias_free=(ln_type == "BiasFree"))
    out = pl.pallas_call(
        kern,
        out_shape=jax.ShapeDtypeStruct((Mp, Np), jnp.float32),
        grid_spec=pltpu.PrefetchScalarGridSpec(
            num_scalar_prefetch=0,
            grid=(Mp // tm, Np // tn),
            in_specs=[
                pl.BlockSpec((tm, C), lambda i, j: (i, 0)),
                pl.BlockSpec((1, C), lambda i, j: (0, 0)),
                pl.BlockSpec((1, C), lambda i, j: (0, 0)),
                pl.BlockSpec((C, tn), lambda i, j: (0, j)),
                pl.BlockSpec((1, tn), lambda i, j: (0, j)),
            ],
            out_specs=pl.BlockSpec((tm, tn), lambda i, j: (i, j)),
        ),
        compiler_params=pltpu.CompilerParams(
            dimension_semantics=("parallel", "parallel")),
    )(x_p, g, be, w_p, b_p)
    return out[:M, :N]


def _dwconv3x3_kernel(x_ref, w_ref, b_ref, o_ref):
    # x: (1, H+2, W+2, C) padded input, w: (9, C) ordered (kh*3+kw, c),
    # b: (1, C), o: (1, H, W, C).  Pure VPU: 9 shifted multiply-adds.
    _, H, W, C = o_ref.shape
    xv = x_ref[0]
    wv = w_ref[...]
    acc = jnp.zeros((H, W, C), jnp.float32)
    for i in range(3):
        for j in range(3):
            acc = acc + xv[i:i + H, j:j + W, :] * wv[i * 3 + j]
    o_ref[0] = acc + b_ref[0]


def pallas_dwconv3x3(x, w, bias=None):
    """Depthwise 3x3 conv, stride 1, pad 1.  x:(B,H,W,C) NHWC, w:(C,3,3)."""
    B, H, W, C = x.shape
    if bias is None:
        bias = jnp.zeros((C,), jnp.float32)
    xp = jnp.pad(x.astype(jnp.float32), ((0, 0), (1, 1), (1, 1), (0, 0)))
    w2 = jnp.transpose(w.reshape(C, 9), (1, 0)).astype(jnp.float32)  # (9, C)
    # TODO(synk): tile H with halos instead of whole-image blocks if the
    # spatial size ever grows beyond a few hundred pixels (VMEM budget, v7x).
    return pl.pallas_call(
        _dwconv3x3_kernel,
        out_shape=jax.ShapeDtypeStruct((B, H, W, C), jnp.float32),
        grid_spec=pltpu.PrefetchScalarGridSpec(
            num_scalar_prefetch=0,
            grid=(B,),
            in_specs=[
                pl.BlockSpec((1, H + 2, W + 2, C), lambda b: (b, 0, 0, 0)),
                pl.BlockSpec((9, C), lambda b: (0, 0)),
                pl.BlockSpec((1, C), lambda b: (0, 0)),
            ],
            out_specs=pl.BlockSpec((1, H, W, C), lambda b: (b, 0, 0, 0)),
        ),
        compiler_params=pltpu.CompilerParams(
            dimension_semantics=("parallel",)),
    )(xp, w2, bias.astype(jnp.float32)[None, :])


def _chan_attn_kernel(q_ref, k_ref, v_ref, t_ref, o_ref):
    # q,k,v: (gb, c, N) f32; t: (gb, 1, 1) f32; o: (gb, c, N) f32
    q = q_ref[...]
    k = k_ref[...]
    v = v_ref[...]
    # L2-normalize along the spatial dim (torch F.normalize, dim=-1).
    qn = q * jax.lax.rsqrt(jnp.sum(q * q, axis=-1, keepdims=True) + 1e-24)
    kn = k * jax.lax.rsqrt(jnp.sum(k * k, axis=-1, keepdims=True) + 1e-24)
    s = jnp.einsum("gcn,gdn->gcd", qn.astype(jnp.bfloat16),
                   kn.astype(jnp.bfloat16),
                   preferred_element_type=jnp.float32)            # (gb, c, c)
    s = s * t_ref[...]
    s = s - jnp.max(s, axis=-1, keepdims=True)
    p = jnp.exp(s)
    p = p / jnp.sum(p, axis=-1, keepdims=True)
    o_ref[...] = jnp.einsum("gcd,gdn->gcn", p.astype(jnp.bfloat16),
                            v.astype(jnp.bfloat16),
                            preferred_element_type=jnp.float32)


def _pick_gb(G, c, N):
    # largest divisor of G whose working set stays well inside VMEM
    budget = 16 * 1024 * 1024
    per_g = (4 * c * N + c * c) * 4 * 2      # q,k,v,o + scores, f32, 2x buffered
    gb = max(1, min(G, budget // max(per_g, 1)))
    while G % gb != 0:
        gb -= 1
    return gb


def pallas_channel_attention(q, k, v, temperature):
    """q,k,v:(G,c,N)  temperature:(G,1,1) -> (G,c,N).  G = batch*heads."""
    G, c, N = q.shape
    gb = _pick_gb(G, c, N)
    return pl.pallas_call(
        _chan_attn_kernel,
        out_shape=jax.ShapeDtypeStruct((G, c, N), jnp.float32),
        grid_spec=pltpu.PrefetchScalarGridSpec(
            num_scalar_prefetch=0,
            grid=(G // gb,),
            in_specs=[
                pl.BlockSpec((gb, c, N), lambda g: (g, 0, 0)),
                pl.BlockSpec((gb, c, N), lambda g: (g, 0, 0)),
                pl.BlockSpec((gb, c, N), lambda g: (g, 0, 0)),
                pl.BlockSpec((gb, 1, 1), lambda g: (g, 0, 0)),
            ],
            out_specs=pl.BlockSpec((gb, c, N), lambda g: (g, 0, 0)),
        ),
        compiler_params=pltpu.CompilerParams(
            dimension_semantics=("parallel",)),
    )(q.astype(jnp.float32), k.astype(jnp.float32), v.astype(jnp.float32),
      temperature.astype(jnp.float32))


# ------------------------------------------------------------------
# Dense 3x3 conv (im2col in JAX, Pallas matmul, fused group residual)
# ------------------------------------------------------------------
def conv3x3(x, w, bias=None, residual=None):
    """x:(B,H,W,Cin) NHWC; w:(O,I,3,3) PyTorch layout; stride 1, pad 1."""
    B, H, W, Cin = x.shape
    O = w.shape[0]
    xp = jnp.pad(x, ((0, 0), (1, 1), (1, 1), (0, 0)))
    patches = jnp.concatenate(
        [xp[:, i:i + H, j:j + W, :] for i in range(3) for j in range(3)],
        axis=-1)                                   # (B,H,W,9*Cin), (kh,kw,c)
    w2 = jnp.transpose(w, (2, 3, 1, 0)).reshape(9 * Cin, O)
    res2d = None if residual is None else residual.reshape(B * H * W, O)
    out = pallas_matmul(patches.reshape(B * H * W, 9 * Cin), w2, bias,
                        residual=res2d)
    return out.reshape(B, H, W, O)


# ------------------------------------------------------------------
# Transformer block / group (glue around the Pallas kernels)
# ------------------------------------------------------------------
def transformer_block(x_nhwc, bp, num_heads, ln_type):
    B, H, W, C = x_nhwc.shape
    M = B * H * W
    N = H * W
    c_head = C // num_heads
    x2d = x_nhwc.reshape(M, C)

    # ---- Attention: x = x + attn(norm1(x)) ----
    qkv = pallas_ln_matmul(x2d, bp["norm1_g"], bp["norm1_b"],
                           bp["qkv_w"].T, bp["qkv_b"], ln_type)     # (M, 3C)
    qkv = qkv.reshape(B, H, W, 3 * C)
    qkv = pallas_dwconv3x3(qkv, bp["qkv_dw_w"], bp["qkv_dw_b"])
    q, k, v = jnp.split(qkv, 3, axis=-1)                            # (B,H,W,C)

    def to_heads(t):
        t = t.reshape(B, N, num_heads, c_head)
        t = jnp.transpose(t, (0, 2, 3, 1))                          # (B,h,c,N)
        return t.reshape(B * num_heads, c_head, N)

    qh, kh, vh = to_heads(q), to_heads(k), to_heads(v)
    temp = jnp.broadcast_to(bp["temperature"].reshape(1, num_heads, 1, 1),
                            (B, num_heads, 1, 1)).reshape(B * num_heads, 1, 1)
    oh = pallas_channel_attention(qh, kh, vh, temp)                 # (G,c,N)
    o = oh.reshape(B, num_heads, c_head, N)
    o = jnp.transpose(o, (0, 3, 1, 2)).reshape(M, C)
    x2d = pallas_matmul(o, bp["proj_w"].T, bp["proj_b"], residual=x2d)

    # ---- FFN: x = x + ffn(norm2(x)) ----
    h2 = pallas_ln_matmul(x2d, bp["norm2_g"], bp["norm2_b"],
                          bp["fc_in_w"].T, bp["fc_in_b"], ln_type)  # (M,2*hid)
    hid2 = h2.shape[-1]
    h2 = h2.reshape(B, H, W, hid2)
    h2 = pallas_dwconv3x3(h2, bp["ffn_dw_w"], bp["ffn_dw_b"])
    x1, xg = jnp.split(h2, 2, axis=-1)
    # TODO(synk): fuse the exact-erf GELU gating into the project_out matmul
    # prologue once erf lowering inside Mosaic is confirmed; XLA fuses it here.
    g = jax.nn.gelu(x1, approximate=False) * xg        # matches F.gelu (erf)
    g = g.reshape(M, hid2 // 2)
    x2d = pallas_matmul(g, bp["fc_out_w"].T, bp["fc_out_b"], residual=x2d)
    return x2d.reshape(B, H, W, C)


def res_transformer_group(x_nhwc, params, num_heads, ln_type):
    y = x_nhwc
    for bp in params["blocks"]:
        y = transformer_block(y, bp, num_heads, ln_type)
    # x + conv(y): residual add fused into the conv matmul epilogue.
    return conv3x3(y, params["conv_w"], params["conv_b"], residual=x_nhwc)


@functools.partial(jax.jit, static_argnames=("num_heads", "ln_type"))
def res_transformer_group_forward(params, x_nchw, num_heads, ln_type):
    x = jnp.transpose(x_nchw, (0, 2, 3, 1))            # NCHW -> NHWC
    y = res_transformer_group(x, params, num_heads, ln_type)
    return jnp.transpose(y, (0, 3, 1, 2))              # NHWC -> NCHW


# ------------------------------------------------------------------
# Parameter init (deterministic, synthetic; bias=False -> zero biases)
# ------------------------------------------------------------------
def init_group_params(key, dim, num_heads, ffn_expansion_factor, num_block):
    hidden = int(dim * ffn_expansion_factor)
    keys = iter(jax.random.split(key, 16 * num_block + 8))

    def nrm(shape):
        return 0.02 * jax.random.normal(next(keys), shape, jnp.float32)

    def zeros(shape):
        return jnp.zeros(shape, jnp.float32)

    blocks = []
    for _ in range(num_block):
        blocks.append({
            "norm1_g": jnp.ones((dim,), jnp.float32),
            "norm1_b": zeros((dim,)),
            "qkv_w": nrm((3 * dim, dim)),          # torch Conv2d 1x1 (O, I)
            "qkv_b": zeros((3 * dim,)),
            "qkv_dw_w": nrm((3 * dim, 3, 3)),      # depthwise (C, kh, kw)
            "qkv_dw_b": zeros((3 * dim,)),
            "temperature": jnp.ones((num_heads, 1, 1), jnp.float32),
            "proj_w": nrm((dim, dim)),
            "proj_b": zeros((dim,)),
            "norm2_g": jnp.ones((dim,), jnp.float32),
            "norm2_b": zeros((dim,)),
            "fc_in_w": nrm((2 * hidden, dim)),
            "fc_in_b": zeros((2 * hidden,)),
            "ffn_dw_w": nrm((2 * hidden, 3, 3)),
            "ffn_dw_b": zeros((2 * hidden,)),
            "fc_out_w": nrm((dim, hidden)),
            "fc_out_b": zeros((dim,)),
        })
    return {
        "blocks": blocks,
        "conv_w": nrm((dim, dim, 3, 3)),           # torch Conv2d (O, I, 3, 3)
        "conv_b": zeros((dim,)),
    }


# ------------------------------------------------------------------
if __name__ == "__main__":
    B = 2
    DIM = 16           # channels (num_heads must divide DIM)
    H = W = 16
    NUM_HEADS = 2
    FFN_FACTOR = 2.0
    NUM_BLOCK = 2
    LN_TYPE = "WithBias"

    key = jax.random.PRNGKey(0)
    pkey, xkey = jax.random.split(key)
    params = init_group_params(pkey, DIM, NUM_HEADS, FFN_FACTOR, NUM_BLOCK)
    x = jax.random.normal(xkey, (B, DIM, H, W), jnp.float32)

    out = res_transformer_group_forward(params, x, num_heads=NUM_HEADS,
                                        ln_type=LN_TYPE)
    out = jax.block_until_ready(out)
    assert out.shape == (B, DIM, H, W), out.shape
    assert bool(jnp.all(jnp.isfinite(out)))
    print("KERNEL_OK")
</pallas_src>

<mosaic_0001>
module attributes {stable_mosaic.version = 11 : i64} {
  func.func @_ln_matmul_kernel(%arg0: i32, %arg1: i32, %arg2: memref<256x16xf32, #tpu.memory_space<vmem>>, %arg3: memref<1x16xf32, #tpu.memory_space<vmem>>, %arg4: memref<1x16xf32, #tpu.memory_space<vmem>>, %arg5: memref<16x128xbf16, #tpu.memory_space<vmem>>, %arg6: memref<1x128xf32, #tpu.memory_space<vmem>>, %arg7: memref<256x128xf32, #tpu.memory_space<vmem>>) attributes {dimension_semantics = [#tpu.dimension_semantics<parallel>, #tpu.dimension_semantics<parallel>], iteration_bounds = array<i64: 2, 1>, scalar_prefetch = 0 : i64, scratch_operands = 0 : i64, tpu.core_type = #tpu.core_type<tc>, window_params = [{transform_indices = @transform_0, window_bounds = array<i64: 256, 16>}, {pipeline_mode = #tpu.pipeline_mode<synchronous>, transform_indices = @transform_1, window_bounds = array<i64: 1, 16>}, {pipeline_mode = #tpu.pipeline_mode<synchronous>, transform_indices = @transform_2, window_bounds = array<i64: 1, 16>}, {transform_indices = @transform_3, window_bounds = array<i64: 16, 128>}, {transform_indices = @transform_4, window_bounds = array<i64: 1, 128>}, {transform_indices = @transform_5, window_bounds = array<i64: 256, 128>}]} {
    %c0 = arith.constant 0 : index
    %c0_0 = arith.constant 0 : index
    %0 = vector.load %arg2[%c0, %c0_0] : memref<256x16xf32, #tpu.memory_space<vmem>>, vector<256x16xf32>
    %cst = arith.constant dense<0.000000e+00> : vector<256xf32>
    %1 = vector.multi_reduction <add>, %0, %cst [1] : vector<256x16xf32> to vector<256xf32>
    %2 = vector.shape_cast %1 : vector<256xf32> to vector<256x1xf32>
    %cst_1 = arith.constant 1.600000e+01 : f32
    %3 = vector.broadcast %cst_1 : f32 to vector<256x1xf32>
    %4 = arith.divf %2, %3 : vector<256x1xf32>
    %5 = vector.broadcast %4 : vector<256x1xf32> to vector<256x16xf32>
    %6 = arith.subf %0, %5 : vector<256x16xf32>
    %7 = arith.mulf %6, %6 : vector<256x16xf32>
    %cst_2 = arith.constant dense<0.000000e+00> : vector<256xf32>
    %8 = vector.multi_reduction <add>, %7, %cst_2 [1] : vector<256x16xf32> to vector<256xf32>
    %9 = vector.shape_cast %8 : vector<256xf32> to vector<256x1xf32>
    %cst_3 = arith.constant 1.600000e+01 : f32
    %10 = vector.broadcast %cst_3 : f32 to vector<256x1xf32>
    %11 = arith.divf %9, %10 : vector<256x1xf32>
    %cst_4 = arith.constant 9.99999974E-6 : f32
    %12 = vector.broadcast %cst_4 : f32 to vector<256x1xf32>
    %13 = arith.addf %11, %12 : vector<256x1xf32>
    %14 = math.rsqrt %13 : vector<256x1xf32>
    %15 = vector.broadcast %14 : vector<256x1xf32> to vector<256x16xf32>
    %16 = arith.mulf %6, %15 : vector<256x16xf32>
    %c0_5 = arith.constant 0 : index
    %c0_6 = arith.constant 0 : index
    %17 = vector.load %arg3[%c0_5, %c0_6] : memref<1x16xf32, #tpu.memory_space<vmem>>, vector<1x16xf32>
    %18 = vector.broadcast %17 : vector<1x16xf32> to vector<256x16xf32>
    %19 = arith.mulf %16, %18 : vector<256x16xf32>
    %c0_7 = arith.constant 0 : index
    %c0_8 = arith.constant 0 : index
    %20 = vector.load %arg4[%c0_7, %c0_8] : memref<1x16xf32, #tpu.memory_space<vmem>>, vector<1x16xf32>
    %21 = vector.broadcast %20 : vector<1x16xf32> to vector<256x16xf32>
    %22 = arith.addf %19, %21 : vector<256x16xf32>
    %23 = arith.truncf %22 : vector<256x16xf32> to vector<256x16xbf16>
    %c0_9 = arith.constant 0 : index
    %c0_10 = arith.constant 0 : index
    %24 = vector.load %arg5[%c0_9, %c0_10] : memref<16x128xbf16, #tpu.memory_space<vmem>>, vector<16x128xbf16>
    %cst_11 = arith.constant dense<0.000000e+00> : vector<256x128xf32>
    %25 = tpu.matmul %23, %24, %cst_11 {dimension_numbers = #tpu.dot_dimension_numbers<[1], [0], [0], [1], [0, 0, 1, 1], [], []>} : vector<256x16xbf16>, vector<16x128xbf16>, vector<256x128xf32> -> vector<256x128xf32>
    %c0_12 = arith.constant 0 : index
    %c0_13 = arith.constant 0 : index
    %26 = vector.load %arg6[%c0_12, %c0_13] : memref<1x128xf32, #tpu.memory_space<vmem>>, vector<1x128xf32>
    %27 = vector.broadcast %26 : vector<1x128xf32> to vector<256x128xf32>
    %28 = arith.addf %25, %27 : vector<256x128xf32>
    %c0_14 = arith.constant 0 : index
    %c0_15 = arith.constant 0 : index
    %29 = vector.load %arg7[%c0_14, %c0_15] : memref<256x128xf32, #tpu.memory_space<vmem>>, vector<256x128xf32>
    tpu.vector_store %arg7[%c0_14, %c0_15], %28 {strides = array<i32>} : memref<256x128xf32, #tpu.memory_space<vmem>>, vector<256x128xf32>,
    return
  }
  func.func @transform_0(%arg0: i32, %arg1: i32) -> (i32, i32) {
    %c0_i32 = arith.constant 0 : i32
    %c0_i32_0 = arith.constant 0 : i32
    return %arg0, %c0_i32 : i32, i32
  }
  func.func @transform_1(%arg0: i32, %arg1: i32) -> (i32, i32) {
    %c0_i32 = arith.constant 0 : i32
    %c0_i32_0 = arith.constant 0 : i32
    %c0_i32_1 = arith.constant 0 : i32
    return %c0_i32, %c0_i32_0 : i32, i32
  }
  func.func @transform_2(%arg0: i32, %arg1: i32) -> (i32, i32) {
    %c0_i32 = arith.constant 0 : i32
    %c0_i32_0 = arith.constant 0 : i32
    %c0_i32_1 = arith.constant 0 : i32
    return %c0_i32, %c0_i32_0 : i32, i32
  }
  func.func @transform_3(%arg0: i32, %arg1: i32) -> (i32, i32) {
    %c0_i32 = arith.constant 0 : i32
    %c0_i32_0 = arith.constant 0 : i32
    return %c0_i32, %arg1 : i32, i32
  }
  func.func @transform_4(%arg0: i32, %arg1: i32) -> (i32, i32) {
    %c0_i32 = arith.constant 0 : i32
    %c0_i32_0 = arith.constant 0 : i32
    return %c0_i32, %arg1 : i32, i32
  }
  func.func @transform_5(%arg0: i32, %arg1: i32) -> (i32, i32) {
    %c0_i32 = arith.constant 0 : i32
    return %arg0, %arg1 : i32, i32
  }
}

module attributes {stable_mosaic.version = 11 : i64} {
  func.func @_dwconv3x3_kernel(%arg0: i32, %arg1: memref<1x18x18x48xf32, #tpu.memory_space<vmem>>, %arg2: memref<9x48xf32, #tpu.memory_space<vmem>>, %arg3: memref<1x48xf32, #tpu.memory_space<vmem>>, %arg4: memref<1x16x16x48xf32, #tpu.memory_space<vmem>>) attributes {dimension_semantics = [#tpu.dimension_semantics<parallel>], iteration_bounds = array<i64: 2>, scalar_prefetch = 0 : i64, scratch_operands = 0 : i64, tpu.core_type = #tpu.core_type<tc>, window_params = [{transform_indices = @transform_0, window_bounds = array<i64: 1, 18, 18, 48>}, {pipeline_mode = #tpu.pipeline_mode<synchronous>, transform_indices = @transform_1, window_bounds = array<i64: 9, 48>}, {pipeline_mode = #tpu.pipeline_mode<synchronous>, transform_indices = @transform_2, window_bounds = array<i64: 1, 48>}, {transform_indices = @transform_3, window_bounds = array<i64: 1, 16, 16, 48>}]} {
    %c0 = arith.constant 0 : index
    %c0_0 = arith.constant 0 : index
    %c0_1 = arith.constant 0 : index
    %c0_2 = arith.constant 0 : index
    %0 = vector.load %arg1[%c0, %c0_0, %c0_1, %c0_2] : memref<1x18x18x48xf32, #tpu.memory_space<vmem>>, vector<1x18x18x48xf32>
    %1 = vector.shape_cast %0 : vector<1x18x18x48xf32> to vector<18x18x48xf32>
    %c0_3 = arith.constant 0 : index
    %c0_4 = arith.constant 0 : index
    %2 = vector.load %arg2[%c0_3, %c0_4] : memref<9x48xf32, #tpu.memory_space<vmem>>, vector<9x48xf32>
    %cst = arith.constant 0.000000e+00 : f32
    %3 = vector.broadcast %cst : f32 to vector<16x16x48xf32>
    %4 = vector.extract_strided_slice %1 {offsets = [0, 0, 0], sizes = [16, 16, 48], strides = [1, 1, 1]} : vector<18x18x48xf32> to vector<16x16x48xf32>
    %5 = vector.extract_strided_slice %2 {offsets = [0, 0], sizes = [1, 48], strides = [1, 1]} : vector<9x48xf32> to vector<1x48xf32>
    %6 = vector.shape_cast %5 : vector<1x48xf32> to vector<48xf32>
    %7 = vector.shape_cast %6 : vector<48xf32> to vector<1x1x48xf32>
    %8 = vector.broadcast %7 : vector<1x1x48xf32> to vector<16x16x48xf32>
    %9 = arith.mulf %4, %8 : vector<16x16x48xf32>
    %10 = arith.addf %3, %9 : vector<16x16x48xf32>
    %11 = vector.extract_strided_slice %1 {offsets = [0, 1, 0], sizes = [16, 16, 48], strides = [1, 1, 1]} : vector<18x18x48xf32> to vector<16x16x48xf32>
    %12 = vector.extract_strided_slice %2 {offsets = [1, 0], sizes = [1, 48], strides = [1, 1]} : vector<9x48xf32> to vector<1x48xf32>
    %13 = vector.shape_cast %12 : vector<1x48xf32> to vector<48xf32>
    %14 = vector.shape_cast %13 : vector<48xf32> to vector<1x1x48xf32>
    %15 = vector.broadcast %14 : vector<1x1x48xf32> to vector<16x16x48xf32>
    %16 = arith.mulf %11, %15 : vector<16x16x48xf32>
    %17 = arith.addf %10, %16 : vector<16x16x48xf32>
    %18 = vector.extract_strided_slice %1 {offsets = [0, 2, 0], sizes = [16, 16, 48], strides = [1, 1, 1]} : vector<18x18x48xf32> to vector<16x16x48xf32>
    %19 = vector.extract_strided_slice %2 {offsets = [2, 0], sizes = [1, 48], strides = [1, 1]} : vector<9x48xf32> to vector<1x48xf32>
    %20 = vector.shape_cast %19 : vector<1x48xf32> to vector<48xf32>
    %21 = vector.shape_cast %20 : vector<48xf32> to vector<1x1x48xf32>
    %22 = vector.broadcast %21 : vector<1x1x48xf32> to vector<16x16x48xf32>
    %23 = arith.mulf %18, %22 : vector<16x16x48xf32>
    %24 = arith.addf %17, %23 : vector<16x16x48xf32>
    %25 = vector.extract_strided_slice %1 {offsets = [1, 0, 0], sizes = [16, 16, 48], strides = [1, 1, 1]} : vector<18x18x48xf32> to vector<16x16x48xf32>
    %26 = vector.extract_strided_slice %2 {offsets = [3, 0], sizes = [1, 48], strides = [1, 1]} : vector<9x48xf32> to vector<1x48xf32>
    %27 = vector.shape_cast %26 : vector<1x48xf32> to vector<48xf32>
    %28 = vector.shape_cast %27 : vector<48xf32> to vector<1x1x48xf32>
    %29 = vector.broadcast %28 : vector<1x1x48xf32> to vector<16x16x48xf32>
    %30 = arith.mulf %25, %29 : vector<16x16x48xf32>
    %31 = arith.addf %24, %30 : vector<16x16x48xf32>
    %32 = vector.extract_strided_slice %1 {offsets = [1, 1, 0], sizes = [16, 16, 48], strides = [1, 1, 1]} : vector<18x18x48xf32> to vector<16x16x48xf32>
    %33 = vector.extract_strided_slice %2 {offsets = [4, 0], sizes = [1, 48], strides = [1, 1]} : vector<9x48xf32> to vector<1x48xf32>
    %34 = vector.shape_cast %33 : vector<1x48xf32> to vector<48xf32>
    %35 = vector.shape_cast %34 : vector<48xf32> to vector<1x1x48xf32>
    %36 = vector.broadcast %35 : vector<1x1x48xf32> to vector<16x16x48xf32>
    %37 = arith.mulf %32, %36 : vector<16x16x48xf32>
    %38 = arith.addf %31, %37 : vector<16x16x48xf32>
    %39 = vector.extract_strided_slice %1 {offsets = [1, 2, 0], sizes = [16, 16, 48], strides = [1, 1, 1]} : vector<18x18x48xf32> to vector<16x16x48xf32>
    %40 = vector.extract_strided_slice %2 {offsets = [5, 0], sizes = [1, 48], strides = [1, 1]} : vector<9x48xf32> to vector<1x48xf32>
    %41 = vector.shape_cast %40 : vector<1x48xf32> to vector<48xf32>
    %42 = vector.shape_cast %41 : vector<48xf32> to vector<1x1x48xf32>
    %43 = vector.broadcast %42 : vector<1x1x48xf32> to vector<16x16x48xf32>
    %44 = arith.mulf %39, %43 : vector<16x16x48xf32>
    %45 = arith.addf %38, %44 : vector<16x16x48xf32>
    %46 = vector.extract_strided_slice %1 {offsets = [2, 0, 0], sizes = [16, 16, 48], strides = [1, 1, 1]} : vector<18x18x48xf32> to vector<16x16x48xf32>
    %47 = vector.extract_strided_slice %2 {offsets = [6, 0], sizes = [1, 48], strides = [1, 1]} : vector<9x48xf32> to vector<1x48xf32>
    %48 = vector.shape_cast %47 : vector<1x48xf32> to vector<48xf32>
    %49 = vector.shape_cast %48 : vector<48xf32> to vector<1x1x48xf32>
    %50 = vector.broadcast %49 : vector<1x1x48xf32> to vector<16x16x48xf32>
    %51 = arith.mulf %46, %50 : vector<16x16x48xf32>
    %52 = arith.addf %45, %51 : vector<16x16x48xf32>
    %53 = vector.extract_strided_slice %1 {offsets = [2, 1, 0], sizes = [16, 16, 48], strides = [1, 1, 1]} : vector<18x18x48xf32> to vector<16x16x48xf32>
    %54 = vector.extract_strided_slice %2 {offsets = [7, 0], sizes = [1, 48], strides = [1, 1]} : vector<9x48xf32> to vector<1x48xf32>
    %55 = vector.shape_cast %54 : vector<1x48xf32> to vector<48xf32>
    %56 = vector.shape_cast %55 : vector<48xf32> to vector<1x1x48xf32>
    %57 = vector.broadcast %56 : vector<1x1x48xf32> to vector<16x16x48xf32>
    %58 = arith.mulf %53, %57 : vector<16x16x48xf32>
    %59 = arith.addf %52, %58 : vector<16x16x48xf32>
    %60 = vector.extract_strided_slice %1 {offsets = [2, 2, 0], sizes = [16, 16, 48], strides = [1, 1, 1]} : vector<18x18x48xf32> to vector<16x16x48xf32>
    %61 = vector.extract_strided_slice %2 {offsets = [8, 0], sizes = [1, 48], strides = [1, 1]} : vector<9x48xf32> to vector<1x48xf32>
    %62 = vector.shape_cast %61 : vector<1x48xf32> to vector<48xf32>
    %63 = vector.shape_cast %62 : vector<48xf32> to vector<1x1x48xf32>
    %64 = vector.broadcast %63 : vector<1x1x48xf32> to vector<16x16x48xf32>
    %65 = arith.mulf %60, %64 : vector<16x16x48xf32>
    %66 = arith.addf %59, %65 : vector<16x16x48xf32>
    %c0_5 = arith.constant 0 : index
    %c0_6 = arith.constant 0 : index
    %67 = vector.load %arg3[%c0_5, %c0_6] : memref<1x48xf32, #tpu.memory_space<vmem>>, vector<1x48xf32>
    %68 = vector.shape_cast %67 : vector<1x48xf32> to vector<48xf32>
    %69 = vector.shape_cast %68 : vector<48xf32> to vector<1x1x48xf32>
    %70 = vector.broadcast %69 : vector<1x1x48xf32> to vector<16x16x48xf32>
    %71 = arith.addf %66, %70 : vector<16x16x48xf32>
    %c0_7 = arith.constant 0 : index
    %c0_8 = arith.constant 0 : index
    %c0_9 = arith.constant 0 : index
    %c0_10 = arith.constant 0 : index
    %72 = vector.load %arg4[%c0_7, %c0_8, %c0_9, %c0_10] : memref<1x16x16x48xf32, #tpu.memory_space<vmem>>, vector<1x16x16x48xf32>
    %73 = vector.shape_cast %72 : vector<1x16x16x48xf32> to vector<16x16x48xf32>
    %74 = vector.shape_cast %71 : vector<16x16x48xf32> to vector<1x16x16x48xf32>
    tpu.vector_store %arg4[%c0_7, %c0_8, %c0_9, %c0_10], %74 {strides = array<i32>} : memref<1x16x16x48xf32, #tpu.memory_space<vmem>>, vector<1x16x16x48xf32>,
    return
  }
  func.func @transform_0(%arg0: i32) -> (i32, i32, i32, i32) {
    %c0_i32 = arith.constant 0 : i32
    %c0_i32_0 = arith.constant 0 : i32
    %c0_i32_1 = arith.constant 0 : i32
    %c0_i32_2 = arith.constant 0 : i32
    return %arg0, %c0_i32, %c0_i32_0, %c0_i32_1 : i32, i32, i32, i32
  }
  func.func @transform_1(%arg0: i32) -> (i32, i32) {
    %c0_i32 = arith.constant 0 : i32
    %c0_i32_0 = arith.constant 0 : i32
    %c0_i32_1 = arith.constant 0 : i32
    return %c0_i32, %c0_i32_0 : i32, i32
  }
  func.func @transform_2(%arg0: i32) -> (i32, i32) {
    %c0_i32 = arith.constant 0 : i32
    %c0_i32_0 = arith.constant 0 : i32
    %c0_i32_1 = arith.constant 0 : i32
    return %c0_i32, %c0_i32_0 : i32, i32
  }
  func.func @transform_3(%arg0: i32) -> (i32, i32, i32, i32) {
    %c0_i32 = arith.constant 0 : i32
    %c0_i32_0 = arith.constant 0 : i32
    %c0_i32_1 = arith.constant 0 : i32
    %c0_i32_2 = arith.constant 0 : i32
    return %arg0, %c0_i32, %c0_i32_0, %c0_i32_1 : i32, i32, i32, i32
  }
}

module attributes {stable_mosaic.version = 11 : i64} {
  func.func @_chan_attn_kernel(%arg0: i32, %arg1: memref<4x8x256xf32, #tpu.memory_space<vmem>>, %arg2: memref<4x8x256xf32, #tpu.memory_space<vmem>>, %arg3: memref<4x8x256xf32, #tpu.memory_space<vmem>>, %arg4: memref<4x1x1xf32, #tpu.memory_space<vmem>>, %arg5: memref<4x8x256xf32, #tpu.memory_space<vmem>>) attributes {dimension_semantics = [#tpu.dimension_semantics<parallel>], iteration_bounds = array<i64: 1>, scalar_prefetch = 0 : i64, scratch_operands = 0 : i64, tpu.core_type = #tpu.core_type<tc>, window_params = [{transform_indices = @transform_0, window_bounds = array<i64: 4, 8, 256>}, {transform_indices = @transform_1, window_bounds = array<i64: 4, 8, 256>}, {transform_indices = @transform_2, window_bounds = array<i64: 4, 8, 256>}, {transform_indices = @transform_3, window_bounds = array<i64: 4, 1, 1>}, {transform_indices = @transform_4, window_bounds = array<i64: 4, 8, 256>}]} {
    %c0 = arith.constant 0 : index
    %c0_0 = arith.constant 0 : index
    %c0_1 = arith.constant 0 : index
    %0 = vector.load %arg1[%c0, %c0_0, %c0_1] : memref<4x8x256xf32, #tpu.memory_space<vmem>>, vector<4x8x256xf32>
    %c0_2 = arith.constant 0 : index
    %c0_3 = arith.constant 0 : index
    %c0_4 = arith.constant 0 : index
    %1 = vector.load %arg2[%c0_2, %c0_3, %c0_4] : memref<4x8x256xf32, #tpu.memory_space<vmem>>, vector<4x8x256xf32>
    %c0_5 = arith.constant 0 : index
    %c0_6 = arith.constant 0 : index
    %c0_7 = arith.constant 0 : index
    %2 = vector.load %arg3[%c0_5, %c0_6, %c0_7] : memref<4x8x256xf32, #tpu.memory_space<vmem>>, vector<4x8x256xf32>
    %3 = arith.mulf %0, %0 : vector<4x8x256xf32>
    %cst = arith.constant dense<0.000000e+00> : vector<4x8xf32>
    %4 = vector.multi_reduction <add>, %3, %cst [2] : vector<4x8x256xf32> to vector<4x8xf32>
    %5 = vector.shape_cast %4 : vector<4x8xf32> to vector<4x8x1xf32>
    %cst_8 = arith.constant 1.000000e-24 : f32
    %6 = vector.broadcast %cst_8 : f32 to vector<4x8x1xf32>
    %7 = arith.addf %5, %6 : vector<4x8x1xf32>
    %8 = math.rsqrt %7 : vector<4x8x1xf32>
    %9 = vector.broadcast %8 : vector<4x8x1xf32> to vector<4x8x256xf32>
    %10 = arith.mulf %0, %9 : vector<4x8x256xf32>
    %11 = arith.mulf %1, %1 : vector<4x8x256xf32>
    %cst_9 = arith.constant dense<0.000000e+00> : vector<4x8xf32>
    %12 = vector.multi_reduction <add>, %11, %cst_9 [2] : vector<4x8x256xf32> to vector<4x8xf32>
    %13 = vector.shape_cast %12 : vector<4x8xf32> to vector<4x8x1xf32>
    %cst_10 = arith.constant 1.000000e-24 : f32
    %14 = vector.broadcast %cst_10 : f32 to vector<4x8x1xf32>
    %15 = arith.addf %13, %14 : vector<4x8x1xf32>
    %16 = math.rsqrt %15 : vector<4x8x1xf32>
    %17 = vector.broadcast %16 : vector<4x8x1xf32> to vector<4x8x256xf32>
    %18 = arith.mulf %1, %17 : vector<4x8x256xf32>
    %19 = arith.truncf %10 : vector<4x8x256xf32> to vector<4x8x256xbf16>
    %20 = arith.truncf %18 : vector<4x8x256xf32> to vector<4x8x256xbf16>
    "tpu.trace_start"() <{level = 10 : i32, message = "gcn,gdn->gcd"}> : () -> ()
    %cst_11 = arith.constant dense<0.000000e+00> : vector<4x8x8xf32>
    %21 = tpu.matmul %19, %20, %cst_11 {dimension_numbers = #tpu.dot_dimension_numbers<[2], [2], [1], [1], [0, 0, 0, 1, 1, 1], [0], [0]>} : vector<4x8x256xbf16>, vector<4x8x256xbf16>, vector<4x8x8xf32> -> vector<4x8x8xf32>
    "tpu.trace_stop"() : () -> ()
    %c0_12 = arith.constant 0 : index
    %c0_13 = arith.constant 0 : index
    %c0_14 = arith.constant 0 : index
    %22 = vector.load %arg4[%c0_12, %c0_13, %c0_14] : memref<4x1x1xf32, #tpu.memory_space<vmem>>, vector<4x1x1xf32>
    %23 = vector.broadcast %22 : vector<4x1x1xf32> to vector<4x8x8xf32>
    %24 = arith.mulf %21, %23 : vector<4x8x8xf32>
    %cst_15 = arith.constant dense<0xFF800000> : vector<4x8xf32>
    %25 = vector.multi_reduction <maximumf>, %24, %cst_15 [2] : vector<4x8x8xf32> to vector<4x8xf32>
    %26 = vector.shape_cast %25 : vector<4x8xf32> to vector<4x8x1xf32>
    %27 = vector.broadcast %26 : vector<4x8x1xf32> to vector<4x8x8xf32>
    %28 = arith.subf %24, %27 : vector<4x8x8xf32>
    %29 = math.exp %28 : vector<4x8x8xf32>
    %cst_16 = arith.constant dense<0.000000e+00> : vector<4x8xf32>
    %30 = vector.multi_reduction <add>, %29, %cst_16 [2] : vector<4x8x8xf32> to vector<4x8xf32>
    %31 = vector.shape_cast %30 : vector<4x8xf32> to vector<4x8x1xf32>
    %32 = vector.broadcast %31 : vector<4x8x1xf32> to vector<4x8x8xf32>
    %33 = arith.divf %29, %32 : vector<4x8x8xf32>
    %34 = arith.truncf %33 : vector<4x8x8xf32> to vector<4x8x8xbf16>
    %35 = arith.truncf %2 : vector<4x8x256xf32> to vector<4x8x256xbf16>
    "tpu.trace_start"() <{level = 10 : i32, message = "gcd,gdn->gcn"}> : () -> ()
    %cst_17 = arith.constant dense<0.000000e+00> : vector<4x8x256xf32>
    %36 = tpu.matmul %34, %35, %cst_17 {dimension_numbers = #tpu.dot_dimension_numbers<[2], [1], [1], [2], [0, 0, 0, 1, 1, 2], [0], [0]>} : vector<4x8x8xbf16>, vector<4x8x256xbf16>, vector<4x8x256xf32> -> vector<4x8x256xf32>
    "tpu.trace_stop"() : () -> ()
    %c0_18 = arith.constant 0 : index
    %c0_19 = arith.constant 0 : index
    %c0_20 = arith.constant 0 : index
    %37 = vector.load %arg5[%c0_18, %c0_19, %c0_20] : memref<4x8x256xf32, #tpu.memory_space<vmem>>, vector<4x8x256xf32>
    tpu.vector_store %arg5[%c0_18, %c0_19, %c0_20], %36 {strides = array<i32>} : memref<4x8x256xf32, #tpu.memory_space<vmem>>, vector<4x8x256xf32>,
    return
  }
  func.func @transform_0(%arg0: i32) -> (i32, i32, i32) {
    %c0_i32 = arith.constant 0 : i32
    %c0_i32_0 = arith.constant 0 : i32
    %c0_i32_1 = arith.constant 0 : i32
    return %arg0, %c0_i32, %c0_i32_0 : i32, i32, i32
  }
  func.func @transform_1(%arg0: i32) -> (i32, i32, i32) {
    %c0_i32 = arith.constant 0 : i32
    %c0_i32_0 = arith.constant 0 : i32
    %c0_i32_1 = arith.constant 0 : i32
    return %arg0, %c0_i32, %c0_i32_0 : i32, i32, i32
  }
  func.func @transform_2(%arg0: i32) -> (i32, i32, i32) {
    %c0_i32 = arith.constant 0 : i32
    %c0_i32_0 = arith.constant 0 : i32
    %c0_i32_1 = arith.constant 0 : i32
    return %arg0, %c0_i32, %c0_i32_0 : i32, i32, i32
  }
  func.func @transform_3(%arg0: i32) -> (i32, i32, i32) {
    %c0_i32 = arith.constant 0 : i32
    %c0_i32_0 = arith.constant 0 : i32
    %c0_i32_1 = arith.constant 0 : i32
    return %arg0, %c0_i32, %c0_i32_0 : i32, i32, i32
  }
  func.func @transform_4(%arg0: i32) -> (i32, i32, i32) {
    %c0_i32 = arith.constant 0 : i32
    %c0_i32_0 = arith.constant 0 : i32
    %c0_i32_1 = arith.constant 0 : i32
    return %arg0, %c0_i32, %c0_i32_0 : i32, i32, i32
  }
}

module attributes {stable_mosaic.version = 11 : i64} {
  func.func @_matmul_bias_res_kernel(%arg0: i32, %arg1: i32, %arg2: memref<256x16xbf16, #tpu.memory_space<vmem>>, %arg3: memref<16x128xbf16, #tpu.memory_space<vmem>>, %arg4: memref<1x128xf32, #tpu.memory_space<vmem>>, %arg5: memref<256x128xf32, #tpu.memory_space<vmem>>, %arg6: memref<256x128xf32, #tpu.memory_space<vmem>>) attributes {dimension_semantics = [#tpu.dimension_semantics<parallel>, #tpu.dimension_semantics<parallel>], iteration_bounds = array<i64: 2, 1>, scalar_prefetch = 0 : i64, scratch_operands = 0 : i64, tpu.core_type = #tpu.core_type<tc>, window_params = [{transform_indices = @transform_0, window_bounds = array<i64: 256, 16>}, {transform_indices = @transform_1, window_bounds = array<i64: 16, 128>}, {transform_indices = @transform_2, window_bounds = array<i64: 1, 128>}, {transform_indices = @transform_3, window_bounds = array<i64: 256, 128>}, {transform_indices = @transform_4, window_bounds = array<i64: 256, 128>}]} {
    %c0 = arith.constant 0 : index
    %c0_0 = arith.constant 0 : index
    %0 = vector.load %arg2[%c0, %c0_0] : memref<256x16xbf16, #tpu.memory_space<vmem>>, vector<256x16xbf16>
    %c0_1 = arith.constant 0 : index
    %c0_2 = arith.constant 0 : index
    %1 = vector.load %arg3[%c0_1, %c0_2] : memref<16x128xbf16, #tpu.memory_space<vmem>>, vector<16x128xbf16>
    %cst = arith.constant dense<0.000000e+00> : vector<256x128xf32>
    %2 = tpu.matmul %0, %1, %cst {dimension_numbers = #tpu.dot_dimension_numbers<[1], [0], [0], [1], [0, 0, 1, 1], [], []>} : vector<256x16xbf16>, vector<16x128xbf16>, vector<256x128xf32> -> vector<256x128xf32>
    %c0_3 = arith.constant 0 : index
    %c0_4 = arith.constant 0 : index
    %3 = vector.load %arg4[%c0_3, %c0_4] : memref<1x128xf32, #tpu.memory_space<vmem>>, vector<1x128xf32>
    %4 = vector.broadcast %3 : vector<1x128xf32> to vector<256x128xf32>
    %5 = arith.addf %2, %4 : vector<256x128xf32>
    %c0_5 = arith.constant 0 : index
    %c0_6 = arith.constant 0 : index
    %6 = vector.load %arg5[%c0_5, %c0_6] : memref<256x128xf32, #tpu.memory_space<vmem>>, vector<256x128xf32>
    %7 = arith.addf %5, %6 : vector<256x128xf32>
    %c0_7 = arith.constant 0 : index
    %c0_8 = arith.constant 0 : index
    %8 = vector.load %arg6[%c0_7, %c0_8] : memref<256x128xf32, #tpu.memory_space<vmem>>, vector<256x128xf32>
    tpu.vector_store %arg6[%c0_7, %c0_8], %7 {strides = array<i32>} : memref<256x128xf32, #tpu.memory_space<vmem>>, vector<256x128xf32>,
    return
  }
  func.func @transform_0(%arg0: i32, %arg1: i32) -> (i32, i32) {
    %c0_i32 = arith.constant 0 : i32
    %c0_i32_0 = arith.constant 0 : i32
    return %arg0, %c0_i32 : i32, i32
  }
  func.func @transform_1(%arg0: i32, %arg1: i32) -> (i32, i32) {
    %c0_i32 = arith.constant 0 : i32
    %c0_i32_0 = arith.constant 0 : i32
    return %c0_i32, %arg1 : i32, i32
  }
  func.func @transform_2(%arg0: i32, %arg1: i32) -> (i32, i32) {
    %c0_i32 = arith.constant 0 : i32
    %c0_i32_0 = arith.constant 0 : i32
    return %c0_i32, %arg1 : i32, i32
  }
  func.func @transform_3(%arg0: i32, %arg1: i32) -> (i32, i32) {
    %c0_i32 = arith.constant 0 : i32
    return %arg0, %arg1 : i32, i32
  }
  func.func @transform_4(%arg0: i32, %arg1: i32) -> (i32, i32) {
    %c0_i32 = arith.constant 0 : i32
    return %arg0, %arg1 : i32, i32
  }
}

module attributes {stable_mosaic.version = 11 : i64} {
  func.func @_dwconv3x3_kernel(%arg0: i32, %arg1: memref<1x18x18x64xf32, #tpu.memory_space<vmem>>, %arg2: memref<9x64xf32, #tpu.memory_space<vmem>>, %arg3: memref<1x64xf32, #tpu.memory_space<vmem>>, %arg4: memref<1x16x16x64xf32, #tpu.memory_space<vmem>>) attributes {dimension_semantics = [#tpu.dimension_semantics<parallel>], iteration_bounds = array<i64: 2>, scalar_prefetch = 0 : i64, scratch_operands = 0 : i64, tpu.core_type = #tpu.core_type<tc>, window_params = [{transform_indices = @transform_0, window_bounds = array<i64: 1, 18, 18, 64>}, {pipeline_mode = #tpu.pipeline_mode<synchronous>, transform_indices = @transform_1, window_bounds = array<i64: 9, 64>}, {pipeline_mode = #tpu.pipeline_mode<synchronous>, transform_indices = @transform_2, window_bounds = array<i64: 1, 64>}, {transform_indices = @transform_3, window_bounds = array<i64: 1, 16, 16, 64>}]} {
    %c0 = arith.constant 0 : index
    %c0_0 = arith.constant 0 : index
    %c0_1 = arith.constant 0 : index
    %c0_2 = arith.constant 0 : index
    %0 = vector.load %arg1[%c0, %c0_0, %c0_1, %c0_2] : memref<1x18x18x64xf32, #tpu.memory_space<vmem>>, vector<1x18x18x64xf32>
    %1 = vector.shape_cast %0 : vector<1x18x18x64xf32> to vector<18x18x64xf32>
    %c0_3 = arith.constant 0 : index
    %c0_4 = arith.constant 0 : index
    %2 = vector.load %arg2[%c0_3, %c0_4] : memref<9x64xf32, #tpu.memory_space<vmem>>, vector<9x64xf32>
    %cst = arith.constant 0.000000e+00 : f32
    %3 = vector.broadcast %cst : f32 to vector<16x16x64xf32>
    %4 = vector.extract_strided_slice %1 {offsets = [0, 0, 0], sizes = [16, 16, 64], strides = [1, 1, 1]} : vector<18x18x64xf32> to vector<16x16x64xf32>
    %5 = vector.extract_strided_slice %2 {offsets = [0, 0], sizes = [1, 64], strides = [1, 1]} : vector<9x64xf32> to vector<1x64xf32>
    %6 = vector.shape_cast %5 : vector<1x64xf32> to vector<64xf32>
    %7 = vector.shape_cast %6 : vector<64xf32> to vector<1x1x64xf32>
    %8 = vector.broadcast %7 : vector<1x1x64xf32> to vector<16x16x64xf32>
    %9 = arith.mulf %4, %8 : vector<16x16x64xf32>
    %10 = arith.addf %3, %9 : vector<16x16x64xf32>
    %11 = vector.extract_strided_slice %1 {offsets = [0, 1, 0], sizes = [16, 16, 64], strides = [1, 1, 1]} : vector<18x18x64xf32> to vector<16x16x64xf32>
    %12 = vector.extract_strided_slice %2 {offsets = [1, 0], sizes = [1, 64], strides = [1, 1]} : vector<9x64xf32> to vector<1x64xf32>
    %13 = vector.shape_cast %12 : vector<1x64xf32> to vector<64xf32>
    %14 = vector.shape_cast %13 : vector<64xf32> to vector<1x1x64xf32>
    %15 = vector.broadcast %14 : vector<1x1x64xf32> to vector<16x16x64xf32>
    %16 = arith.mulf %11, %15 : vector<16x16x64xf32>
    %17 = arith.addf %10, %16 : vector<16x16x64xf32>
    %18 = vector.extract_strided_slice %1 {offsets = [0, 2, 0], sizes = [16, 16, 64], strides = [1, 1, 1]} : vector<18x18x64xf32> to vector<16x16x64xf32>
    %19 = vector.extract_strided_slice %2 {offsets = [2, 0], sizes = [1, 64], strides = [1, 1]} : vector<9x64xf32> to vector<1x64xf32>
    %20 = vector.shape_cast %19 : vector<1x64xf32> to vector<64xf32>
    %21 = vector.shape_cast %20 : vector<64xf32> to vector<1x1x64xf32>
    %22 = vector.broadcast %21 : vector<1x1x64xf32> to vector<16x16x64xf32>
    %23 = arith.mulf %18, %22 : vector<16x16x64xf32>
    %24 = arith.addf %17, %23 : vector<16x16x64xf32>
    %25 = vector.extract_strided_slice %1 {offsets = [1, 0, 0], sizes = [16, 16, 64], strides = [1, 1, 1]} : vector<18x18x64xf32> to vector<16x16x64xf32>
    %26 = vector.extract_strided_slice %2 {offsets = [3, 0], sizes = [1, 64], strides = [1, 1]} : vector<9x64xf32> to vector<1x64xf32>
    %27 = vector.shape_cast %26 : vector<1x64xf32> to vector<64xf32>
    %28 = vector.shape_cast %27 : vector<64xf32> to vector<1x1x64xf32>
    %29 = vector.broadcast %28 : vector<1x1x64xf32> to vector<16x16x64xf32>
    %30 = arith.mulf %25, %29 : vector<16x16x64xf32>
    %31 = arith.addf %24, %30 : vector<16x16x64xf32>
    %32 = vector.extract_strided_slice %1 {offsets = [1, 1, 0], sizes = [16, 16, 64], strides = [1, 1, 1]} : vector<18x18x64xf32> to vector<16x16x64xf32>
    %33 = vector.extract_strided_slice %2 {offsets = [4, 0], sizes = [1, 64], strides = [1, 1]} : vector<9x64xf32> to vector<1x64xf32>
    %34 = vector.shape_cast %33 : vector<1x64xf32> to vector<64xf32>
    %35 = vector.shape_cast %34 : vector<64xf32> to vector<1x1x64xf32>
    %36 = vector.broadcast %35 : vector<1x1x64xf32> to vector<16x16x64xf32>
    %37 = arith.mulf %32, %36 : vector<16x16x64xf32>
    %38 = arith.addf %31, %37 : vector<16x16x64xf32>
    %39 = vector.extract_strided_slice %1 {offsets = [1, 2, 0], sizes = [16, 16, 64], strides = [1, 1, 1]} : vector<18x18x64xf32> to vector<16x16x64xf32>
    %40 = vector.extract_strided_slice %2 {offsets = [5, 0], sizes = [1, 64], strides = [1, 1]} : vector<9x64xf32> to vector<1x64xf32>
    %41 = vector.shape_cast %40 : vector<1x64xf32> to vector<64xf32>
    %42 = vector.shape_cast %41 : vector<64xf32> to vector<1x1x64xf32>
    %43 = vector.broadcast %42 : vector<1x1x64xf32> to vector<16x16x64xf32>
    %44 = arith.mulf %39, %43 : vector<16x16x64xf32>
    %45 = arith.addf %38, %44 : vector<16x16x64xf32>
    %46 = vector.extract_strided_slice %1 {offsets = [2, 0, 0], sizes = [16, 16, 64], strides = [1, 1, 1]} : vector<18x18x64xf32> to vector<16x16x64xf32>
    %47 = vector.extract_strided_slice %2 {offsets = [6, 0], sizes = [1, 64], strides = [1, 1]} : vector<9x64xf32> to vector<1x64xf32>
    %48 = vector.shape_cast %47 : vector<1x64xf32> to vector<64xf32>
    %49 = vector.shape_cast %48 : vector<64xf32> to vector<1x1x64xf32>
    %50 = vector.broadcast %49 : vector<1x1x64xf32> to vector<16x16x64xf32>
    %51 = arith.mulf %46, %50 : vector<16x16x64xf32>
    %52 = arith.addf %45, %51 : vector<16x16x64xf32>
    %53 = vector.extract_strided_slice %1 {offsets = [2, 1, 0], sizes = [16, 16, 64], strides = [1, 1, 1]} : vector<18x18x64xf32> to vector<16x16x64xf32>
    %54 = vector.extract_strided_slice %2 {offsets = [7, 0], sizes = [1, 64], strides = [1, 1]} : vector<9x64xf32> to vector<1x64xf32>
    %55 = vector.shape_cast %54 : vector<1x64xf32> to vector<64xf32>
    %56 = vector.shape_cast %55 : vector<64xf32> to vector<1x1x64xf32>
    %57 = vector.broadcast %56 : vector<1x1x64xf32> to vector<16x16x64xf32>
    %58 = arith.mulf %53, %57 : vector<16x16x64xf32>
    %59 = arith.addf %52, %58 : vector<16x16x64xf32>
    %60 = vector.extract_strided_slice %1 {offsets = [2, 2, 0], sizes = [16, 16, 64], strides = [1, 1, 1]} : vector<18x18x64xf32> to vector<16x16x64xf32>
    %61 = vector.extract_strided_slice %2 {offsets = [8, 0], sizes = [1, 64], strides = [1, 1]} : vector<9x64xf32> to vector<1x64xf32>
    %62 = vector.shape_cast %61 : vector<1x64xf32> to vector<64xf32>
    %63 = vector.shape_cast %62 : vector<64xf32> to vector<1x1x64xf32>
    %64 = vector.broadcast %63 : vector<1x1x64xf32> to vector<16x16x64xf32>
    %65 = arith.mulf %60, %64 : vector<16x16x64xf32>
    %66 = arith.addf %59, %65 : vector<16x16x64xf32>
    %c0_5 = arith.constant 0 : index
    %c0_6 = arith.constant 0 : index
    %67 = vector.load %arg3[%c0_5, %c0_6] : memref<1x64xf32, #tpu.memory_space<vmem>>, vector<1x64xf32>
    %68 = vector.shape_cast %67 : vector<1x64xf32> to vector<64xf32>
    %69 = vector.shape_cast %68 : vector<64xf32> to vector<1x1x64xf32>
    %70 = vector.broadcast %69 : vector<1x1x64xf32> to vector<16x16x64xf32>
    %71 = arith.addf %66, %70 : vector<16x16x64xf32>
    %c0_7 = arith.constant 0 : index
    %c0_8 = arith.constant 0 : index
    %c0_9 = arith.constant 0 : index
    %c0_10 = arith.constant 0 : index
    %72 = vector.load %arg4[%c0_7, %c0_8, %c0_9, %c0_10] : memref<1x16x16x64xf32, #tpu.memory_space<vmem>>, vector<1x16x16x64xf32>
    %73 = vector.shape_cast %72 : vector<1x16x16x64xf32> to vector<16x16x64xf32>
    %74 = vector.shape_cast %71 : vector<16x16x64xf32> to vector<1x16x16x64xf32>
    tpu.vector_store %arg4[%c0_7, %c0_8, %c0_9, %c0_10], %74 {strides = array<i32>} : memref<1x16x16x64xf32, #tpu.memory_space<vmem>>, vector<1x16x16x64xf32>,
    return
  }
  func.func @transform_0(%arg0: i32) -> (i32, i32, i32, i32) {
    %c0_i32 = arith.constant 0 : i32
    %c0_i32_0 = arith.constant 0 : i32
    %c0_i32_1 = arith.constant 0 : i32
    %c0_i32_2 = arith.constant 0 : i32
    return %arg0, %c0_i32, %c0_i32_0, %c0_i32_1 : i32, i32, i32, i32
  }
  func.func @transform_1(%arg0: i32) -> (i32, i32) {
    %c0_i32 = arith.constant 0 : i32
    %c0_i32_0 = arith.constant 0 : i32
    %c0_i32_1 = arith.constant 0 : i32
    return %c0_i32, %c0_i32_0 : i32, i32
  }
  func.func @transform_2(%arg0: i32) -> (i32, i32) {
    %c0_i32 = arith.constant 0 : i32
    %c0_i32_0 = arith.constant 0 : i32
    %c0_i32_1 = arith.constant 0 : i32
    return %c0_i32, %c0_i32_0 : i32, i32
  }
  func.func @transform_3(%arg0: i32) -> (i32, i32, i32, i32) {
    %c0_i32 = arith.constant 0 : i32
    %c0_i32_0 = arith.constant 0 : i32
    %c0_i32_1 = arith.constant 0 : i32
    %c0_i32_2 = arith.constant 0 : i32
    return %arg0, %c0_i32, %c0_i32_0, %c0_i32_1 : i32, i32, i32, i32
  }
}

module attributes {stable_mosaic.version = 11 : i64} {
  func.func @_matmul_bias_res_kernel(%arg0: i32, %arg1: i32, %arg2: memref<256x32xbf16, #tpu.memory_space<vmem>>, %arg3: memref<32x128xbf16, #tpu.memory_space<vmem>>, %arg4: memref<1x128xf32, #tpu.memory_space<vmem>>, %arg5: memref<256x128xf32, #tpu.memory_space<vmem>>, %arg6: memref<256x128xf32, #tpu.memory_space<vmem>>) attributes {dimension_semantics = [#tpu.dimension_semantics<parallel>, #tpu.dimension_semantics<parallel>], iteration_bounds = array<i64: 2, 1>, scalar_prefetch = 0 : i64, scratch_operands = 0 : i64, tpu.core_type = #tpu.core_type<tc>, window_params = [{transform_indices = @transform_0, window_bounds = array<i64: 256, 32>}, {transform_indices = @transform_1, window_bounds = array<i64: 32, 128>}, {transform_indices = @transform_2, window_bounds = array<i64: 1, 128>}, {transform_indices = @transform_3, window_bounds = array<i64: 256, 128>}, {transform_indices = @transform_4, window_bounds = array<i64: 256, 128>}]} {
    %c0 = arith.constant 0 : index
    %c0_0 = arith.constant 0 : index
    %0 = vector.load %arg2[%c0, %c0_0] : memref<256x32xbf16, #tpu.memory_space<vmem>>, vector<256x32xbf16>
    %c0_1 = arith.constant 0 : index
    %c0_2 = arith.constant 0 : index
    %1 = vector.load %arg3[%c0_1, %c0_2] : memref<32x128xbf16, #tpu.memory_space<vmem>>, vector<32x128xbf16>
    %cst = arith.constant dense<0.000000e+00> : vector<256x128xf32>
    %2 = tpu.matmul %0, %1, %cst {dimension_numbers = #tpu.dot_dimension_numbers<[1], [0], [0], [1], [0, 0, 1, 1], [], []>} : vector<256x32xbf16>, vector<32x128xbf16>, vector<256x128xf32> -> vector<256x128xf32>
    %c0_3 = arith.constant 0 : index
    %c0_4 = arith.constant 0 : index
    %3 = vector.load %arg4[%c0_3, %c0_4] : memref<1x128xf32, #tpu.memory_space<vmem>>, vector<1x128xf32>
    %4 = vector.broadcast %3 : vector<1x128xf32> to vector<256x128xf32>
    %5 = arith.addf %2, %4 : vector<256x128xf32>
    %c0_5 = arith.constant 0 : index
    %c0_6 = arith.constant 0 : index
    %6 = vector.load %arg5[%c0_5, %c0_6] : memref<256x128xf32, #tpu.memory_space<vmem>>, vector<256x128xf32>
    %7 = arith.addf %5, %6 : vector<256x128xf32>
    %c0_7 = arith.constant 0 : index
    %c0_8 = arith.constant 0 : index
    %8 = vector.load %arg6[%c0_7, %c0_8] : memref<256x128xf32, #tpu.memory_space<vmem>>, vector<256x128xf32>
    tpu.vector_store %arg6[%c0_7, %c0_8], %7 {strides = array<i32>} : memref<256x128xf32, #tpu.memory_space<vmem>>, vector<256x128xf32>,
    return
  }
  func.func @transform_0(%arg0: i32, %arg1: i32) -> (i32, i32) {
    %c0_i32 = arith.constant 0 : i32
    %c0_i32_0 = arith.constant 0 : i32
    return %arg0, %c0_i32 : i32, i32
  }
  func.func @transform_1(%arg0: i32, %arg1: i32) -> (i32, i32) {
    %c0_i32 = arith.constant 0 : i32
    %c0_i32_0 = arith.constant 0 : i32
    return %c0_i32, %arg1 : i32, i32
  }
  func.func @transform_2(%arg0: i32, %arg1: i32) -> (i32, i32) {
    %c0_i32 = arith.constant 0 : i32
    %c0_i32_0 = arith.constant 0 : i32
    return %c0_i32, %arg1 : i32, i32
  }
  func.func @transform_3(%arg0: i32, %arg1: i32) -> (i32, i32) {
    %c0_i32 = arith.constant 0 : i32
    return %arg0, %arg1 : i32, i32
  }
  func.func @transform_4(%arg0: i32, %arg1: i32) -> (i32, i32) {
    %c0_i32 = arith.constant 0 : i32
    return %arg0, %arg1 : i32, i32
  }
}

module attributes {stable_mosaic.version = 11 : i64} {
  func.func @_matmul_bias_res_kernel(%arg0: i32, %arg1: i32, %arg2: memref<256x144xbf16, #tpu.memory_space<vmem>>, %arg3: memref<144x128xbf16, #tpu.memory_space<vmem>>, %arg4: memref<1x128xf32, #tpu.memory_space<vmem>>, %arg5: memref<256x128xf32, #tpu.memory_space<vmem>>, %arg6: memref<256x128xf32, #tpu.memory_space<vmem>>) attributes {dimension_semantics = [#tpu.dimension_semantics<parallel>, #tpu.dimension_semantics<parallel>], iteration_bounds = array<i64: 2, 1>, scalar_prefetch = 0 : i64, scratch_operands = 0 : i64, tpu.core_type = #tpu.core_type<tc>, window_params = [{transform_indices = @transform_0, window_bounds = array<i64: 256, 144>}, {transform_indices = @transform_1, window_bounds = array<i64: 144, 128>}, {transform_indices = @transform_2, window_bounds = array<i64: 1, 128>}, {transform_indices = @transform_3, window_bounds = array<i64: 256, 128>}, {transform_indices = @transform_4, window_bounds = array<i64: 256, 128>}]} {
    %c0 = arith.constant 0 : index
    %c0_0 = arith.constant 0 : index
    %0 = vector.load %arg2[%c0, %c0_0] : memref<256x144xbf16, #tpu.memory_space<vmem>>, vector<256x144xbf16>
    %c0_1 = arith.constant 0 : index
    %c0_2 = arith.constant 0 : index
    %1 = vector.load %arg3[%c0_1, %c0_2] : memref<144x128xbf16, #tpu.memory_space<vmem>>, vector<144x128xbf16>
    %cst = arith.constant dense<0.000000e+00> : vector<256x128xf32>
    %2 = tpu.matmul %0, %1, %cst {dimension_numbers = #tpu.dot_dimension_numbers<[1], [0], [0], [1], [0, 0, 1, 1], [], []>} : vector<256x144xbf16>, vector<144x128xbf16>, vector<256x128xf32> -> vector<256x128xf32>
    %c0_3 = arith.constant 0 : index
    %c0_4 = arith.constant 0 : index
    %3 = vector.load %arg4[%c0_3, %c0_4] : memref<1x128xf32, #tpu.memory_space<vmem>>, vector<1x128xf32>
    %4 = vector.broadcast %3 : vector<1x128xf32> to vector<256x128xf32>
    %5 = arith.addf %2, %4 : vector<256x128xf32>
    %c0_5 = arith.constant 0 : index
    %c0_6 = arith.constant 0 : index
    %6 = vector.load %arg5[%c0_5, %c0_6] : memref<256x128xf32, #tpu.memory_space<vmem>>, vector<256x128xf32>
    %7 = arith.addf %5, %6 : vector<256x128xf32>
    %c0_7 = arith.constant 0 : index
    %c0_8 = arith.constant 0 : index
    %8 = vector.load %arg6[%c0_7, %c0_8] : memref<256x128xf32, #tpu.memory_space<vmem>>, vector<256x128xf32>
    tpu.vector_store %arg6[%c0_7, %c0_8], %7 {strides = array<i32>} : memref<256x128xf32, #tpu.memory_space<vmem>>, vector<256x128xf32>,
    return
  }
  func.func @transform_0(%arg0: i32, %arg1: i32) -> (i32, i32) {
    %c0_i32 = arith.constant 0 : i32
    %c0_i32_0 = arith.constant 0 : i32
    return %arg0, %c0_i32 : i32, i32
  }
  func.func @transform_1(%arg0: i32, %arg1: i32) -> (i32, i32) {
    %c0_i32 = arith.constant 0 : i32
    %c0_i32_0 = arith.constant 0 : i32
    return %c0_i32, %arg1 : i32, i32
  }
  func.func @transform_2(%arg0: i32, %arg1: i32) -> (i32, i32) {
    %c0_i32 = arith.constant 0 : i32
    %c0_i32_0 = arith.constant 0 : i32
    return %c0_i32, %arg1 : i32, i32
  }
  func.func @transform_3(%arg0: i32, %arg1: i32) -> (i32, i32) {
    %c0_i32 = arith.constant 0 : i32
    return %arg0, %arg1 : i32, i32
  }
  func.func @transform_4(%arg0: i32, %arg1: i32) -> (i32, i32) {
    %c0_i32 = arith.constant 0 : i32
    return %arg0, %arg1 : i32, i32
  }
}

</mosaic_0001>

<bundles_post_ra>
// kernel: res_transformer_group_forward.15
= control target key start
LH: loop header
LB: loop body
LE: loop exit
PB: predicated region body
PF: predicated region fallthrough
CT: control target
= control target key end

     0   :  { %s1411_s18 = smov 0   ;;  %s1413_s19 = smov 0   ;;  %s2001_s0 = inlined_call_operand.vmem [shape: f32[512,16], index: 0, kind: input, shape index: {}]   ;;  %s2002_s1 = inlined_call_operand.vmem [shape: f32[1,16], index: 1, kind: input, shape index: {}]   ;;  %s2003_s2 = inlined_call_operand.vmem [shape: f32[1,16], index: 2, kind: input, shape index: {}]   ;;  %s2004_s3 = inlined_call_operand.vmem [shape: bf16[16,128], index: 3, kind: input, shape index: {}]   ;;  %s2005_s4 = inlined_call_operand.vmem [shape: f32[1,128], index: 4, kind: input, shape index: {}]   ;;  %s2006_s5 = inlined_call_operand.vmem [shape: f32[512,128], index: 5, kind: output, shape index: {}]  }
   0x1   :  { %s1415_s20 = smov 0  }
   0x2 LB: > { %s27_s21 = sadd.s32 1, %s1375_s19  ;;  %p1188_p0 = scmp.ge.s32.totalorder %s1379_s20, 1  ;;  %s1379_s20 = sphi %s1415_s20, %s15_s20   ;;  %s1375_s19 = sphi %s1413_s19, %s2008_s19   ;;  %s1371_s18 = sphi %s1411_s18, %s2007_s18  }
   0x3   : > { %p29_p1 = scmp.ge.s32.totalorder %s27_s21, 2  ;;  %p219_p2 = scmp.lt.s32.totalorder %s1379_s20, 3 }
   0x5   : > { %s2010_s21 = smov (%p29_p1, %s27_s21), 0  ;;  %p220_p3 = pnand %p1188_p0, %p219_p2 }
   0x6   : > { %s1189_s22 = sshll.u32 (!%p220_p3), %s1371_s18, 5  ;;  %vm312_vm0 = vcmask (!%p220_p3), 130048  }
   0x7   : > { %223 = sbr.rel (%p220_p3) target bundleno = 615 (0x267), region = 40  ;;  %p258_p4 = scmp.lt.s32.totalorder (!%p220_p3), %s1189_s22, 63 }
   0xe   : > { %s2012_s22 = smov (!%p258_p4, %s1189_s22), 63 }
   0xf   : > { %s1190_s23 = sshll.u32 %s2012_s22, 3 }
  0x10   : > { %s1437_s26 = scalar_lea.vmem %s2001_s0, %s1190_s23  ;;  %s1926_s12 = scalar_lea.vmem %s2006_s5, %s1190_s23 }
  0x11   : > { %v1440_v0 = vld [vmem:[%s1437_s26] sm:$0xff]  ;;  %v1446_v2 = vld [vmem:[%s1437_s26 + $0x8] sm:$0xff]  ;;  %v1460_v8 = vld [vmem:[%s1437_s26 + $0x10] sm:$0xff] }
  0x12   : > { %v1443_v1 = vld [vmem:[%s1437_s26 + $0x80] sm:$0xff]  ;;  %v313_v3 = vsel %vm312_vm0, %v1440_v0, 0.0  ;;  %v1453_v5 = vld [vmem:[%s1437_s26 + $0x88] sm:$0xff]  ;;  %v316_v6 = vsel %vm312_vm0, %v1446_v2, 0.0  ;;  %v1463_v9 = vld [vmem:[%s1437_s26 + $0x18] sm:$0xff]  ;;  %v319_v10 = vsel %vm312_vm0, %v1460_v8, 0.0 }
  0x13   : > { %v361_v4 = vsel %vm312_vm0, %v1443_v1, 0.0  ;;  %314 = vadd.xlane.f32.xlu0 %v313_v3  ;;  %v364_v7 = vsel %vm312_vm0, %v1453_v5, 0.0  ;;  %v322_v11 = vsel %vm312_vm0, %v1463_v9, 0.0  ;;  %v1470_v12 = vld [vmem:[%s1437_s26 + $0x90] sm:$0xff]  ;;  %v1473_v13 = vld [vmem:[%s1437_s26 + $0x98] sm:$0xff]  ;;  %v1480_v16 = vld [vmem:[%s1437_s26 + $0x20] sm:$0xff] }
  0x14   : > { %362 = vadd.xlane.f32.xlu1 %v361_v4  ;;  %v367_v14 = vsel %vm312_vm0, %v1470_v12, 0.0  ;;  %v370_v15 = vsel %vm312_vm0, %v1473_v13, 0.0  ;;  %v1483_v17 = vld [vmem:[%s1437_s26 + $0x28] sm:$0xff]  ;;  %v325_v18 = vsel %vm312_vm0, %v1480_v16, 0.0  ;;  %v1490_v20 = vld [vmem:[%s1437_s26 + $0xa0] sm:$0xff]  ;;  %v1500_v24 = vld [vmem:[%s1437_s26 + $0x30] sm:$0xff] }
  0x15   : > { %v328_v19 = vsel %vm312_vm0, %v1483_v17, 0.0  ;;  %v1493_v21 = vld [vmem:[%s1437_s26 + $0xa8] sm:$0xff]  ;;  %v373_v22 = vsel %vm312_vm0, %v1490_v20, 0.0  ;;  %v1503_v25 = vld [vmem:[%s1437_s26 + $0x38] sm:$0xff]  ;;  %v331_v26 = vsel %vm312_vm0, %v1500_v24, 0.0  ;;  %v1510_v28 = vld [vmem:[%s1437_s26 + $0xb0] sm:$0xff] }
  0x16   : > { %v376_v23 = vsel %vm312_vm0, %v1493_v21, 0.0  ;;  %v334_v27 = vsel %vm312_vm0, %v1503_v25, 0.0  ;;  %v1513_v29 = vld [vmem:[%s1437_s26 + $0xb8] sm:$0xff]  ;;  %v379_v30 = vsel %vm312_vm0, %v1510_v28, 0.0  ;;  %v1520_v32 = vld [vmem:[%s1437_s26 + $0x40] sm:$0xff]  ;;  %v1523_v33 = vld [vmem:[%s1437_s26 + $0x48] sm:$0xff] }
  0x17   : > { %317 = vadd.xlane.f32.xlu0 %v316_v6  ;;  %v382_v31 = vsel %vm312_vm0, %v1513_v29, 0.0  ;;  %v337_v34 = vsel %vm312_vm0, %v1520_v32, 0.0  ;;  %v340_v35 = vsel %vm312_vm0, %v1523_v33, 0.0  ;;  %v1530_v36 = vld [vmem:[%s1437_s26 + $0xc0] sm:$0xff]  ;;  %v1533_v37 = vld [vmem:[%s1437_s26 + $0xc8] sm:$0xff]  ;;  %v1540_v40 = vld [vmem:[%s1437_s26 + $0x50] sm:$0xff] }
  0x18   : > { %365 = vadd.xlane.f32.xlu1 %v364_v7  ;;  %v385_v38 = vsel %vm312_vm0, %v1530_v36, 0.0  ;;  %v388_v39 = vsel %vm312_vm0, %v1533_v37, 0.0  ;;  %v1543_v41 = vld [vmem:[%s1437_s26 + $0x58] sm:$0xff]  ;;  %v343_v42 = vsel %vm312_vm0, %v1540_v40, 0.0  ;;  %v1550_v44 = vld [vmem:[%s1437_s26 + $0xd0] sm:$0xff]  ;;  %v1560_v48 = vld [vmem:[%s1437_s26 + $0x60] sm:$0xff] }
  0x19   : > { %v346_v43 = vsel %vm312_vm0, %v1543_v41, 0.0  ;;  %v1553_v45 = vld [vmem:[%s1437_s26 + $0xd8] sm:$0xff]  ;;  %v391_v46 = vsel %vm312_vm0, %v1550_v44, 0.0  ;;  %v1563_v49 = vld [vmem:[%s1437_s26 + $0x68] sm:$0xff]  ;;  %v349_v50 = vsel %vm312_vm0, %v1560_v48, 0.0  ;;  %v1570_v52 = vld [vmem:[%s1437_s26 + $0xe0] sm:$0xff] }
  0x1a   : > { %v394_v47 = vsel %vm312_vm0, %v1553_v45, 0.0  ;;  %v352_v51 = vsel %vm312_vm0, %v1563_v49, 0.0  ;;  %v1573_v53 = vld [vmem:[%s1437_s26 + $0xe8] sm:$0xff]  ;;  %v397_v54 = vsel %vm312_vm0, %v1570_v52, 0.0  ;;  %v1580_v56 = vld [vmem:[%s1437_s26 + $0x70] sm:$0xff]  ;;  %v1583_v57 = vld [vmem:[%s1437_s26 + $0x78] sm:$0xff] }
  0x1b   : > { %320 = vadd.xlane.f32.xlu0 %v319_v10  ;;  %v400_v55 = vsel %vm312_vm0, %v1573_v53, 0.0  ;;  %v355_v58 = vsel %vm312_vm0, %v1580_v56, 0.0  ;;  %v358_v59 = vsel %vm312_vm0, %v1583_v57, 0.0  ;;  %v1590_v60 = vld [vmem:[%s1437_s26 + $0xf0] sm:$0xff]  ;;  %v1593_v61 = vld [vmem:[%s1437_s26 + $0xf8] sm:$0xff] }
  0x1c   : > { %323 = vadd.xlane.f32.xlu1 %v322_v11  ;;  %v403_v62 = vsel %vm312_vm0, %v1590_v60, 0.0  ;;  %v406_v63 = vsel %vm312_vm0, %v1593_v61, 0.0 }
  0x1f   : > { %368 = vadd.xlane.f32.xlu0 %v367_v14 }
  0x20   : > { %371 = vadd.xlane.f32.xlu1 %v370_v15 }
  0x23   : > { %326 = vadd.xlane.f32.xlu0 %v325_v18 }
  0x24   : > { %329 = vadd.xlane.f32.xlu1 %v328_v19 }
  0x27   : > { %374 = vadd.xlane.f32.xlu0 %v373_v22 }
  0x28   : > { %377 = vadd.xlane.f32.xlu1 %v376_v23 }
  0x2b   : > { %332 = vadd.xlane.f32.xlu0 %v331_v26 }
  0x2c   : > { %335 = vadd.xlane.f32.xlu1 %v334_v27 }
  0x2f   : > { %380 = vadd.xlane.f32.xlu0 %v379_v30 }
  0x30   : > { %383 = vadd.xlane.f32.xlu1 %v382_v31 }
  0x33   : > { %338 = vadd.xlane.f32.xlu0 %v337_v34 }
  0x34   : > { %341 = vadd.xlane.f32.xlu1 %v340_v35 }
  0x37   : > { %386 = vadd.xlane.f32.xlu0 %v385_v38 }
  0x38   : > { %389 = vadd.xlane.f32.xlu1 %v388_v39 }
  0x3b   : > { %344 = vadd.xlane.f32.xlu0 %v343_v42 }
  0x3c   : > { %347 = vadd.xlane.f32.xlu1 %v346_v43 }
  0x3f   : > { %392 = vadd.xlane.f32.xlu0 %v391_v46 }
  0x40   : > { %395 = vadd.xlane.f32.xlu1 %v394_v47 }
  0x43   : > { %350 = vadd.xlane.f32.xlu0 %v349_v50 }
  0x44   : > { %353 = vadd.xlane.f32.xlu1 %v352_v51 }
  0x47   : > { %398 = vadd.xlane.f32.xlu0 %v397_v54 }
  0x48   : > { %401 = vadd.xlane.f32.xlu1 %v400_v55 }
  0x4b   : > { %356 = vadd.xlane.f32.xlu0 %v355_v58 }
  0x4c   : > { %359 = vadd.xlane.f32.xlu1 %v358_v59 }
  0x4f   : > { %404 = vadd.xlane.f32.xlu0 %v403_v62 }
  0x50   : > { %407 = vadd.xlane.f32.xlu1 %v406_v63 }
  0xa0   : > { %v315_v3 = vpop.xlane.xlu0 %314 }
  0xa1   : > { %v363_v4 = vpop.xlane.xlu1 %362  ;;  %v410_v6 = vmul.f32 0.0625, %v315_v3 }
  0xa2   : > { %v426_v7 = vmul.f32 0.0625, %v363_v4 }
  0xa3   : > { %v1600_v10 = vsub.f32 %v1440_v0, %v410_v6 }
  0xa4   : > { %v1603_v11 = vsub.f32 %v1443_v1, %v426_v7  ;;  %v318_v14 = vpop.xlane.xlu0 %317 }
  0xa5   : > { %v366_v15 = vpop.xlane.xlu1 %365  ;;  %v411_v18 = vmul.f32 0.0625, %v318_v14  ;;  %v474_v22 = vmul.f32 %v1600_v10, %v1600_v10 }
  0xa6   : > { %v427_v19 = vmul.f32 0.0625, %v366_v15  ;;  %v490_v23 = vmul.f32 %v1603_v11, %v1603_v11 }
  0xa7   : > { %v1610_v26 = vsub.f32 %v1446_v2, %v411_v18  ;;  %v506_v0 = vsel %vm312_vm0, %v474_v22, 0.0 }
  0xa8   : > { %v1613_v27 = vsub.f32 %v1453_v5, %v427_v19  ;;  %507 = vadd.xlane.f32.xlu0 %v506_v0  ;;  %v321_v1 = vpop.xlane.xlu0 %320  ;;  %v554_v31 = vsel %vm312_vm0, %v490_v23, 0.0 }
  0xa9   : > { %v324_v30 = vpop.xlane.xlu1 %323  ;;  %v412_v34 = vmul.f32 0.0625, %v321_v1  ;;  %v475_v38 = vmul.f32 %v1610_v26, %v1610_v26 }
  0xaa   : > { %v413_v35 = vmul.f32 0.0625, %v324_v30  ;;  %v491_v39 = vmul.f32 %v1613_v27, %v1613_v27 }
  0xab   : > { %v1622_v2 = vsub.f32 %v1460_v8, %v412_v34  ;;  %v509_v42 = vsel %vm312_vm0, %v475_v38, 0.0 }
  0xac   : > { %v1625_v5 = vsub.f32 %v1463_v9, %v413_v35  ;;  %555 = vadd.xlane.f32.xlu0 %v554_v31  ;;  %510 = vadd.xlane.f32.xlu1 %v509_v42  ;;  %v369_v43 = vpop.xlane.xlu0 %368  ;;  %v557_v47 = vsel %vm312_vm0, %v491_v39, 0.0 }
  0xad   : > { %v372_v46 = vpop.xlane.xlu1 %371  ;;  %v428_v50 = vmul.f32 0.0625, %v369_v43  ;;  %v476_v54 = vmul.f32 %v1622_v2, %v1622_v2 }
  0xae   : > { %v429_v51 = vmul.f32 0.0625, %v372_v46  ;;  %v477_v8 = vmul.f32 %v1625_v5, %v1625_v5 }
  0xaf   : > { %v1634_v55 = vsub.f32 %v1470_v12, %v428_v50  ;;  %v512_v58 = vsel %vm312_vm0, %v476_v54, 0.0 }
  0xb0   : > { %v1637_v9 = vsub.f32 %v1473_v13, %v429_v51  ;;  %558 = vadd.xlane.f32.xlu1 %v557_v47  ;;  %513 = vadd.xlane.f32.xlu0 %v512_v58  ;;  %v327_v59 = vpop.xlane.xlu0 %326  ;;  %v515_v63 = vsel %vm312_vm0, %v477_v8, 0.0 }
  0xb1   : > { %v330_v62 = vpop.xlane.xlu1 %329  ;;  %v414_v3 = vmul.f32 0.0625, %v327_v59  ;;  %v492_v6 = vmul.f32 %v1634_v55, %v1634_v55 }
  0xb2   : > { %v415_v4 = vmul.f32 0.0625, %v330_v62  ;;  %v493_v12 = vmul.f32 %v1637_v9, %v1637_v9 }
  0xb3   : > { %v1646_v7 = vsub.f32 %v1480_v16, %v414_v3  ;;  %v560_v14 = vsel %vm312_vm0, %v492_v6, 0.0 }
  0xb4   : > { %v1649_v13 = vsub.f32 %v1483_v17, %v415_v4  ;;  %516 = vadd.xlane.f32.xlu1 %v515_v63  ;;  %561 = vadd.xlane.f32.xlu0 %v560_v14  ;;  %v375_v15 = vpop.xlane.xlu0 %374  ;;  %v563_v19 = vsel %vm312_vm0, %v493_v12, 0.0 }
  0xb5   : > { %v378_v18 = vpop.xlane.xlu1 %377  ;;  %v430_v22 = vmul.f32 0.0625, %v375_v15  ;;  %v478_v0 = vmul.f32 %v1646_v7, %v1646_v7 }
  0xb6   : > { %v431_v23 = vmul.f32 0.0625, %v378_v18  ;;  %v479_v16 = vmul.f32 %v1649_v13, %v1649_v13 }
  0xb7   : > { %v1658_v1 = vsub.f32 %v1490_v20, %v430_v22  ;;  %v518_v30 = vsel %vm312_vm0, %v478_v0, 0.0 }
  0xb8   : > { %v1661_v17 = vsub.f32 %v1493_v21, %v431_v23  ;;  %564 = vadd.xlane.f32.xlu1 %v563_v19  ;;  %519 = vadd.xlane.f32.xlu0 %v518_v30  ;;  %v333_v31 = vpop.xlane.xlu0 %332  ;;  %v521_v35 = vsel %vm312_vm0, %v479_v16, 0.0 }
  0xb9   : > { %v336_v34 = vpop.xlane.xlu1 %335  ;;  %v416_v38 = vmul.f32 0.0625, %v333_v31  ;;  %v494_v42 = vmul.f32 %v1658_v1, %v1658_v1 }
  0xba   : > { %v417_v39 = vmul.f32 0.0625, %v336_v34  ;;  %v495_v20 = vmul.f32 %v1661_v17, %v1661_v17 }
  0xbb   : > { %v1670_v43 = vsub.f32 %v1500_v24, %v416_v38  ;;  %v566_v46 = vsel %vm312_vm0, %v494_v42, 0.0 }
  0xbc   : > { %v1673_v21 = vsub.f32 %v1503_v25, %v417_v39  ;;  %522 = vadd.xlane.f32.xlu1 %v521_v35  ;;  %567 = vadd.xlane.f32.xlu0 %v566_v46  ;;  %v381_v47 = vpop.xlane.xlu0 %380  ;;  %v569_v51 = vsel %vm312_vm0, %v495_v20, 0.0 }
  0xbd   : > { %v384_v50 = vpop.xlane.xlu1 %383  ;;  %v432_v54 = vmul.f32 0.0625, %v381_v47  ;;  %v480_v58 = vmul.f32 %v1670_v43, %v1670_v43 }
  0xbe   : > { %v433_v8 = vmul.f32 0.0625, %v384_v50  ;;  %v481_v24 = vmul.f32 %v1673_v21, %v1673_v21 }
  0xbf   : > { %v1682_v59 = vsub.f32 %v1510_v28, %v432_v54  ;;  %v524_v62 = vsel %vm312_vm0, %v480_v58, 0.0 }
  0xc0   : > { %v1685_v25 = vsub.f32 %v1513_v29, %v433_v8  ;;  %570 = vadd.xlane.f32.xlu1 %v569_v51  ;;  %525 = vadd.xlane.f32.xlu0 %v524_v62  ;;  %v339_v63 = vpop.xlane.xlu0 %338  ;;  %v527_v4 = vsel %vm312_vm0, %v481_v24, 0.0 }
  0xc1   : > { %v342_v3 = vpop.xlane.xlu1 %341  ;;  %v418_v6 = vmul.f32 0.0625, %v339_v63  ;;  %v496_v14 = vmul.f32 %v1682_v59, %v1682_v59 }
  0xc2   : > { %v419_v12 = vmul.f32 0.0625, %v342_v3  ;;  %v497_v28 = vmul.f32 %v1685_v25, %v1685_v25 }
  0xc3   : > { %v1694_v15 = vsub.f32 %v1520_v32, %v418_v6  ;;  %v572_v18 = vsel %vm312_vm0, %v496_v14, 0.0 }
  0xc4   : > { %v1697_v29 = vsub.f32 %v1523_v33, %v419_v12  ;;  %528 = vadd.xlane.f32.xlu1 %v527_v4  ;;  %573 = vadd.xlane.f32.xlu0 %v572_v18  ;;  %v387_v19 = vpop.xlane.xlu0 %386  ;;  %v575_v23 = vsel %vm312_vm0, %v497_v28, 0.0 }
  0xc5   : > { %v390_v22 = vpop.xlane.xlu1 %389  ;;  %v434_v0 = vmul.f32 0.0625, %v387_v19  ;;  %v482_v30 = vmul.f32 %v1694_v15, %v1694_v15 }
  0xc6   : > { %v435_v16 = vmul.f32 0.0625, %v390_v22  ;;  %v483_v32 = vmul.f32 %v1697_v29, %v1697_v29 }
  0xc7   : > { %v1706_v31 = vsub.f32 %v1530_v36, %v434_v0  ;;  %v530_v34 = vsel %vm312_vm0, %v482_v30, 0.0  ;;  %v1292_v30 = vld [vmem:[%s2004_s3] sm:$0xff]  }
  0xc8   : > { %v1709_v33 = vsub.f32 %v1533_v37, %v435_v16  ;;  %576 = vadd.xlane.f32.xlu1 %v575_v23  ;;  %531 = vadd.xlane.f32.xlu0 %v530_v34  ;;  %v345_v35 = vpop.xlane.xlu0 %344  ;;  %v533_v39 = vsel %vm312_vm0, %v483_v32, 0.0 }
  0xc9   : > { %v348_v38 = vpop.xlane.xlu1 %347  ;;  %v420_v42 = vmul.f32 0.0625, %v345_v35  ;;  %v498_v46 = vmul.f32 %v1706_v31, %v1706_v31  ;;  %1232 = vmatprep.subr.bf16.mxu0 %v1292_v30  ;;  %1266 = vmatprep.subr.bf16.mxu1 %v1292_v30 }
  0xca   : > { %v421_v20 = vmul.f32 0.0625, %v348_v38  ;;  %v499_v36 = vmul.f32 %v1709_v33, %v1709_v33  ;;  %1233 = vmatpush3.bf16.msra.mxu0 %v1292_v30  ;;  %1267 = vmatpush3.bf16.msra.mxu1 %v1292_v30 }
  0xcb   : > { %v1718_v47 = vsub.f32 %v1540_v40, %v420_v42  ;;  %v578_v50 = vsel %vm312_vm0, %v498_v46, 0.0 }
  0xcc   : > { %v1721_v37 = vsub.f32 %v1543_v41, %v421_v20  ;;  %534 = vadd.xlane.f32.xlu1 %v533_v39  ;;  %579 = vadd.xlane.f32.xlu0 %v578_v50  ;;  %v393_v51 = vpop.xlane.xlu0 %392  ;;  %v581_v8 = vsel %vm312_vm0, %v499_v36, 0.0 }
  0xcd   : > { %v396_v54 = vpop.xlane.xlu1 %395  ;;  %v436_v58 = vmul.f32 0.0625, %v393_v51  ;;  %v484_v62 = vmul.f32 %v1718_v47, %v1718_v47 }
  0xce   : > { %v437_v24 = vmul.f32 0.0625, %v396_v54  ;;  %v485_v40 = vmul.f32 %v1721_v37, %v1721_v37 }
  0xcf   : > { %v1730_v63 = vsub.f32 %v1550_v44, %v436_v58  ;;  %v536_v3 = vsel %vm312_vm0, %v484_v62, 0.0 }
  0xd0   : > { %v1733_v41 = vsub.f32 %v1553_v45, %v437_v24  ;;  %582 = vadd.xlane.f32.xlu1 %v581_v8  ;;  %537 = vadd.xlane.f32.xlu0 %v536_v3  ;;  %v351_v4 = vpop.xlane.xlu0 %350  ;;  %v539_v12 = vsel %vm312_vm0, %v485_v40, 0.0 }
  0xd1   : > { %v354_v6 = vpop.xlane.xlu1 %353  ;;  %v422_v14 = vmul.f32 0.0625, %v351_v4  ;;  %v500_v18 = vmul.f32 %v1730_v63, %v1730_v63 }
  0xd2   : > { %v423_v28 = vmul.f32 0.0625, %v354_v6  ;;  %v501_v44 = vmul.f32 %v1733_v41, %v1733_v41 }
  0xd3   : > { %v1742_v19 = vsub.f32 %v1560_v48, %v422_v14  ;;  %v584_v22 = vsel %vm312_vm0, %v500_v18, 0.0 }
  0xd4   : > { %v1745_v45 = vsub.f32 %v1563_v49, %v423_v28  ;;  %540 = vadd.xlane.f32.xlu1 %v539_v12  ;;  %585 = vadd.xlane.f32.xlu0 %v584_v22  ;;  %v399_v23 = vpop.xlane.xlu0 %398  ;;  %v587_v16 = vsel %vm312_vm0, %v501_v44, 0.0 }
  0xd5   : > { %v402_v0 = vpop.xlane.xlu1 %401  ;;  %v438_v32 = vmul.f32 0.0625, %v399_v23  ;;  %v486_v48 = vmul.f32 %v1742_v19, %v1742_v19 }
  0xd6   : > { %v439_v34 = vmul.f32 0.0625, %v402_v0  ;;  %v487_v49 = vmul.f32 %v1745_v45, %v1745_v45 }
  0xd7   : > { %v1757_v35 = vsub.f32 %v1570_v52, %v438_v32  ;;  %v542_v39 = vsel %vm312_vm0, %v486_v48, 0.0 }
  0xd8   : > { %v1760_v38 = vsub.f32 %v1573_v53, %v439_v34  ;;  %588 = vadd.xlane.f32.xlu1 %v587_v16  ;;  %543 = vadd.xlane.f32.xlu0 %v542_v39  ;;  %v357_v42 = vpop.xlane.xlu0 %356  ;;  %v545_v46 = vsel %vm312_vm0, %v487_v49, 0.0 }
  0xd9   : > { %v360_v20 = vpop.xlane.xlu1 %359  ;;  %v424_v36 = vmul.f32 0.0625, %v357_v42  ;;  %v502_v51 = vmul.f32 %v1757_v35, %v1757_v35 }
  0xda   : > { %v425_v50 = vmul.f32 0.0625, %v360_v20  ;;  %v503_v52 = vmul.f32 %v1760_v38, %v1760_v38 }
  0xdb   : > { %v1769_v53 = vsub.f32 %v1580_v56, %v424_v36  ;;  %v590_v8 = vsel %vm312_vm0, %v502_v51, 0.0 }
  0xdc   : > { %v1772_v54 = vsub.f32 %v1583_v57, %v425_v50  ;;  %546 = vadd.xlane.f32.xlu1 %v545_v46  ;;  %591 = vadd.xlane.f32.xlu0 %v590_v8  ;;  %v405_v58 = vpop.xlane.xlu0 %404  ;;  %v593_v62 = vsel %vm312_vm0, %v503_v52, 0.0 }
  0xdd   : > { %v408_v24 = vpop.xlane.xlu1 %407  ;;  %v440_v40 = vmul.f32 0.0625, %v405_v58  ;;  %v488_v4 = vmul.f32 %v1769_v53, %v1769_v53 }
  0xde   : > { %v441_v3 = vmul.f32 0.0625, %v408_v24  ;;  %v489_v56 = vmul.f32 %v1772_v54, %v1772_v54 }
  0xdf   : > { %v1781_v6 = vsub.f32 %v1590_v60, %v440_v40  ;;  %v548_v12 = vsel %vm312_vm0, %v488_v4, 0.0 }
  0xe0   : > { %v1784_v57 = vsub.f32 %v1593_v61, %v441_v3  ;;  %594 = vadd.xlane.f32.xlu1 %v593_v62  ;;  %549 = vadd.xlane.f32.xlu0 %v548_v12  ;;  %v551_v14 = vsel %vm312_vm0, %v489_v56, 0.0 }
  0xe1   : > { %v504_v28 = vmul.f32 %v1781_v6, %v1781_v6 }
  0xe2   : > { %v505_v18 = vmul.f32 %v1784_v57, %v1784_v57 }
  0xe3   : > { %v596_v44 = vsel %vm312_vm0, %v504_v28, 0.0 }
  0xe4   : > { %552 = vadd.xlane.f32.xlu1 %v551_v14  ;;  %597 = vadd.xlane.f32.xlu0 %v596_v44  ;;  %v599_v60 = vsel %vm312_vm0, %v505_v18, 0.0  ;;  %v1798_v14 = vld [vmem:[%s2002_s1] ss:$0 sm:$0xff] }
  0xe8   : > { %600 = vadd.xlane.f32.xlu1 %v599_v60 }
 0x135   : > { %v508_v61 = vpop.xlane.xlu0 %507 }
 0x136   : > { %v602_v22 = vmul.f32 0.0625, %v508_v61 }
 0x138   : > { %v634_v23 = vadd.f32 1e-05, %v602_v22 }
 0x139   : > { %v511_v0 = vpop.xlane.xlu1 %510  ;;  %v556_v16 = vpop.xlane.xlu0 %555 }
 0x13a   : > { %1293 = vrsqrt.f32 %v634_v23  ;;  %v603_v30 = vmul.f32 0.0625, %v511_v0  ;;  %v618_v32 = vmul.f32 0.0625, %v556_v16 }
 0x13c   : > { %v635_v34 = vadd.f32 1e-05, %v603_v30  ;;  %v650_v48 = vadd.f32 1e-05, %v618_v32  ;;  %v1805_v30 = vld [vmem:[%s2003_s2] ss:$0 sm:$0xff] }
 0x13d   : > { %v559_v49 = vpop.xlane.xlu1 %558  ;;  %v514_v39 = vpop.xlane.xlu0 %513 }
 0x13e   : > { %1295 = vrsqrt.f32 %v635_v34  ;;  %v619_v42 = vmul.f32 0.0625, %v559_v49  ;;  %v604_v20 = vmul.f32 0.0625, %v514_v39 }
 0x13f   : > { %1297 = vrsqrt.f32 %v650_v48 }
 0x140   : > { %v651_v46 = vadd.f32 1e-05, %v619_v42  ;;  %v636_v36 = vadd.f32 1e-05, %v604_v20 }
 0x141   : > { %v517_v50 = vpop.xlane.xlu1 %516  ;;  %v562_v51 = vpop.xlane.xlu0 %561 }
 0x142   : > { %1299 = vrsqrt.f32 %v651_v46  ;;  %v605_v52 = vmul.f32 0.0625, %v517_v50  ;;  %v620_v8 = vmul.f32 0.0625, %v562_v51 }
 0x143   : > { %1301 = vrsqrt.f32 %v636_v36 }
 0x144   : > { %v1294_v58 = vpop.eup %1293  ;;  %v637_v24 = vadd.f32 1e-05, %v605_v52  ;;  %v652_v62 = vadd.f32 1e-05, %v620_v8 }
 0x145   : > { %v565_v40 = vpop.xlane.xlu1 %564  ;;  %v520_v3 = vpop.xlane.xlu0 %519  ;;  %v698_v4 = vmul.f32 %v1294_v58, %v1600_v10 }
 0x146   : > { %1303 = vrsqrt.f32 %v637_v24  ;;  %v621_v56 = vmul.f32 0.0625, %v565_v40  ;;  %v606_v12 = vmul.f32 0.0625, %v520_v3 }
 0x147   : > { %1305 = vrsqrt.f32 %v652_v62  ;;  %v737_v0 = vmul.f32 %v1798_v14, %v698_v4 }
 0x148   : > { %v1296_v28 = vpop.eup %1295  ;;  %v653_v18 = vadd.f32 1e-05, %v621_v56  ;;  %v638_v44 = vadd.f32 1e-05, %v606_v12 }
 0x149   : > { %v1298_v60 = vpop.eup %1297  ;;  %v523_v61 = vpop.xlane.xlu1 %522  ;;  %v699_v23 = vmul.f32 %v1296_v28, %v1610_v26  ;;  %v776_v46 = vadd.f32 %v1805_v30, %v737_v0 }
 0x14a   : > { %v568_v22 = vpop.xlane.xlu0 %567  ;;  %1307 = vrsqrt.f32 %v653_v18  ;;  %v607_v10 = vmul.f32 0.0625, %v523_v61  ;;  %v714_v32 = vmul.f32 %v1298_v60, %v1603_v11 }
 0x14b   : > { %v622_v16 = vmul.f32 0.0625, %v568_v22  ;;  %1309 = vrsqrt.f32 %v638_v44  ;;  %v738_v34 = vmul.f32 %v1798_v14, %v699_v23 }
 0x14c   : > { %v1300_v48 = vpop.eup %1299  ;;  %v639_v49 = vadd.f32 1e-05, %v607_v10  ;;  %v753_v51 = vmul.f32 %v1798_v14, %v714_v32 }
 0x14d   : > { %v654_v39 = vadd.f32 1e-05, %v622_v16  ;;  %v1302_v42 = vpop.eup %1301  ;;  %v571_v26 = vpop.xlane.xlu1 %570  ;;  %v777_v36 = vadd.f32 %v1805_v30, %v738_v34  ;;  %v715_v50 = vmul.f32 %v1300_v48, %v1613_v27 }
 0x14e   : > { %v526_v20 = vpop.xlane.xlu0 %525  ;;  %v700_v52 = vmul.f32 %v1302_v42, %v1622_v2  ;;  %1311 = vrsqrt.f32 %v639_v49  ;;  %v623_v11 = vmul.f32 0.0625, %v571_v26  ;;  %v792_v28 = vadd.f32 %v1805_v30, %v753_v51 }
 0x14f   : > { %v608_v8 = vmul.f32 0.0625, %v526_v20  ;;  %1313 = vrsqrt.f32 %v654_v39  ;;  %v808_v58 = vpack.c.bf16 %v777_v36, %v776_v46  ;;  %v754_v24 = vmul.f32 %v1798_v14, %v715_v50 }
 0x150   : > { %v1304_v62 = vpop.eup %1303  ;;  %v655_v40 = vadd.f32 1e-05, %v623_v11  ;;  %v739_v18 = vmul.f32 %v1798_v14, %v700_v52 }
 0x151   : > { %v640_v3 = vadd.f32 1e-05, %v608_v8  ;;  %v1306_v4 = vpop.eup %1305  ;;  %v701_v56 = vmul.f32 %v1304_v62, %v1625_v5  ;;  %v529_v12 = vpop.xlane.xlu1 %528  ;;  %1234 = vmatprep.mubr.msk.bf16.mxu0 %vm312_vm0, %v808_v58  ;;  %v793_v2 = vadd.f32 %v1805_v30, %v754_v24 }
 0x152   : > { %v574_v27 = vpop.xlane.xlu0 %573  ;;  %v716_v44 = vmul.f32 %v1306_v4, %v1634_v55  ;;  %1315 = vrsqrt.f32 %v655_v40  ;;  %v609_v60 = vmul.f32 0.0625, %v529_v12  ;;  %v778_v49 = vadd.f32 %v1805_v30, %v739_v18 }
 0x153   : > { %v624_v61 = vmul.f32 0.0625, %v574_v27  ;;  %1317 = vrsqrt.f32 %v640_v3  ;;  %v816_v22 = vpack.c.bf16 %v793_v2, %v792_v28  ;;  %v740_v23 = vmul.f32 %v1798_v14, %v701_v56 }
 0x154   : > { %v1308_v5 = vpop.eup %1307  ;;  %v641_v0 = vadd.f32 1e-05, %v609_v60  ;;  %v755_v39 = vmul.f32 %v1798_v14, %v716_v44 }
 0x155   : > { %v656_v10 = vadd.f32 1e-05, %v624_v61  ;;  %v1310_v16 = vpop.eup %1309  ;;  %v717_v32 = vmul.f32 %v1308_v5, %v1637_v9  ;;  %v577_v34 = vpop.xlane.xlu1 %576  ;;  %1250 = vmatprep.mubr.msk.bf16.mxu1 %vm312_vm0, %v816_v22  ;;  %v779_v55 = vadd.f32 %v1805_v30, %v740_v23 }
 0x156   : > { %v532_v48 = vpop.xlane.xlu0 %531  ;;  %v702_v42 = vmul.f32 %v1310_v16, %v1646_v7  ;;  %1319 = vrsqrt.f32 %v641_v0  ;;  %v625_v26 = vmul.f32 0.0625, %v577_v34  ;;  %v794_v24 = vadd.f32 %v1805_v30, %v755_v39 }
 0x157   : > { %v610_v20 = vmul.f32 0.0625, %v532_v48  ;;  %1321 = vrsqrt.f32 %v656_v10  ;;  %v809_v46 = vpack.c.bf16 %v779_v55, %v778_v49  ;;  %v756_v36 = vmul.f32 %v1798_v14, %v717_v32 }
 0x158   : > { %v1312_v9 = vpop.eup %1311  ;;  %v657_v50 = vadd.f32 1e-05, %v625_v26  ;;  %v741_v62 = vmul.f32 %v1798_v14, %v702_v42 }
 0x159   : > { %v642_v51 = vadd.f32 1e-05, %v610_v20  ;;  %v1314_v52 = vpop.eup %1313  ;;  %v703_v11 = vmul.f32 %v1312_v9, %v1649_v13  ;;  %v535_v8 = vpop.xlane.xlu1 %534  ;;  %1235 = vmatmul.mubr.msk.bf16.vlgmr.msra.gmra.mrb[0].mxu0 %vm312_vm0, %v809_v46  ;;  %v795_v7 = vadd.f32 %v1805_v30, %v756_v36 }
 0x15a   : > { %v580_v58 = vpop.xlane.xlu0 %579  ;;  %v718_v40 = vmul.f32 %v1314_v52, %v1658_v1  ;;  %1323 = vrsqrt.f32 %v657_v50  ;;  %v611_v3 = vmul.f32 0.0625, %v535_v8  ;;  %v780_v61 = vadd.f32 %v1805_v30, %v741_v62 }
 0x15b   : > { %v626_v4 = vmul.f32 0.0625, %v580_v58  ;;  %1325 = vrsqrt.f32 %v642_v51  ;;  %v817_v56 = vpack.c.bf16 %v795_v7, %v794_v24  ;;  %v742_v12 = vmul.f32 %v1798_v14, %v703_v11 }
 0x15c   : > { %v1316_v13 = vpop.eup %1315  ;;  %v643_v27 = vadd.f32 1e-05, %v611_v3  ;;  %v757_v22 = vmul.f32 %v1798_v14, %v718_v40 }
 0x15d   : > { %v658_v28 = vadd.f32 1e-05, %v626_v4  ;;  %v1318_v2 = vpop.eup %1317  ;;  %v719_v18 = vmul.f32 %v1316_v13, %v1661_v17  ;;  %v583_v44 = vpop.xlane.xlu1 %582  ;;  %1251 = vmatmul.mubr.msk.bf16.vlgmr.msra.gmra.mrb[0].mxu1 %vm312_vm0, %v817_v56  ;;  %v781_v1 = vadd.f32 %v1805_v30, %v742_v12 }
 0x15e   : > { %v538_v60 = vpop.xlane.xlu0 %537  ;;  %v704_v23 = vmul.f32 %v1318_v2, %v1670_v43  ;;  %1327 = vrsqrt.f32 %v643_v27  ;;  %v627_v5 = vmul.f32 0.0625, %v583_v44  ;;  %v796_v42 = vadd.f32 %v1805_v30, %v757_v22 }
 0x15f   : > { %v612_v0 = vmul.f32 0.0625, %v538_v60  ;;  %1329 = vrsqrt.f32 %v658_v28  ;;  %v810_v10 = vpack.c.bf16 %v781_v1, %v780_v61  ;;  %v758_v16 = vmul.f32 %v1798_v14, %v719_v18 }
 0x160   : > { %v1320_v17 = vpop.eup %1319  ;;  %v659_v32 = vadd.f32 1e-05, %v627_v5  ;;  %v743_v26 = vmul.f32 %v1798_v14, %v704_v23 }
 0x161   : > { %v644_v34 = vadd.f32 1e-05, %v612_v0  ;;  %v1322_v48 = vpop.eup %1321  ;;  %v705_v49 = vmul.f32 %v1320_v17, %v1673_v21  ;;  %v541_v55 = vpop.xlane.xlu1 %540  ;;  %1238 = vmatprep.mubr.msk.bf16.mxu0 %vm312_vm0, %v810_v10  ;;  %v797_v43 = vadd.f32 %v1805_v30, %v758_v16 }
 0x162   : > { %v586_v39 = vpop.xlane.xlu0 %585  ;;  %v720_v20 = vmul.f32 %v1322_v48, %v1682_v59  ;;  %1331 = vrsqrt.f32 %v659_v32  ;;  %v613_v46 = vmul.f32 0.0625, %v541_v55  ;;  %v782_v7 = vadd.f32 %v1805_v30, %v743_v26 }
 0x163   : > { %v628_v36 = vmul.f32 0.0625, %v586_v39  ;;  %1333 = vrsqrt.f32 %v644_v34  ;;  %v818_v9 = vpack.c.bf16 %v797_v43, %v796_v42  ;;  %v744_v50 = vmul.f32 %v1798_v14, %v705_v49 }
 0x164   : > { %v1324_v21 = vpop.eup %1323  ;;  %v645_v51 = vadd.f32 1e-05, %v613_v46  ;;  %v759_v62 = vmul.f32 %v1798_v14, %v720_v20 }
 0x165   : > { %v660_v52 = vadd.f32 1e-05, %v628_v36  ;;  %v1326_v11 = vpop.eup %1325  ;;  %v721_v8 = vmul.f32 %v1324_v21, %v1685_v25  ;;  %v589_v58 = vpop.xlane.xlu1 %588  ;;  %1254 = vmatprep.mubr.msk.bf16.mxu1 %vm312_vm0, %v818_v9  ;;  %v783_v59 = vadd.f32 %v1805_v30, %v744_v50 }
 0x166   : > { %v544_v24 = vpop.xlane.xlu0 %543  ;;  %v706_v40 = vmul.f32 %v1326_v11, %v1694_v15  ;;  %1335 = vrsqrt.f32 %v645_v51  ;;  %v629_v3 = vmul.f32 0.0625, %v589_v58  ;;  %v798_v60 = vadd.f32 %v1805_v30, %v759_v62 }
 0x167   : > { %v614_v4 = vmul.f32 0.0625, %v544_v24  ;;  %1337 = vrsqrt.f32 %v660_v52  ;;  %v811_v56 = vpack.c.bf16 %v783_v59, %v782_v7  ;;  %v760_v12 = vmul.f32 %v1798_v14, %v721_v8 }
 0x168   : > { %v1328_v25 = vpop.eup %1327  ;;  %v661_v13 = vadd.f32 1e-05, %v629_v3  ;;  %v745_v61 = vmul.f32 %v1798_v14, %v706_v40 }
 0x169   : > { %v646_v27 = vadd.f32 1e-05, %v614_v4  ;;  %v1330_v28 = vpop.eup %1329  ;;  %v707_v2 = vmul.f32 %v1328_v25, %v1697_v29  ;;  %v547_v18 = vpop.xlane.xlu1 %546  ;;  %1239 = vmatmul.mubr.msk.bf16.gmra.mrb[4].mxu0 %vm312_vm0, %v811_v56  ;;  %v799_v15 = vadd.f32 %v1805_v30, %v760_v12 }
 0x16a   : > { %v592_v44 = vpop.xlane.xlu0 %591  ;;  %v722_v1 = vmul.f32 %v1330_v28, %v1706_v31  ;;  %1339 = vrsqrt.f32 %v661_v13  ;;  %v615_v22 = vmul.f32 0.0625, %v547_v18  ;;  %v784_v49 = vadd.f32 %v1805_v30, %v745_v61 }
 0x16b   : > { %v630_v23 = vmul.f32 0.0625, %v592_v44  ;;  %1341 = vrsqrt.f32 %v646_v27  ;;  %v819_v5 = vpack.c.bf16 %v799_v15, %v798_v60  ;;  %v746_v0 = vmul.f32 %v1798_v14, %v707_v2 }
 0x16c   : > { %v1332_v29 = vpop.eup %1331  ;;  %v647_v10 = vadd.f32 1e-05, %v615_v22  ;;  %v761_v55 = vmul.f32 %v1798_v14, %v722_v1 }
 0x16d   : > { %v662_v16 = vadd.f32 1e-05, %v630_v23  ;;  %v1334_v17 = vpop.eup %1333  ;;  %v723_v32 = vmul.f32 %v1332_v29, %v1709_v33  ;;  %v595_v34 = vpop.xlane.xlu1 %594  ;;  %1255 = vmatmul.mubr.msk.bf16.gmra.mrb[4].mxu1 %vm312_vm0, %v819_v5  ;;  %v785_v31 = vadd.f32 %v1805_v30, %v746_v0 }
 0x16e   : > { %v550_v48 = vpop.xlane.xlu0 %549  ;;  %v708_v39 = vmul.f32 %v1334_v17, %v1718_v47  ;;  %1343 = vrsqrt.f32 %v647_v10  ;;  %v631_v42 = vmul.f32 0.0625, %v595_v34  ;;  %v800_v52 = vadd.f32 %v1805_v30, %v761_v55 }
 0x16f   : > { %v616_v43 = vmul.f32 0.0625, %v550_v48  ;;  %1345 = vrsqrt.f32 %v662_v16  ;;  %v812_v26 = vpack.c.bf16 %v785_v31, %v784_v49  ;;  %v762_v20 = vmul.f32 %v1798_v14, %v723_v32 }
 0x170   : > { %v1336_v33 = vpop.eup %1335  ;;  %v663_v46 = vadd.f32 1e-05, %v631_v42  ;;  %v747_v11 = vmul.f32 %v1798_v14, %v708_v39 }
 0x171   : > { %v648_v36 = vadd.f32 1e-05, %v616_v43  ;;  %v1338_v9 = vpop.eup %1337  ;;  %v709_v50 = vmul.f32 %v1336_v33, %v1721_v37  ;;  %v553_v21 = vpop.xlane.xlu1 %552  ;;  %1242 = vmatprep.mubr.msk.bf16.mxu0 %vm312_vm0, %v812_v26  ;;  %v801_v47 = vadd.f32 %v1805_v30, %v762_v20 }
 0x172   : > { %v598_v51 = vpop.xlane.xlu0 %597  ;;  %v724_v8 = vmul.f32 %v1338_v9, %v1730_v63  ;;  %1347 = vrsqrt.f32 %v663_v46  ;;  %v617_v58 = vmul.f32 0.0625, %v553_v21  ;;  %v786_v12 = vadd.f32 %v1805_v30, %v747_v11 }
 0x173   : > { %v632_v24 = vmul.f32 0.0625, %v598_v51  ;;  %1349 = vrsqrt.f32 %v648_v36  ;;  %v820_v7 = vpack.c.bf16 %v801_v47, %v800_v52  ;;  %v748_v59 = vmul.f32 %v1798_v14, %v709_v50 }
 0x174   : > { %v1340_v37 = vpop.eup %1339  ;;  %v649_v62 = vadd.f32 1e-05, %v617_v58  ;;  %v763_v25 = vmul.f32 %v1798_v14, %v724_v8 }
 0x175   : > { %v664_v40 = vadd.f32 1e-05, %v632_v24  ;;  %v1342_v3 = vpop.eup %1341  ;;  %v725_v4 = vmul.f32 %v1340_v37, %v1733_v41  ;;  %v601_v56 = vpop.xlane.xlu1 %600  ;;  %1258 = vmatprep.mubr.msk.bf16.mxu1 %vm312_vm0, %v820_v7  ;;  %v787_v63 = vadd.f32 %v1805_v30, %v748_v59 }
 0x176   : > { %v710_v13 = vmul.f32 %v1342_v3, %v1742_v19  ;;  %1351 = vrsqrt.f32 %v649_v62  ;;  %v633_v27 = vmul.f32 0.0625, %v601_v56  ;;  %v802_v15 = vadd.f32 %v1805_v30, %v763_v25 }
 0x177   : > { %1353 = vrsqrt.f32 %v664_v40  ;;  %v813_v28 = vpack.c.bf16 %v787_v63, %v786_v12  ;;  %v764_v2 = vmul.f32 %v1798_v14, %v725_v4 }
 0x178   : > { %v1344_v18 = vpop.eup %1343  ;;  %v665_v44 = vadd.f32 1e-05, %v633_v27  ;;  %v749_v1 = vmul.f32 %v1798_v14, %v710_v13 }
 0x179   : > { %v1346_v41 = vpop.eup %1345  ;;  %v711_v60 = vmul.f32 %v1344_v18, %v1745_v45  ;;  %1243 = vmatmul.mubr.msk.bf16.gmra.mrb[8].mxu0 %vm312_vm0, %v813_v28  ;;  %v803_v61 = vadd.f32 %v1805_v30, %v764_v2 }
 0x17a   : > { %v726_v19 = vmul.f32 %v1346_v41, %v1757_v35  ;;  %1355 = vrsqrt.f32 %v665_v44  ;;  %v788_v45 = vadd.f32 %v1805_v30, %v749_v1 }
 0x17b   : > { %v821_v22 = vpack.c.bf16 %v803_v61, %v802_v15  ;;  %v750_v23 = vmul.f32 %v1798_v14, %v711_v60 }
 0x17c   : > { %v1348_v5 = vpop.eup %1347  ;;  %v765_v16 = vmul.f32 %v1798_v14, %v726_v19 }
 0x17d   : > { %v1350_v0 = vpop.eup %1349  ;;  %v727_v29 = vmul.f32 %v1348_v5, %v1760_v38  ;;  %1259 = vmatmul.mubr.msk.bf16.gmra.mrb[8].mxu1 %vm312_vm0, %v821_v22  ;;  %v789_v10 = vadd.f32 %v1805_v30, %v750_v23 }
 0x17e   : > { %v712_v17 = vmul.f32 %v1350_v0, %v1769_v53  ;;  %v804_v38 = vadd.f32 %v1805_v30, %v765_v16 }
 0x17f   : > { %v814_v32 = vpack.c.bf16 %v789_v10, %v788_v45  ;;  %v766_v35 = vmul.f32 %v1798_v14, %v727_v29 }
 0x180   : > { %v1352_v34 = vpop.eup %1351  ;;  %v751_v55 = vmul.f32 %v1798_v14, %v712_v17 }
 0x181   : > { %v1354_v48 = vpop.eup %1353  ;;  %v713_v49 = vmul.f32 %v1352_v34, %v1772_v54  ;;  %1246 = vmatprep.mubr.msk.bf16.mxu0 %vm312_vm0, %v814_v32  ;;  %v805_v31 = vadd.f32 %v1805_v30, %v766_v35 }
 0x182   : > { %v728_v39 = vmul.f32 %v1354_v48, %v1781_v6  ;;  %v790_v54 = vadd.f32 %v1805_v30, %v751_v55 }
 0x183   : > { %v822_v42 = vpack.c.bf16 %v805_v31, %v804_v38  ;;  %v752_v53 = vmul.f32 %v1798_v14, %v713_v49 }
 0x184   : > { %v1356_v43 = vpop.eup %1355  ;;  %v767_v33 = vmul.f32 %v1798_v14, %v728_v39 }
 0x185   : > { %v729_v26 = vmul.f32 %v1356_v43, %v1784_v57  ;;  %1262 = vmatprep.mubr.msk.bf16.mxu1 %vm312_vm0, %v822_v42  ;;  %v791_v20 = vadd.f32 %v1805_v30, %v752_v53  ;;  %v1919_v57 = vld [vmem:[%s2005_s4] ss:$0 sm:$0xff] }
 0x186   : > { %v806_v6 = vadd.f32 %v1805_v30, %v767_v33 }
 0x187   : > { %v815_v46 = vpack.c.bf16 %v791_v20, %v790_v54  ;;  %v768_v36 = vmul.f32 %v1798_v14, %v729_v26 }
 0x189   : > { %1247 = vmatmul.mubr.msk.bf16.gmra.mrb[12].mxu0 %vm312_vm0, %v815_v46  ;;  %v807_v9 = vadd.f32 %v1805_v30, %v768_v36 }
 0x18b   : > { %v823_v50 = vpack.c.bf16 %v807_v9, %v806_v6 }
 0x18d   : > { %1263 = vmatmul.mubr.msk.bf16.gmra.mrb[12].mxu1 %vm312_vm0, %v823_v50 }
 0x22c   : > { %v1236_v14 = vpop.f32.mrb[0].mxu0 }
 0x22d   : > { %v930_v30 = vadd.f32 %v1236_v14, %v1919_v57  ;;  %v921_v21 = vpop.f32.mrb[1].mxu0 }
 0x22e   : > { %v922_v51 = vadd.f32 %v1919_v57, %v921_v21  ;;  %v1237_v52 = vpop.f32.mrb[2].mxu0 }
 0x22f   : > { %1050 = vst [vmem:[%s1926_s12 + $0x10] sm:$0xff] %v930_v30  ;;  %v933_v47 = vadd.f32 %v1237_v52, %v1919_v57  ;;  %v924_v11 = vpop.f32.mrb[3].mxu0 }
 0x230   : > { %1048 = vst [vmem:[%s1926_s12] sm:$0xff] %v922_v51  ;;  %v925_v8 = vadd.f32 %v1919_v57, %v924_v11  ;;  %v1252_v58 = vpop.f32.mrb[0].mxu1 }
 0x231   : > { %1051 = vst [vmem:[%s1926_s12 + $0x18] sm:$0xff] %v933_v47  ;;  %v994_v24 = vadd.f32 %v1252_v58, %v1919_v57  ;;  %v985_v7 = vpop.f32.mrb[1].mxu1 }
 0x232   : > { %1049 = vst [vmem:[%s1926_s12 + $0x8] sm:$0xff] %v925_v8  ;;  %v986_v59 = vadd.f32 %v1919_v57, %v985_v7  ;;  %v1253_v37 = vpop.f32.mrb[2].mxu1 }
 0x233   : > { %1066 = vst [vmem:[%s1926_s12 + $0x90] sm:$0xff] %v994_v24  ;;  %v997_v62 = vadd.f32 %v1253_v37, %v1919_v57  ;;  %v988_v40 = vpop.f32.mrb[3].mxu1 }
 0x234   : > { %1064 = vst [vmem:[%s1926_s12 + $0x80] sm:$0xff] %v986_v59  ;;  %v989_v3 = vadd.f32 %v1919_v57, %v988_v40 }
 0x235   : > { %1067 = vst [vmem:[%s1926_s12 + $0x98] sm:$0xff] %v997_v62 }
 0x236   : > { %1065 = vst [vmem:[%s1926_s12 + $0x88] sm:$0xff] %v989_v3 }
 0x23c   : > { %v1240_v4 = vpop.f32.mrb[4].mxu0 }
 0x23d   : > { %v946_v56 = vadd.f32 %v1240_v4, %v1919_v57  ;;  %v937_v12 = vpop.f32.mrb[5].mxu0 }
 0x23e   : > { %v938_v63 = vadd.f32 %v1919_v57, %v937_v12  ;;  %v1241_v25 = vpop.f32.mrb[6].mxu0 }
 0x23f   : > { %1054 = vst [vmem:[%s1926_s12 + $0x30] sm:$0xff] %v946_v56  ;;  %v949_v13 = vadd.f32 %v1241_v25, %v1919_v57  ;;  %v940_v27 = vpop.f32.mrb[7].mxu0 }
 0x240   : > { %1052 = vst [vmem:[%s1926_s12 + $0x20] sm:$0xff] %v938_v63  ;;  %v941_v28 = vadd.f32 %v1919_v57, %v940_v27  ;;  %v1256_v2 = vpop.f32.mrb[4].mxu1 }
 0x241   : > { %1055 = vst [vmem:[%s1926_s12 + $0x38] sm:$0xff] %v949_v13  ;;  %v1010_v18 = vadd.f32 %v1256_v2, %v1919_v57  ;;  %v1001_v44 = vpop.f32.mrb[5].mxu1 }
 0x242   : > { %1053 = vst [vmem:[%s1926_s12 + $0x28] sm:$0xff] %v941_v28  ;;  %v1002_v41 = vadd.f32 %v1919_v57, %v1001_v44  ;;  %v1257_v60 = vpop.f32.mrb[6].mxu1 }
 0x243   : > { %1070 = vst [vmem:[%s1926_s12 + $0xb0] sm:$0xff] %v1010_v18  ;;  %v1013_v15 = vadd.f32 %v1257_v60, %v1919_v57  ;;  %v1004_v61 = vpop.f32.mrb[7].mxu1 }
 0x244   : > { %1068 = vst [vmem:[%s1926_s12 + $0xa0] sm:$0xff] %v1002_v41  ;;  %v1005_v1 = vadd.f32 %v1919_v57, %v1004_v61 }
 0x245   : > { %1071 = vst [vmem:[%s1926_s12 + $0xb8] sm:$0xff] %v1013_v15 }
 0x246   : > { %1069 = vst [vmem:[%s1926_s12 + $0xa8] sm:$0xff] %v1005_v1 }
 0x24c   : > { %v1244_v19 = vpop.f32.mrb[8].mxu0 }
 0x24d   : > { %v962_v22 = vadd.f32 %v1244_v19, %v1919_v57  ;;  %v953_v23 = vpop.f32.mrb[9].mxu0 }
 0x24e   : > { %v954_v5 = vadd.f32 %v1919_v57, %v953_v23  ;;  %v1245_v0 = vpop.f32.mrb[10].mxu0 }
 0x24f   : > { %1058 = vst [vmem:[%s1926_s12 + $0x50] sm:$0xff] %v962_v22  ;;  %v965_v29 = vadd.f32 %v1245_v0, %v1919_v57  ;;  %v956_v45 = vpop.f32.mrb[11].mxu0 }
 0x250   : > { %1056 = vst [vmem:[%s1926_s12 + $0x40] sm:$0xff] %v954_v5  ;;  %v957_v10 = vadd.f32 %v1919_v57, %v956_v45  ;;  %v1260_v16 = vpop.f32.mrb[8].mxu1 }
 0x251   : > { %1059 = vst [vmem:[%s1926_s12 + $0x58] sm:$0xff] %v965_v29  ;;  %v1026_v17 = vadd.f32 %v1260_v16, %v1919_v57  ;;  %v1017_v32 = vpop.f32.mrb[9].mxu1 }
 0x252   : > { %1057 = vst [vmem:[%s1926_s12 + $0x48] sm:$0xff] %v957_v10  ;;  %v1018_v35 = vadd.f32 %v1919_v57, %v1017_v32  ;;  %v1261_v34 = vpop.f32.mrb[10].mxu1 }
 0x253   : > { %1074 = vst [vmem:[%s1926_s12 + $0xd0] sm:$0xff] %v1026_v17  ;;  %v1029_v48 = vadd.f32 %v1261_v34, %v1919_v57  ;;  %v1020_v49 = vpop.f32.mrb[11].mxu1 }
 0x254   : > { %1072 = vst [vmem:[%s1926_s12 + $0xc0] sm:$0xff] %v1018_v35  ;;  %v1021_v38 = vadd.f32 %v1919_v57, %v1020_v49 }
 0x255   : > { %1075 = vst [vmem:[%s1926_s12 + $0xd8] sm:$0xff] %v1029_v48 }
 0x256   : > { %1073 = vst [vmem:[%s1926_s12 + $0xc8] sm:$0xff] %v1021_v38 }
 0x25c   : > { %v1248_v31 = vpop.f32.mrb[12].mxu0 }
 0x25d   : > { %v978_v55 = vadd.f32 %v1248_v31, %v1919_v57  ;;  %v969_v39 = vpop.f32.mrb[13].mxu0 }
 0x25e   : > { %v970_v42 = vadd.f32 %v1919_v57, %v969_v39  ;;  %v1249_v53 = vpop.f32.mrb[14].mxu0 }
 0x25f   : > { %1062 = vst [vmem:[%s1926_s12 + $0x70] sm:$0xff] %v978_v55  ;;  %v981_v43 = vadd.f32 %v1249_v53, %v1919_v57  ;;  %v972_v26 = vpop.f32.mrb[15].mxu0 }
 0x260   : > { %1060 = vst [vmem:[%s1926_s12 + $0x60] sm:$0xff] %v970_v42  ;;  %v973_v54 = vadd.f32 %v1919_v57, %v972_v26  ;;  %v1264_v20 = vpop.f32.mrb[12].mxu1 }
 0x261   : > { %1063 = vst [vmem:[%s1926_s12 + $0x78] sm:$0xff] %v981_v43  ;;  %v1042_v33 = vadd.f32 %v1264_v20, %v1919_v57  ;;  %v1033_v46 = vpop.f32.mrb[13].mxu1 }
 0x262   : > { %1061 = vst [vmem:[%s1926_s12 + $0x68] sm:$0xff] %v973_v54  ;;  %v1034_v36 = vadd.f32 %v1919_v57, %v1033_v46  ;;  %v1265_v6 = vpop.f32.mrb[14].mxu1 }
 0x263   : > { %1078 = vst [vmem:[%s1926_s12 + $0xf0] sm:$0xff] %v1042_v33  ;;  %v1045_v9 = vadd.f32 %v1265_v6, %v1919_v57  ;;  %v1036_v50 = vpop.f32.mrb[15].mxu1 }
 0x264   : > { %1076 = vst [vmem:[%s1926_s12 + $0xe0] sm:$0xff] %v1034_v36  ;;  %v1037_v14 = vadd.f32 %v1919_v57, %v1036_v50 }
 0x265   : > { %1079 = vst [vmem:[%s1926_s12 + $0xf8] sm:$0xff] %v1045_v9 }
 0x266   : > { %1077 = vst [vmem:[%s1926_s12 + $0xe8] sm:$0xff] %v1037_v14 }
 0x267 PF: > { %s15_s20 = sadd.s32 1, %s1379_s20   ;;  %s2007_s18 = smov %s1375_s19 }
 0x268   : > { %p12_p5 = scmp.ge.s32.totalorder %s15_s20, 4   ;;  %s2008_s19 = smov %s2010_s21 }
 0x26a   :  { %14 = sbr.rel (!%p12_p5) target bundleno = 2 (0x2), region = 76 }

// kernel: res_transformer_group_forward.16
= control target key start
LH: loop header
LB: loop body
LE: loop exit
PB: predicated region body
PF: predicated region fallthrough
CT: control target
= control target key end

     0   :  { %s2078_s12 = smov 0   ;;  %s3537_s0 = inlined_call_operand.vmem [shape: f32[2,18,18,48], index: 0, kind: input, shape index: {}]   ;;  %s3538_s1 = inlined_call_operand.vmem [shape: f32[9,48], index: 1, kind: input, shape index: {}]   ;;  %s3539_s2 = inlined_call_operand.vmem [shape: f32[1,48], index: 2, kind: input, shape index: {}]   ;;  %s3540_s3 = inlined_call_operand.vmem [shape: f32[2,16,16,48], index: 3, kind: output, shape index: {}]  }
   0x1 LB: > { %s2024_s13 = sadd.s32 4294967295, %s2056_s12   ;;  %p2028_p0 = scmp.ge.s32.totalorder %s2056_s12, 1  ;;  %s2056_s12 = sphi %s2078_s12, %s13_s12  }
   0x2   : > { %p137_p1 = scmp.lt.s32.totalorder %s2056_s12, 3 }
   0x4   : > { %p138_p2 = pnand %p2028_p0, %p137_p1 }
   0x5   : > { %p161_p3 = scmp.lt.s32.totalorder (!%p138_p2), %s2024_s13, 1  ;;  %v227_v0 = vlaneseq (!%p138_p2)  ;;  %v225_v2 = vld [vmem:[%s3538_s1] sm:$0xff] (!%p138_p2)  ;;  %vm395_vm0 = vcmask (!%p138_p2), 1046528   ;;  %vm640_vm1 = vcmask (!%p138_p2), 1045504   ;;  %v2138_v35 = vld [vmem:[%s3538_s1 + $0x8] ss:$0 sm:$0xff] (!%p138_p2) }
   0x6   : > { %141 = sbr.rel (%p138_p2) target bundleno = 319 (0x13f), region = 32  ;;  %vm1936_vm2 = vcmask (!%p138_p2), 392192  }
   0x7   : > { %v228_v1 = vshrl.u32 (!%p138_p2), %v227_v0, 7 }
   0x9   : > { %v229_v3 = vsub.s32 (!%p138_p2), 0, %v228_v1  ;;  %v297_v4 = vsub.s32 (!%p138_p2), 1, %v228_v1  ;;  %v542_v5 = vsub.s32 (!%p138_p2), 2, %v228_v1  ;;  %v787_v6 = vsub.s32 (!%p138_p2), 3, %v228_v1 }
   0xa   : > { %v855_v7 = vsub.s32 (!%p138_p2), 4, %v228_v1  ;;  %v1099_v8 = vsub.s32 (!%p138_p2), 5, %v228_v1  ;;  %v1343_v9 = vsub.s32 (!%p138_p2), 6, %v228_v1  ;;  %v1411_v10 = vsub.s32 (!%p138_p2), 7, %v228_v1 }
   0xb   : > { %v2097_v11 = vrot.slane (!%p138_p2), %v225_v2, %v229_v3  ;;  %v2099_v12 = vrot.slane (!%p138_p2), %v225_v2, %v297_v4  ;;  %v2101_v13 = vrot.slane (!%p138_p2), %v225_v2, %v542_v5  ;;  %v2105_v16 = vrot.slane (!%p138_p2), %v225_v2, %v787_v6 }
   0xc   : > { %v2107_v17 = vrot.slane (!%p138_p2), %v225_v2, %v855_v7  ;;  %v2109_v18 = vrot.slane (!%p138_p2), %v225_v2, %v1099_v8  ;;  %v2111_v19 = vrot.slane (!%p138_p2), %v225_v2, %v1343_v9  ;;  %v2122_v25 = vrot.slane (!%p138_p2), %v225_v2, %v1411_v10 }
   0xd   : > { %s3542_s13 = smov (!%p161_p3, %s2024_s13), 1 }
   0xe   : > { %s2037_s16 = smul.u32 432, %s3542_s13  ;;  %s2036_s22 = sshll.u32 %s3542_s13, 8 }
   0xf   : > { %s2229_s27 = scalar_lea.vmem %s3540_s3, %s2036_s22 }
  0x10   : > { %s2095_s19 = scalar_lea.vmem %s3537_s0, %s2037_s16 }
  0x11   : > { %v171_v14 = vld [vmem:[%s2095_s19] sm:$0xff]  ;;  %v172_v15 = vld [vmem:[%s2095_s19 + $0x8] sm:$0xff]  ;;  %v2114_v20 = vld [vmem:[%s2095_s19 + $0x18] sm:$0xff] }
  0x12   : > { %v2117_v21 = vld [vmem:[%s2095_s19 + $0x20] sm:$0xff]  ;;  %v299_v22 = vmul.f32 %v2099_v12, %v171_v14  ;;  %v300_v23 = vmul.f32 %v2099_v12, %v172_v15  ;;  %v544_v24 = vmul.f32 %v2101_v13, %v171_v14  ;;  %v231_v26 = vmul.f32 %v2097_v11, %v171_v14  ;;  %v2133_v34 = vld [vmem:[%s2095_s19 + $0x30] sm:$0xff]  ;;  %v2149_v45 = vld [vmem:[%s2095_s19 + $0x38] sm:$0xff] }
  0x13   : > { %v545_v27 = vmul.f32 %v2101_v13, %v172_v15  ;;  %v857_v28 = vmul.f32 %v2107_v17, %v2114_v20  ;;  %v858_v29 = vmul.f32 %v2107_v17, %v2117_v21  ;;  %v1101_v33 = vmul.f32 %v2109_v18, %v2114_v20  ;;  %v173_v44 = vld [vmem:[%s2095_s19 + $0x10] sm:$0x3]  ;;  %v2167_v61 = vld [vmem:[%s2095_s19 + $0x28] sm:$0x3]  ;;  %v2182_v9 = vld [vmem:[%s2095_s19 + $0x40] sm:$0x3] }
  0x14   : > { %v396_v30 = vrot.slane %v299_v22, 1  ;;  %v397_v31 = vrot.slane %v300_v23, 1  ;;  %v641_v32 = vrot.slane %v544_v24, 2  ;;  %v1102_v39 = vmul.f32 %v2109_v18, %v2117_v21 }
  0x15   : > { %v642_v36 = vrot.slane %v545_v27, 2  ;;  %v953_v37 = vrot.slane %v857_v28, 1  ;;  %v954_v38 = vrot.slane %v858_v29, 1  ;;  %v789_v41 = vmul.f32 %v2105_v16, %v2114_v20 }
  0x16   : > { %v398_v40 = vsel %vm395_vm0, %v396_v30, %v397_v31  ;;  %v1197_v42 = vrot.slane %v1101_v33, 2  ;;  %v1413_v43 = vmul.f32 %v2122_v25, %v2133_v34  ;;  %v1198_v48 = vrot.slane %v1102_v39, 2 }
  0x17   : > { %v508_v46 = vadd.f32 %v398_v40, %v231_v26  ;;  %v643_v47 = vsel %vm640_vm1, %v641_v32, %v642_v36  ;;  %v1345_v49 = vmul.f32 %v2111_v19, %v2133_v34  ;;  %v1414_v50 = vmul.f32 %v2122_v25, %v2149_v45 }
  0x18   : > { %v1509_v51 = vrot.slane %v1413_v43, 1  ;;  %v1657_v52 = vmul.f32 %v2138_v35, %v2133_v34  ;;  %v2160_v53 = vmul.f32 %v2138_v35, %v2149_v45  ;;  %v955_v55 = vsel %vm395_vm0, %v953_v37, %v954_v38 }
  0x19   : > { %v753_v54 = vadd.f32 %v643_v47, %v508_v46  ;;  %v232_v56 = vmul.f32 %v2097_v11, %v172_v15  ;;  %v301_v57 = vmul.f32 %v2099_v12, %v173_v44  ;;  %v1510_v58 = vrot.slane %v1414_v50, 1 }
  0x1a   : > { %v1753_v59 = vrot.slane %v1657_v52, 2  ;;  %v1754_v60 = vrot.slane %v2160_v53, 2  ;;  %v546_v62 = vmul.f32 %v2101_v13, %v173_v44  ;;  %v1199_v0 = vsel %vm640_vm1, %v1197_v42, %v1198_v48 }
  0x1b   : > { %v821_v63 = vadd.f32 %v789_v41, %v753_v54  ;;  %v399_v1 = vrot.slane %v301_v57, 1  ;;  %v859_v2 = vmul.f32 %v2107_v17, %v2167_v61  ;;  %v1511_v3 = vsel %vm395_vm0, %v1509_v51, %v1510_v58 }
  0x1c   : > { %v644_v4 = vrot.slane %v546_v62, 2  ;;  %v790_v5 = vmul.f32 %v2105_v16, %v2117_v21  ;;  %v1103_v6 = vmul.f32 %v2109_v18, %v2167_v61  ;;  %v1755_v8 = vsel %vm640_vm1, %v1753_v59, %v1754_v60 }
  0x1d   : > { %v1065_v7 = vadd.f32 %v955_v55, %v821_v63  ;;  %v400_v10 = vsel %vm395_vm0, %v397_v31, %v399_v1  ;;  %v956_v14 = vrot.slane %v859_v2, 1  ;;  %v1415_v24 = vmul.f32 %v2122_v25, %v2182_v9  ;;  %v2234_v1 = vld [vmem:[%s2095_s19 + $0x48] sm:$0xff] }
  0x1e   : > { %v509_v15 = vadd.f32 %v400_v10, %v232_v56  ;;  %v645_v22 = vsel %vm640_vm1, %v642_v36, %v644_v4  ;;  %v1200_v23 = vrot.slane %v1103_v6, 2  ;;  %v1346_v28 = vmul.f32 %v2111_v19, %v2149_v45 }
  0x1f   : > { %v1309_v26 = vadd.f32 %v1199_v0, %v1065_v7  ;;  %v957_v27 = vsel %vm395_vm0, %v954_v38, %v956_v14  ;;  %v1659_v29 = vmul.f32 %v2138_v35, %v2182_v9  ;;  %v1512_v31 = vrot.slane %v1415_v24, 1  ;;  %v2242_v7 = vld [vmem:[%s2095_s19 + $0x50] sm:$0xff] }
  0x20   : > { %v754_v30 = vadd.f32 %v645_v22, %v509_v15  ;;  %v233_v32 = vmul.f32 %v2097_v11, %v2114_v20  ;;  %v302_v33 = vmul.f32 %v2099_v12, %v2114_v20  ;;  %v1201_v37 = vsel %vm640_vm1, %v1198_v48, %v1200_v23 }
  0x21   : > { %v1377_v36 = vadd.f32 %v1345_v49, %v1309_v26  ;;  %v2200_v38 = vmul.f32 %v2099_v12, %v2117_v21  ;;  %v547_v39 = vmul.f32 %v2101_v13, %v2114_v20  ;;  %v1756_v41 = vrot.slane %v1659_v29, 2  ;;  %v2214_v49 = vld [vmem:[%s3539_s2] ss:$0 sm:$0xff] }
  0x22   : > { %v822_v40 = vadd.f32 %v790_v5, %v754_v30  ;;  %v401_v42 = vrot.slane %v302_v33, 1  ;;  %v2206_v43 = vmul.f32 %v2101_v13, %v2117_v21  ;;  %v1513_v46 = vsel %vm395_vm0, %v1510_v58, %v1512_v31 }
  0x23   : > { %v1621_v44 = vadd.f32 %v1511_v3, %v1377_v36  ;;  %v402_v47 = vrot.slane %v2200_v38, 1  ;;  %v646_v48 = vrot.slane %v547_v39, 2  ;;  %v791_v51 = vmul.f32 %v2105_v16, %v2133_v34 }
  0x24   : > { %v1066_v20 = vadd.f32 %v957_v27, %v822_v40  ;;  %v647_v50 = vrot.slane %v2206_v43, 2  ;;  %v860_v52 = vmul.f32 %v2107_v17, %v2133_v34  ;;  %v861_v56 = vmul.f32 %v2107_v17, %v2149_v45 }
  0x25   : > { %v1865_v54 = vadd.f32 %v1755_v8, %v1621_v44  ;;  %v403_v55 = vsel %vm395_vm0, %v401_v42, %v402_v47  ;;  %v1104_v57 = vmul.f32 %v2109_v18, %v2133_v34  ;;  %v1105_v3 = vmul.f32 %v2109_v18, %v2149_v45  ;;  %v2275_v44 = vld [vmem:[%s2095_s19 + $0x58] sm:$0x3] }
  0x26   : > { %v1310_v58 = vadd.f32 %v1201_v37, %v1066_v20  ;;  %v510_v59 = vadd.f32 %v403_v55, %v233_v32  ;;  %v648_v62 = vsel %vm640_vm1, %v646_v48, %v647_v50  ;;  %v958_v63 = vrot.slane %v860_v52, 1 }
  0x27   : > { %v1904_v0 = vadd.f32 %v2214_v49, %v1865_v54  ;;  %v959_v2 = vrot.slane %v861_v56, 1  ;;  %v1202_v4 = vrot.slane %v1104_v57, 2  ;;  %v1757_v6 = vsel %vm640_vm1, %v1754_v60, %v1756_v41 }
  0x28   : > { %v1378_v5 = vadd.f32 %v1346_v28, %v1310_v58  ;;  %v755_v8 = vadd.f32 %v648_v62, %v510_v59  ;;  %v1416_v10 = vmul.f32 %v2122_v25, %v2234_v1  ;;  %v1203_v15 = vrot.slane %v1105_v3, 2 }
  0x29   : > { %1937 = vst.msk [vmem:[%s2229_s27] sm:$0xff] %vm1936_vm2, %v1904_v0  ;;  %v960_v14 = vsel %vm395_vm0, %v958_v63, %v959_v2  ;;  %v2251_v22 = vmul.f32 %v2122_v25, %v2242_v7  ;;  %v1660_v53 = vmul.f32 %v2138_v35, %v2234_v1  ;;  %v2257_v26 = vmul.f32 %v2138_v35, %v2242_v7 }
  0x2a   : > { %v1622_v23 = vadd.f32 %v1513_v46, %v1378_v5  ;;  %v823_v60 = vadd.f32 %v791_v51, %v755_v8  ;;  %v1514_v24 = vrot.slane %v1416_v10, 1  ;;  %v1204_v27 = vsel %vm640_vm1, %v1202_v4, %v1203_v15 }
  0x2b   : > { %v1347_v28 = vmul.f32 %v2111_v19, %v2234_v1  ;;  %v1515_v29 = vrot.slane %v2251_v22, 1  ;;  %v1758_v32 = vrot.slane %v1660_v53, 2  ;;  %v304_v33 = vmul.f32 %v2099_v12, %v2167_v61 }
  0x2c   : > { %v1866_v30 = vadd.f32 %v1757_v6, %v1622_v23  ;;  %v1067_v31 = vadd.f32 %v960_v14, %v823_v60  ;;  %v1759_v36 = vrot.slane %v2257_v26, 2  ;;  %v234_v37 = vmul.f32 %v2097_v11, %v2117_v21 }
  0x2d   : > { %v549_v38 = vmul.f32 %v2101_v13, %v2167_v61  ;;  %v862_v39 = vmul.f32 %v2107_v17, %v2182_v9  ;;  %v1516_v42 = vsel %vm395_vm0, %v1514_v24, %v1515_v29  ;;  %v404_v43 = vrot.slane %v304_v33, 1 }
  0x2e   : > { %v1905_v40 = vadd.f32 %v2214_v49, %v1866_v30  ;;  %v1311_v41 = vadd.f32 %v1204_v27, %v1067_v31  ;;  %v792_v48 = vmul.f32 %v2105_v16, %v2149_v45  ;;  %v1106_v21 = vmul.f32 %v2109_v18, %v2182_v9 }
  0x2f   : > { %v649_v46 = vrot.slane %v549_v38, 2  ;;  %v961_v20 = vrot.slane %v862_v39, 1  ;;  %v405_v51 = vsel %vm395_vm0, %v402_v47, %v404_v43  ;;  %v1418_v52 = vmul.f32 %v2122_v25, %v2275_v44  ;;  %v2329_v43 = vld [vmem:[%s2095_s19 + $0x68] sm:$0xff] }
  0x30   : > { %1938 = vst.msk [vmem:[%s2229_s27 + $0x8] sm:$0xff] %vm1936_vm2, %v1905_v40  ;;  %v1379_v61 = vadd.f32 %v1347_v28, %v1311_v41  ;;  %v1662_v54 = vmul.f32 %v2138_v35, %v2275_v44  ;;  %v1760_v55 = vsel %vm640_vm1, %v1758_v32, %v1759_v36  ;;  %v511_v56 = vadd.f32 %v405_v51, %v234_v37  ;;  %v2325_v40 = vld [vmem:[%s2095_s19 + $0x60] sm:$0xff] }
  0x31   : > { %v650_v57 = vsel %vm640_vm1, %v647_v50, %v649_v46  ;;  %v1205_v58 = vrot.slane %v1106_v21, 2  ;;  %v962_v62 = vsel %vm395_vm0, %v959_v2, %v961_v20  ;;  %v1348_v47 = vmul.f32 %v2111_v19, %v2242_v7 }
  0x32   : > { %v1623_v59 = vadd.f32 %v1516_v42, %v1379_v61  ;;  %v1517_v63 = vrot.slane %v1418_v52, 1  ;;  %v756_v0 = vadd.f32 %v650_v57, %v511_v56  ;;  %v1761_v3 = vrot.slane %v1662_v54, 2 }
  0x33   : > { %v305_v4 = vmul.f32 %v2099_v12, %v2133_v34  ;;  %v2299_v5 = vmul.f32 %v2099_v12, %v2149_v45  ;;  %v1206_v50 = vsel %vm640_vm1, %v1203_v15, %v1205_v58  ;;  %v235_v2 = vmul.f32 %v2097_v11, %v2133_v34 }
  0x34   : > { %v1867_v6 = vadd.f32 %v1760_v55, %v1623_v59  ;;  %v550_v8 = vmul.f32 %v2101_v13, %v2133_v34  ;;  %v824_v10 = vadd.f32 %v792_v48, %v756_v0  ;;  %v551_v53 = vmul.f32 %v2101_v13, %v2149_v45 }
  0x35   : > { %v406_v14 = vrot.slane %v305_v4, 1  ;;  %v407_v22 = vrot.slane %v2299_v5, 1  ;;  %v793_v15 = vmul.f32 %v2105_v16, %v2234_v1  ;;  %v863_v24 = vmul.f32 %v2107_v17, %v2234_v1 }
  0x36   : > { %v1906_v23 = vadd.f32 %v2214_v49, %v1867_v6  ;;  %v651_v60 = vrot.slane %v550_v8, 2  ;;  %v1068_v27 = vadd.f32 %v962_v62, %v824_v10  ;;  %v652_v28 = vrot.slane %v551_v53, 2  ;;  %v2363_v53 = vld [vmem:[%s2095_s19 + $0x70] sm:$0x3] }
  0x37   : > { %v408_v34 = vsel %vm395_vm0, %v406_v14, %v407_v22  ;;  %v864_v30 = vmul.f32 %v2107_v17, %v2242_v7  ;;  %v963_v32 = vrot.slane %v863_v24, 1  ;;  %v1107_v33 = vmul.f32 %v2109_v18, %v2234_v1 }
  0x38   : > { %1939 = vst.msk [vmem:[%s2229_s27 + $0x10] sm:$0xff] %vm1936_vm2, %v1906_v23  ;;  %v512_v31 = vadd.f32 %v408_v34, %v235_v2  ;;  %v1108_v37 = vmul.f32 %v2109_v18, %v2242_v7  ;;  %v1312_v38 = vadd.f32 %v1206_v50, %v1068_v27  ;;  %v1518_v39 = vsel %vm395_vm0, %v1515_v29, %v1517_v63 }
  0x39   : > { %v653_v41 = vsel %vm640_vm1, %v651_v60, %v652_v28  ;;  %v964_v42 = vrot.slane %v864_v30, 1  ;;  %v1207_v48 = vrot.slane %v1107_v33, 2  ;;  %v1419_v21 = vmul.f32 %v2122_v25, %v2325_v40 }
  0x3a   : > { %v757_v46 = vadd.f32 %v653_v41, %v512_v31  ;;  %v1208_v20 = vrot.slane %v1108_v37, 2  ;;  %v1380_v61 = vadd.f32 %v1348_v47, %v1312_v38  ;;  %v2336_v52 = vmul.f32 %v2122_v25, %v2329_v43 }
  0x3b   : > { %v965_v51 = vsel %vm395_vm0, %v963_v32, %v964_v42  ;;  %v1663_v29 = vmul.f32 %v2138_v35, %v2325_v40  ;;  %v1762_v54 = vsel %vm640_vm1, %v1759_v36, %v1761_v3  ;;  %v1519_v56 = vrot.slane %v1419_v21, 1 }
  0x3c   : > { %v825_v55 = vadd.f32 %v793_v15, %v757_v46  ;;  %v2345_v57 = vmul.f32 %v2138_v35, %v2329_v43  ;;  %v1624_v58 = vadd.f32 %v1518_v39, %v1380_v61  ;;  %v1209_v59 = vsel %vm640_vm1, %v1207_v48, %v1208_v20 }
  0x3d   : > { %v1349_v62 = vmul.f32 %v2111_v19, %v2325_v40  ;;  %v1520_v47 = vrot.slane %v2336_v52, 1  ;;  %v1763_v0 = vrot.slane %v1663_v29, 2  ;;  %v307_v26 = vmul.f32 %v2099_v12, %v2182_v9 }
  0x3e   : > { %v1069_v63 = vadd.f32 %v965_v51, %v825_v55  ;;  %v552_v36 = vmul.f32 %v2101_v13, %v2182_v9  ;;  %v1868_v3 = vadd.f32 %v1762_v54, %v1624_v58  ;;  %v1764_v4 = vrot.slane %v2345_v57, 2 }
  0x3f   : > { %v236_v5 = vmul.f32 %v2097_v11, %v2149_v45  ;;  %v865_v6 = vmul.f32 %v2107_v17, %v2275_v44  ;;  %v1521_v2 = vsel %vm395_vm0, %v1519_v56, %v1520_v47  ;;  %v409_v8 = vrot.slane %v307_v26, 1 }
  0x40   : > { %v1313_v50 = vadd.f32 %v1209_v59, %v1069_v63  ;;  %v654_v10 = vrot.slane %v552_v36, 2  ;;  %v1907_v14 = vadd.f32 %v2214_v49, %v1868_v3  ;;  %v794_v9 = vmul.f32 %v2105_v16, %v2242_v7 }
  0x41   : > { %v966_v23 = vrot.slane %v865_v6, 1  ;;  %v1109_v60 = vmul.f32 %v2109_v18, %v2275_v44  ;;  %v410_v15 = vsel %vm395_vm0, %v407_v22, %v409_v8  ;;  %v1421_v27 = vmul.f32 %v2122_v25, %v2363_v53 }
  0x42   : > { %v1381_v45 = vadd.f32 %v1349_v62, %v1313_v50  ;;  %v655_v24 = vsel %vm640_vm1, %v652_v28, %v654_v10  ;;  %1940 = vst.msk [vmem:[%s2229_s27 + $0x18] sm:$0xff] %vm1936_vm2, %v1907_v14  ;;  %v1765_v34 = vsel %vm640_vm1, %v1763_v0, %v1764_v4  ;;  %v513_v30 = vadd.f32 %v410_v15, %v236_v5  ;;  %v2413_v50 = vld [vmem:[%s2095_s19 + $0x78] sm:$0xff]  ;;  %v2417_v10 = vld [vmem:[%s2095_s19 + $0x80] sm:$0xff] }
  0x43   : > { %v1210_v31 = vrot.slane %v1109_v60, 2  ;;  %v1665_v32 = vmul.f32 %v2138_v35, %v2363_v53  ;;  %v967_v37 = vsel %vm395_vm0, %v964_v42, %v966_v23  ;;  %v1350_v22 = vmul.f32 %v2111_v19, %v2329_v43 }
  0x44   : > { %v1625_v33 = vadd.f32 %v1521_v2, %v1381_v45  ;;  %v308_v28 = vmul.f32 %v2099_v12, %v2234_v1  ;;  %v758_v38 = vadd.f32 %v655_v24, %v513_v30  ;;  %v1522_v39 = vrot.slane %v1421_v27, 1 }
  0x45   : > { %v237_v41 = vmul.f32 %v2097_v11, %v2234_v1  ;;  %v2389_v46 = vmul.f32 %v2099_v12, %v2242_v7  ;;  %v1211_v21 = vsel %vm640_vm1, %v1208_v20, %v1210_v31  ;;  %v553_v61 = vmul.f32 %v2101_v13, %v2234_v1 }
  0x46   : > { %v1869_v48 = vadd.f32 %v1765_v34, %v1625_v33  ;;  %v411_v42 = vrot.slane %v308_v28, 1  ;;  %v826_v51 = vadd.f32 %v794_v9, %v758_v38  ;;  %v1766_v52 = vrot.slane %v1665_v32, 2 }
  0x47   : > { %v412_v29 = vrot.slane %v2389_v46, 1  ;;  %v554_v54 = vmul.f32 %v2101_v13, %v2242_v7  ;;  %v656_v56 = vrot.slane %v553_v61, 2  ;;  %v795_v58 = vmul.f32 %v2105_v16, %v2325_v40 }
  0x48   : > { %v1908_v55 = vadd.f32 %v2214_v49, %v1869_v48  ;;  %v866_v20 = vmul.f32 %v2107_v17, %v2325_v40  ;;  %v1070_v59 = vadd.f32 %v967_v37, %v826_v51  ;;  %v867_v63 = vmul.f32 %v2107_v17, %v2329_v43 }
  0x49   : > { %v413_v1 = vsel %vm395_vm0, %v411_v42, %v412_v29  ;;  %v657_v62 = vrot.slane %v554_v54, 2  ;;  %v1110_v36 = vmul.f32 %v2109_v18, %v2325_v40  ;;  %v1111_v3 = vmul.f32 %v2109_v18, %v2329_v43  ;;  %v2451_v54 = vld [vmem:[%s2095_s19 + $0x88] sm:$0x3] }
  0x4a   : > { %1941 = vst.msk [vmem:[%s2229_s27 + $0x20] sm:$0xff] %vm1936_vm2, %v1908_v55  ;;  %v514_v0 = vadd.f32 %v413_v1, %v237_v41  ;;  %v968_v26 = vrot.slane %v866_v20, 1  ;;  %v1314_v5 = vadd.f32 %v1211_v21, %v1070_v59  ;;  %v1523_v6 = vsel %vm395_vm0, %v1520_v47, %v1522_v39 }
  0x4b   : > { %v658_v2 = vsel %vm640_vm1, %v656_v56, %v657_v62  ;;  %v969_v8 = vrot.slane %v867_v63, 1  ;;  %v1212_v9 = vrot.slane %v1110_v36, 2  ;;  %v1213_v23 = vrot.slane %v1111_v3, 2 }
  0x4c   : > { %v759_v14 = vadd.f32 %v658_v2, %v514_v0  ;;  %v1422_v60 = vmul.f32 %v2122_v25, %v2413_v50  ;;  %v1382_v45 = vadd.f32 %v1350_v22, %v1314_v5  ;;  %v2424_v24 = vmul.f32 %v2122_v25, %v2417_v10 }
  0x4d   : > { %v970_v15 = vsel %vm395_vm0, %v968_v26, %v969_v8  ;;  %v1666_v47 = vmul.f32 %v2138_v35, %v2413_v50  ;;  %v1767_v27 = vsel %vm640_vm1, %v1764_v4, %v1766_v52  ;;  %v2433_v31 = vmul.f32 %v2138_v35, %v2417_v10 }
  0x4e   : > { %v827_v34 = vadd.f32 %v795_v58, %v759_v14  ;;  %v1524_v30 = vrot.slane %v1422_v60, 1  ;;  %v1626_v32 = vadd.f32 %v1523_v6, %v1382_v45  ;;  %v1214_v33 = vsel %vm640_vm1, %v1212_v9, %v1213_v23 }
  0x4f   : > { %v1351_v37 = vmul.f32 %v2111_v19, %v2413_v50  ;;  %v1525_v22 = vrot.slane %v2424_v24, 1  ;;  %v1768_v38 = vrot.slane %v1666_v47, 2  ;;  %v310_v57 = vmul.f32 %v2099_v12, %v2275_v44 }
  0x50   : > { %v1071_v28 = vadd.f32 %v970_v15, %v827_v34  ;;  %v555_v4 = vmul.f32 %v2101_v13, %v2275_v44  ;;  %v1870_v39 = vadd.f32 %v1767_v27, %v1626_v32  ;;  %v1769_v41 = vrot.slane %v2433_v31, 2 }
  0x51   : > { %v238_v46 = vmul.f32 %v2097_v11, %v2242_v7  ;;  %v868_v48 = vmul.f32 %v2107_v17, %v2363_v53  ;;  %v1526_v42 = vsel %vm395_vm0, %v1524_v30, %v1525_v22  ;;  %v414_v61 = vrot.slane %v310_v57, 1 }
  0x52   : > { %v1315_v21 = vadd.f32 %v1214_v33, %v1071_v28  ;;  %v659_v51 = vrot.slane %v555_v4, 2  ;;  %v1909_v52 = vadd.f32 %v2214_v49, %v1870_v39  ;;  %v796_v44 = vmul.f32 %v2105_v16, %v2329_v43 }
  0x53   : > { %v971_v55 = vrot.slane %v868_v48, 1  ;;  %v1112_v56 = vmul.f32 %v2109_v18, %v2363_v53  ;;  %v415_v58 = vsel %vm395_vm0, %v412_v29, %v414_v61  ;;  %v1424_v59 = vmul.f32 %v2122_v25, %v2451_v54 }
  0x54   : > { %v1383_v7 = vadd.f32 %v1351_v37, %v1315_v21  ;;  %v660_v20 = vsel %vm640_vm1, %v657_v62, %v659_v51  ;;  %1942 = vst.msk [vmem:[%s2229_s27 + $0x28] sm:$0xff] %vm1936_vm2, %v1909_v52  ;;  %v1770_v1 = vsel %vm640_vm1, %v1768_v38, %v1769_v41  ;;  %v515_v63 = vadd.f32 %v415_v58, %v238_v46  ;;  %v2501_v21 = vld [vmem:[%s2095_s19 + $0x90] sm:$0xff]  ;;  %v2505_v51 = vld [vmem:[%s2095_s19 + $0x98] sm:$0xff] }
  0x55   : > { %v1215_v0 = vrot.slane %v1112_v56, 2  ;;  %v1668_v26 = vmul.f32 %v2138_v35, %v2451_v54  ;;  %v972_v3 = vsel %vm395_vm0, %v969_v8, %v971_v55  ;;  %v1352_v29 = vmul.f32 %v2111_v19, %v2417_v10 }
  0x56   : > { %v1627_v36 = vadd.f32 %v1526_v42, %v1383_v7  ;;  %v311_v62 = vmul.f32 %v2099_v12, %v2325_v40  ;;  %v760_v5 = vadd.f32 %v660_v20, %v515_v63  ;;  %v1527_v6 = vrot.slane %v1424_v59, 1 }
  0x57   : > { %v239_v2 = vmul.f32 %v2097_v11, %v2325_v40  ;;  %v2477_v14 = vmul.f32 %v2099_v12, %v2329_v43  ;;  %v1216_v60 = vsel %vm640_vm1, %v1213_v23, %v1215_v0  ;;  %v556_v45 = vmul.f32 %v2101_v13, %v2325_v40 }
  0x58   : > { %v1871_v9 = vadd.f32 %v1770_v1, %v1627_v36  ;;  %v416_v8 = vrot.slane %v311_v62, 1  ;;  %v828_v15 = vadd.f32 %v796_v44, %v760_v5  ;;  %v1771_v24 = vrot.slane %v1668_v26, 2 }
  0x59   : > { %v417_v47 = vrot.slane %v2477_v14, 1  ;;  %v557_v27 = vmul.f32 %v2101_v13, %v2329_v43  ;;  %v661_v30 = vrot.slane %v556_v45, 2  ;;  %v797_v32 = vmul.f32 %v2105_v16, %v2413_v50 }
  0x5a   : > { %v1910_v34 = vadd.f32 %v2214_v49, %v1871_v9  ;;  %v869_v23 = vmul.f32 %v2107_v17, %v2413_v50  ;;  %v1072_v33 = vadd.f32 %v972_v3, %v828_v15  ;;  %v870_v28 = vmul.f32 %v2107_v17, %v2417_v10 }
  0x5b   : > { %v418_v40 = vsel %vm395_vm0, %v416_v8, %v417_v47  ;;  %v662_v37 = vrot.slane %v557_v27, 2  ;;  %v1113_v4 = vmul.f32 %v2109_v18, %v2413_v50  ;;  %v1114_v39 = vmul.f32 %v2109_v18, %v2417_v10  ;;  %v2539_v27 = vld [vmem:[%s2095_s19 + $0xa0] sm:$0x3] }
  0x5c   : > { %1943 = vst.msk [vmem:[%s2229_s27 + $0x30] sm:$0xff] %vm1936_vm2, %v1910_v34  ;;  %v516_v38 = vadd.f32 %v418_v40, %v239_v2  ;;  %v973_v57 = vrot.slane %v869_v23, 1  ;;  %v1316_v46 = vadd.f32 %v1216_v60, %v1072_v33  ;;  %v1528_v48 = vsel %vm395_vm0, %v1525_v22, %v1527_v6 }
  0x5d   : > { %v663_v42 = vsel %vm640_vm1, %v661_v30, %v662_v37  ;;  %v974_v61 = vrot.slane %v870_v28, 1  ;;  %v1217_v44 = vrot.slane %v1113_v4, 2  ;;  %v1218_v55 = vrot.slane %v1114_v39, 2 }
  0x5e   : > { %v761_v52 = vadd.f32 %v663_v42, %v516_v38  ;;  %v1425_v56 = vmul.f32 %v2122_v25, %v2501_v21  ;;  %v1384_v7 = vadd.f32 %v1352_v29, %v1316_v46  ;;  %v2512_v20 = vmul.f32 %v2122_v25, %v2505_v51 }
  0x5f   : > { %v975_v58 = vsel %vm395_vm0, %v973_v57, %v974_v61  ;;  %v1669_v22 = vmul.f32 %v2138_v35, %v2501_v21  ;;  %v1772_v59 = vsel %vm640_vm1, %v1769_v41, %v1771_v24  ;;  %v2521_v0 = vmul.f32 %v2138_v35, %v2505_v51 }
  0x60   : > { %v829_v1 = vadd.f32 %v797_v32, %v761_v52  ;;  %v1529_v63 = vrot.slane %v1425_v56, 1  ;;  %v1628_v26 = vadd.f32 %v1528_v48, %v1384_v7  ;;  %v1219_v36 = vsel %vm640_vm1, %v1217_v44, %v1218_v55 }
  0x61   : > { %v1353_v3 = vmul.f32 %v2111_v19, %v2501_v21  ;;  %v1530_v29 = vrot.slane %v2512_v20, 1  ;;  %v1773_v5 = vrot.slane %v1669_v22, 2  ;;  %v313_v31 = vmul.f32 %v2099_v12, %v2363_v53 }
  0x62   : > { %v1073_v62 = vadd.f32 %v975_v58, %v829_v1  ;;  %v558_v41 = vmul.f32 %v2101_v13, %v2363_v53  ;;  %v1872_v6 = vadd.f32 %v1772_v59, %v1628_v26  ;;  %v1774_v2 = vrot.slane %v2521_v0, 2 }
  0x63   : > { %v240_v14 = vmul.f32 %v2097_v11, %v2329_v43  ;;  %v871_v9 = vmul.f32 %v2107_v17, %v2451_v54  ;;  %v1531_v8 = vsel %vm395_vm0, %v1529_v63, %v1530_v29  ;;  %v419_v45 = vrot.slane %v313_v31, 1 }
  0x64   : > { %v1317_v60 = vadd.f32 %v1219_v36, %v1073_v62  ;;  %v664_v15 = vrot.slane %v558_v41, 2  ;;  %v1911_v24 = vadd.f32 %v2214_v49, %v1872_v6  ;;  %v798_v53 = vmul.f32 %v2105_v16, %v2417_v10 }
  0x65   : > { %v976_v34 = vrot.slane %v871_v9, 1  ;;  %v1115_v30 = vmul.f32 %v2109_v18, %v2451_v54  ;;  %v420_v32 = vsel %vm395_vm0, %v417_v47, %v419_v45  ;;  %v1427_v33 = vmul.f32 %v2122_v25, %v2539_v27 }
  0x66   : > { %v1385_v43 = vadd.f32 %v1353_v3, %v1317_v60  ;;  %v665_v23 = vsel %vm640_vm1, %v662_v37, %v664_v15  ;;  %1944 = vst.msk [vmem:[%s2229_s27 + $0x38] sm:$0xff] %vm1936_vm2, %v1911_v24  ;;  %v1775_v40 = vsel %vm640_vm1, %v1773_v5, %v1774_v2  ;;  %v517_v28 = vadd.f32 %v420_v32, %v240_v14  ;;  %v2589_v60 = vld [vmem:[%s2095_s19 + $0xa8] sm:$0xff]  ;;  %v2593_v15 = vld [vmem:[%s2095_s19 + $0xb0] sm:$0xff] }
  0x67   : > { %v1220_v38 = vrot.slane %v1115_v30, 2  ;;  %v1671_v57 = vmul.f32 %v2138_v35, %v2539_v27  ;;  %v977_v39 = vsel %vm395_vm0, %v974_v61, %v976_v34  ;;  %v1354_v47 = vmul.f32 %v2111_v19, %v2505_v51 }
  0x68   : > { %v1629_v4 = vadd.f32 %v1531_v8, %v1385_v43  ;;  %v314_v37 = vmul.f32 %v2099_v12, %v2413_v50  ;;  %v762_v46 = vadd.f32 %v665_v23, %v517_v28  ;;  %v1532_v48 = vrot.slane %v1427_v33, 1 }
  0x69   : > { %v241_v42 = vmul.f32 %v2097_v11, %v2413_v50  ;;  %v2565_v52 = vmul.f32 %v2099_v12, %v2417_v10  ;;  %v1221_v56 = vsel %vm640_vm1, %v1218_v55, %v1220_v38  ;;  %v559_v7 = vmul.f32 %v2101_v13, %v2413_v50 }
  0x6a   : > { %v1873_v44 = vadd.f32 %v1775_v40, %v1629_v4  ;;  %v421_v61 = vrot.slane %v314_v37, 1  ;;  %v830_v58 = vadd.f32 %v798_v53, %v762_v46  ;;  %v1776_v20 = vrot.slane %v1671_v57, 2 }
  0x6b   : > { %v422_v22 = vrot.slane %v2565_v52, 1  ;;  %v560_v59 = vmul.f32 %v2101_v13, %v2417_v10  ;;  %v666_v63 = vrot.slane %v559_v7, 2  ;;  %v799_v26 = vmul.f32 %v2105_v16, %v2501_v21 }
  0x6c   : > { %v1912_v1 = vadd.f32 %v2214_v49, %v1873_v44  ;;  %v872_v55 = vmul.f32 %v2107_v17, %v2501_v21  ;;  %v1074_v36 = vadd.f32 %v977_v39, %v830_v58  ;;  %v873_v62 = vmul.f32 %v2107_v17, %v2505_v51 }
  0x6d   : > { %v423_v50 = vsel %vm395_vm0, %v421_v61, %v422_v22  ;;  %v667_v3 = vrot.slane %v560_v59, 2  ;;  %v1116_v41 = vmul.f32 %v2109_v18, %v2501_v21  ;;  %v1117_v6 = vmul.f32 %v2109_v18, %v2505_v51  ;;  %v2627_v59 = vld [vmem:[%s2095_s19 + $0xb8] sm:$0x3] }
  0x6e   : > { %1945 = vst.msk [vmem:[%s2229_s27 + $0x40] sm:$0xff] %vm1936_vm2, %v1912_v1  ;;  %v518_v5 = vadd.f32 %v423_v50, %v241_v42  ;;  %v978_v31 = vrot.slane %v872_v55, 1  ;;  %v1318_v14 = vadd.f32 %v1221_v56, %v1074_v36  ;;  %v1533_v9 = vsel %vm395_vm0, %v1530_v29, %v1532_v48 }
  0x6f   : > { %v668_v8 = vsel %vm640_vm1, %v666_v63, %v667_v3  ;;  %v979_v45 = vrot.slane %v873_v62, 1  ;;  %v1222_v53 = vrot.slane %v1116_v41, 2  ;;  %v1223_v34 = vrot.slane %v1117_v6, 2 }
  0x70   : > { %v763_v24 = vadd.f32 %v668_v8, %v518_v5  ;;  %v1428_v30 = vmul.f32 %v2122_v25, %v2589_v60  ;;  %v1386_v43 = vadd.f32 %v1354_v47, %v1318_v14  ;;  %v2600_v23 = vmul.f32 %v2122_v25, %v2593_v15 }
  0x71   : > { %v980_v32 = vsel %vm395_vm0, %v978_v31, %v979_v45  ;;  %v1672_v29 = vmul.f32 %v2138_v35, %v2589_v60  ;;  %v1777_v33 = vsel %vm640_vm1, %v1774_v2, %v1776_v20  ;;  %v2609_v38 = vmul.f32 %v2138_v35, %v2593_v15 }
  0x72   : > { %v831_v40 = vadd.f32 %v799_v26, %v763_v24  ;;  %v1534_v28 = vrot.slane %v1428_v30, 1  ;;  %v1630_v57 = vadd.f32 %v1533_v9, %v1386_v43  ;;  %v1224_v4 = vsel %vm640_vm1, %v1222_v53, %v1223_v34 }
  0x73   : > { %v1355_v39 = vmul.f32 %v2111_v19, %v2589_v60  ;;  %v1535_v47 = vrot.slane %v2600_v23, 1  ;;  %v1778_v46 = vrot.slane %v1672_v29, 2  ;;  %v316_v0 = vmul.f32 %v2099_v12, %v2451_v54 }
  0x74   : > { %v1075_v37 = vadd.f32 %v980_v32, %v831_v40  ;;  %v561_v2 = vmul.f32 %v2101_v13, %v2451_v54  ;;  %v1874_v48 = vadd.f32 %v1777_v33, %v1630_v57  ;;  %v1779_v42 = vrot.slane %v2609_v38, 2 }
  0x75   : > { %v242_v52 = vmul.f32 %v2097_v11, %v2417_v10  ;;  %v874_v44 = vmul.f32 %v2107_v17, %v2539_v27  ;;  %v1536_v61 = vsel %vm395_vm0, %v1534_v28, %v1535_v47  ;;  %v424_v7 = vrot.slane %v316_v0, 1 }
  0x76   : > { %v1319_v56 = vadd.f32 %v1224_v4, %v1075_v37  ;;  %v669_v58 = vrot.slane %v561_v2, 2  ;;  %v1913_v20 = vadd.f32 %v2214_v49, %v1874_v48  ;;  %v800_v54 = vmul.f32 %v2105_v16, %v2505_v51 }
  0x77   : > { %v981_v1 = vrot.slane %v874_v44, 1  ;;  %v1118_v63 = vmul.f32 %v2109_v18, %v2539_v27  ;;  %v425_v26 = vsel %vm395_vm0, %v422_v22, %v424_v7  ;;  %v1430_v36 = vmul.f32 %v2122_v25, %v2627_v59 }
  0x78   : > { %v1387_v10 = vadd.f32 %v1355_v39, %v1319_v56  ;;  %v670_v55 = vsel %vm640_vm1, %v667_v3, %v669_v58  ;;  %1946 = vst.msk [vmem:[%s2229_s27 + $0x48] sm:$0xff] %vm1936_vm2, %v1913_v20  ;;  %v1780_v50 = vsel %vm640_vm1, %v1778_v46, %v1779_v42  ;;  %v519_v62 = vadd.f32 %v425_v26, %v242_v52  ;;  %v2677_v56 = vld [vmem:[%s2095_s19 + $0xc0] sm:$0xff]  ;;  %v2681_v58 = vld [vmem:[%s2095_s19 + $0xc8] sm:$0xff] }
  0x79   : > { %v1225_v5 = vrot.slane %v1118_v63, 2  ;;  %v1674_v31 = vmul.f32 %v2138_v35, %v2627_v59  ;;  %v982_v6 = vsel %vm395_vm0, %v979_v45, %v981_v1  ;;  %v1356_v22 = vmul.f32 %v2111_v19, %v2593_v15 }
  0x7a   : > { %v1631_v41 = vadd.f32 %v1536_v61, %v1387_v10  ;;  %v317_v3 = vmul.f32 %v2099_v12, %v2501_v21  ;;  %v764_v14 = vadd.f32 %v670_v55, %v519_v62  ;;  %v1537_v9 = vrot.slane %v1430_v36, 1 }
  0x7b   : > { %v243_v8 = vmul.f32 %v2097_v11, %v2501_v21  ;;  %v2653_v24 = vmul.f32 %v2099_v12, %v2505_v51  ;;  %v1226_v30 = vsel %vm640_vm1, %v1223_v34, %v1225_v5  ;;  %v562_v43 = vmul.f32 %v2101_v13, %v2501_v21 }
  0x7c   : > { %v1875_v53 = vadd.f32 %v1780_v50, %v1631_v41  ;;  %v426_v45 = vrot.slane %v317_v3, 1  ;;  %v832_v32 = vadd.f32 %v800_v54, %v764_v14  ;;  %v1781_v23 = vrot.slane %v1674_v31, 2 }
  0x7d   : > { %v427_v29 = vrot.slane %v2653_v24, 1  ;;  %v563_v33 = vmul.f32 %v2101_v13, %v2505_v51  ;;  %v671_v28 = vrot.slane %v562_v43, 2  ;;  %v801_v57 = vmul.f32 %v2105_v16, %v2589_v60 }
  0x7e   : > { %v1914_v40 = vadd.f32 %v2214_v49, %v1875_v53  ;;  %v875_v34 = vmul.f32 %v2107_v17, %v2589_v60  ;;  %v1076_v4 = vadd.f32 %v982_v6, %v832_v32  ;;  %v876_v37 = vmul.f32 %v2107_v17, %v2593_v15 }
  0x7f   : > { %v428_v21 = vsel %vm395_vm0, %v426_v45, %v427_v29  ;;  %v672_v39 = vrot.slane %v563_v33, 2  ;;  %v1119_v2 = vmul.f32 %v2109_v18, %v2589_v60  ;;  %v1120_v48 = vmul.f32 %v2109_v18, %v2593_v15 }
  0x80   : > { %1947 = vst.msk [vmem:[%s2229_s27 + $0x50] sm:$0xff] %vm1936_vm2, %v1914_v40  ;;  %v520_v46 = vadd.f32 %v428_v21, %v243_v8  ;;  %v983_v0 = vrot.slane %v875_v34, 1  ;;  %v1320_v52 = vadd.f32 %v1226_v30, %v1076_v4  ;;  %v1538_v44 = vsel %vm395_vm0, %v1535_v47, %v1537_v9 }
  0x81   : > { %v673_v61 = vsel %vm640_vm1, %v671_v28, %v672_v39  ;;  %v984_v7 = vrot.slane %v876_v37, 1  ;;  %v1227_v54 = vrot.slane %v1119_v2, 2  ;;  %v1228_v1 = vrot.slane %v1120_v48, 2 }
  0x82   : > { %v765_v20 = vadd.f32 %v673_v61, %v520_v46  ;;  %v1431_v63 = vmul.f32 %v2122_v25, %v2677_v56  ;;  %v1388_v10 = vadd.f32 %v1356_v22, %v1320_v52  ;;  %v2688_v55 = vmul.f32 %v2122_v25, %v2681_v58  ;;  %v2733_v46 = vld [vmem:[%s3538_s1 + $0x8] ss:$0 sm:$0xff] }
  0x83   : > { %v985_v26 = vsel %vm395_vm0, %v983_v0, %v984_v7  ;;  %v1675_v47 = vmul.f32 %v2138_v35, %v2677_v56  ;;  %v1782_v36 = vsel %vm640_vm1, %v1779_v42, %v1781_v23  ;;  %v2697_v5 = vmul.f32 %v2138_v35, %v2681_v58  ;;  %v2715_v23 = vld [vmem:[%s2095_s19 + $0xd0] sm:$0x3] }
  0x84   : > { %v833_v50 = vadd.f32 %v801_v57, %v765_v20  ;;  %v1539_v62 = vrot.slane %v1431_v63, 1  ;;  %v1632_v31 = vadd.f32 %v1538_v44, %v1388_v10  ;;  %v1229_v41 = vsel %vm640_vm1, %v1227_v54, %v1228_v1 }
  0x85   : > { %v1357_v6 = vmul.f32 %v2111_v19, %v2677_v56  ;;  %v1540_v22 = vrot.slane %v2688_v55, 1  ;;  %v1783_v14 = vrot.slane %v1675_v47, 2  ;;  %v319_v38 = vmul.f32 %v2099_v12, %v2539_v27 }
  0x86   : > { %v1077_v3 = vadd.f32 %v985_v26, %v833_v50  ;;  %v564_v42 = vmul.f32 %v2101_v13, %v2539_v27  ;;  %v1876_v9 = vadd.f32 %v1782_v36, %v1632_v31  ;;  %v1784_v35 = vrot.slane %v2697_v5, 2 }
  0x87   : > { %v244_v8 = vmul.f32 %v2097_v11, %v2505_v51  ;;  %v877_v24 = vmul.f32 %v2107_v17, %v2627_v59  ;;  %v1541_v30 = vsel %vm395_vm0, %v1539_v62, %v1540_v22  ;;  %v429_v45 = vrot.slane %v319_v38, 1 }
  0x88   : > { %v1321_v53 = vadd.f32 %v1229_v41, %v1077_v3  ;;  %v674_v43 = vrot.slane %v564_v42, 2  ;;  %v1915_v32 = vadd.f32 %v2214_v49, %v1876_v9  ;;  %v802_v27 = vmul.f32 %v2105_v16, %v2593_v15 }
  0x89   : > { %v986_v33 = vrot.slane %v877_v24, 1  ;;  %v1121_v40 = vmul.f32 %v2109_v18, %v2627_v59  ;;  %v430_v28 = vsel %vm395_vm0, %v427_v29, %v429_v45  ;;  %v1433_v34 = vmul.f32 %v2122_v25, %v2715_v23 }
  0x8a   : > { %v1389_v51 = vadd.f32 %v1357_v6, %v1321_v53  ;;  %v675_v57 = vsel %vm640_vm1, %v672_v39, %v674_v43  ;;  %1948 = vst.msk [vmem:[%s2229_s27 + $0x58] sm:$0xff] %vm1936_vm2, %v1915_v32  ;;  %v1785_v4 = vsel %vm640_vm1, %v1783_v14, %v1784_v35  ;;  %v521_v21 = vadd.f32 %v430_v28, %v244_v8  ;;  %v2770_v53 = vld [vmem:[%s2095_s19 + $0xd8] sm:$0xff]  ;;  %v2774_v43 = vld [vmem:[%s2095_s19 + $0xe0] sm:$0xff] }
  0x8b   : > { %v1230_v37 = vrot.slane %v1121_v40, 2  ;;  %v1677_v29 = vmul.f32 %v2733_v46, %v2715_v23  ;;  %v987_v0 = vsel %vm395_vm0, %v984_v7, %v986_v33  ;;  %v1358_v2 = vmul.f32 %v2111_v19, %v2681_v58 }
  0x8c   : > { %v1633_v39 = vadd.f32 %v1541_v30, %v1389_v51  ;;  %v320_v48 = vmul.f32 %v2099_v12, %v2589_v60  ;;  %v766_v52 = vadd.f32 %v675_v57, %v521_v21  ;;  %v1542_v44 = vrot.slane %v1433_v34, 1 }
  0x8d   : > { %v245_v61 = vmul.f32 %v2097_v11, %v2589_v60  ;;  %v2746_v20 = vmul.f32 %v2099_v12, %v2593_v15  ;;  %v1231_v63 = vsel %vm640_vm1, %v1228_v1, %v1230_v37  ;;  %v565_v10 = vmul.f32 %v2101_v13, %v2589_v60 }
  0x8e   : > { %v1877_v54 = vadd.f32 %v1785_v4, %v1633_v39  ;;  %v431_v7 = vrot.slane %v320_v48, 1  ;;  %v834_v26 = vadd.f32 %v802_v27, %v766_v52  ;;  %v1786_v55 = vrot.slane %v1677_v29, 2 }
  0x8f   : > { %v432_v47 = vrot.slane %v2746_v20, 1  ;;  %v566_v36 = vmul.f32 %v2101_v13, %v2593_v15  ;;  %v676_v62 = vrot.slane %v565_v10, 2  ;;  %v803_v31 = vmul.f32 %v2105_v16, %v2677_v56 }
  0x90   : > { %v1916_v50 = vadd.f32 %v2214_v49, %v1877_v54  ;;  %v878_v1 = vmul.f32 %v2107_v17, %v2677_v56  ;;  %v1078_v41 = vadd.f32 %v987_v0, %v834_v26  ;;  %v879_v3 = vmul.f32 %v2107_v17, %v2681_v58 }
  0x91   : > { %v433_v60 = vsel %vm395_vm0, %v431_v7, %v432_v47  ;;  %v677_v6 = vrot.slane %v566_v36, 2  ;;  %v1122_v42 = vmul.f32 %v2109_v18, %v2677_v56  ;;  %v1123_v9 = vmul.f32 %v2109_v18, %v2681_v58  ;;  %v2808_v36 = vld [vmem:[%s2095_s19 + $0xe8] sm:$0x3] }
  0x92   : > { %1949 = vst.msk [vmem:[%s2229_s27 + $0x60] sm:$0xff] %vm1936_vm2, %v1916_v50  ;;  %v522_v14 = vadd.f32 %v433_v60, %v245_v61  ;;  %v988_v38 = vrot.slane %v878_v1, 1  ;;  %v1322_v8 = vadd.f32 %v1231_v63, %v1078_v41  ;;  %v1543_v24 = vsel %vm395_vm0, %v1540_v22, %v1542_v44 }
  0x93   : > { %v678_v30 = vsel %vm640_vm1, %v676_v62, %v677_v6  ;;  %v989_v45 = vrot.slane %v879_v3, 1  ;;  %v1232_v27 = vrot.slane %v1122_v42, 2  ;;  %v1233_v33 = vrot.slane %v1123_v9, 2 }
  0x94   : > { %v767_v32 = vadd.f32 %v678_v30, %v522_v14  ;;  %v1434_v40 = vmul.f32 %v2122_v25, %v2770_v53  ;;  %v1390_v51 = vadd.f32 %v1358_v2, %v1322_v8  ;;  %v2781_v57 = vmul.f32 %v2122_v25, %v2774_v43 }
  0x95   : > { %v990_v28 = vsel %vm395_vm0, %v988_v38, %v989_v45  ;;  %v1678_v22 = vmul.f32 %v2733_v46, %v2770_v53  ;;  %v1787_v34 = vsel %vm640_vm1, %v1784_v35, %v1786_v55  ;;  %v2790_v37 = vmul.f32 %v2733_v46, %v2774_v43 }
  0x96   : > { %v835_v4 = vadd.f32 %v803_v31, %v767_v32  ;;  %v1544_v21 = vrot.slane %v1434_v40, 1  ;;  %v1634_v29 = vadd.f32 %v1543_v24, %v1390_v51  ;;  %v1234_v39 = vsel %vm640_vm1, %v1232_v27, %v1233_v33 }
  0x97   : > { %v1359_v0 = vmul.f32 %v2111_v19, %v2770_v53  ;;  %v1545_v2 = vrot.slane %v2781_v57, 1  ;;  %v1788_v52 = vrot.slane %v1678_v22, 2  ;;  %v322_v5 = vmul.f32 %v2099_v12, %v2627_v59 }
  0x98   : > { %v1079_v48 = vadd.f32 %v990_v28, %v835_v4  ;;  %v567_v35 = vmul.f32 %v2101_v13, %v2627_v59  ;;  %v1878_v44 = vadd.f32 %v1787_v34, %v1634_v29  ;;  %v1789_v61 = vrot.slane %v2790_v37, 2  ;;  %v2845_v34 = vld [vmem:[%s3539_s2] ss:$0 sm:$0xff] }
  0x99   : > { %v246_v20 = vmul.f32 %v2097_v11, %v2593_v15  ;;  %v880_v54 = vmul.f32 %v2107_v17, %v2715_v23  ;;  %v1546_v7 = vsel %vm395_vm0, %v1544_v21, %v1545_v2  ;;  %v434_v10 = vrot.slane %v322_v5, 1 }
  0x9a   : > { %v1323_v63 = vadd.f32 %v1234_v39, %v1079_v48  ;;  %v679_v26 = vrot.slane %v567_v35, 2  ;;  %v1917_v55 = vadd.f32 %v2214_v49, %v1878_v44  ;;  %v804_v59 = vmul.f32 %v2105_v16, %v2681_v58 }
  0x9b   : > { %v991_v50 = vrot.slane %v880_v54, 1  ;;  %v1124_v62 = vmul.f32 %v2109_v18, %v2715_v23  ;;  %v435_v31 = vsel %vm395_vm0, %v432_v47, %v434_v10  ;;  %v1436_v41 = vmul.f32 %v2122_v25, %v2808_v36 }
  0x9c   : > { %v1391_v15 = vadd.f32 %v1359_v0, %v1323_v63  ;;  %v680_v1 = vsel %vm640_vm1, %v677_v6, %v679_v26  ;;  %1950 = vst.msk [vmem:[%s2229_s27 + $0x68] sm:$0xff] %vm1936_vm2, %v1917_v55  ;;  %v1790_v49 = vsel %vm640_vm1, %v1788_v52, %v1789_v61  ;;  %v523_v60 = vadd.f32 %v435_v31, %v246_v20  ;;  %v2863_v63 = vld [vmem:[%s2095_s19 + $0xf0] sm:$0xff]  ;;  %v2867_v26 = vld [vmem:[%s2095_s19 + $0xf8] sm:$0xff] }
  0x9d   : > { %v1235_v3 = vrot.slane %v1124_v62, 2  ;;  %v1680_v14 = vmul.f32 %v2733_v46, %v2808_v36  ;;  %v992_v42 = vsel %vm395_vm0, %v989_v45, %v991_v50  ;;  %v1360_v47 = vmul.f32 %v2111_v19, %v2774_v43 }
  0x9e   : > { %v1635_v38 = vadd.f32 %v1546_v7, %v1391_v15  ;;  %v323_v6 = vmul.f32 %v2099_v12, %v2677_v56  ;;  %v768_v9 = vadd.f32 %v680_v1, %v523_v60  ;;  %v1547_v8 = vrot.slane %v1436_v41, 1 }
  0x9f   : > { %v247_v24 = vmul.f32 %v2097_v11, %v2677_v56  ;;  %v2834_v30 = vmul.f32 %v2099_v12, %v2681_v58  ;;  %v1236_v27 = vsel %vm640_vm1, %v1233_v33, %v1235_v3  ;;  %v568_v40 = vmul.f32 %v2101_v13, %v2677_v56 }
  0xa0   : > { %v1879_v32 = vadd.f32 %v1790_v49, %v1635_v38  ;;  %v436_v45 = vrot.slane %v323_v6, 1  ;;  %v836_v51 = vadd.f32 %v804_v59, %v768_v9  ;;  %v1791_v28 = vrot.slane %v1680_v14, 2 }
  0xa1   : > { %v437_v57 = vrot.slane %v2834_v30, 1  ;;  %v569_v22 = vmul.f32 %v2101_v13, %v2681_v58  ;;  %v681_v4 = vrot.slane %v568_v40, 2  ;;  %v805_v21 = vmul.f32 %v2105_v16, %v2770_v53 }
  0xa2   : > { %v1918_v33 = vadd.f32 %v2845_v34, %v1879_v32  ;;  %v881_v56 = vmul.f32 %v2107_v17, %v2770_v53  ;;  %v1080_v29 = vadd.f32 %v992_v42, %v836_v51  ;;  %v882_v48 = vmul.f32 %v2107_v17, %v2774_v43 }
  0xa3   : > { %v438_v39 = vsel %vm395_vm0, %v436_v45, %v437_v57  ;;  %v682_v0 = vrot.slane %v569_v22, 2  ;;  %v1125_v35 = vmul.f32 %v2109_v18, %v2770_v53  ;;  %v1126_v44 = vmul.f32 %v2109_v18, %v2774_v43  ;;  %v2901_v22 = vld [vmem:[%s2095_s19 + $0x100] sm:$0x3] }
  0xa4   : > { %1951 = vst.msk [vmem:[%s2229_s27 + $0x70] sm:$0xff] %vm1936_vm2, %v1918_v33  ;;  %v524_v52 = vadd.f32 %v438_v39, %v247_v24  ;;  %v993_v5 = vrot.slane %v881_v56, 1  ;;  %v1324_v20 = vadd.f32 %v1236_v27, %v1080_v29  ;;  %v1548_v54 = vsel %vm395_vm0, %v1545_v2, %v1547_v8 }
  0xa5   : > { %v683_v7 = vsel %vm640_vm1, %v681_v4, %v682_v0  ;;  %v994_v10 = vrot.slane %v882_v48, 1  ;;  %v1237_v59 = vrot.slane %v1125_v35, 2  ;;  %v1238_v50 = vrot.slane %v1126_v44, 2 }
  0xa6   : > { %v769_v55 = vadd.f32 %v683_v7, %v524_v52  ;;  %v1437_v62 = vmul.f32 %v2122_v25, %v2863_v63  ;;  %v1392_v15 = vadd.f32 %v1360_v47, %v1324_v20  ;;  %v2874_v1 = vmul.f32 %v2122_v25, %v2867_v26 }
  0xa7   : > { %v995_v31 = vsel %vm395_vm0, %v993_v5, %v994_v10  ;;  %v1681_v2 = vmul.f32 %v2733_v46, %v2863_v63  ;;  %v1792_v41 = vsel %vm640_vm1, %v1789_v61, %v1791_v28  ;;  %v2883_v3 = vmul.f32 %v2733_v46, %v2867_v26 }
  0xa8   : > { %v837_v49 = vadd.f32 %v805_v21, %v769_v55  ;;  %v1549_v60 = vrot.slane %v1437_v62, 1  ;;  %v1636_v14 = vadd.f32 %v1548_v54, %v1392_v15  ;;  %v1239_v38 = vsel %vm640_vm1, %v1237_v59, %v1238_v50 }
  0xa9   : > { %v1361_v42 = vmul.f32 %v2111_v19, %v2863_v63  ;;  %v1550_v47 = vrot.slane %v2874_v1, 1  ;;  %v1793_v9 = vrot.slane %v1681_v2, 2  ;;  %v325_v37 = vmul.f32 %v2099_v12, %v2715_v23 }
  0xaa   : > { %v1081_v6 = vadd.f32 %v995_v31, %v837_v49  ;;  %v570_v61 = vmul.f32 %v2101_v13, %v2715_v23  ;;  %v1880_v8 = vadd.f32 %v1792_v41, %v1636_v14  ;;  %v1794_v24 = vrot.slane %v2883_v3, 2 }
  0xab   : > { %v248_v30 = vmul.f32 %v2097_v11, %v2681_v58  ;;  %v883_v32 = vmul.f32 %v2107_v17, %v2808_v36  ;;  %v1551_v45 = vsel %vm395_vm0, %v1549_v60, %v1550_v47  ;;  %v439_v40 = vrot.slane %v325_v37, 1 }
  0xac   : > { %v1325_v27 = vadd.f32 %v1239_v38, %v1081_v6  ;;  %v684_v51 = vrot.slane %v570_v61, 2  ;;  %v1919_v28 = vadd.f32 %v2845_v34, %v1880_v8  ;;  %v806_v23 = vmul.f32 %v2105_v16, %v2774_v43 }
  0xad   : > { %v996_v33 = vrot.slane %v883_v32, 1  ;;  %v1127_v4 = vmul.f32 %v2109_v18, %v2808_v36  ;;  %v440_v21 = vsel %vm395_vm0, %v437_v57, %v439_v40  ;;  %v1439_v29 = vmul.f32 %v2122_v25, %v2901_v22 }
  0xae   : > { %v1393_v58 = vadd.f32 %v1361_v42, %v1325_v27  ;;  %v685_v56 = vsel %vm640_vm1, %v682_v0, %v684_v51  ;;  %1952 = vst.msk [vmem:[%s2229_s27 + $0x78] sm:$0xff] %vm1936_vm2, %v1919_v28  ;;  %v1795_v39 = vsel %vm640_vm1, %v1793_v9, %v1794_v24  ;;  %v525_v48 = vadd.f32 %v440_v21, %v248_v30  ;;  %v2951_v27 = vld [vmem:[%s2095_s19 + $0x108] sm:$0xff]  ;;  %v2955_v51 = vld [vmem:[%s2095_s19 + $0x110] sm:$0xff] }
  0xaf   : > { %v1240_v52 = vrot.slane %v1127_v4, 2  ;;  %v1683_v5 = vmul.f32 %v2733_v46, %v2901_v22  ;;  %v997_v44 = vsel %vm395_vm0, %v994_v10, %v996_v33  ;;  %v1362_v57 = vmul.f32 %v2111_v19, %v2867_v26 }
  0xb0   : > { %v1637_v35 = vadd.f32 %v1551_v45, %v1393_v58  ;;  %v326_v0 = vmul.f32 %v2099_v12, %v2770_v53  ;;  %v770_v20 = vadd.f32 %v685_v56, %v525_v48  ;;  %v1552_v54 = vrot.slane %v1439_v29, 1 }
  0xb1   : > { %v249_v7 = vmul.f32 %v2097_v11, %v2770_v53  ;;  %v2927_v55 = vmul.f32 %v2099_v12, %v2774_v43  ;;  %v1241_v62 = vsel %vm640_vm1, %v1238_v50, %v1240_v52  ;;  %v571_v15 = vmul.f32 %v2101_v13, %v2770_v53 }
  0xb2   : > { %v1881_v59 = vadd.f32 %v1795_v39, %v1637_v35  ;;  %v441_v10 = vrot.slane %v326_v0, 1  ;;  %v838_v31 = vadd.f32 %v806_v23, %v770_v20  ;;  %v1796_v1 = vrot.slane %v1683_v5, 2 }
  0xb3   : > { %v442_v2 = vrot.slane %v2927_v55, 1  ;;  %v572_v41 = vmul.f32 %v2101_v13, %v2774_v43  ;;  %v686_v60 = vrot.slane %v571_v15, 2  ;;  %v807_v14 = vmul.f32 %v2105_v16, %v2863_v63 }
  0xb4   : > { %v1920_v49 = vadd.f32 %v2845_v34, %v1881_v59  ;;  %v884_v50 = vmul.f32 %v2107_v17, %v2863_v63  ;;  %v1082_v38 = vadd.f32 %v997_v44, %v838_v31  ;;  %v885_v6 = vmul.f32 %v2107_v17, %v2867_v26 }
  0xb5   : > { %v443_v53 = vsel %vm395_vm0, %v441_v10, %v442_v2  ;;  %v687_v42 = vrot.slane %v572_v41, 2  ;;  %v1128_v61 = vmul.f32 %v2109_v18, %v2863_v63  ;;  %v1129_v8 = vmul.f32 %v2109_v18, %v2867_v26  ;;  %v2989_v41 = vld [vmem:[%s2095_s19 + $0x118] sm:$0x3] }
  0xb6   : > { %1953 = vst.msk [vmem:[%s2229_s27 + $0x80] sm:$0xff] %vm1936_vm2, %v1920_v49  ;;  %v526_v9 = vadd.f32 %v443_v53, %v249_v7  ;;  %v998_v37 = vrot.slane %v884_v50, 1  ;;  %v1326_v30 = vadd.f32 %v1241_v62, %v1082_v38  ;;  %v1553_v32 = vsel %vm395_vm0, %v1550_v47, %v1552_v54 }
  0xb7   : > { %v688_v45 = vsel %vm640_vm1, %v686_v60, %v687_v42  ;;  %v999_v40 = vrot.slane %v885_v6, 1  ;;  %v1242_v23 = vrot.slane %v1128_v61, 2  ;;  %v1243_v33 = vrot.slane %v1129_v8, 2 }
  0xb8   : > { %v771_v28 = vadd.f32 %v688_v45, %v526_v9  ;;  %v1440_v4 = vmul.f32 %v2122_v25, %v2951_v27  ;;  %v1394_v58 = vadd.f32 %v1362_v57, %v1326_v30  ;;  %v2962_v56 = vmul.f32 %v2122_v25, %v2955_v51 }
  0xb9   : > { %v1000_v21 = vsel %vm395_vm0, %v998_v37, %v999_v40  ;;  %v1684_v47 = vmul.f32 %v2733_v46, %v2951_v27  ;;  %v1797_v29 = vsel %vm640_vm1, %v1794_v24, %v1796_v1  ;;  %v2971_v52 = vmul.f32 %v2733_v46, %v2955_v51 }
  0xba   : > { %v839_v39 = vadd.f32 %v807_v14, %v771_v28  ;;  %v1554_v48 = vrot.slane %v1440_v4, 1  ;;  %v1638_v5 = vadd.f32 %v1553_v32, %v1394_v58  ;;  %v1244_v35 = vsel %vm640_vm1, %v1242_v23, %v1243_v33 }
  0xbb   : > { %v1363_v44 = vmul.f32 %v2111_v19, %v2951_v27  ;;  %v1555_v57 = vrot.slane %v2962_v56, 1  ;;  %v1798_v20 = vrot.slane %v1684_v47, 2  ;;  %v328_v3 = vmul.f32 %v2099_v12, %v2808_v36 }
  0xbc   : > { %v1083_v0 = vadd.f32 %v1000_v21, %v839_v39  ;;  %v573_v24 = vmul.f32 %v2101_v13, %v2808_v36  ;;  %v1882_v54 = vadd.f32 %v1797_v29, %v1638_v5  ;;  %v1799_v7 = vrot.slane %v2971_v52, 2 }
  0xbd   : > { %v250_v55 = vmul.f32 %v2097_v11, %v2774_v43  ;;  %v886_v59 = vmul.f32 %v2107_v17, %v2901_v22  ;;  %v1556_v10 = vsel %vm395_vm0, %v1554_v48, %v1555_v57  ;;  %v444_v15 = vrot.slane %v328_v3, 1 }
  0xbe   : > { %v1327_v62 = vadd.f32 %v1244_v35, %v1083_v0  ;;  %v689_v31 = vrot.slane %v573_v24, 2  ;;  %v1921_v1 = vadd.f32 %v2845_v34, %v1882_v54  ;;  %v808_v36 = vmul.f32 %v2105_v16, %v2867_v26 }
  0xbf   : > { %v1001_v49 = vrot.slane %v886_v59, 1  ;;  %v1130_v60 = vmul.f32 %v2109_v18, %v2901_v22  ;;  %v445_v14 = vsel %vm395_vm0, %v442_v2, %v444_v15  ;;  %v1442_v38 = vmul.f32 %v2122_v25, %v2989_v41 }
  0xc0   : > { %v1395_v43 = vadd.f32 %v1363_v44, %v1327_v62  ;;  %v690_v50 = vsel %vm640_vm1, %v687_v42, %v689_v31  ;;  %1954 = vst.msk [vmem:[%s2229_s27 + $0x88] sm:$0xff] %vm1936_vm2, %v1921_v1  ;;  %v1800_v53 = vsel %vm640_vm1, %v1798_v20, %v1799_v7  ;;  %v527_v6 = vadd.f32 %v445_v14, %v250_v55  ;;  %v3039_v62 = vld [vmem:[%s2095_s19 + $0x120] sm:$0xff]  ;;  %v3043_v31 = vld [vmem:[%s2095_s19 + $0x128] sm:$0xff] }
  0xc1   : > { %v1245_v9 = vrot.slane %v1130_v60, 2  ;;  %v1686_v37 = vmul.f32 %v2733_v46, %v2989_v41  ;;  %v1002_v8 = vsel %vm395_vm0, %v999_v40, %v1001_v49  ;;  %v1364_v2 = vmul.f32 %v2111_v19, %v2955_v51 }
  0xc2   : > { %v1639_v61 = vadd.f32 %v1556_v10, %v1395_v43  ;;  %v329_v42 = vmul.f32 %v2099_v12, %v2863_v63  ;;  %v772_v30 = vadd.f32 %v690_v50, %v527_v6  ;;  %v1557_v32 = vrot.slane %v1442_v38, 1 }
  0xc3   : > { %v251_v45 = vmul.f32 %v2097_v11, %v2863_v63  ;;  %v3015_v28 = vmul.f32 %v2099_v12, %v2867_v26  ;;  %v1246_v4 = vsel %vm640_vm1, %v1243_v33, %v1245_v9  ;;  %v574_v58 = vmul.f32 %v2101_v13, %v2863_v63 }
  0xc4   : > { %v1883_v23 = vadd.f32 %v1800_v53, %v1639_v61  ;;  %v446_v40 = vrot.slane %v329_v42, 1  ;;  %v840_v21 = vadd.f32 %v808_v36, %v772_v30  ;;  %v1801_v56 = vrot.slane %v1686_v37, 2 }
  0xc5   : > { %v447_v47 = vrot.slane %v3015_v28, 1  ;;  %v575_v29 = vmul.f32 %v2101_v13, %v2867_v26  ;;  %v691_v48 = vrot.slane %v574_v58, 2  ;;  %v809_v5 = vmul.f32 %v2105_v16, %v2951_v27 }
  0xc6   : > { %v1922_v39 = vadd.f32 %v2845_v34, %v1883_v23  ;;  %v887_v33 = vmul.f32 %v2107_v17, %v2951_v27  ;;  %v1084_v35 = vadd.f32 %v1002_v8, %v840_v21  ;;  %v888_v0 = vmul.f32 %v2107_v17, %v2955_v51 }
  0xc7   : > { %v448_v63 = vsel %vm395_vm0, %v446_v40, %v447_v47  ;;  %v692_v44 = vrot.slane %v575_v29, 2  ;;  %v1131_v24 = vmul.f32 %v2109_v18, %v2951_v27  ;;  %v1132_v54 = vmul.f32 %v2109_v18, %v2955_v51  ;;  %v3077_v29 = vld [vmem:[%s2095_s19 + $0x130] sm:$0x3] }
  0xc8   : > { %1955 = vst.msk [vmem:[%s2229_s27 + $0x90] sm:$0xff] %vm1936_vm2, %v1922_v39  ;;  %v528_v20 = vadd.f32 %v448_v63, %v251_v45  ;;  %v1003_v3 = vrot.slane %v887_v33, 1  ;;  %v1328_v55 = vadd.f32 %v1246_v4, %v1084_v35  ;;  %v1558_v59 = vsel %vm395_vm0, %v1555_v57, %v1557_v32 }
  0xc9   : > { %v693_v10 = vsel %vm640_vm1, %v691_v48, %v692_v44  ;;  %v1004_v15 = vrot.slane %v888_v0, 1  ;;  %v1247_v36 = vrot.slane %v1131_v24, 2  ;;  %v1248_v49 = vrot.slane %v1132_v54, 2 }
  0xca   : > { %v773_v1 = vadd.f32 %v693_v10, %v528_v20  ;;  %v1443_v60 = vmul.f32 %v2122_v25, %v3039_v62  ;;  %v1396_v43 = vadd.f32 %v1364_v2, %v1328_v55  ;;  %v3050_v50 = vmul.f32 %v2122_v25, %v3043_v31 }
  0xcb   : > { %v1005_v14 = vsel %vm395_vm0, %v1003_v3, %v1004_v15  ;;  %v1687_v57 = vmul.f32 %v2733_v46, %v3039_v62  ;;  %v1802_v38 = vsel %vm640_vm1, %v1799_v7, %v1801_v56  ;;  %v3059_v9 = vmul.f32 %v2733_v46, %v3043_v31 }
  0xcc   : > { %v841_v53 = vadd.f32 %v809_v5, %v773_v1  ;;  %v1559_v6 = vrot.slane %v1443_v60, 1  ;;  %v1640_v37 = vadd.f32 %v1558_v59, %v1396_v43  ;;  %v1249_v61 = vsel %vm640_vm1, %v1247_v36, %v1248_v49 }
  0xcd   : > { %v1365_v8 = vmul.f32 %v2111_v19, %v3039_v62  ;;  %v1560_v2 = vrot.slane %v3050_v50, 1  ;;  %v1803_v30 = vrot.slane %v1687_v57, 2  ;;  %v331_v52 = vmul.f32 %v2099_v12, %v2901_v22 }
  0xce   : > { %v1085_v42 = vadd.f32 %v1005_v14, %v841_v53  ;;  %v576_v7 = vmul.f32 %v2101_v13, %v2901_v22  ;;  %v1884_v32 = vadd.f32 %v1802_v38, %v1640_v37  ;;  %v1804_v45 = vrot.slane %v3059_v9, 2 }
  0xcf   : > { %v252_v28 = vmul.f32 %v2097_v11, %v2867_v26  ;;  %v889_v23 = vmul.f32 %v2107_v17, %v2989_v41  ;;  %v1561_v40 = vsel %vm395_vm0, %v1559_v6, %v1560_v2  ;;  %v449_v58 = vrot.slane %v331_v52, 1 }
  0xd0   : > { %v1329_v4 = vadd.f32 %v1249_v61, %v1085_v42  ;;  %v694_v21 = vrot.slane %v576_v7, 2  ;;  %v1923_v56 = vadd.f32 %v2845_v34, %v1884_v32  ;;  %v810_v22 = vmul.f32 %v2105_v16, %v2955_v51 }
  0xd1   : > { %v1006_v39 = vrot.slane %v889_v23, 1  ;;  %v1133_v48 = vmul.f32 %v2109_v18, %v2989_v41  ;;  %v450_v5 = vsel %vm395_vm0, %v447_v47, %v449_v58  ;;  %v1445_v35 = vmul.f32 %v2122_v25, %v3077_v29 }
  0xd2   : > { %v1397_v26 = vadd.f32 %v1365_v8, %v1329_v4  ;;  %v695_v33 = vsel %vm640_vm1, %v692_v44, %v694_v21  ;;  %1956 = vst.msk [vmem:[%s2229_s27 + $0x98] sm:$0xff] %vm1936_vm2, %v1923_v56  ;;  %v1805_v63 = vsel %vm640_vm1, %v1803_v30, %v1804_v45  ;;  %v529_v0 = vadd.f32 %v450_v5, %v252_v28  ;;  %v3127_v4 = vld [vmem:[%s2095_s19 + $0x138] sm:$0xff]  ;;  %v3131_v21 = vld [vmem:[%s2095_s19 + $0x140] sm:$0xff] }
  0xd3   : > { %v1250_v20 = vrot.slane %v1133_v48, 2  ;;  %v1689_v3 = vmul.f32 %v2733_v46, %v3077_v29  ;;  %v1007_v54 = vsel %vm395_vm0, %v1004_v15, %v1006_v39  ;;  %v1366_v47 = vmul.f32 %v2111_v19, %v3043_v31 }
  0xd4   : > { %v1641_v24 = vadd.f32 %v1561_v40, %v1397_v26  ;;  %v332_v44 = vmul.f32 %v2099_v12, %v2951_v27  ;;  %v774_v55 = vadd.f32 %v695_v33, %v529_v0  ;;  %v1562_v59 = vrot.slane %v1445_v35, 1 }
  0xd5   : > { %v253_v10 = vmul.f32 %v2097_v11, %v2951_v27  ;;  %v3103_v1 = vmul.f32 %v2099_v12, %v2955_v51  ;;  %v1251_v60 = vsel %vm640_vm1, %v1248_v49, %v1250_v20  ;;  %v577_v43 = vmul.f32 %v2101_v13, %v2951_v27 }
  0xd6   : > { %v1885_v36 = vadd.f32 %v1805_v63, %v1641_v24  ;;  %v451_v15 = vrot.slane %v332_v44, 1  ;;  %v842_v14 = vadd.f32 %v810_v22, %v774_v55  ;;  %v1806_v50 = vrot.slane %v1689_v3, 2 }
  0xd7   : > { %v452_v57 = vrot.slane %v3103_v1, 1  ;;  %v578_v38 = vmul.f32 %v2101_v13, %v2955_v51  ;;  %v696_v6 = vrot.slane %v577_v43, 2  ;;  %v811_v37 = vmul.f32 %v2105_v16, %v3039_v62 }
  0xd8   : > { %v1924_v53 = vadd.f32 %v2845_v34, %v1885_v36  ;;  %v890_v49 = vmul.f32 %v2107_v17, %v3039_v62  ;;  %v1086_v61 = vadd.f32 %v1007_v54, %v842_v14  ;;  %v891_v42 = vmul.f32 %v2107_v17, %v3043_v31 }
  0xd9   : > { %v453_v27 = vsel %vm395_vm0, %v451_v15, %v452_v57  ;;  %v697_v8 = vrot.slane %v578_v38, 2  ;;  %v1134_v7 = vmul.f32 %v2109_v18, %v3039_v62  ;;  %v1135_v32 = vmul.f32 %v2109_v18, %v3043_v31  ;;  %v3165_v38 = vld [vmem:[%s2095_s19 + $0x148] sm:$0x3] }
  0xda   : > { %1957 = vst.msk [vmem:[%s2229_s27 + $0xa0] sm:$0xff] %vm1936_vm2, %v1924_v53  ;;  %v530_v30 = vadd.f32 %v453_v27, %v253_v10  ;;  %v1008_v52 = vrot.slane %v890_v49, 1  ;;  %v1330_v28 = vadd.f32 %v1251_v60, %v1086_v61  ;;  %v1563_v23 = vsel %vm395_vm0, %v1560_v2, %v1562_v59 }
  0xdb   : > { %v698_v40 = vsel %vm640_vm1, %v696_v6, %v697_v8  ;;  %v1009_v58 = vrot.slane %v891_v42, 1  ;;  %v1252_v22 = vrot.slane %v1134_v7, 2  ;;  %v1253_v39 = vrot.slane %v1135_v32, 2 }
  0xdc   : > { %v775_v56 = vadd.f32 %v698_v40, %v530_v30  ;;  %v1446_v48 = vmul.f32 %v2122_v25, %v3127_v4  ;;  %v1398_v26 = vadd.f32 %v1366_v47, %v1330_v28  ;;  %v3138_v33 = vmul.f32 %v2122_v25, %v3131_v21 }
  0xdd   : > { %v1010_v5 = vsel %vm395_vm0, %v1008_v52, %v1009_v58  ;;  %v1690_v2 = vmul.f32 %v2733_v46, %v3127_v4  ;;  %v1807_v35 = vsel %vm640_vm1, %v1804_v45, %v1806_v50  ;;  %v3147_v20 = vmul.f32 %v2733_v46, %v3131_v21 }
  0xde   : > { %v843_v63 = vadd.f32 %v811_v37, %v775_v56  ;;  %v1564_v0 = vrot.slane %v1446_v48, 1  ;;  %v1642_v3 = vadd.f32 %v1563_v23, %v1398_v26  ;;  %v1254_v24 = vsel %vm640_vm1, %v1252_v22, %v1253_v39 }
  0xdf   : > { %v1367_v54 = vmul.f32 %v2111_v19, %v3127_v4  ;;  %v1565_v47 = vrot.slane %v3138_v33, 1  ;;  %v1808_v55 = vrot.slane %v1690_v2, 2  ;;  %v334_v9 = vmul.f32 %v2099_v12, %v2989_v41 }
  0xe0   : > { %v1087_v44 = vadd.f32 %v1010_v5, %v843_v63  ;;  %v579_v45 = vmul.f32 %v2101_v13, %v2989_v41  ;;  %v1886_v59 = vadd.f32 %v1807_v35, %v1642_v3  ;;  %v1809_v10 = vrot.slane %v3147_v20, 2 }
  0xe1   : > { %v254_v1 = vmul.f32 %v2097_v11, %v2955_v51  ;;  %v892_v36 = vmul.f32 %v2107_v17, %v3077_v29  ;;  %v1566_v15 = vsel %vm395_vm0, %v1564_v0, %v1565_v47  ;;  %v454_v43 = vrot.slane %v334_v9, 1 }
  0xe2   : > { %v1331_v60 = vadd.f32 %v1254_v24, %v1087_v44  ;;  %v699_v14 = vrot.slane %v579_v45, 2  ;;  %v1925_v50 = vadd.f32 %v2845_v34, %v1886_v59  ;;  %v812_v41 = vmul.f32 %v2105_v16, %v3043_v31 }
  0xe3   : > { %v1011_v53 = vrot.slane %v892_v36, 1  ;;  %v1136_v6 = vmul.f32 %v2109_v18, %v3077_v29  ;;  %v455_v37 = vsel %vm395_vm0, %v452_v57, %v454_v43  ;;  %v1448_v61 = vmul.f32 %v2122_v25, %v3165_v38 }
  0xe4   : > { %v1399_v51 = vadd.f32 %v1367_v54, %v1331_v60  ;;  %v700_v49 = vsel %vm640_vm1, %v697_v8, %v699_v14  ;;  %1958 = vst.msk [vmem:[%s2229_s27 + $0xa8] sm:$0xff] %vm1936_vm2, %v1925_v50  ;;  %v1810_v27 = vsel %vm640_vm1, %v1808_v55, %v1809_v10  ;;  %v531_v42 = vadd.f32 %v455_v37, %v254_v1  ;;  %v3215_v60 = vld [vmem:[%s2095_s19 + $0x150] sm:$0xff]  ;;  %v3219_v14 = vld [vmem:[%s2095_s19 + $0x158] sm:$0xff] }
  0xe5   : > { %v1255_v30 = vrot.slane %v1136_v6, 2  ;;  %v1692_v52 = vmul.f32 %v2733_v46, %v3165_v38  ;;  %v1012_v32 = vsel %vm395_vm0, %v1009_v58, %v1011_v53  ;;  %v1368_v57 = vmul.f32 %v2111_v19, %v3131_v21 }
  0xe6   : > { %v1643_v7 = vadd.f32 %v1566_v15, %v1399_v51  ;;  %v335_v8 = vmul.f32 %v2099_v12, %v3039_v62  ;;  %v776_v28 = vadd.f32 %v700_v49, %v531_v42  ;;  %v1567_v23 = vrot.slane %v1448_v61, 1 }
  0xe7   : > { %v255_v40 = vmul.f32 %v2097_v11, %v3039_v62  ;;  %v3191_v56 = vmul.f32 %v2099_v12, %v3043_v31  ;;  %v1256_v48 = vsel %vm640_vm1, %v1253_v39, %v1255_v30  ;;  %v580_v26 = vmul.f32 %v2101_v13, %v3039_v62 }
  0xe8   : > { %v1887_v22 = vadd.f32 %v1810_v27, %v1643_v7  ;;  %v456_v58 = vrot.slane %v335_v8, 1  ;;  %v844_v5 = vadd.f32 %v812_v41, %v776_v28  ;;  %v1811_v33 = vrot.slane %v1692_v52, 2 }
  0xe9   : > { %v457_v2 = vrot.slane %v3191_v56, 1  ;;  %v581_v35 = vmul.f32 %v2101_v13, %v3043_v31  ;;  %v701_v0 = vrot.slane %v580_v26, 2  ;;  %v813_v3 = vmul.f32 %v2105_v16, %v3127_v4 }
  0xea   : > { %v1926_v63 = vadd.f32 %v2845_v34, %v1887_v22  ;;  %v893_v39 = vmul.f32 %v2107_v17, %v3127_v4  ;;  %v1088_v24 = vadd.f32 %v1012_v32, %v844_v5  ;;  %v894_v44 = vmul.f32 %v2107_v17, %v3131_v21 }
  0xeb   : > { %v458_v62 = vsel %vm395_vm0, %v456_v58, %v457_v2  ;;  %v702_v54 = vrot.slane %v581_v35, 2  ;;  %v1137_v45 = vmul.f32 %v2109_v18, %v3127_v4  ;;  %v1138_v59 = vmul.f32 %v2109_v18, %v3131_v21  ;;  %v3253_v35 = vld [vmem:[%s2095_s19 + $0x160] sm:$0x3] }
  0xec   : > { %1959 = vst.msk [vmem:[%s2229_s27 + $0xb0] sm:$0xff] %vm1936_vm2, %v1926_v63  ;;  %v532_v55 = vadd.f32 %v458_v62, %v255_v40  ;;  %v1013_v9 = vrot.slane %v893_v39, 1  ;;  %v1332_v1 = vadd.f32 %v1256_v48, %v1088_v24  ;;  %v1568_v36 = vsel %vm395_vm0, %v1565_v47, %v1567_v23 }
  0xed   : > { %v703_v15 = vsel %vm640_vm1, %v701_v0, %v702_v54  ;;  %v1014_v43 = vrot.slane %v894_v44, 1  ;;  %v1257_v41 = vrot.slane %v1137_v45, 2  ;;  %v1258_v53 = vrot.slane %v1138_v59, 2 }
  0xee   : > { %v777_v50 = vadd.f32 %v703_v15, %v532_v55  ;;  %v1449_v6 = vmul.f32 %v2122_v25, %v3215_v60  ;;  %v1400_v51 = vadd.f32 %v1368_v57, %v1332_v1  ;;  %v3226_v49 = vmul.f32 %v2122_v25, %v3219_v14 }
  0xef   : > { %v1015_v37 = vsel %vm395_vm0, %v1013_v9, %v1014_v43  ;;  %v1693_v47 = vmul.f32 %v2733_v46, %v3215_v60  ;;  %v1812_v61 = vsel %vm640_vm1, %v1809_v10, %v1811_v33  ;;  %v3235_v30 = vmul.f32 %v2733_v46, %v3219_v14 }
  0xf0   : > { %v845_v27 = vadd.f32 %v813_v3, %v777_v50  ;;  %v1569_v42 = vrot.slane %v1449_v6, 1  ;;  %v1644_v52 = vadd.f32 %v1568_v36, %v1400_v51  ;;  %v1259_v7 = vsel %vm640_vm1, %v1257_v41, %v1258_v53 }
  0xf1   : > { %v1369_v32 = vmul.f32 %v2111_v19, %v3215_v60  ;;  %v1570_v57 = vrot.slane %v3226_v49, 1  ;;  %v1813_v28 = vrot.slane %v1693_v47, 2  ;;  %v337_v20 = vmul.f32 %v2099_v12, %v3077_v29 }
  0xf2   : > { %v1089_v8 = vadd.f32 %v1015_v37, %v845_v27  ;;  %v582_v10 = vmul.f32 %v2101_v13, %v3077_v29  ;;  %v1888_v23 = vadd.f32 %v1812_v61, %v1644_v52  ;;  %v1814_v40 = vrot.slane %v3235_v30, 2 }
  0xf3   : > { %v256_v56 = vmul.f32 %v2097_v11, %v3043_v31  ;;  %v895_v22 = vmul.f32 %v2107_v17, %v3165_v38  ;;  %v1571_v58 = vsel %vm395_vm0, %v1569_v42, %v1570_v57  ;;  %v459_v26 = vrot.slane %v337_v20, 1 }
  0xf4   : > { %v1333_v48 = vadd.f32 %v1259_v7, %v1089_v8  ;;  %v704_v5 = vrot.slane %v582_v10, 2  ;;  %v1927_v33 = vadd.f32 %v2845_v34, %v1888_v23  ;;  %v814_v29 = vmul.f32 %v2105_v16, %v3131_v21 }
  0xf5   : > { %v1016_v63 = vrot.slane %v895_v22, 1  ;;  %v1139_v0 = vmul.f32 %v2109_v18, %v3165_v38  ;;  %v460_v3 = vsel %vm395_vm0, %v457_v2, %v459_v26  ;;  %v1451_v24 = vmul.f32 %v2122_v25, %v3253_v35 }
  0xf6   : > { %v1401_v31 = vadd.f32 %v1369_v32, %v1333_v48  ;;  %v705_v39 = vsel %vm640_vm1, %v702_v54, %v704_v5  ;;  %1960 = vst.msk [vmem:[%s2229_s27 + $0xb8] sm:$0xff] %vm1936_vm2, %v1927_v33  ;;  %v1815_v62 = vsel %vm640_vm1, %v1813_v28, %v1814_v40  ;;  %v533_v44 = vadd.f32 %v460_v3, %v256_v56  ;;  %v3303_v48 = vld [vmem:[%s2095_s19 + $0x168] sm:$0xff]  ;;  %v3307_v5 = vld [vmem:[%s2095_s19 + $0x170] sm:$0xff] }
  0xf7   : > { %v1260_v55 = vrot.slane %v1139_v0, 2  ;;  %v1695_v9 = vmul.f32 %v2733_v46, %v3253_v35  ;;  %v1017_v59 = vsel %vm395_vm0, %v1014_v43, %v1016_v63  ;;  %v1370_v2 = vmul.f32 %v2111_v19, %v3219_v14 }
  0xf8   : > { %v1645_v45 = vadd.f32 %v1571_v58, %v1401_v31  ;;  %v338_v54 = vmul.f32 %v2099_v12, %v3127_v4  ;;  %v778_v1 = vadd.f32 %v705_v39, %v533_v44  ;;  %v1572_v36 = vrot.slane %v1451_v24, 1 }
  0xf9   : > { %v257_v15 = vmul.f32 %v2097_v11, %v3127_v4  ;;  %v3279_v50 = vmul.f32 %v2099_v12, %v3131_v21  ;;  %v1261_v6 = vsel %vm640_vm1, %v1258_v53, %v1260_v55  ;;  %v583_v51 = vmul.f32 %v2101_v13, %v3127_v4 }
  0xfa   : > { %v1889_v41 = vadd.f32 %v1815_v62, %v1645_v45  ;;  %v461_v43 = vrot.slane %v338_v54, 1  ;;  %v846_v37 = vadd.f32 %v814_v29, %v778_v1  ;;  %v1816_v49 = vrot.slane %v1695_v9, 2 }
  0xfb   : > { %v462_v47 = vrot.slane %v3279_v50, 1  ;;  %v584_v61 = vmul.f32 %v2101_v13, %v3131_v21  ;;  %v706_v42 = vrot.slane %v583_v51, 2  ;;  %v815_v52 = vmul.f32 %v2105_v16, %v3215_v60 }
  0xfc   : > { %v1928_v27 = vadd.f32 %v2845_v34, %v1889_v41  ;;  %v896_v53 = vmul.f32 %v2107_v17, %v3215_v60  ;;  %v1090_v7 = vadd.f32 %v1017_v59, %v846_v37  ;;  %v897_v8 = vmul.f32 %v2107_v17, %v3219_v14 }
  0xfd   : > { %v463_v4 = vsel %vm395_vm0, %v461_v43, %v462_v47  ;;  %v707_v32 = vrot.slane %v584_v61, 2  ;;  %v1140_v10 = vmul.f32 %v2109_v18, %v3215_v60  ;;  %v1141_v23 = vmul.f32 %v2109_v18, %v3219_v14 }
  0xfe   : > { %1961 = vst.msk [vmem:[%s2229_s27 + $0xc0] sm:$0xff] %vm1936_vm2, %v1928_v27  ;;  %v534_v28 = vadd.f32 %v463_v4, %v257_v15  ;;  %v1018_v20 = vrot.slane %v896_v53, 1  ;;  %v1334_v56 = vadd.f32 %v1261_v6, %v1090_v7  ;;  %v1573_v22 = vsel %vm395_vm0, %v1570_v57, %v1572_v36 }
  0xff   : > { %v708_v58 = vsel %vm640_vm1, %v706_v42, %v707_v32  ;;  %v1019_v26 = vrot.slane %v897_v8, 1  ;;  %v1262_v29 = vrot.slane %v1140_v10, 2  ;;  %v1263_v63 = vrot.slane %v1141_v23, 2 }
 0x100   : > { %v779_v33 = vadd.f32 %v708_v58, %v534_v28  ;;  %v1452_v0 = vmul.f32 %v2122_v25, %v3303_v48  ;;  %v1402_v31 = vadd.f32 %v1370_v2, %v1334_v56  ;;  %v3314_v39 = vmul.f32 %v2122_v25, %v3307_v5  ;;  %v3359_v28 = vld [vmem:[%s3538_s1 + $0x8] ss:$0 sm:$0xff] }
 0x101   : > { %v1020_v3 = vsel %vm395_vm0, %v1018_v20, %v1019_v26  ;;  %v1696_v57 = vmul.f32 %v2733_v46, %v3303_v48  ;;  %v1817_v24 = vsel %vm640_vm1, %v1814_v40, %v1816_v49  ;;  %v3323_v55 = vmul.f32 %v2733_v46, %v3307_v5  ;;  %v3341_v49 = vld [vmem:[%s2095_s19 + $0x178] sm:$0x3] }
 0x102   : > { %v847_v62 = vadd.f32 %v815_v52, %v779_v33  ;;  %v1574_v44 = vrot.slane %v1452_v0, 1  ;;  %v1646_v9 = vadd.f32 %v1573_v22, %v1402_v31  ;;  %v1264_v45 = vsel %vm640_vm1, %v1262_v29, %v1263_v63 }
 0x103   : > { %v1371_v59 = vmul.f32 %v2111_v19, %v3303_v48  ;;  %v1575_v2 = vrot.slane %v3314_v39, 1  ;;  %v1818_v1 = vrot.slane %v1696_v57, 2  ;;  %v340_v30 = vmul.f32 %v2099_v12, %v3165_v38 }
 0x104   : > { %v1091_v54 = vadd.f32 %v1020_v3, %v847_v62  ;;  %v585_v40 = vmul.f32 %v2101_v13, %v3165_v38  ;;  %v1890_v36 = vadd.f32 %v1817_v24, %v1646_v9  ;;  %v1819_v46 = vrot.slane %v3323_v55, 2 }
 0x105   : > { %v258_v15 = vmul.f32 %v2097_v11, %v3131_v21  ;;  %v898_v50 = vmul.f32 %v2107_v17, %v3253_v35  ;;  %v1576_v6 = vsel %vm395_vm0, %v1574_v44, %v1575_v2  ;;  %v464_v43 = vrot.slane %v340_v30, 1 }
 0x106   : > { %v1335_v41 = vadd.f32 %v1264_v45, %v1091_v54  ;;  %v709_v51 = vrot.slane %v585_v40, 2  ;;  %v1929_v37 = vadd.f32 %v2845_v34, %v1890_v36  ;;  %v816_v38 = vmul.f32 %v2105_v16, %v3219_v14 }
 0x107   : > { %v1021_v61 = vrot.slane %v898_v50, 1  ;;  %v1142_v27 = vmul.f32 %v2109_v18, %v3253_v35  ;;  %v465_v42 = vsel %vm395_vm0, %v462_v47, %v464_v43  ;;  %v1454_v53 = vmul.f32 %v2122_v25, %v3341_v49 }
 0x108   : > { %v1403_v21 = vadd.f32 %v1371_v59, %v1335_v41  ;;  %v710_v52 = vsel %vm640_vm1, %v707_v32, %v709_v51  ;;  %1962 = vst.msk [vmem:[%s2229_s27 + $0xc8] sm:$0xff] %vm1936_vm2, %v1929_v37  ;;  %v1820_v7 = vsel %vm640_vm1, %v1818_v1, %v1819_v46  ;;  %v535_v4 = vadd.f32 %v465_v42, %v258_v15  ;;  %v3396_v41 = vld [vmem:[%s2095_s19 + $0x180] sm:$0xff]  ;;  %v3400_v51 = vld [vmem:[%s2095_s19 + $0x188] sm:$0xff] }
 0x109   : > { %v1265_v8 = vrot.slane %v1142_v27, 2  ;;  %v1698_v47 = vmul.f32 %v3359_v28, %v3341_v49  ;;  %v1022_v20 = vsel %vm395_vm0, %v1019_v26, %v1021_v61  ;;  %v1372_v10 = vmul.f32 %v2111_v19, %v3307_v5 }
 0x10a   : > { %v1647_v32 = vadd.f32 %v1576_v6, %v1403_v21  ;;  %v341_v23 = vmul.f32 %v2099_v12, %v3215_v60  ;;  %v780_v56 = vadd.f32 %v710_v52, %v535_v4  ;;  %v1577_v22 = vrot.slane %v1454_v53, 1 }
 0x10b   : > { %v259_v58 = vmul.f32 %v2097_v11, %v3215_v60  ;;  %v3372_v33 = vmul.f32 %v2099_v12, %v3219_v14  ;;  %v1266_v0 = vsel %vm640_vm1, %v1263_v63, %v1265_v8  ;;  %v586_v31 = vmul.f32 %v2101_v13, %v3215_v60 }
 0x10c   : > { %v1891_v29 = vadd.f32 %v1820_v7, %v1647_v32  ;;  %v466_v26 = vrot.slane %v341_v23, 1  ;;  %v848_v3 = vadd.f32 %v816_v38, %v780_v56  ;;  %v1821_v39 = vrot.slane %v1698_v47, 2 }
 0x10d   : > { %v467_v57 = vrot.slane %v3372_v33, 1  ;;  %v587_v24 = vmul.f32 %v2101_v13, %v3219_v14  ;;  %v711_v44 = vrot.slane %v586_v31, 2  ;;  %v817_v9 = vmul.f32 %v2105_v16, %v3303_v48 }
 0x10e   : > { %v1930_v62 = vadd.f32 %v2845_v34, %v1891_v29  ;;  %v899_v63 = vmul.f32 %v2107_v17, %v3303_v48  ;;  %v1092_v45 = vadd.f32 %v1022_v20, %v848_v3  ;;  %v900_v54 = vmul.f32 %v2107_v17, %v3307_v5 }
 0x10f   : > { %v468_v60 = vsel %vm395_vm0, %v466_v26, %v467_v57  ;;  %v712_v59 = vrot.slane %v587_v24, 2  ;;  %v1143_v40 = vmul.f32 %v2109_v18, %v3303_v48  ;;  %v1144_v36 = vmul.f32 %v2109_v18, %v3307_v5  ;;  %v3434_v24 = vld [vmem:[%s2095_s19 + $0x190] sm:$0x3] }
 0x110   : > { %1963 = vst.msk [vmem:[%s2229_s27 + $0xd0] sm:$0xff] %vm1936_vm2, %v1930_v62  ;;  %v536_v1 = vadd.f32 %v468_v60, %v259_v58  ;;  %v1023_v30 = vrot.slane %v899_v63, 1  ;;  %v1336_v15 = vadd.f32 %v1266_v0, %v1092_v45  ;;  %v1578_v50 = vsel %vm395_vm0, %v1575_v2, %v1577_v22 }
 0x111   : > { %v713_v6 = vsel %vm640_vm1, %v711_v44, %v712_v59  ;;  %v1024_v43 = vrot.slane %v900_v54, 1  ;;  %v1267_v38 = vrot.slane %v1143_v40, 2  ;;  %v1268_v61 = vrot.slane %v1144_v36, 2 }
 0x112   : > { %v781_v37 = vadd.f32 %v713_v6, %v536_v1  ;;  %v1455_v27 = vmul.f32 %v2122_v25, %v3396_v41  ;;  %v1404_v21 = vadd.f32 %v1372_v10, %v1336_v15  ;;  %v3407_v52 = vmul.f32 %v2122_v25, %v3400_v51 }
 0x113   : > { %v1025_v42 = vsel %vm395_vm0, %v1023_v30, %v1024_v43  ;;  %v1699_v2 = vmul.f32 %v3359_v28, %v3396_v41  ;;  %v1822_v53 = vsel %vm640_vm1, %v1819_v46, %v1821_v39  ;;  %v3416_v8 = vmul.f32 %v3359_v28, %v3400_v51 }
 0x114   : > { %v849_v7 = vadd.f32 %v817_v9, %v781_v37  ;;  %v1579_v4 = vrot.slane %v1455_v27, 1  ;;  %v1648_v47 = vadd.f32 %v1578_v50, %v1404_v21  ;;  %v1269_v32 = vsel %vm640_vm1, %v1267_v38, %v1268_v61 }
 0x115   : > { %v1373_v20 = vmul.f32 %v2111_v19, %v3396_v41  ;;  %v1580_v10 = vrot.slane %v3407_v52, 1  ;;  %v1823_v56 = vrot.slane %v1699_v2, 2  ;;  %v343_v55 = vmul.f32 %v2099_v12, %v3253_v35 }
 0x116   : > { %v1093_v23 = vadd.f32 %v1025_v42, %v849_v7  ;;  %v588_v46 = vmul.f32 %v2101_v13, %v3253_v35  ;;  %v1892_v22 = vadd.f32 %v1822_v53, %v1648_v47  ;;  %v1824_v58 = vrot.slane %v3416_v8, 2  ;;  %v3471_v53 = vld [vmem:[%s3539_s2] ss:$0 sm:$0xff] }
 0x117   : > { %v260_v33 = vmul.f32 %v2097_v11, %v3219_v14  ;;  %v901_v29 = vmul.f32 %v2107_v17, %v3341_v49  ;;  %v1581_v26 = vsel %vm395_vm0, %v1579_v4, %v1580_v10  ;;  %v469_v31 = vrot.slane %v343_v55, 1  ;;  %v223_v55 = vld [vmem:[%s2095_s19 + $0x1a0] sm:$0xff] }
 0x118   : > { %v1337_v0 = vadd.f32 %v1269_v32, %v1093_v23  ;;  %v714_v3 = vrot.slane %v588_v46, 2  ;;  %v1931_v39 = vadd.f32 %v2845_v34, %v1892_v22  ;;  %v818_v35 = vmul.f32 %v2105_v16, %v3307_v5  ;;  %v222_v32 = vld [vmem:[%s2095_s19 + $0x198] sm:$0xff] }
 0x119   : > { %v1026_v62 = vrot.slane %v901_v29, 1  ;;  %v1145_v44 = vmul.f32 %v2109_v18, %v3341_v49  ;;  %v470_v9 = vsel %vm395_vm0, %v467_v57, %v469_v31  ;;  %v1457_v45 = vmul.f32 %v2122_v25, %v3434_v24 }
 0x11a   : > { %v1405_v14 = vadd.f32 %v1373_v20, %v1337_v0  ;;  %v715_v63 = vsel %vm640_vm1, %v712_v59, %v714_v3  ;;  %1964 = vst.msk [vmem:[%s2229_s27 + $0xd8] sm:$0xff] %vm1936_vm2, %v1931_v39  ;;  %v1825_v34 = vsel %vm640_vm1, %v1823_v56, %v1824_v58  ;;  %v537_v60 = vadd.f32 %v470_v9, %v260_v33 }
 0x11b   : > { %v1270_v54 = vrot.slane %v1145_v44, 2  ;;  %v1701_v1 = vmul.f32 %v3359_v28, %v3434_v24  ;;  %v1027_v40 = vsel %vm395_vm0, %v1024_v43, %v1026_v62  ;;  %v1374_v57 = vmul.f32 %v2111_v19, %v3400_v51 }
 0x11c   : > { %v1649_v30 = vadd.f32 %v1581_v26, %v1405_v14  ;;  %v344_v59 = vmul.f32 %v2099_v12, %v3303_v48  ;;  %v782_v36 = vadd.f32 %v715_v63, %v537_v60  ;;  %v1582_v15 = vrot.slane %v1457_v45, 1 }
 0x11d   : > { %v261_v50 = vmul.f32 %v2097_v11, %v3303_v48  ;;  %v3460_v6 = vmul.f32 %v2099_v12, %v3307_v5  ;;  %v1271_v38 = vsel %vm640_vm1, %v1268_v61, %v1270_v54  ;;  %v589_v27 = vmul.f32 %v2101_v13, %v3303_v48 }
 0x11e   : > { %v1893_v37 = vadd.f32 %v1825_v34, %v1649_v30  ;;  %v471_v43 = vrot.slane %v344_v59, 1  ;;  %v850_v21 = vadd.f32 %v818_v35, %v782_v36  ;;  %v1826_v42 = vrot.slane %v1701_v1, 2 }
 0x11f   : > { %v472_v52 = vrot.slane %v3460_v6, 1  ;;  %v590_v2 = vmul.f32 %v2101_v13, %v3307_v5  ;;  %v716_v7 = vrot.slane %v589_v27, 2  ;;  %v819_v4 = vmul.f32 %v2105_v16, %v3396_v41 }
 0x120   : > { %v1932_v61 = vadd.f32 %v3471_v53, %v1893_v37  ;;  %v902_v48 = vmul.f32 %v2107_v17, %v3396_v41  ;;  %v1094_v47 = vadd.f32 %v1027_v40, %v850_v21  ;;  %v903_v56 = vmul.f32 %v2107_v17, %v3400_v51 }
 0x121   : > { %v473_v20 = vsel %vm395_vm0, %v471_v43, %v472_v52  ;;  %v717_v23 = vrot.slane %v590_v2, 2  ;;  %v1146_v33 = vmul.f32 %v2109_v18, %v3396_v41  ;;  %v1147_v29 = vmul.f32 %v2109_v18, %v3400_v51 }
 0x122   : > { %1965 = vst.msk [vmem:[%s2229_s27 + $0xe0] sm:$0xff] %vm1936_vm2, %v1932_v61  ;;  %v538_v46 = vadd.f32 %v473_v20, %v261_v50  ;;  %v1028_v22 = vrot.slane %v902_v48, 1  ;;  %v1338_v0 = vadd.f32 %v1271_v38, %v1094_v47  ;;  %v1583_v26 = vsel %vm395_vm0, %v1580_v10, %v1582_v15 }
 0x123   : > { %v718_v31 = vsel %vm640_vm1, %v716_v7, %v717_v23  ;;  %v1029_v3 = vrot.slane %v903_v56, 1  ;;  %v1272_v35 = vrot.slane %v1146_v33, 2  ;;  %v1273_v62 = vrot.slane %v1147_v29, 2 }
 0x124   : > { %v783_v39 = vadd.f32 %v718_v31, %v538_v46  ;;  %v1458_v44 = vmul.f32 %v2122_v25, %v222_v32  ;;  %v1406_v14 = vadd.f32 %v1374_v57, %v1338_v0  ;;  %v1459_v63 = vmul.f32 %v2122_v25, %v223_v55 }
 0x125   : > { %v1030_v9 = vsel %vm395_vm0, %v1028_v22, %v1029_v3  ;;  %v1702_v41 = vmul.f32 %v3359_v28, %v222_v32  ;;  %v1827_v45 = vsel %vm640_vm1, %v1824_v58, %v1826_v42  ;;  %v1375_v34 = vmul.f32 %v2111_v19, %v222_v32 }
 0x126   : > { %v851_v10 = vadd.f32 %v819_v4, %v783_v39  ;;  %v1703_v60 = vmul.f32 %v3359_v28, %v223_v55  ;;  %v1650_v54 = vadd.f32 %v1583_v26, %v1406_v14  ;;  %v1274_v1 = vsel %vm640_vm1, %v1272_v35, %v1273_v62 }
 0x127   : > { %v1584_v30 = vrot.slane %v1458_v44, 1  ;;  %v1585_v40 = vrot.slane %v1459_v63, 1  ;;  %v1828_v59 = vrot.slane %v1702_v41, 2  ;;  %v346_v36 = vmul.f32 %v2099_v12, %v3341_v49  ;;  %v224_v12 = vld [vmem:[%s2095_s19 + $0x1a8] sm:$0x3] }
 0x128   : > { %v1095_v57 = vadd.f32 %v1030_v9, %v851_v10  ;;  %v591_v8 = vmul.f32 %v2101_v13, %v3341_v49  ;;  %v1894_v58 = vadd.f32 %v1827_v45, %v1650_v54  ;;  %v1829_v15 = vrot.slane %v1703_v60, 2 }
 0x129   : > { %v262_v50 = vmul.f32 %v2097_v11, %v3307_v5  ;;  %v904_v6 = vmul.f32 %v2107_v17, %v3434_v24  ;;  %v474_v38 = vrot.slane %v346_v36, 1  ;;  %v1586_v21 = vsel %vm395_vm0, %v1584_v30, %v1585_v40 }
 0x12a   : > { %v1339_v37 = vadd.f32 %v1274_v1, %v1095_v57  ;;  %v719_v43 = vrot.slane %v591_v8, 2  ;;  %v1933_v27 = vadd.f32 %v3471_v53, %v1894_v58  ;;  %v1148_v13 = vmul.f32 %v2109_v18, %v3434_v24 }
 0x12b   : > { %v475_v42 = vsel %vm395_vm0, %v472_v52, %v474_v38  ;;  %v1031_v11 = vrot.slane %v904_v6, 1  ;;  %v1830_v17 = vsel %vm640_vm1, %v1828_v59, %v1829_v15  ;;  %v820_v61 = vmul.f32 %v2105_v16, %v3400_v51 }
 0x12c   : > { %v1407_v49 = vadd.f32 %v1375_v34, %v1339_v37  ;;  %v720_v2 = vsel %vm640_vm1, %v717_v23, %v719_v43  ;;  %1966 = vst.msk [vmem:[%s2229_s27 + $0xe8] sm:$0xff] %vm1936_vm2, %v1933_v27  ;;  %v539_v5 = vadd.f32 %v475_v42, %v262_v50  ;;  %v1275_v4 = vrot.slane %v1148_v13, 2 }
 0x12d   : > { %v1460_v48 = vmul.f32 %v2122_v25, %v224_v12  ;;  %v1032_v52 = vsel %vm395_vm0, %v1029_v3, %v1031_v11  ;;  %v1704_v47 = vmul.f32 %v3359_v28, %v224_v12  ;;  %v1376_v16 = vmul.f32 %v2111_v19, %v223_v55 }
 0x12e   : > { %v1651_v7 = vadd.f32 %v1586_v21, %v1407_v49  ;;  %v784_v18 = vadd.f32 %v720_v2, %v539_v5  ;;  %v1276_v23 = vsel %vm640_vm1, %v1273_v62, %v1275_v4 }
 0x12f   : > { %v1587_v56 = vrot.slane %v1460_v48, 1  ;;  %v1831_v51 = vrot.slane %v1704_v47, 2 }
 0x130   : > { %v1895_v24 = vadd.f32 %v1830_v17, %v1651_v7  ;;  %v852_v32 = vadd.f32 %v820_v61, %v784_v18 }
 0x131   : > { %v1588_v22 = vsel %vm395_vm0, %v1585_v40, %v1587_v56  ;;  %v1832_v29 = vsel %vm640_vm1, %v1829_v15, %v1831_v51 }
 0x132   : > { %v1934_v20 = vadd.f32 %v3471_v53, %v1895_v24  ;;  %v1096_v46 = vadd.f32 %v1032_v52, %v852_v32 }
 0x134   : > { %1967 = vst.msk [vmem:[%s2229_s27 + $0xf0] sm:$0xff] %vm1936_vm2, %v1934_v20  ;;  %v1340_v25 = vadd.f32 %v1276_v23, %v1096_v46 }
 0x136   : > { %v1408_v33 = vadd.f32 %v1376_v16, %v1340_v25 }
 0x138   : > { %v1652_v28 = vadd.f32 %v1588_v22, %v1408_v33 }
 0x13a   : > { %v1896_v0 = vadd.f32 %v1832_v29, %v1652_v28 }
 0x13c   : > { %v1935_v26 = vadd.f32 %v3471_v53, %v1896_v0 }
 0x13e   : > { %1968 = vst.msk [vmem:[%s2229_s27 + $0xf8] sm:$0xff] %vm1936_vm2, %v1935_v26 }
 0x13f PF: > { %s13_s12 = sadd.s32 1, %s2056_s12  }
 0x140   : > { %p10_p4 = scmp.ge.s32.totalorder %s13_s12, 4  }
 0x142   :  { %12 = sbr.rel (!%p10_p4) target bundleno = 1 (0x1), region = 62 }

// kernel: res_transformer_group_forward.17
= control target key start
LH: loop header
LB: loop body
LE: loop exit
PB: predicated region body
PF: predicated region fallthrough
CT: control target
= control target key end

     0   :  { %v651_v40 = vmov 0   ;;  %vm334_vm0 = vcmask 64512   ;;  %vm394_vm1 = vcmask 1043456   ;;  %s891_s1 = inlined_call_operand.vmem [shape: f32[4,8,256], index: 1, kind: input, shape index: {}]   ;;  %s892_s0 = inlined_call_operand.vmem [shape: f32[4,8,256], index: 0, kind: input, shape index: {}]   ;;  %s893_s3 = inlined_call_operand.vmem [shape: f32[4,1,1], index: 3, kind: input, shape index: {}]   ;;  %s894_s2 = inlined_call_operand.vmem [shape: f32[4,8,256], index: 2, kind: input, shape index: {}]   ;;  %s895_s4 = inlined_call_operand.vmem [shape: f32[4,8,256], index: 4, kind: output, shape index: {}]  }
   0x1   :  { %v680_v0 = vld [vmem:[%s891_s1] sm:$0xff]  ;;  %v685_v1 = vld [vmem:[%s891_s1 + $0x8] sm:$0xff]  ;;  %v690_v2 = vld [vmem:[%s891_s1 + $0x10] sm:$0xff]  ;;  %618 = vset.pattern.permute.xlu1 %v651_v40  ;;  %617 = vset.pattern.permute.xlu0 %v651_v40 }
   0x2   :  { %v78_v3 = vmul.f32 %v680_v0, %v680_v0  ;;  %v79_v4 = vmul.f32 %v685_v1, %v685_v1  ;;  %v699_v5 = vld [vmem:[%s891_s1 + $0x18] sm:$0xff]  ;;  %v80_v6 = vmul.f32 %v690_v2, %v690_v2  ;;  %v706_v7 = vld [vmem:[%s892_s0] sm:$0xff]  ;;  %v711_v8 = vld [vmem:[%s892_s0 + $0x8] sm:$0xff] }
   0x3   :  { %v81_v9 = vmul.f32 %v699_v5, %v699_v5  ;;  %v42_v10 = vmul.f32 %v706_v7, %v706_v7  ;;  %v43_v11 = vmul.f32 %v711_v8, %v711_v8  ;;  %v722_v12 = vld [vmem:[%s891_s1 + $0x20] sm:$0xff]  ;;  %v727_v13 = vld [vmem:[%s891_s1 + $0x28] sm:$0xff]  ;;  %v732_v14 = vld [vmem:[%s892_s0 + $0x10] sm:$0xff] }
   0x4   :  { %v86_v15 = vadd.f32 %v79_v4, %v78_v3  ;;  %v737_v16 = vld [vmem:[%s892_s0 + $0x18] sm:$0xff]  ;;  %v44_v17 = vmul.f32 %v732_v14, %v732_v14  ;;  %v744_v18 = vld [vmem:[%s891_s1 + $0x30] sm:$0xff]  ;;  %v82_v23 = vmul.f32 %v722_v12, %v722_v12  ;;  %v83_v24 = vmul.f32 %v727_v13, %v727_v13  ;;  %v764_v28 = vld [vmem:[%s892_s0 + $0x20] sm:$0xff] }
   0x5   :  { %v749_v19 = vld [vmem:[%s891_s1 + $0x38] sm:$0xff]  ;;  %v50_v20 = vadd.f32 %v43_v11, %v42_v10  ;;  %v45_v21 = vmul.f32 %v737_v16, %v737_v16  ;;  %v89_v22 = vadd.f32 %v81_v9, %v80_v6  ;;  %v84_v26 = vmul.f32 %v744_v18, %v744_v18  ;;  %v769_v29 = vld [vmem:[%s892_s0 + $0x28] sm:$0xff]  ;;  %v774_v30 = vld [vmem:[%s892_s0 + $0x30] sm:$0xff] }
   0x6   :  { %87 = vadd.xlane.f32.xlu0 %v86_v15  ;;  %v85_v27 = vmul.f32 %v749_v19, %v749_v19  ;;  %v779_v31 = vld [vmem:[%s892_s0 + $0x38] sm:$0xff]  ;;  %v92_v32 = vadd.f32 %v83_v24, %v82_v23  ;;  %v46_v33 = vmul.f32 %v764_v28, %v764_v28  ;;  %v47_v34 = vmul.f32 %v769_v29, %v769_v29  ;;  %v605_v41 = vld [vmem:[%s893_s3 + $0x1] ss:$0 sm:$0xff]  ;;  %v604_v42 = vld [vmem:[%s893_s3] ss:$0 sm:$0xff] }
   0x7   :  { %51 = vadd.xlane.f32.xlu1 %v50_v20  ;;  %v53_v25 = vadd.f32 %v45_v21, %v44_v17  ;;  %v48_v36 = vmul.f32 %v774_v30, %v774_v30  ;;  %v49_v37 = vmul.f32 %v779_v31, %v779_v31  ;;  %v606_v43 = vld [vmem:[%s893_s3 + $0x2] ss:$0 sm:$0xff]  ;;  %v607_v44 = vld [vmem:[%s893_s3 + $0x3] ss:$0 sm:$0xff] }
   0x8   :  { %v95_v35 = vadd.f32 %v85_v27, %v84_v26  ;;  %v56_v38 = vadd.f32 %v47_v34, %v46_v33 }
   0x9   :  { %v59_v39 = vadd.f32 %v49_v37, %v48_v36 }
   0xa   :  { %90 = vadd.xlane.f32.xlu0 %v89_v22 }
   0xb   :  { %54 = vadd.xlane.f32.xlu1 %v53_v25 }
   0xe   :  { %93 = vadd.xlane.f32.xlu0 %v92_v32 }
   0xf   :  { %96 = vadd.xlane.f32.xlu1 %v95_v35 }
  0x12   :  { %57 = vadd.xlane.f32.xlu0 %v56_v38 }
  0x13   :  { %60 = vadd.xlane.f32.xlu1 %v59_v39 }
  0x24   :  { %319 = vperm.xlu1 %618, %v605_v41  }
  0x28   :  { %315 = vperm.xlu0 %617, %v604_v42   ;;  %323 = vperm.xlu1 %618, %v606_v43  }
  0x2c   :  { %327 = vperm.xlu1 %618, %v607_v44  }
  0x93   :  { %v88_v45 = vpop.xlane.xlu0 %87 }
  0x94   :  { %v98_v46 = vadd.f32 1e-24, %v88_v45  ;;  %v52_v47 = vpop.xlane.xlu1 %51 }
  0x95   :  { %v62_v48 = vadd.f32 1e-24, %v52_v47 }
  0x96   :  { %619 = vrsqrt.f32 %v98_v46 }
  0x97   :  { %v91_v49 = vpop.xlane.xlu0 %90  ;;  %621 = vrsqrt.f32 %v62_v48 }
  0x98   :  { %v99_v50 = vadd.f32 1e-24, %v91_v49  ;;  %v55_v51 = vpop.xlane.xlu1 %54 }
  0x99   :  { %v63_v52 = vadd.f32 1e-24, %v55_v51 }
  0x9a   :  { %623 = vrsqrt.f32 %v99_v50 }
  0x9b   :  { %v94_v53 = vpop.xlane.xlu0 %93  ;;  %625 = vrsqrt.f32 %v63_v52 }
  0x9c   :  { %v100_v54 = vadd.f32 1e-24, %v94_v53  ;;  %v97_v55 = vpop.xlane.xlu1 %96 }
  0x9d   :  { %v101_v56 = vadd.f32 1e-24, %v97_v55 }
  0x9e   :  { %627 = vrsqrt.f32 %v100_v54 }
  0x9f   :  { %629 = vrsqrt.f32 %v101_v56  ;;  %v58_v57 = vpop.xlane.xlu0 %57 }
  0xa0   :  { %v620_v58 = vpop.eup %619  ;;  %v64_v59 = vadd.f32 1e-24, %v58_v57  ;;  %v61_v60 = vpop.xlane.xlu1 %60 }
  0xa1   :  { %v622_v61 = vpop.eup %621  ;;  %v107_v62 = vmul.f32 %v620_v58, %v685_v1  ;;  %v106_v63 = vmul.f32 %v620_v58, %v680_v0  ;;  %v65_v3 = vadd.f32 1e-24, %v61_v60 }
  0xa2   :  { %631 = vrsqrt.f32 %v64_v59  ;;  %v71_v4 = vmul.f32 %v622_v61, %v711_v8  ;;  %v70_v22 = vmul.f32 %v622_v61, %v706_v7 }
  0xa3   :  { %v123_v6 = vpack.c.bf16 %v107_v62, %v107_v62  ;;  %v122_v9 = vpack.c.bf16 %v106_v63, %v106_v63  ;;  %633 = vrsqrt.f32 %v65_v3 }
  0xa4   :  { %v624_v10 = vpop.eup %623  ;;  %v115_v11 = vpack.c.bf16 %v71_v4, %v71_v4  ;;  %v114_v27 = vpack.c.bf16 %v70_v22, %v70_v22 }
  0xa5   :  { %v626_v15 = vpop.eup %625  ;;  %130 = vmatprep.subr.bf16.mxu0 %v123_v6  ;;  %v109_v17 = vmul.f32 %v624_v10, %v699_v5  ;;  %v108_v20 = vmul.f32 %v624_v10, %v690_v2 }
  0xa6   :  { %131 = vmatpush1.bf16.xpose.msra.mxu0 %v122_v9  ;;  %162 = vmatprep.mubr.bf16.mxu0 %v115_v11  ;;  %v73_v1 = vmul.f32 %v626_v15, %v737_v16  ;;  %v72_v33 = vmul.f32 %v626_v15, %v732_v14 }
  0xa7   :  { %v125_v0 = vpack.c.bf16 %v109_v17, %v109_v17  ;;  %v124_v21 = vpack.c.bf16 %v108_v20, %v108_v20 }
  0xa8   :  { %v628_v8 = vpop.eup %627  ;;  %v117_v23 = vpack.c.bf16 %v73_v1, %v73_v1 }
  0xa9   :  { %v630_v24 = vpop.eup %629  ;;  %170 = vmatprep.subr.bf16.mxu1 %v125_v0  ;;  %v111_v25 = vmul.f32 %v628_v8, %v727_v13  ;;  %v110_v26 = vmul.f32 %v628_v8, %v722_v12 }
  0xaa   :  { %171 = vmatpush1.bf16.xpose.msra.mxu1 %v124_v21  ;;  %202 = vmatprep.mubr.bf16.mxu1 %v117_v23  ;;  %v113_v2 = vmul.f32 %v630_v24, %v749_v19  ;;  %v112_v5 = vmul.f32 %v630_v24, %v744_v18  ;;  %v116_v18 = vpack.c.bf16 %v72_v33, %v72_v33  ;;  %v34_v33 = vld [vmem:[%s894_s2] sm:$0xff] }
  0xab   :  { %v127_v16 = vpack.c.bf16 %v111_v25, %v111_v25  ;;  %v126_v32 = vpack.c.bf16 %v110_v26, %v110_v26 }
  0xac   :  { %v632_v7 = vpop.eup %631  ;;  %v129_v34 = vpack.c.bf16 %v113_v2, %v113_v2  ;;  %v128_v36 = vpack.c.bf16 %v112_v5, %v112_v5 }
  0xad   :  { %v634_v35 = vpop.eup %633  ;;  %163 = vmatmul.mubr.bf16.vlgmr.msra.gmra.mrb[0].mxu0 %v114_v27  ;;  %210 = vmatprep.subr.bf16.mxu0 %v127_v16  ;;  %v75_v13 = vmul.f32 %v632_v7, %v769_v29  ;;  %v74_v12 = vmul.f32 %v632_v7, %v764_v28  ;;  %v316_v28 = vpop.permute.xlu0 %315 }
  0xae   :  { %211 = vmatpush1.bf16.xpose.msra.mxu0 %v126_v32  ;;  %250 = vmatprep.subr.bf16.mxu1 %v129_v34  ;;  %v77_v19 = vmul.f32 %v634_v35, %v779_v31  ;;  %v76_v39 = vmul.f32 %v634_v35, %v774_v30  ;;  %v320_v29 = vpop.permute.xlu1 %319  ;;  %v35_v32 = vld [vmem:[%s894_s2 + $0x8] sm:$0xff]  ;;  %v383_v34 = vpack.c.bf16 %v34_v33, %v34_v33 }
  0xaf   :  { %v119_v37 = vpack.c.bf16 %v75_v13, %v75_v13  ;;  %v118_v14 = vpack.c.bf16 %v74_v12, %v74_v12  ;;  %v384_v7 = vpack.c.bf16 %v35_v32, %v35_v32  ;;  %v37_v13 = vld [vmem:[%s894_s2 + $0x18] sm:$0xff]  ;;  %v36_v12 = vld [vmem:[%s894_s2 + $0x10] sm:$0xff] }
  0xb0   :  { %v121_v38 = vpack.c.bf16 %v77_v19, %v77_v19  ;;  %v120_v41 = vpack.c.bf16 %v76_v39, %v76_v39  ;;  %v396_v35 = vsel %vm394_vm1, %v383_v34, 0  ;;  %v385_v19 = vpack.c.bf16 %v36_v12, %v36_v12 }
  0xb1   :  { %203 = vmatmul.mubr.bf16.vlgmr.msra.gmra.mrb[0].mxu1 %v116_v18  ;;  %242 = vmatprep.mubr.bf16.mxu0 %v119_v37  ;;  %v39_v37 = vld [vmem:[%s894_s2 + $0x28] sm:$0xff] }
  0xb2   :  { %251 = vmatpush1.bf16.xpose.msra.mxu1 %v128_v36  ;;  %282 = vmatprep.mubr.bf16.mxu1 %v121_v38  ;;  %v324_v49 = vpop.permute.xlu1 %323  ;;  %v386_v36 = vpack.c.bf16 %v37_v13, %v37_v13  ;;  %v446_v18 = vsel %vm394_vm1, %v385_v19, 0  ;;  %v38_v38 = vld [vmem:[%s894_s2 + $0x20] sm:$0xff] }
  0xb3   :  { %608 = vmatprep.subr.msk.bf16.mxu0 %vm394_vm1, %v384_v7  ;;  %v387_v39 = vpack.c.bf16 %v38_v38, %v38_v38 }
  0xb4   :  { %610 = vmatprep.subr.msk.bf16.mxu1 %vm394_vm1, %v386_v36 }
  0xb5   :  { %243 = vmatmul.mubr.bf16.vlgmr.msra.gmra.mrb[4].mxu0 %v118_v14  ;;  %v388_v14 = vpack.c.bf16 %v39_v37, %v39_v37 }
  0xb6   :  { %433 = vmatprep.mubr.bf16.mxu0 %v651_v40  ;;  %v328_v59 = vpop.permute.xlu1 %327  ;;  %402 = vmatpush1.bf16.msra.mxu0 %v396_v35 }
  0xb7   :  { %612 = vmatprep.subr.msk.bf16.mxu0 %vm394_vm1, %v388_v14 }
  0xb9   :  { %283 = vmatmul.mubr.bf16.vlgmr.msra.gmra.mrb[4].mxu1 %v120_v41  ;;  %v496_v41 = vsel %vm394_vm1, %v387_v39, 0 }
  0xba   :  { %483 = vmatprep.mubr.bf16.mxu1 %v651_v40  ;;  %452 = vmatpush1.bf16.msra.mxu1 %v446_v18 }
 0x180   :  { %v164_v31 = vpop.f32.mrb[0].mxu0 }
 0x181   :  { %v330_v42 = vmul.f32 %v316_v28, %v164_v31  ;;  %v166_v43 = vpop.f32.mrb[1].mxu0  ;;  %v41_v28 = vld [vmem:[%s894_s2 + $0x38] sm:$0xff] }
 0x182   :  { %v167_v44 = vpop.f32.mrb[2].mxu0  ;;  %v390_v31 = vpack.c.bf16 %v41_v28, %v41_v28 }
 0x183   :  { %v168_v45 = vpop.f32.mrb[3].mxu0  ;;  %v335_v46 = vsel %vm334_vm0, %v330_v42, -inf }
 0x184   :  { %336 = vmax.xlane.f32.xlu1 %v335_v46  ;;  %v204_v30 = vpop.f32.mrb[0].mxu1  ;;  %614 = vmatprep.subr.msk.bf16.mxu1 %vm394_vm1, %v390_v31 }
 0x185   :  { %v331_v47 = vmul.f32 %v320_v29, %v204_v30  ;;  %v206_v48 = vpop.f32.mrb[1].mxu1  ;;  %v40_v29 = vld [vmem:[%s894_s2 + $0x30] sm:$0xff] }
 0x186   :  { %v207_v50 = vpop.f32.mrb[2].mxu1 }
 0x187   :  { %v208_v51 = vpop.f32.mrb[3].mxu1  ;;  %v338_v52 = vsel %vm334_vm0, %v331_v47, -inf }
 0x188   :  { %v244_v53 = vpop.f32.mrb[4].mxu0  ;;  %339 = vmax.xlane.f32.xlu0 %v338_v52 }
 0x189   :  { %v332_v54 = vmul.f32 %v324_v49, %v244_v53  ;;  %v246_v55 = vpop.f32.mrb[5].mxu0 }
 0x18a   :  { %v247_v56 = vpop.f32.mrb[6].mxu0 }
 0x18b   :  { %v248_v57 = vpop.f32.mrb[7].mxu0  ;;  %v341_v58 = vsel %vm334_vm0, %v332_v54, -inf }
 0x18c   :  { %v284_v60 = vpop.f32.mrb[4].mxu1  ;;  %342 = vmax.xlane.f32.xlu1 %v341_v58 }
 0x18d   :  { %v333_v61 = vmul.f32 %v328_v59, %v284_v60  ;;  %v286_v62 = vpop.f32.mrb[5].mxu1 }
 0x18e   :  { %v287_v63 = vpop.f32.mrb[6].mxu1 }
 0x18f   :  { %v288_v3 = vpop.f32.mrb[7].mxu1  ;;  %v344_v4 = vsel %vm334_vm0, %v333_v61, -inf }
 0x190   :  { %345 = vmax.xlane.f32.xlu1 %v344_v4 }
 0x211   :  { %v337_v6 = vpop.xlane.xlu1 %336 }
 0x212   :  { %v347_v9 = vsub.f32 %v330_v42, %v337_v6  ;;  %v389_v42 = vpack.c.bf16 %v40_v29, %v40_v29 }
 0x214   :  { %v351_v10 = vmul.f32 1.442695, %v347_v9  ;;  %v546_v43 = vsel %vm394_vm1, %v389_v42, 0 }
 0x215   :  { %v340_v11 = vpop.xlane.xlu0 %339 }
 0x216   :  { %635 = vpow2.f32 %v351_v10  ;;  %v348_v15 = vsub.f32 %v331_v47, %v340_v11 }
 0x218   :  { %v353_v17 = vmul.f32 1.442695, %v348_v15 }
 0x219   :  { %v343_v20 = vpop.xlane.xlu1 %342 }
 0x21a   :  { %637 = vpow2.f32 %v353_v17  ;;  %v349_v1 = vsub.f32 %v332_v54, %v343_v20 }
 0x21c   :  { %v355_v0 = vmul.f32 1.442695, %v349_v1 }
 0x21d   :  { %v346_v21 = vpop.xlane.xlu1 %345 }
 0x21e   :  { %639 = vpow2.f32 %v355_v0  ;;  %v350_v22 = vsub.f32 %v333_v61, %v346_v21 }
 0x220   :  { %v636_v8 = vpop.eup %635  ;;  %v357_v23 = vmul.f32 1.442695, %v350_v22 }
 0x221   :  { %v359_v24 = vsel %vm334_vm0, %v636_v8, 0.0 }
 0x222   :  { %641 = vpow2.f32 %v357_v23  ;;  %360 = vadd.xlane.f32.xlu1 %v359_v24 }
 0x224   :  { %v638_v25 = vpop.eup %637 }
 0x225   :  { %v362_v26 = vsel %vm334_vm0, %v638_v25, 0.0 }
 0x226   :  { %363 = vadd.xlane.f32.xlu1 %v362_v26 }
 0x228   :  { %v640_v2 = vpop.eup %639 }
 0x229   :  { %v365_v5 = vsel %vm334_vm0, %v640_v2, 0.0 }
 0x22a   :  { %366 = vadd.xlane.f32.xlu0 %v365_v5 }
 0x22c   :  { %v642_v27 = vpop.eup %641 }
 0x22d   :  { %v368_v16 = vsel %vm334_vm0, %v642_v27, 0.0 }
 0x22e   :  { %369 = vadd.xlane.f32.xlu1 %v368_v16 }
 0x2af   :  { %v361_v44 = vpop.xlane.xlu1 %360 }
 0x2b0   :  { %643 = vrcp.f32 %v361_v44 }
 0x2b3   :  { %v364_v45 = vpop.xlane.xlu1 %363 }
 0x2b4   :  { %645 = vrcp.f32 %v364_v45 }
 0x2b7   :  { %v367_v46 = vpop.xlane.xlu0 %366 }
 0x2b8   :  { %647 = vrcp.f32 %v367_v46 }
 0x2ba   :  { %v644_v30 = vpop.eup %643 }
 0x2bb   :  { %v372_v47 = vmul.f32 %v644_v30, %v636_v8  ;;  %v370_v48 = vpop.xlane.xlu1 %369 }
 0x2bc   :  { %649 = vrcp.f32 %v370_v48 }
 0x2bd   :  { %v379_v49 = vpack.c.bf16 %v372_v47, %v372_v47 }
 0x2be   :  { %v646_v50 = vpop.eup %645 }
 0x2bf   :  { %v374_v51 = vmul.f32 %v646_v50, %v638_v25  ;;  %609 = vmatmul.mubr.msk.bf16.vlgmr.msra.gmra.mrb[8].mxu0 %vm334_vm0, %v379_v49 }
 0x2c0   :  { %502 = vmatpush1.bf16.msra.mxu0 %v496_v41  ;;  %533 = vmatprep.mubr.bf16.mxu0 %v651_v40 }
 0x2c1   :  { %v380_v52 = vpack.c.bf16 %v374_v51, %v374_v51 }
 0x2c2   :  { %v648_v53 = vpop.eup %647 }
 0x2c3   :  { %v376_v54 = vmul.f32 %v648_v53, %v640_v2  ;;  %611 = vmatmul.mubr.msk.bf16.vlgmr.msra.gmra.mrb[8].mxu1 %vm334_vm0, %v380_v52 }
 0x2c4   :  { %552 = vmatpush1.bf16.msra.mxu1 %v546_v43  ;;  %583 = vmatprep.mubr.bf16.mxu1 %v651_v40 }
 0x2c5   :  { %v381_v55 = vpack.c.bf16 %v376_v54, %v376_v54 }
 0x2c6   :  { %v650_v56 = vpop.eup %649 }
 0x2c7   :  { %v378_v57 = vmul.f32 %v650_v56, %v642_v27  ;;  %613 = vmatmul.mubr.msk.bf16.vlgmr.msra.gmra.mrb[12].mxu0 %vm334_vm0, %v381_v55 }
 0x2c9   :  { %v382_v58 = vpack.c.bf16 %v378_v57, %v378_v57 }
 0x2cb   :  { %615 = vmatmul.mubr.msk.bf16.vlgmr.msra.gmra.mrb[12].mxu1 %vm334_vm0, %v382_v58 }
 0x392   :  { %v435_v59 = vpop.f32.mrb[8].mxu0 }
 0x393   :  { %592 = vst [vmem:[%s895_s4] sm:$0xff] %v435_v59  ;;  %v437_v60 = vpop.f32.mrb[9].mxu0 }
 0x394   :  { %593 = vst [vmem:[%s895_s4 + $0x8] sm:$0xff] %v437_v60  ;;  %v439_v61 = vpop.f32.mrb[10].mxu0 }
 0x395   :  { %v440_v40 = vpop.f32.mrb[11].mxu0 }
 0x396   :  { %v485_v62 = vpop.f32.mrb[8].mxu1 }
 0x397   :  { %594 = vst [vmem:[%s895_s4 + $0x10] sm:$0xff] %v485_v62  ;;  %v487_v63 = vpop.f32.mrb[9].mxu1 }
 0x398   :  { %595 = vst [vmem:[%s895_s4 + $0x18] sm:$0xff] %v487_v63  ;;  %v489_v3 = vpop.f32.mrb[10].mxu1 }
 0x399   :  { %v490_v4 = vpop.f32.mrb[11].mxu1 }
 0x39a   :  { %v535_v6 = vpop.f32.mrb[12].mxu0 }
 0x39b   :  { %596 = vst [vmem:[%s895_s4 + $0x20] sm:$0xff] %v535_v6  ;;  %v537_v9 = vpop.f32.mrb[13].mxu0 }
 0x39c   :  { %597 = vst [vmem:[%s895_s4 + $0x28] sm:$0xff] %v537_v9  ;;  %v539_v10 = vpop.f32.mrb[14].mxu0 }
 0x39d   :  { %v540_v11 = vpop.f32.mrb[15].mxu0 }
 0x39e   :  { %v585_v15 = vpop.f32.mrb[12].mxu1 }
 0x39f   :  { %598 = vst [vmem:[%s895_s4 + $0x30] sm:$0xff] %v585_v15  ;;  %v587_v17 = vpop.f32.mrb[13].mxu1 }
 0x3a0   :  { %599 = vst [vmem:[%s895_s4 + $0x38] sm:$0xff] %v587_v17  ;;  %v589_v20 = vpop.f32.mrb[14].mxu1 }
 0x3a1   :  { %v590_v1 = vpop.f32.mrb[15].mxu1 }

// kernel: res_transformer_group_forward.18
= control target key start
LH: loop header
LB: loop body
LE: loop exit
PB: predicated region body
PF: predicated region fallthrough
CT: control target
= control target key end

     0   :  { %s1028_s15 = smov 0   ;;  %s1030_s16 = smov 0   ;;  %s1210_s0 = inlined_call_operand.vmem [shape: bf16[512,16], index: 0, kind: input, shape index: {}]   ;;  %s1211_s1 = inlined_call_operand.vmem [shape: bf16[16,128], index: 1, kind: input, shape index: {}]   ;;  %s1212_s2 = inlined_call_operand.vmem [shape: f32[1,128], index: 2, kind: input, shape index: {}]   ;;  %s1213_s3 = inlined_call_operand.vmem [shape: f32[512,128], index: 3, kind: input, shape index: {}]   ;;  %s1214_s4 = inlined_call_operand.vmem [shape: f32[512,128], index: 4, kind: output, shape index: {}]  }
   0x1   :  { %s1032_s17 = smov 0  }
   0x2 LB: > { %s26_s18 = sadd.s32 1, %s997_s16  ;;  %p842_p0 = scmp.ge.s32.totalorder %s1001_s17, 1  ;;  %s1001_s17 = sphi %s1032_s17, %s14_s17   ;;  %s997_s16 = sphi %s1030_s16, %s1216_s16   ;;  %s993_s15 = sphi %s1028_s15, %s1215_s15  }
   0x3   : > { %p28_p1 = scmp.ge.s32.totalorder %s26_s18, 2  ;;  %p210_p2 = scmp.lt.s32.totalorder %s1001_s17, 3 }
   0x5   : > { %s1218_s18 = smov (%p28_p1, %s26_s18), 0  ;;  %p211_p3 = pnand %p842_p0, %p210_p2 }
   0x6   : > { %v962_v0 = vld [vmem:[%s1211_s1] sm:$0xff] (!%p211_p3)   ;;  %s843_s21 = sshll.u32 (!%p211_p3), %s993_s15, 5  ;;  %vm413_vm0 = vcmask (!%p211_p3), 130048  }
   0x7   : > { %214 = sbr.rel (%p211_p3) target bundleno = 264 (0x108), region = 36  ;;  %p255_p4 = scmp.lt.s32.totalorder (!%p211_p3), %s843_s21, 63  ;;  %902 = vmatprep.subr.bf16.mxu0 (!%p211_p3), %v962_v0  ;;  %936 = vmatprep.subr.bf16.mxu1 (!%p211_p3), %v962_v0  ;;  %v1098_v17 = vld [vmem:[%s1212_s2] ss:$0 sm:$0xff] (!%p211_p3) }
   0x8   : > { %903 = vmatpush3.bf16.msra.mxu0 (!%p211_p3), %v962_v0  ;;  %937 = vmatpush3.bf16.msra.mxu1 (!%p211_p3), %v962_v0 }
   0xe   : > { %s1220_s21 = smov (!%p255_p4, %s843_s21), 63 }
   0xf   : > { %s844_s22 = sshll.u32 %s1220_s21, 2  ;;  %s846_s26 = sshll.u32 %s1220_s21, 3 }
  0x10   : > { %s1055_s25 = scalar_lea.vmem %s1210_s0, %s844_s22  ;;  %s1093_s29 = scalar_lea.vmem %s1213_s3, %s846_s26 }
  0x11   : > { %v963_v1 = vld [vmem:[%s1055_s25] sm:$0xff]   ;;  %v965_v3 = vld [vmem:[%s1055_s25 + $0x8] sm:$0xff]   ;;  %v967_v5 = vld [vmem:[%s1055_s25 + $0x10] sm:$0xff]   ;;  %s1107_s8 = scalar_lea.vmem %s1214_s4, %s846_s26 }
  0x12   : > { %v964_v2 = vld [vmem:[%s1055_s25 + $0x40] sm:$0xff]   ;;  %904 = vmatprep.mubr.msk.bf16.mxu0 %vm413_vm0, %v963_v1  ;;  %v966_v4 = vld [vmem:[%s1055_s25 + $0x48] sm:$0xff]   ;;  %v968_v6 = vld [vmem:[%s1055_s25 + $0x50] sm:$0xff]  }
  0x13   : > { %920 = vmatprep.mubr.msk.bf16.mxu1 %vm413_vm0, %v964_v2  ;;  %905 = vmatmul.mubr.msk.bf16.vlgmr.msra.gmra.mrb[0].mxu0 %vm413_vm0, %v965_v3  ;;  %v969_v7 = vld [vmem:[%s1055_s25 + $0x18] sm:$0xff]   ;;  %v971_v9 = vld [vmem:[%s1055_s25 + $0x20] sm:$0xff]   ;;  %v973_v11 = vld [vmem:[%s1055_s25 + $0x28] sm:$0xff]  }
  0x14   : > { %921 = vmatmul.mubr.msk.bf16.vlgmr.msra.gmra.mrb[0].mxu1 %vm413_vm0, %v966_v4  ;;  %908 = vmatprep.mubr.msk.bf16.mxu0 %vm413_vm0, %v967_v5  ;;  %v970_v8 = vld [vmem:[%s1055_s25 + $0x58] sm:$0xff]   ;;  %v972_v10 = vld [vmem:[%s1055_s25 + $0x60] sm:$0xff]   ;;  %v974_v12 = vld [vmem:[%s1055_s25 + $0x68] sm:$0xff]  }
  0x15   : > { %924 = vmatprep.mubr.msk.bf16.mxu1 %vm413_vm0, %v968_v6  ;;  %v975_v13 = vld [vmem:[%s1055_s25 + $0x30] sm:$0xff]   ;;  %v977_v15 = vld [vmem:[%s1055_s25 + $0x38] sm:$0xff]   ;;  %v623_v24 = vld [vmem:[%s1093_s29] sm:$0xff] }
  0x16   : > { %v976_v14 = vld [vmem:[%s1055_s25 + $0x70] sm:$0xff]   ;;  %v978_v16 = vld [vmem:[%s1055_s25 + $0x78] sm:$0xff]   ;;  %v639_v28 = vld [vmem:[%s1093_s29 + $0x80] sm:$0xff] }
  0x17   : > { %v625_v19 = vld [vmem:[%s1093_s29 + $0x10] sm:$0xff]  ;;  %v626_v30 = vld [vmem:[%s1093_s29 + $0x18] sm:$0xff]  ;;  %v624_v37 = vld [vmem:[%s1093_s29 + $0x8] sm:$0xff] }
  0x18   : > { %v641_v22 = vld [vmem:[%s1093_s29 + $0x90] sm:$0xff]  ;;  %v642_v35 = vld [vmem:[%s1093_s29 + $0x98] sm:$0xff]  ;;  %v640_v43 = vld [vmem:[%s1093_s29 + $0x88] sm:$0xff] }
  0x19   : > { %v629_v51 = vld [vmem:[%s1093_s29 + $0x30] sm:$0xff]  ;;  %v627_v56 = vld [vmem:[%s1093_s29 + $0x20] sm:$0xff]  ;;  %v630_v62 = vld [vmem:[%s1093_s29 + $0x38] sm:$0xff] }
  0x1a   : > { %v645_v54 = vld [vmem:[%s1093_s29 + $0xb0] sm:$0xff]  ;;  %v643_v60 = vld [vmem:[%s1093_s29 + $0xa0] sm:$0xff]  ;;  %v646_v3 = vld [vmem:[%s1093_s29 + $0xb8] sm:$0xff] }
  0x1b   : > { %909 = vmatmul.mubr.msk.bf16.gmra.mrb[4].mxu0 %vm413_vm0, %v969_v7  ;;  %v628_v5 = vld [vmem:[%s1093_s29 + $0x28] sm:$0xff] }
  0x1c   : > { %925 = vmatmul.mubr.msk.bf16.gmra.mrb[4].mxu1 %vm413_vm0, %v970_v8  ;;  %912 = vmatprep.mubr.msk.bf16.mxu0 %vm413_vm0, %v971_v9 }
  0x1d   : > { %928 = vmatprep.mubr.msk.bf16.mxu1 %vm413_vm0, %v972_v10 }
  0x23   : > { %913 = vmatmul.mubr.msk.bf16.gmra.mrb[8].mxu0 %vm413_vm0, %v973_v11  ;;  %v644_v11 = vld [vmem:[%s1093_s29 + $0xa8] sm:$0xff] }
  0x24   : > { %929 = vmatmul.mubr.msk.bf16.gmra.mrb[8].mxu1 %vm413_vm0, %v974_v12  ;;  %916 = vmatprep.mubr.msk.bf16.mxu0 %vm413_vm0, %v975_v13 }
  0x25   : > { %932 = vmatprep.mubr.msk.bf16.mxu1 %vm413_vm0, %v976_v14 }
  0x2b   : > { %917 = vmatmul.mubr.msk.bf16.gmra.mrb[12].mxu0 %vm413_vm0, %v977_v15 }
  0x2c   : > { %933 = vmatmul.mubr.msk.bf16.gmra.mrb[12].mxu1 %vm413_vm0, %v978_v16 }
  0xe6   : > { %v906_v18 = vpop.f32.mrb[0].mxu0 }
  0xe7   : > { %v505_v20 = vadd.f32 %v906_v18, %v1098_v17  ;;  %v922_v21 = vpop.f32.mrb[0].mxu1  ;;  %v496_v23 = vpop.f32.mrb[1].mxu0 }
  0xe8   : > { %v569_v25 = vadd.f32 %v922_v21, %v1098_v17  ;;  %v497_v26 = vadd.f32 %v1098_v17, %v496_v23  ;;  %v560_v27 = vpop.f32.mrb[1].mxu1  ;;  %v907_v29 = vpop.f32.mrb[2].mxu0  ;;  %v649_v23 = vld [vmem:[%s1093_s29 + $0xd0] sm:$0xff] }
  0xe9   : > { %v657_v31 = vadd.f32 %v625_v19, %v505_v20  ;;  %v561_v32 = vadd.f32 %v1098_v17, %v560_v27  ;;  %v508_v33 = vadd.f32 %v907_v29, %v1098_v17  ;;  %v923_v34 = vpop.f32.mrb[2].mxu1  ;;  %v499_v36 = vpop.f32.mrb[3].mxu0  ;;  %v633_v20 = vld [vmem:[%s1093_s29 + $0x50] sm:$0xff]  ;;  %v647_v29 = vld [vmem:[%s1093_s29 + $0xc0] sm:$0xff] }
  0xea   : > { %v673_v38 = vadd.f32 %v641_v22, %v569_v25  ;;  %v655_v39 = vadd.f32 %v623_v24, %v497_v26  ;;  %v572_v40 = vadd.f32 %v923_v34, %v1098_v17  ;;  %v500_v41 = vadd.f32 %v1098_v17, %v499_v36  ;;  %v563_v42 = vpop.f32.mrb[3].mxu1  ;;  %v631_v25 = vld [vmem:[%s1093_s29 + $0x40] sm:$0xff]  ;;  %v650_v36 = vld [vmem:[%s1093_s29 + $0xd8] sm:$0xff] }
  0xeb   : > { %689 = vst [vmem:[%s1107_s8 + $0x10] sm:$0xff] %v657_v31  ;;  %v671_v44 = vadd.f32 %v639_v28, %v561_v32  ;;  %v658_v45 = vadd.f32 %v626_v30, %v508_v33  ;;  %v564_v46 = vadd.f32 %v1098_v17, %v563_v42  ;;  %v634_v31 = vld [vmem:[%s1093_s29 + $0x58] sm:$0xff] }
  0xec   : > { %705 = vst [vmem:[%s1107_s8 + $0x90] sm:$0xff] %v673_v38  ;;  %687 = vst [vmem:[%s1107_s8] sm:$0xff] %v655_v39  ;;  %v674_v47 = vadd.f32 %v642_v35, %v572_v40  ;;  %v656_v48 = vadd.f32 %v624_v37, %v500_v41  ;;  %v632_v38 = vld [vmem:[%s1093_s29 + $0x48] sm:$0xff] }
  0xed   : > { %703 = vst [vmem:[%s1107_s8 + $0x80] sm:$0xff] %v671_v44  ;;  %690 = vst [vmem:[%s1107_s8 + $0x18] sm:$0xff] %v658_v45  ;;  %v672_v49 = vadd.f32 %v640_v43, %v564_v46  ;;  %v648_v44 = vld [vmem:[%s1093_s29 + $0xc8] sm:$0xff] }
  0xee   : > { %706 = vst [vmem:[%s1107_s8 + $0x98] sm:$0xff] %v674_v47  ;;  %688 = vst [vmem:[%s1107_s8 + $0x8] sm:$0xff] %v656_v48  ;;  %v910_v50 = vpop.f32.mrb[4].mxu0 }
  0xef   : > { %704 = vst [vmem:[%s1107_s8 + $0x88] sm:$0xff] %v672_v49  ;;  %v521_v52 = vadd.f32 %v910_v50, %v1098_v17  ;;  %v926_v53 = vpop.f32.mrb[4].mxu1  ;;  %v512_v55 = vpop.f32.mrb[5].mxu0 }
  0xf0   : > { %v585_v57 = vadd.f32 %v926_v53, %v1098_v17  ;;  %v513_v58 = vadd.f32 %v1098_v17, %v512_v55  ;;  %v576_v59 = vpop.f32.mrb[5].mxu1  ;;  %v911_v61 = vpop.f32.mrb[6].mxu0  ;;  %v653_v55 = vld [vmem:[%s1093_s29 + $0xf0] sm:$0xff] }
  0xf1   : > { %v661_v63 = vadd.f32 %v629_v51, %v521_v52  ;;  %v577_v0 = vadd.f32 %v1098_v17, %v576_v59  ;;  %v524_v1 = vadd.f32 %v911_v61, %v1098_v17  ;;  %v927_v2 = vpop.f32.mrb[6].mxu1  ;;  %v515_v4 = vpop.f32.mrb[7].mxu0  ;;  %v637_v52 = vld [vmem:[%s1093_s29 + $0x70] sm:$0xff]  ;;  %v651_v61 = vld [vmem:[%s1093_s29 + $0xe0] sm:$0xff] }
  0xf2   : > { %v677_v6 = vadd.f32 %v645_v54, %v585_v57  ;;  %v659_v7 = vadd.f32 %v627_v56, %v513_v58  ;;  %v588_v8 = vadd.f32 %v927_v2, %v1098_v17  ;;  %v516_v9 = vadd.f32 %v1098_v17, %v515_v4  ;;  %v579_v10 = vpop.f32.mrb[7].mxu1  ;;  %v635_v57 = vld [vmem:[%s1093_s29 + $0x60] sm:$0xff]  ;;  %v654_v4 = vld [vmem:[%s1093_s29 + $0xf8] sm:$0xff] }
  0xf3   : > { %693 = vst [vmem:[%s1107_s8 + $0x30] sm:$0xff] %v661_v63  ;;  %v675_v12 = vadd.f32 %v643_v60, %v577_v0  ;;  %v662_v13 = vadd.f32 %v630_v62, %v524_v1  ;;  %v580_v14 = vadd.f32 %v1098_v17, %v579_v10  ;;  %v638_v63 = vld [vmem:[%s1093_s29 + $0x78] sm:$0xff] }
  0xf4   : > { %709 = vst [vmem:[%s1107_s8 + $0xb0] sm:$0xff] %v677_v6  ;;  %691 = vst [vmem:[%s1107_s8 + $0x20] sm:$0xff] %v659_v7  ;;  %v678_v15 = vadd.f32 %v646_v3, %v588_v8  ;;  %v660_v16 = vadd.f32 %v628_v5, %v516_v9  ;;  %v636_v6 = vld [vmem:[%s1093_s29 + $0x68] sm:$0xff] }
  0xf5   : > { %707 = vst [vmem:[%s1107_s8 + $0xa0] sm:$0xff] %v675_v12  ;;  %694 = vst [vmem:[%s1107_s8 + $0x38] sm:$0xff] %v662_v13  ;;  %v676_v18 = vadd.f32 %v644_v11, %v580_v14  ;;  %v652_v12 = vld [vmem:[%s1093_s29 + $0xe8] sm:$0xff] }
  0xf6   : > { %710 = vst [vmem:[%s1107_s8 + $0xb8] sm:$0xff] %v678_v15  ;;  %692 = vst [vmem:[%s1107_s8 + $0x28] sm:$0xff] %v660_v16  ;;  %v914_v19 = vpop.f32.mrb[8].mxu0 }
  0xf7   : > { %708 = vst [vmem:[%s1107_s8 + $0xa8] sm:$0xff] %v676_v18  ;;  %v537_v21 = vadd.f32 %v914_v19, %v1098_v17  ;;  %v930_v22 = vpop.f32.mrb[8].mxu1  ;;  %v528_v24 = vpop.f32.mrb[9].mxu0 }
  0xf8   : > { %v601_v26 = vadd.f32 %v930_v22, %v1098_v17  ;;  %v529_v27 = vadd.f32 %v1098_v17, %v528_v24  ;;  %v592_v28 = vpop.f32.mrb[9].mxu1  ;;  %v915_v30 = vpop.f32.mrb[10].mxu0 }
  0xf9   : > { %v665_v32 = vadd.f32 %v633_v20, %v537_v21  ;;  %v593_v33 = vadd.f32 %v1098_v17, %v592_v28  ;;  %v540_v34 = vadd.f32 %v915_v30, %v1098_v17  ;;  %v931_v35 = vpop.f32.mrb[10].mxu1  ;;  %v531_v37 = vpop.f32.mrb[11].mxu0 }
  0xfa   : > { %v681_v39 = vadd.f32 %v649_v23, %v601_v26  ;;  %v663_v40 = vadd.f32 %v631_v25, %v529_v27  ;;  %v604_v41 = vadd.f32 %v931_v35, %v1098_v17  ;;  %v532_v42 = vadd.f32 %v1098_v17, %v531_v37  ;;  %v595_v43 = vpop.f32.mrb[11].mxu1 }
  0xfb   : > { %697 = vst [vmem:[%s1107_s8 + $0x50] sm:$0xff] %v665_v32  ;;  %v679_v45 = vadd.f32 %v647_v29, %v593_v33  ;;  %v666_v46 = vadd.f32 %v634_v31, %v540_v34  ;;  %v596_v47 = vadd.f32 %v1098_v17, %v595_v43 }
  0xfc   : > { %713 = vst [vmem:[%s1107_s8 + $0xd0] sm:$0xff] %v681_v39  ;;  %695 = vst [vmem:[%s1107_s8 + $0x40] sm:$0xff] %v663_v40  ;;  %v682_v48 = vadd.f32 %v650_v36, %v604_v41  ;;  %v664_v49 = vadd.f32 %v632_v38, %v532_v42 }
  0xfd   : > { %711 = vst [vmem:[%s1107_s8 + $0xc0] sm:$0xff] %v679_v45  ;;  %698 = vst [vmem:[%s1107_s8 + $0x58] sm:$0xff] %v666_v46  ;;  %v680_v50 = vadd.f32 %v648_v44, %v596_v47 }
  0xfe   : > { %714 = vst [vmem:[%s1107_s8 + $0xd8] sm:$0xff] %v682_v48  ;;  %696 = vst [vmem:[%s1107_s8 + $0x48] sm:$0xff] %v664_v49  ;;  %v918_v51 = vpop.f32.mrb[12].mxu0 }
  0xff   : > { %712 = vst [vmem:[%s1107_s8 + $0xc8] sm:$0xff] %v680_v50  ;;  %v553_v53 = vadd.f32 %v918_v51, %v1098_v17  ;;  %v934_v54 = vpop.f32.mrb[12].mxu1  ;;  %v544_v56 = vpop.f32.mrb[13].mxu0 }
 0x100   : > { %v617_v58 = vadd.f32 %v934_v54, %v1098_v17  ;;  %v545_v59 = vadd.f32 %v1098_v17, %v544_v56  ;;  %v608_v60 = vpop.f32.mrb[13].mxu1  ;;  %v919_v62 = vpop.f32.mrb[14].mxu0 }
 0x101   : > { %v669_v0 = vadd.f32 %v637_v52, %v553_v53  ;;  %v609_v1 = vadd.f32 %v1098_v17, %v608_v60  ;;  %v556_v2 = vadd.f32 %v919_v62, %v1098_v17  ;;  %v935_v3 = vpop.f32.mrb[14].mxu1  ;;  %v547_v5 = vpop.f32.mrb[15].mxu0 }
 0x102   : > { %v685_v7 = vadd.f32 %v653_v55, %v617_v58  ;;  %v667_v8 = vadd.f32 %v635_v57, %v545_v59  ;;  %v620_v9 = vadd.f32 %v935_v3, %v1098_v17  ;;  %v548_v10 = vadd.f32 %v1098_v17, %v547_v5  ;;  %v611_v11 = vpop.f32.mrb[15].mxu1 }
 0x103   : > { %701 = vst [vmem:[%s1107_s8 + $0x70] sm:$0xff] %v669_v0  ;;  %v683_v13 = vadd.f32 %v651_v61, %v609_v1  ;;  %v670_v14 = vadd.f32 %v638_v63, %v556_v2  ;;  %v612_v15 = vadd.f32 %v1098_v17, %v611_v11 }
 0x104   : > { %717 = vst [vmem:[%s1107_s8 + $0xf0] sm:$0xff] %v685_v7  ;;  %699 = vst [vmem:[%s1107_s8 + $0x60] sm:$0xff] %v667_v8  ;;  %v686_v16 = vadd.f32 %v654_v4, %v620_v9  ;;  %v668_v18 = vadd.f32 %v636_v6, %v548_v10 }
 0x105   : > { %715 = vst [vmem:[%s1107_s8 + $0xe0] sm:$0xff] %v683_v13  ;;  %702 = vst [vmem:[%s1107_s8 + $0x78] sm:$0xff] %v670_v14  ;;  %v684_v19 = vadd.f32 %v652_v12, %v612_v15 }
 0x106   : > { %718 = vst [vmem:[%s1107_s8 + $0xf8] sm:$0xff] %v686_v16  ;;  %700 = vst [vmem:[%s1107_s8 + $0x68] sm:$0xff] %v668_v18 }
 0x107   : > { %716 = vst [vmem:[%s1107_s8 + $0xe8] sm:$0xff] %v684_v19 }
 0x108 PF: > { %s14_s17 = sadd.s32 1, %s1001_s17   ;;  %s1215_s15 = smov %s997_s16 }
 0x109   : > { %p11_p5 = scmp.ge.s32.totalorder %s14_s17, 4   ;;  %s1216_s16 = smov %s1218_s18 }
 0x10b   :  { %13 = sbr.rel (!%p11_p5) target bundleno = 2 (0x2), region = 75 }

// kernel: res_transformer_group_forward.20
= control target key start
LH: loop header
LB: loop body
LE: loop exit
PB: predicated region body
PF: predicated region fallthrough
CT: control target
= control target key end

     0   :  { %s2078_s12 = smov 0   ;;  %s3537_s0 = inlined_call_operand.vmem [shape: f32[2,18,18,64], index: 0, kind: input, shape index: {}]   ;;  %s3538_s1 = inlined_call_operand.vmem [shape: f32[9,64], index: 1, kind: input, shape index: {}]   ;;  %s3539_s2 = inlined_call_operand.vmem [shape: f32[1,64], index: 2, kind: input, shape index: {}]   ;;  %s3540_s3 = inlined_call_operand.vmem [shape: f32[2,16,16,64], index: 3, kind: output, shape index: {}]  }
   0x1 LB: > { %s2024_s13 = sadd.s32 4294967295, %s2056_s12   ;;  %p2028_p0 = scmp.ge.s32.totalorder %s2056_s12, 1  ;;  %s2056_s12 = sphi %s2078_s12, %s13_s12  }
   0x2   : > { %p137_p1 = scmp.lt.s32.totalorder %s2056_s12, 3 }
   0x4   : > { %p138_p2 = pnand %p2028_p0, %p137_p1 }
   0x5   : > { %p161_p3 = scmp.lt.s32.totalorder (!%p138_p2), %s2024_s13, 1  ;;  %v227_v0 = vlaneseq (!%p138_p2)  ;;  %v225_v2 = vld [vmem:[%s3538_s1] sm:$0xff] (!%p138_p2)  ;;  %vm395_vm0 = vcmask (!%p138_p2), 1046528   ;;  %vm640_vm1 = vcmask (!%p138_p2), 1045504   ;;  %v2138_v35 = vld [vmem:[%s3538_s1 + $0x8] ss:$0 sm:$0xff] (!%p138_p2) }
   0x6   : > { %141 = sbr.rel (%p138_p2) target bundleno = 319 (0x13f), region = 32  ;;  %vm1936_vm2 = vcmask (!%p138_p2), 523264  }
   0x7   : > { %v228_v1 = vshrl.u32 (!%p138_p2), %v227_v0, 7 }
   0x9   : > { %v229_v3 = vsub.s32 (!%p138_p2), 0, %v228_v1  ;;  %v297_v4 = vsub.s32 (!%p138_p2), 1, %v228_v1  ;;  %v542_v5 = vsub.s32 (!%p138_p2), 2, %v228_v1  ;;  %v787_v6 = vsub.s32 (!%p138_p2), 3, %v228_v1 }
   0xa   : > { %v855_v7 = vsub.s32 (!%p138_p2), 4, %v228_v1  ;;  %v1099_v8 = vsub.s32 (!%p138_p2), 5, %v228_v1  ;;  %v1343_v9 = vsub.s32 (!%p138_p2), 6, %v228_v1  ;;  %v1411_v10 = vsub.s32 (!%p138_p2), 7, %v228_v1 }
   0xb   : > { %v2097_v11 = vrot.slane (!%p138_p2), %v225_v2, %v229_v3  ;;  %v2099_v12 = vrot.slane (!%p138_p2), %v225_v2, %v297_v4  ;;  %v2101_v13 = vrot.slane (!%p138_p2), %v225_v2, %v542_v5  ;;  %v2105_v16 = vrot.slane (!%p138_p2), %v225_v2, %v787_v6 }
   0xc   : > { %v2107_v17 = vrot.slane (!%p138_p2), %v225_v2, %v855_v7  ;;  %v2109_v18 = vrot.slane (!%p138_p2), %v225_v2, %v1099_v8  ;;  %v2111_v19 = vrot.slane (!%p138_p2), %v225_v2, %v1343_v9  ;;  %v2122_v25 = vrot.slane (!%p138_p2), %v225_v2, %v1411_v10 }
   0xd   : > { %s3542_s13 = smov (!%p161_p3, %s2024_s13), 1 }
   0xe   : > { %s2037_s16 = smul.u32 432, %s3542_s13  ;;  %s2036_s22 = sshll.u32 %s3542_s13, 8 }
   0xf   : > { %s2229_s27 = scalar_lea.vmem %s3540_s3, %s2036_s22 }
  0x10   : > { %s2095_s19 = scalar_lea.vmem %s3537_s0, %s2037_s16 }
  0x11   : > { %v171_v14 = vld [vmem:[%s2095_s19] sm:$0xff]  ;;  %v172_v15 = vld [vmem:[%s2095_s19 + $0x8] sm:$0xff]  ;;  %v2114_v20 = vld [vmem:[%s2095_s19 + $0x18] sm:$0xff] }
  0x12   : > { %v2117_v21 = vld [vmem:[%s2095_s19 + $0x20] sm:$0xff]  ;;  %v299_v22 = vmul.f32 %v2099_v12, %v171_v14  ;;  %v300_v23 = vmul.f32 %v2099_v12, %v172_v15  ;;  %v544_v24 = vmul.f32 %v2101_v13, %v171_v14  ;;  %v231_v26 = vmul.f32 %v2097_v11, %v171_v14  ;;  %v2133_v34 = vld [vmem:[%s2095_s19 + $0x30] sm:$0xff]  ;;  %v2149_v45 = vld [vmem:[%s2095_s19 + $0x38] sm:$0xff] }
  0x13   : > { %v545_v27 = vmul.f32 %v2101_v13, %v172_v15  ;;  %v857_v28 = vmul.f32 %v2107_v17, %v2114_v20  ;;  %v858_v29 = vmul.f32 %v2107_v17, %v2117_v21  ;;  %v1101_v33 = vmul.f32 %v2109_v18, %v2114_v20  ;;  %v173_v44 = vld [vmem:[%s2095_s19 + $0x10] sm:$0x3]  ;;  %v2167_v61 = vld [vmem:[%s2095_s19 + $0x28] sm:$0x3]  ;;  %v2182_v9 = vld [vmem:[%s2095_s19 + $0x40] sm:$0x3] }
  0x14   : > { %v396_v30 = vrot.slane %v299_v22, 1  ;;  %v397_v31 = vrot.slane %v300_v23, 1  ;;  %v641_v32 = vrot.slane %v544_v24, 2  ;;  %v1102_v39 = vmul.f32 %v2109_v18, %v2117_v21 }
  0x15   : > { %v642_v36 = vrot.slane %v545_v27, 2  ;;  %v953_v37 = vrot.slane %v857_v28, 1  ;;  %v954_v38 = vrot.slane %v858_v29, 1  ;;  %v789_v41 = vmul.f32 %v2105_v16, %v2114_v20 }
  0x16   : > { %v398_v40 = vsel %vm395_vm0, %v396_v30, %v397_v31  ;;  %v1197_v42 = vrot.slane %v1101_v33, 2  ;;  %v1413_v43 = vmul.f32 %v2122_v25, %v2133_v34  ;;  %v1198_v48 = vrot.slane %v1102_v39, 2 }
  0x17   : > { %v508_v46 = vadd.f32 %v398_v40, %v231_v26  ;;  %v643_v47 = vsel %vm640_vm1, %v641_v32, %v642_v36  ;;  %v1345_v49 = vmul.f32 %v2111_v19, %v2133_v34  ;;  %v1414_v50 = vmul.f32 %v2122_v25, %v2149_v45 }
  0x18   : > { %v1509_v51 = vrot.slane %v1413_v43, 1  ;;  %v1657_v52 = vmul.f32 %v2138_v35, %v2133_v34  ;;  %v2160_v53 = vmul.f32 %v2138_v35, %v2149_v45  ;;  %v955_v55 = vsel %vm395_vm0, %v953_v37, %v954_v38 }
  0x19   : > { %v753_v54 = vadd.f32 %v643_v47, %v508_v46  ;;  %v232_v56 = vmul.f32 %v2097_v11, %v172_v15  ;;  %v301_v57 = vmul.f32 %v2099_v12, %v173_v44  ;;  %v1510_v58 = vrot.slane %v1414_v50, 1 }
  0x1a   : > { %v1753_v59 = vrot.slane %v1657_v52, 2  ;;  %v1754_v60 = vrot.slane %v2160_v53, 2  ;;  %v546_v62 = vmul.f32 %v2101_v13, %v173_v44  ;;  %v1199_v0 = vsel %vm640_vm1, %v1197_v42, %v1198_v48 }
  0x1b   : > { %v821_v63 = vadd.f32 %v789_v41, %v753_v54  ;;  %v399_v1 = vrot.slane %v301_v57, 1  ;;  %v859_v2 = vmul.f32 %v2107_v17, %v2167_v61  ;;  %v1511_v3 = vsel %vm395_vm0, %v1509_v51, %v1510_v58 }
  0x1c   : > { %v644_v4 = vrot.slane %v546_v62, 2  ;;  %v790_v5 = vmul.f32 %v2105_v16, %v2117_v21  ;;  %v1103_v6 = vmul.f32 %v2109_v18, %v2167_v61  ;;  %v1755_v8 = vsel %vm640_vm1, %v1753_v59, %v1754_v60 }
  0x1d   : > { %v1065_v7 = vadd.f32 %v955_v55, %v821_v63  ;;  %v400_v10 = vsel %vm395_vm0, %v397_v31, %v399_v1  ;;  %v956_v14 = vrot.slane %v859_v2, 1  ;;  %v1415_v24 = vmul.f32 %v2122_v25, %v2182_v9  ;;  %v2234_v1 = vld [vmem:[%s2095_s19 + $0x48] sm:$0xff] }
  0x1e   : > { %v509_v15 = vadd.f32 %v400_v10, %v232_v56  ;;  %v645_v22 = vsel %vm640_vm1, %v642_v36, %v644_v4  ;;  %v1200_v23 = vrot.slane %v1103_v6, 2  ;;  %v1346_v28 = vmul.f32 %v2111_v19, %v2149_v45 }
  0x1f   : > { %v1309_v26 = vadd.f32 %v1199_v0, %v1065_v7  ;;  %v957_v27 = vsel %vm395_vm0, %v954_v38, %v956_v14  ;;  %v1659_v29 = vmul.f32 %v2138_v35, %v2182_v9  ;;  %v1512_v31 = vrot.slane %v1415_v24, 1  ;;  %v2242_v7 = vld [vmem:[%s2095_s19 + $0x50] sm:$0xff] }
  0x20   : > { %v754_v30 = vadd.f32 %v645_v22, %v509_v15  ;;  %v233_v32 = vmul.f32 %v2097_v11, %v2114_v20  ;;  %v302_v33 = vmul.f32 %v2099_v12, %v2114_v20  ;;  %v1201_v37 = vsel %vm640_vm1, %v1198_v48, %v1200_v23 }
  0x21   : > { %v1377_v36 = vadd.f32 %v1345_v49, %v1309_v26  ;;  %v2200_v38 = vmul.f32 %v2099_v12, %v2117_v21  ;;  %v547_v39 = vmul.f32 %v2101_v13, %v2114_v20  ;;  %v1756_v41 = vrot.slane %v1659_v29, 2  ;;  %v2214_v49 = vld [vmem:[%s3539_s2] ss:$0 sm:$0xff] }
  0x22   : > { %v822_v40 = vadd.f32 %v790_v5, %v754_v30  ;;  %v401_v42 = vrot.slane %v302_v33, 1  ;;  %v2206_v43 = vmul.f32 %v2101_v13, %v2117_v21  ;;  %v1513_v46 = vsel %vm395_vm0, %v1510_v58, %v1512_v31 }
  0x23   : > { %v1621_v44 = vadd.f32 %v1511_v3, %v1377_v36  ;;  %v402_v47 = vrot.slane %v2200_v38, 1  ;;  %v646_v48 = vrot.slane %v547_v39, 2  ;;  %v791_v51 = vmul.f32 %v2105_v16, %v2133_v34 }
  0x24   : > { %v1066_v20 = vadd.f32 %v957_v27, %v822_v40  ;;  %v647_v50 = vrot.slane %v2206_v43, 2  ;;  %v860_v52 = vmul.f32 %v2107_v17, %v2133_v34  ;;  %v861_v56 = vmul.f32 %v2107_v17, %v2149_v45 }
  0x25   : > { %v1865_v54 = vadd.f32 %v1755_v8, %v1621_v44  ;;  %v403_v55 = vsel %vm395_vm0, %v401_v42, %v402_v47  ;;  %v1104_v57 = vmul.f32 %v2109_v18, %v2133_v34  ;;  %v1105_v3 = vmul.f32 %v2109_v18, %v2149_v45  ;;  %v2275_v44 = vld [vmem:[%s2095_s19 + $0x58] sm:$0x3] }
  0x26   : > { %v1310_v58 = vadd.f32 %v1201_v37, %v1066_v20  ;;  %v510_v59 = vadd.f32 %v403_v55, %v233_v32  ;;  %v648_v62 = vsel %vm640_vm1, %v646_v48, %v647_v50  ;;  %v958_v63 = vrot.slane %v860_v52, 1 }
  0x27   : > { %v1904_v0 = vadd.f32 %v2214_v49, %v1865_v54  ;;  %v959_v2 = vrot.slane %v861_v56, 1  ;;  %v1202_v4 = vrot.slane %v1104_v57, 2  ;;  %v1757_v6 = vsel %vm640_vm1, %v1754_v60, %v1756_v41 }
  0x28   : > { %v1378_v5 = vadd.f32 %v1346_v28, %v1310_v58  ;;  %v755_v8 = vadd.f32 %v648_v62, %v510_v59  ;;  %v1416_v10 = vmul.f32 %v2122_v25, %v2234_v1  ;;  %v1203_v15 = vrot.slane %v1105_v3, 2 }
  0x29   : > { %1937 = vst.msk [vmem:[%s2229_s27] sm:$0xff] %vm1936_vm2, %v1904_v0  ;;  %v960_v14 = vsel %vm395_vm0, %v958_v63, %v959_v2  ;;  %v2251_v22 = vmul.f32 %v2122_v25, %v2242_v7  ;;  %v1660_v53 = vmul.f32 %v2138_v35, %v2234_v1  ;;  %v2257_v26 = vmul.f32 %v2138_v35, %v2242_v7 }
  0x2a   : > { %v1622_v23 = vadd.f32 %v1513_v46, %v1378_v5  ;;  %v823_v60 = vadd.f32 %v791_v51, %v755_v8  ;;  %v1514_v24 = vrot.slane %v1416_v10, 1  ;;  %v1204_v27 = vsel %vm640_vm1, %v1202_v4, %v1203_v15 }
  0x2b   : > { %v1347_v28 = vmul.f32 %v2111_v19, %v2234_v1  ;;  %v1515_v29 = vrot.slane %v2251_v22, 1  ;;  %v1758_v32 = vrot.slane %v1660_v53, 2  ;;  %v304_v33 = vmul.f32 %v2099_v12, %v2167_v61 }
  0x2c   : > { %v1866_v30 = vadd.f32 %v1757_v6, %v1622_v23  ;;  %v1067_v31 = vadd.f32 %v960_v14, %v823_v60  ;;  %v1759_v36 = vrot.slane %v2257_v26, 2  ;;  %v234_v37 = vmul.f32 %v2097_v11, %v2117_v21 }
  0x2d   : > { %v549_v38 = vmul.f32 %v2101_v13, %v2167_v61  ;;  %v862_v39 = vmul.f32 %v2107_v17, %v2182_v9  ;;  %v1516_v42 = vsel %vm395_vm0, %v1514_v24, %v1515_v29  ;;  %v404_v43 = vrot.slane %v304_v33, 1 }
  0x2e   : > { %v1905_v40 = vadd.f32 %v2214_v49, %v1866_v30  ;;  %v1311_v41 = vadd.f32 %v1204_v27, %v1067_v31  ;;  %v792_v48 = vmul.f32 %v2105_v16, %v2149_v45  ;;  %v1106_v21 = vmul.f32 %v2109_v18, %v2182_v9 }
  0x2f   : > { %v649_v46 = vrot.slane %v549_v38, 2  ;;  %v961_v20 = vrot.slane %v862_v39, 1  ;;  %v405_v51 = vsel %vm395_vm0, %v402_v47, %v404_v43  ;;  %v1418_v52 = vmul.f32 %v2122_v25, %v2275_v44  ;;  %v2329_v43 = vld [vmem:[%s2095_s19 + $0x68] sm:$0xff] }
  0x30   : > { %1938 = vst.msk [vmem:[%s2229_s27 + $0x8] sm:$0xff] %vm1936_vm2, %v1905_v40  ;;  %v1379_v61 = vadd.f32 %v1347_v28, %v1311_v41  ;;  %v1662_v54 = vmul.f32 %v2138_v35, %v2275_v44  ;;  %v1760_v55 = vsel %vm640_vm1, %v1758_v32, %v1759_v36  ;;  %v511_v56 = vadd.f32 %v405_v51, %v234_v37  ;;  %v2325_v40 = vld [vmem:[%s2095_s19 + $0x60] sm:$0xff] }
  0x31   : > { %v650_v57 = vsel %vm640_vm1, %v647_v50, %v649_v46  ;;  %v1205_v58 = vrot.slane %v1106_v21, 2  ;;  %v962_v62 = vsel %vm395_vm0, %v959_v2, %v961_v20  ;;  %v1348_v47 = vmul.f32 %v2111_v19, %v2242_v7 }
  0x32   : > { %v1623_v59 = vadd.f32 %v1516_v42, %v1379_v61  ;;  %v1517_v63 = vrot.slane %v1418_v52, 1  ;;  %v756_v0 = vadd.f32 %v650_v57, %v511_v56  ;;  %v1761_v3 = vrot.slane %v1662_v54, 2 }
  0x33   : > { %v305_v4 = vmul.f32 %v2099_v12, %v2133_v34  ;;  %v2299_v5 = vmul.f32 %v2099_v12, %v2149_v45  ;;  %v1206_v50 = vsel %vm640_vm1, %v1203_v15, %v1205_v58  ;;  %v235_v2 = vmul.f32 %v2097_v11, %v2133_v34 }
  0x34   : > { %v1867_v6 = vadd.f32 %v1760_v55, %v1623_v59  ;;  %v550_v8 = vmul.f32 %v2101_v13, %v2133_v34  ;;  %v824_v10 = vadd.f32 %v792_v48, %v756_v0  ;;  %v551_v53 = vmul.f32 %v2101_v13, %v2149_v45 }
  0x35   : > { %v406_v14 = vrot.slane %v305_v4, 1  ;;  %v407_v22 = vrot.slane %v2299_v5, 1  ;;  %v793_v15 = vmul.f32 %v2105_v16, %v2234_v1  ;;  %v863_v24 = vmul.f32 %v2107_v17, %v2234_v1 }
  0x36   : > { %v1906_v23 = vadd.f32 %v2214_v49, %v1867_v6  ;;  %v651_v60 = vrot.slane %v550_v8, 2  ;;  %v1068_v27 = vadd.f32 %v962_v62, %v824_v10  ;;  %v652_v28 = vrot.slane %v551_v53, 2  ;;  %v2363_v53 = vld [vmem:[%s2095_s19 + $0x70] sm:$0x3] }
  0x37   : > { %v408_v34 = vsel %vm395_vm0, %v406_v14, %v407_v22  ;;  %v864_v30 = vmul.f32 %v2107_v17, %v2242_v7  ;;  %v963_v32 = vrot.slane %v863_v24, 1  ;;  %v1107_v33 = vmul.f32 %v2109_v18, %v2234_v1 }
  0x38   : > { %1939 = vst.msk [vmem:[%s2229_s27 + $0x10] sm:$0xff] %vm1936_vm2, %v1906_v23  ;;  %v512_v31 = vadd.f32 %v408_v34, %v235_v2  ;;  %v1108_v37 = vmul.f32 %v2109_v18, %v2242_v7  ;;  %v1312_v38 = vadd.f32 %v1206_v50, %v1068_v27  ;;  %v1518_v39 = vsel %vm395_vm0, %v1515_v29, %v1517_v63 }
  0x39   : > { %v653_v41 = vsel %vm640_vm1, %v651_v60, %v652_v28  ;;  %v964_v42 = vrot.slane %v864_v30, 1  ;;  %v1207_v48 = vrot.slane %v1107_v33, 2  ;;  %v1419_v21 = vmul.f32 %v2122_v25, %v2325_v40 }
  0x3a   : > { %v757_v46 = vadd.f32 %v653_v41, %v512_v31  ;;  %v1208_v20 = vrot.slane %v1108_v37, 2  ;;  %v1380_v61 = vadd.f32 %v1348_v47, %v1312_v38  ;;  %v2336_v52 = vmul.f32 %v2122_v25, %v2329_v43 }
  0x3b   : > { %v965_v51 = vsel %vm395_vm0, %v963_v32, %v964_v42  ;;  %v1663_v29 = vmul.f32 %v2138_v35, %v2325_v40  ;;  %v1762_v54 = vsel %vm640_vm1, %v1759_v36, %v1761_v3  ;;  %v1519_v56 = vrot.slane %v1419_v21, 1 }
  0x3c   : > { %v825_v55 = vadd.f32 %v793_v15, %v757_v46  ;;  %v2345_v57 = vmul.f32 %v2138_v35, %v2329_v43  ;;  %v1624_v58 = vadd.f32 %v1518_v39, %v1380_v61  ;;  %v1209_v59 = vsel %vm640_vm1, %v1207_v48, %v1208_v20 }
  0x3d   : > { %v1349_v62 = vmul.f32 %v2111_v19, %v2325_v40  ;;  %v1520_v47 = vrot.slane %v2336_v52, 1  ;;  %v1763_v0 = vrot.slane %v1663_v29, 2  ;;  %v307_v26 = vmul.f32 %v2099_v12, %v2182_v9 }
  0x3e   : > { %v1069_v63 = vadd.f32 %v965_v51, %v825_v55  ;;  %v552_v36 = vmul.f32 %v2101_v13, %v2182_v9  ;;  %v1868_v3 = vadd.f32 %v1762_v54, %v1624_v58  ;;  %v1764_v4 = vrot.slane %v2345_v57, 2 }
  0x3f   : > { %v236_v5 = vmul.f32 %v2097_v11, %v2149_v45  ;;  %v865_v6 = vmul.f32 %v2107_v17, %v2275_v44  ;;  %v1521_v2 = vsel %vm395_vm0, %v1519_v56, %v1520_v47  ;;  %v409_v8 = vrot.slane %v307_v26, 1 }
  0x40   : > { %v1313_v50 = vadd.f32 %v1209_v59, %v1069_v63  ;;  %v654_v10 = vrot.slane %v552_v36, 2  ;;  %v1907_v14 = vadd.f32 %v2214_v49, %v1868_v3  ;;  %v794_v9 = vmul.f32 %v2105_v16, %v2242_v7 }
  0x41   : > { %v966_v23 = vrot.slane %v865_v6, 1  ;;  %v1109_v60 = vmul.f32 %v2109_v18, %v2275_v44  ;;  %v410_v15 = vsel %vm395_vm0, %v407_v22, %v409_v8  ;;  %v1421_v27 = vmul.f32 %v2122_v25, %v2363_v53 }
  0x42   : > { %v1381_v45 = vadd.f32 %v1349_v62, %v1313_v50  ;;  %v655_v24 = vsel %vm640_vm1, %v652_v28, %v654_v10  ;;  %1940 = vst.msk [vmem:[%s2229_s27 + $0x18] sm:$0xff] %vm1936_vm2, %v1907_v14  ;;  %v1765_v34 = vsel %vm640_vm1, %v1763_v0, %v1764_v4  ;;  %v513_v30 = vadd.f32 %v410_v15, %v236_v5  ;;  %v2413_v50 = vld [vmem:[%s2095_s19 + $0x78] sm:$0xff]  ;;  %v2417_v10 = vld [vmem:[%s2095_s19 + $0x80] sm:$0xff] }
  0x43   : > { %v1210_v31 = vrot.slane %v1109_v60, 2  ;;  %v1665_v32 = vmul.f32 %v2138_v35, %v2363_v53  ;;  %v967_v37 = vsel %vm395_vm0, %v964_v42, %v966_v23  ;;  %v1350_v22 = vmul.f32 %v2111_v19, %v2329_v43 }
  0x44   : > { %v1625_v33 = vadd.f32 %v1521_v2, %v1381_v45  ;;  %v308_v28 = vmul.f32 %v2099_v12, %v2234_v1  ;;  %v758_v38 = vadd.f32 %v655_v24, %v513_v30  ;;  %v1522_v39 = vrot.slane %v1421_v27, 1 }
  0x45   : > { %v237_v41 = vmul.f32 %v2097_v11, %v2234_v1  ;;  %v2389_v46 = vmul.f32 %v2099_v12, %v2242_v7  ;;  %v1211_v21 = vsel %vm640_vm1, %v1208_v20, %v1210_v31  ;;  %v553_v61 = vmul.f32 %v2101_v13, %v2234_v1 }
  0x46   : > { %v1869_v48 = vadd.f32 %v1765_v34, %v1625_v33  ;;  %v411_v42 = vrot.slane %v308_v28, 1  ;;  %v826_v51 = vadd.f32 %v794_v9, %v758_v38  ;;  %v1766_v52 = vrot.slane %v1665_v32, 2 }
  0x47   : > { %v412_v29 = vrot.slane %v2389_v46, 1  ;;  %v554_v54 = vmul.f32 %v2101_v13, %v2242_v7  ;;  %v656_v56 = vrot.slane %v553_v61, 2  ;;  %v795_v58 = vmul.f32 %v2105_v16, %v2325_v40 }
  0x48   : > { %v1908_v55 = vadd.f32 %v2214_v49, %v1869_v48  ;;  %v866_v20 = vmul.f32 %v2107_v17, %v2325_v40  ;;  %v1070_v59 = vadd.f32 %v967_v37, %v826_v51  ;;  %v867_v63 = vmul.f32 %v2107_v17, %v2329_v43 }
  0x49   : > { %v413_v1 = vsel %vm395_vm0, %v411_v42, %v412_v29  ;;  %v657_v62 = vrot.slane %v554_v54, 2  ;;  %v1110_v36 = vmul.f32 %v2109_v18, %v2325_v40  ;;  %v1111_v3 = vmul.f32 %v2109_v18, %v2329_v43  ;;  %v2451_v54 = vld [vmem:[%s2095_s19 + $0x88] sm:$0x3] }
  0x4a   : > { %1941 = vst.msk [vmem:[%s2229_s27 + $0x20] sm:$0xff] %vm1936_vm2, %v1908_v55  ;;  %v514_v0 = vadd.f32 %v413_v1, %v237_v41  ;;  %v968_v26 = vrot.slane %v866_v20, 1  ;;  %v1314_v5 = vadd.f32 %v1211_v21, %v1070_v59  ;;  %v1523_v6 = vsel %vm395_vm0, %v1520_v47, %v1522_v39 }
  0x4b   : > { %v658_v2 = vsel %vm640_vm1, %v656_v56, %v657_v62  ;;  %v969_v8 = vrot.slane %v867_v63, 1  ;;  %v1212_v9 = vrot.slane %v1110_v36, 2  ;;  %v1213_v23 = vrot.slane %v1111_v3, 2 }
  0x4c   : > { %v759_v14 = vadd.f32 %v658_v2, %v514_v0  ;;  %v1422_v60 = vmul.f32 %v2122_v25, %v2413_v50  ;;  %v1382_v45 = vadd.f32 %v1350_v22, %v1314_v5  ;;  %v2424_v24 = vmul.f32 %v2122_v25, %v2417_v10 }
  0x4d   : > { %v970_v15 = vsel %vm395_vm0, %v968_v26, %v969_v8  ;;  %v1666_v47 = vmul.f32 %v2138_v35, %v2413_v50  ;;  %v1767_v27 = vsel %vm640_vm1, %v1764_v4, %v1766_v52  ;;  %v2433_v31 = vmul.f32 %v2138_v35, %v2417_v10 }
  0x4e   : > { %v827_v34 = vadd.f32 %v795_v58, %v759_v14  ;;  %v1524_v30 = vrot.slane %v1422_v60, 1  ;;  %v1626_v32 = vadd.f32 %v1523_v6, %v1382_v45  ;;  %v1214_v33 = vsel %vm640_vm1, %v1212_v9, %v1213_v23 }
  0x4f   : > { %v1351_v37 = vmul.f32 %v2111_v19, %v2413_v50  ;;  %v1525_v22 = vrot.slane %v2424_v24, 1  ;;  %v1768_v38 = vrot.slane %v1666_v47, 2  ;;  %v310_v57 = vmul.f32 %v2099_v12, %v2275_v44 }
  0x50   : > { %v1071_v28 = vadd.f32 %v970_v15, %v827_v34  ;;  %v555_v4 = vmul.f32 %v2101_v13, %v2275_v44  ;;  %v1870_v39 = vadd.f32 %v1767_v27, %v1626_v32  ;;  %v1769_v41 = vrot.slane %v2433_v31, 2 }
  0x51   : > { %v238_v46 = vmul.f32 %v2097_v11, %v2242_v7  ;;  %v868_v48 = vmul.f32 %v2107_v17, %v2363_v53  ;;  %v1526_v42 = vsel %vm395_vm0, %v1524_v30, %v1525_v22  ;;  %v414_v61 = vrot.slane %v310_v57, 1 }
  0x52   : > { %v1315_v21 = vadd.f32 %v1214_v33, %v1071_v28  ;;  %v659_v51 = vrot.slane %v555_v4, 2  ;;  %v1909_v52 = vadd.f32 %v2214_v49, %v1870_v39  ;;  %v796_v44 = vmul.f32 %v2105_v16, %v2329_v43 }
  0x53   : > { %v971_v55 = vrot.slane %v868_v48, 1  ;;  %v1112_v56 = vmul.f32 %v2109_v18, %v2363_v53  ;;  %v415_v58 = vsel %vm395_vm0, %v412_v29, %v414_v61  ;;  %v1424_v59 = vmul.f32 %v2122_v25, %v2451_v54 }
  0x54   : > { %v1383_v7 = vadd.f32 %v1351_v37, %v1315_v21  ;;  %v660_v20 = vsel %vm640_vm1, %v657_v62, %v659_v51  ;;  %1942 = vst.msk [vmem:[%s2229_s27 + $0x28] sm:$0xff] %vm1936_vm2, %v1909_v52  ;;  %v1770_v1 = vsel %vm640_vm1, %v1768_v38, %v1769_v41  ;;  %v515_v63 = vadd.f32 %v415_v58, %v238_v46  ;;  %v2501_v21 = vld [vmem:[%s2095_s19 + $0x90] sm:$0xff]  ;;  %v2505_v51 = vld [vmem:[%s2095_s19 + $0x98] sm:$0xff] }
  0x55   : > { %v1215_v0 = vrot.slane %v1112_v56, 2  ;;  %v1668_v26 = vmul.f32 %v2138_v35, %v2451_v54  ;;  %v972_v3 = vsel %vm395_vm0, %v969_v8, %v971_v55  ;;  %v1352_v29 = vmul.f32 %v2111_v19, %v2417_v10 }
  0x56   : > { %v1627_v36 = vadd.f32 %v1526_v42, %v1383_v7  ;;  %v311_v62 = vmul.f32 %v2099_v12, %v2325_v40  ;;  %v760_v5 = vadd.f32 %v660_v20, %v515_v63  ;;  %v1527_v6 = vrot.slane %v1424_v59, 1 }
  0x57   : > { %v239_v2 = vmul.f32 %v2097_v11, %v2325_v40  ;;  %v2477_v14 = vmul.f32 %v2099_v12, %v2329_v43  ;;  %v1216_v60 = vsel %vm640_vm1, %v1213_v23, %v1215_v0  ;;  %v556_v45 = vmul.f32 %v2101_v13, %v2325_v40 }
  0x58   : > { %v1871_v9 = vadd.f32 %v1770_v1, %v1627_v36  ;;  %v416_v8 = vrot.slane %v311_v62, 1  ;;  %v828_v15 = vadd.f32 %v796_v44, %v760_v5  ;;  %v1771_v24 = vrot.slane %v1668_v26, 2 }
  0x59   : > { %v417_v47 = vrot.slane %v2477_v14, 1  ;;  %v557_v27 = vmul.f32 %v2101_v13, %v2329_v43  ;;  %v661_v30 = vrot.slane %v556_v45, 2  ;;  %v797_v32 = vmul.f32 %v2105_v16, %v2413_v50 }
  0x5a   : > { %v1910_v34 = vadd.f32 %v2214_v49, %v1871_v9  ;;  %v869_v23 = vmul.f32 %v2107_v17, %v2413_v50  ;;  %v1072_v33 = vadd.f32 %v972_v3, %v828_v15  ;;  %v870_v28 = vmul.f32 %v2107_v17, %v2417_v10 }
  0x5b   : > { %v418_v40 = vsel %vm395_vm0, %v416_v8, %v417_v47  ;;  %v662_v37 = vrot.slane %v557_v27, 2  ;;  %v1113_v4 = vmul.f32 %v2109_v18, %v2413_v50  ;;  %v1114_v39 = vmul.f32 %v2109_v18, %v2417_v10  ;;  %v2539_v27 = vld [vmem:[%s2095_s19 + $0xa0] sm:$0x3] }
  0x5c   : > { %1943 = vst.msk [vmem:[%s2229_s27 + $0x30] sm:$0xff] %vm1936_vm2, %v1910_v34  ;;  %v516_v38 = vadd.f32 %v418_v40, %v239_v2  ;;  %v973_v57 = vrot.slane %v869_v23, 1  ;;  %v1316_v46 = vadd.f32 %v1216_v60, %v1072_v33  ;;  %v1528_v48 = vsel %vm395_vm0, %v1525_v22, %v1527_v6 }
  0x5d   : > { %v663_v42 = vsel %vm640_vm1, %v661_v30, %v662_v37  ;;  %v974_v61 = vrot.slane %v870_v28, 1  ;;  %v1217_v44 = vrot.slane %v1113_v4, 2  ;;  %v1218_v55 = vrot.slane %v1114_v39, 2 }
  0x5e   : > { %v761_v52 = vadd.f32 %v663_v42, %v516_v38  ;;  %v1425_v56 = vmul.f32 %v2122_v25, %v2501_v21  ;;  %v1384_v7 = vadd.f32 %v1352_v29, %v1316_v46  ;;  %v2512_v20 = vmul.f32 %v2122_v25, %v2505_v51 }
  0x5f   : > { %v975_v58 = vsel %vm395_vm0, %v973_v57, %v974_v61  ;;  %v1669_v22 = vmul.f32 %v2138_v35, %v2501_v21  ;;  %v1772_v59 = vsel %vm640_vm1, %v1769_v41, %v1771_v24  ;;  %v2521_v0 = vmul.f32 %v2138_v35, %v2505_v51 }
  0x60   : > { %v829_v1 = vadd.f32 %v797_v32, %v761_v52  ;;  %v1529_v63 = vrot.slane %v1425_v56, 1  ;;  %v1628_v26 = vadd.f32 %v1528_v48, %v1384_v7  ;;  %v1219_v36 = vsel %vm640_vm1, %v1217_v44, %v1218_v55 }
  0x61   : > { %v1353_v3 = vmul.f32 %v2111_v19, %v2501_v21  ;;  %v1530_v29 = vrot.slane %v2512_v20, 1  ;;  %v1773_v5 = vrot.slane %v1669_v22, 2  ;;  %v313_v31 = vmul.f32 %v2099_v12, %v2363_v53 }
  0x62   : > { %v1073_v62 = vadd.f32 %v975_v58, %v829_v1  ;;  %v558_v41 = vmul.f32 %v2101_v13, %v2363_v53  ;;  %v1872_v6 = vadd.f32 %v1772_v59, %v1628_v26  ;;  %v1774_v2 = vrot.slane %v2521_v0, 2 }
  0x63   : > { %v240_v14 = vmul.f32 %v2097_v11, %v2329_v43  ;;  %v871_v9 = vmul.f32 %v2107_v17, %v2451_v54  ;;  %v1531_v8 = vsel %vm395_vm0, %v1529_v63, %v1530_v29  ;;  %v419_v45 = vrot.slane %v313_v31, 1 }
  0x64   : > { %v1317_v60 = vadd.f32 %v1219_v36, %v1073_v62  ;;  %v664_v15 = vrot.slane %v558_v41, 2  ;;  %v1911_v24 = vadd.f32 %v2214_v49, %v1872_v6  ;;  %v798_v53 = vmul.f32 %v2105_v16, %v2417_v10 }
  0x65   : > { %v976_v34 = vrot.slane %v871_v9, 1  ;;  %v1115_v30 = vmul.f32 %v2109_v18, %v2451_v54  ;;  %v420_v32 = vsel %vm395_vm0, %v417_v47, %v419_v45  ;;  %v1427_v33 = vmul.f32 %v2122_v25, %v2539_v27 }
  0x66   : > { %v1385_v43 = vadd.f32 %v1353_v3, %v1317_v60  ;;  %v665_v23 = vsel %vm640_vm1, %v662_v37, %v664_v15  ;;  %1944 = vst.msk [vmem:[%s2229_s27 + $0x38] sm:$0xff] %vm1936_vm2, %v1911_v24  ;;  %v1775_v40 = vsel %vm640_vm1, %v1773_v5, %v1774_v2  ;;  %v517_v28 = vadd.f32 %v420_v32, %v240_v14  ;;  %v2589_v60 = vld [vmem:[%s2095_s19 + $0xa8] sm:$0xff]  ;;  %v2593_v15 = vld [vmem:[%s2095_s19 + $0xb0] sm:$0xff] }
  0x67   : > { %v1220_v38 = vrot.slane %v1115_v30, 2  ;;  %v1671_v57 = vmul.f32 %v2138_v35, %v2539_v27  ;;  %v977_v39 = vsel %vm395_vm0, %v974_v61, %v976_v34  ;;  %v1354_v47 = vmul.f32 %v2111_v19, %v2505_v51 }
  0x68   : > { %v1629_v4 = vadd.f32 %v1531_v8, %v1385_v43  ;;  %v314_v37 = vmul.f32 %v2099_v12, %v2413_v50  ;;  %v762_v46 = vadd.f32 %v665_v23, %v517_v28  ;;  %v1532_v48 = vrot.slane %v1427_v33, 1 }
  0x69   : > { %v241_v42 = vmul.f32 %v2097_v11, %v2413_v50  ;;  %v2565_v52 = vmul.f32 %v2099_v12, %v2417_v10  ;;  %v1221_v56 = vsel %vm640_vm1, %v1218_v55, %v1220_v38  ;;  %v559_v7 = vmul.f32 %v2101_v13, %v2413_v50 }
  0x6a   : > { %v1873_v44 = vadd.f32 %v1775_v40, %v1629_v4  ;;  %v421_v61 = vrot.slane %v314_v37, 1  ;;  %v830_v58 = vadd.f32 %v798_v53, %v762_v46  ;;  %v1776_v20 = vrot.slane %v1671_v57, 2 }
  0x6b   : > { %v422_v22 = vrot.slane %v2565_v52, 1  ;;  %v560_v59 = vmul.f32 %v2101_v13, %v2417_v10  ;;  %v666_v63 = vrot.slane %v559_v7, 2  ;;  %v799_v26 = vmul.f32 %v2105_v16, %v2501_v21 }
  0x6c   : > { %v1912_v1 = vadd.f32 %v2214_v49, %v1873_v44  ;;  %v872_v55 = vmul.f32 %v2107_v17, %v2501_v21  ;;  %v1074_v36 = vadd.f32 %v977_v39, %v830_v58  ;;  %v873_v62 = vmul.f32 %v2107_v17, %v2505_v51 }
  0x6d   : > { %v423_v50 = vsel %vm395_vm0, %v421_v61, %v422_v22  ;;  %v667_v3 = vrot.slane %v560_v59, 2  ;;  %v1116_v41 = vmul.f32 %v2109_v18, %v2501_v21  ;;  %v1117_v6 = vmul.f32 %v2109_v18, %v2505_v51  ;;  %v2627_v59 = vld [vmem:[%s2095_s19 + $0xb8] sm:$0x3] }
  0x6e   : > { %1945 = vst.msk [vmem:[%s2229_s27 + $0x40] sm:$0xff] %vm1936_vm2, %v1912_v1  ;;  %v518_v5 = vadd.f32 %v423_v50, %v241_v42  ;;  %v978_v31 = vrot.slane %v872_v55, 1  ;;  %v1318_v14 = vadd.f32 %v1221_v56, %v1074_v36  ;;  %v1533_v9 = vsel %vm395_vm0, %v1530_v29, %v1532_v48 }
  0x6f   : > { %v668_v8 = vsel %vm640_vm1, %v666_v63, %v667_v3  ;;  %v979_v45 = vrot.slane %v873_v62, 1  ;;  %v1222_v53 = vrot.slane %v1116_v41, 2  ;;  %v1223_v34 = vrot.slane %v1117_v6, 2 }
  0x70   : > { %v763_v24 = vadd.f32 %v668_v8, %v518_v5  ;;  %v1428_v30 = vmul.f32 %v2122_v25, %v2589_v60  ;;  %v1386_v43 = vadd.f32 %v1354_v47, %v1318_v14  ;;  %v2600_v23 = vmul.f32 %v2122_v25, %v2593_v15 }
  0x71   : > { %v980_v32 = vsel %vm395_vm0, %v978_v31, %v979_v45  ;;  %v1672_v29 = vmul.f32 %v2138_v35, %v2589_v60  ;;  %v1777_v33 = vsel %vm640_vm1, %v1774_v2, %v1776_v20  ;;  %v2609_v38 = vmul.f32 %v2138_v35, %v2593_v15 }
  0x72   : > { %v831_v40 = vadd.f32 %v799_v26, %v763_v24  ;;  %v1534_v28 = vrot.slane %v1428_v30, 1  ;;  %v1630_v57 = vadd.f32 %v1533_v9, %v1386_v43  ;;  %v1224_v4 = vsel %vm640_vm1, %v1222_v53, %v1223_v34 }
  0x73   : > { %v1355_v39 = vmul.f32 %v2111_v19, %v2589_v60  ;;  %v1535_v47 = vrot.slane %v2600_v23, 1  ;;  %v1778_v46 = vrot.slane %v1672_v29, 2  ;;  %v316_v0 = vmul.f32 %v2099_v12, %v2451_v54 }
  0x74   : > { %v1075_v37 = vadd.f32 %v980_v32, %v831_v40  ;;  %v561_v2 = vmul.f32 %v2101_v13, %v2451_v54  ;;  %v1874_v48 = vadd.f32 %v1777_v33, %v1630_v57  ;;  %v1779_v42 = vrot.slane %v2609_v38, 2 }
  0x75   : > { %v242_v52 = vmul.f32 %v2097_v11, %v2417_v10  ;;  %v874_v44 = vmul.f32 %v2107_v17, %v2539_v27  ;;  %v1536_v61 = vsel %vm395_vm0, %v1534_v28, %v1535_v47  ;;  %v424_v7 = vrot.slane %v316_v0, 1 }
  0x76   : > { %v1319_v56 = vadd.f32 %v1224_v4, %v1075_v37  ;;  %v669_v58 = vrot.slane %v561_v2, 2  ;;  %v1913_v20 = vadd.f32 %v2214_v49, %v1874_v48  ;;  %v800_v54 = vmul.f32 %v2105_v16, %v2505_v51 }
  0x77   : > { %v981_v1 = vrot.slane %v874_v44, 1  ;;  %v1118_v63 = vmul.f32 %v2109_v18, %v2539_v27  ;;  %v425_v26 = vsel %vm395_vm0, %v422_v22, %v424_v7  ;;  %v1430_v36 = vmul.f32 %v2122_v25, %v2627_v59 }
  0x78   : > { %v1387_v10 = vadd.f32 %v1355_v39, %v1319_v56  ;;  %v670_v55 = vsel %vm640_vm1, %v667_v3, %v669_v58  ;;  %1946 = vst.msk [vmem:[%s2229_s27 + $0x48] sm:$0xff] %vm1936_vm2, %v1913_v20  ;;  %v1780_v50 = vsel %vm640_vm1, %v1778_v46, %v1779_v42  ;;  %v519_v62 = vadd.f32 %v425_v26, %v242_v52  ;;  %v2677_v56 = vld [vmem:[%s2095_s19 + $0xc0] sm:$0xff]  ;;  %v2681_v58 = vld [vmem:[%s2095_s19 + $0xc8] sm:$0xff] }
  0x79   : > { %v1225_v5 = vrot.slane %v1118_v63, 2  ;;  %v1674_v31 = vmul.f32 %v2138_v35, %v2627_v59  ;;  %v982_v6 = vsel %vm395_vm0, %v979_v45, %v981_v1  ;;  %v1356_v22 = vmul.f32 %v2111_v19, %v2593_v15 }
  0x7a   : > { %v1631_v41 = vadd.f32 %v1536_v61, %v1387_v10  ;;  %v317_v3 = vmul.f32 %v2099_v12, %v2501_v21  ;;  %v764_v14 = vadd.f32 %v670_v55, %v519_v62  ;;  %v1537_v9 = vrot.slane %v1430_v36, 1 }
  0x7b   : > { %v243_v8 = vmul.f32 %v2097_v11, %v2501_v21  ;;  %v2653_v24 = vmul.f32 %v2099_v12, %v2505_v51  ;;  %v1226_v30 = vsel %vm640_vm1, %v1223_v34, %v1225_v5  ;;  %v562_v43 = vmul.f32 %v2101_v13, %v2501_v21 }
  0x7c   : > { %v1875_v53 = vadd.f32 %v1780_v50, %v1631_v41  ;;  %v426_v45 = vrot.slane %v317_v3, 1  ;;  %v832_v32 = vadd.f32 %v800_v54, %v764_v14  ;;  %v1781_v23 = vrot.slane %v1674_v31, 2 }
  0x7d   : > { %v427_v29 = vrot.slane %v2653_v24, 1  ;;  %v563_v33 = vmul.f32 %v2101_v13, %v2505_v51  ;;  %v671_v28 = vrot.slane %v562_v43, 2  ;;  %v801_v57 = vmul.f32 %v2105_v16, %v2589_v60 }
  0x7e   : > { %v1914_v40 = vadd.f32 %v2214_v49, %v1875_v53  ;;  %v875_v34 = vmul.f32 %v2107_v17, %v2589_v60  ;;  %v1076_v4 = vadd.f32 %v982_v6, %v832_v32  ;;  %v876_v37 = vmul.f32 %v2107_v17, %v2593_v15 }
  0x7f   : > { %v428_v21 = vsel %vm395_vm0, %v426_v45, %v427_v29  ;;  %v672_v39 = vrot.slane %v563_v33, 2  ;;  %v1119_v2 = vmul.f32 %v2109_v18, %v2589_v60  ;;  %v1120_v48 = vmul.f32 %v2109_v18, %v2593_v15 }
  0x80   : > { %1947 = vst.msk [vmem:[%s2229_s27 + $0x50] sm:$0xff] %vm1936_vm2, %v1914_v40  ;;  %v520_v46 = vadd.f32 %v428_v21, %v243_v8  ;;  %v983_v0 = vrot.slane %v875_v34, 1  ;;  %v1320_v52 = vadd.f32 %v1226_v30, %v1076_v4  ;;  %v1538_v44 = vsel %vm395_vm0, %v1535_v47, %v1537_v9 }
  0x81   : > { %v673_v61 = vsel %vm640_vm1, %v671_v28, %v672_v39  ;;  %v984_v7 = vrot.slane %v876_v37, 1  ;;  %v1227_v54 = vrot.slane %v1119_v2, 2  ;;  %v1228_v1 = vrot.slane %v1120_v48, 2 }
  0x82   : > { %v765_v20 = vadd.f32 %v673_v61, %v520_v46  ;;  %v1431_v63 = vmul.f32 %v2122_v25, %v2677_v56  ;;  %v1388_v10 = vadd.f32 %v1356_v22, %v1320_v52  ;;  %v2688_v55 = vmul.f32 %v2122_v25, %v2681_v58  ;;  %v2733_v46 = vld [vmem:[%s3538_s1 + $0x8] ss:$0 sm:$0xff] }
  0x83   : > { %v985_v26 = vsel %vm395_vm0, %v983_v0, %v984_v7  ;;  %v1675_v47 = vmul.f32 %v2138_v35, %v2677_v56  ;;  %v1782_v36 = vsel %vm640_vm1, %v1779_v42, %v1781_v23  ;;  %v2697_v5 = vmul.f32 %v2138_v35, %v2681_v58  ;;  %v2715_v23 = vld [vmem:[%s2095_s19 + $0xd0] sm:$0x3] }
  0x84   : > { %v833_v50 = vadd.f32 %v801_v57, %v765_v20  ;;  %v1539_v62 = vrot.slane %v1431_v63, 1  ;;  %v1632_v31 = vadd.f32 %v1538_v44, %v1388_v10  ;;  %v1229_v41 = vsel %vm640_vm1, %v1227_v54, %v1228_v1 }
  0x85   : > { %v1357_v6 = vmul.f32 %v2111_v19, %v2677_v56  ;;  %v1540_v22 = vrot.slane %v2688_v55, 1  ;;  %v1783_v14 = vrot.slane %v1675_v47, 2  ;;  %v319_v38 = vmul.f32 %v2099_v12, %v2539_v27 }
  0x86   : > { %v1077_v3 = vadd.f32 %v985_v26, %v833_v50  ;;  %v564_v42 = vmul.f32 %v2101_v13, %v2539_v27  ;;  %v1876_v9 = vadd.f32 %v1782_v36, %v1632_v31  ;;  %v1784_v35 = vrot.slane %v2697_v5, 2 }
  0x87   : > { %v244_v8 = vmul.f32 %v2097_v11, %v2505_v51  ;;  %v877_v24 = vmul.f32 %v2107_v17, %v2627_v59  ;;  %v1541_v30 = vsel %vm395_vm0, %v1539_v62, %v1540_v22  ;;  %v429_v45 = vrot.slane %v319_v38, 1 }
  0x88   : > { %v1321_v53 = vadd.f32 %v1229_v41, %v1077_v3  ;;  %v674_v43 = vrot.slane %v564_v42, 2  ;;  %v1915_v32 = vadd.f32 %v2214_v49, %v1876_v9  ;;  %v802_v27 = vmul.f32 %v2105_v16, %v2593_v15 }
  0x89   : > { %v986_v33 = vrot.slane %v877_v24, 1  ;;  %v1121_v40 = vmul.f32 %v2109_v18, %v2627_v59  ;;  %v430_v28 = vsel %vm395_vm0, %v427_v29, %v429_v45  ;;  %v1433_v34 = vmul.f32 %v2122_v25, %v2715_v23 }
  0x8a   : > { %v1389_v51 = vadd.f32 %v1357_v6, %v1321_v53  ;;  %v675_v57 = vsel %vm640_vm1, %v672_v39, %v674_v43  ;;  %1948 = vst.msk [vmem:[%s2229_s27 + $0x58] sm:$0xff] %vm1936_vm2, %v1915_v32  ;;  %v1785_v4 = vsel %vm640_vm1, %v1783_v14, %v1784_v35  ;;  %v521_v21 = vadd.f32 %v430_v28, %v244_v8  ;;  %v2770_v53 = vld [vmem:[%s2095_s19 + $0xd8] sm:$0xff]  ;;  %v2774_v43 = vld [vmem:[%s2095_s19 + $0xe0] sm:$0xff] }
  0x8b   : > { %v1230_v37 = vrot.slane %v1121_v40, 2  ;;  %v1677_v29 = vmul.f32 %v2733_v46, %v2715_v23  ;;  %v987_v0 = vsel %vm395_vm0, %v984_v7, %v986_v33  ;;  %v1358_v2 = vmul.f32 %v2111_v19, %v2681_v58 }
  0x8c   : > { %v1633_v39 = vadd.f32 %v1541_v30, %v1389_v51  ;;  %v320_v48 = vmul.f32 %v2099_v12, %v2589_v60  ;;  %v766_v52 = vadd.f32 %v675_v57, %v521_v21  ;;  %v1542_v44 = vrot.slane %v1433_v34, 1 }
  0x8d   : > { %v245_v61 = vmul.f32 %v2097_v11, %v2589_v60  ;;  %v2746_v20 = vmul.f32 %v2099_v12, %v2593_v15  ;;  %v1231_v63 = vsel %vm640_vm1, %v1228_v1, %v1230_v37  ;;  %v565_v10 = vmul.f32 %v2101_v13, %v2589_v60 }
  0x8e   : > { %v1877_v54 = vadd.f32 %v1785_v4, %v1633_v39  ;;  %v431_v7 = vrot.slane %v320_v48, 1  ;;  %v834_v26 = vadd.f32 %v802_v27, %v766_v52  ;;  %v1786_v55 = vrot.slane %v1677_v29, 2 }
  0x8f   : > { %v432_v47 = vrot.slane %v2746_v20, 1  ;;  %v566_v36 = vmul.f32 %v2101_v13, %v2593_v15  ;;  %v676_v62 = vrot.slane %v565_v10, 2  ;;  %v803_v31 = vmul.f32 %v2105_v16, %v2677_v56 }
  0x90   : > { %v1916_v50 = vadd.f32 %v2214_v49, %v1877_v54  ;;  %v878_v1 = vmul.f32 %v2107_v17, %v2677_v56  ;;  %v1078_v41 = vadd.f32 %v987_v0, %v834_v26  ;;  %v879_v3 = vmul.f32 %v2107_v17, %v2681_v58 }
  0x91   : > { %v433_v60 = vsel %vm395_vm0, %v431_v7, %v432_v47  ;;  %v677_v6 = vrot.slane %v566_v36, 2  ;;  %v1122_v42 = vmul.f32 %v2109_v18, %v2677_v56  ;;  %v1123_v9 = vmul.f32 %v2109_v18, %v2681_v58  ;;  %v2808_v36 = vld [vmem:[%s2095_s19 + $0xe8] sm:$0x3] }
  0x92   : > { %1949 = vst.msk [vmem:[%s2229_s27 + $0x60] sm:$0xff] %vm1936_vm2, %v1916_v50  ;;  %v522_v14 = vadd.f32 %v433_v60, %v245_v61  ;;  %v988_v38 = vrot.slane %v878_v1, 1  ;;  %v1322_v8 = vadd.f32 %v1231_v63, %v1078_v41  ;;  %v1543_v24 = vsel %vm395_vm0, %v1540_v22, %v1542_v44 }
  0x93   : > { %v678_v30 = vsel %vm640_vm1, %v676_v62, %v677_v6  ;;  %v989_v45 = vrot.slane %v879_v3, 1  ;;  %v1232_v27 = vrot.slane %v1122_v42, 2  ;;  %v1233_v33 = vrot.slane %v1123_v9, 2 }
  0x94   : > { %v767_v32 = vadd.f32 %v678_v30, %v522_v14  ;;  %v1434_v40 = vmul.f32 %v2122_v25, %v2770_v53  ;;  %v1390_v51 = vadd.f32 %v1358_v2, %v1322_v8  ;;  %v2781_v57 = vmul.f32 %v2122_v25, %v2774_v43 }
  0x95   : > { %v990_v28 = vsel %vm395_vm0, %v988_v38, %v989_v45  ;;  %v1678_v22 = vmul.f32 %v2733_v46, %v2770_v53  ;;  %v1787_v34 = vsel %vm640_vm1, %v1784_v35, %v1786_v55  ;;  %v2790_v37 = vmul.f32 %v2733_v46, %v2774_v43 }
  0x96   : > { %v835_v4 = vadd.f32 %v803_v31, %v767_v32  ;;  %v1544_v21 = vrot.slane %v1434_v40, 1  ;;  %v1634_v29 = vadd.f32 %v1543_v24, %v1390_v51  ;;  %v1234_v39 = vsel %vm640_vm1, %v1232_v27, %v1233_v33 }
  0x97   : > { %v1359_v0 = vmul.f32 %v2111_v19, %v2770_v53  ;;  %v1545_v2 = vrot.slane %v2781_v57, 1  ;;  %v1788_v52 = vrot.slane %v1678_v22, 2  ;;  %v322_v5 = vmul.f32 %v2099_v12, %v2627_v59 }
  0x98   : > { %v1079_v48 = vadd.f32 %v990_v28, %v835_v4  ;;  %v567_v35 = vmul.f32 %v2101_v13, %v2627_v59  ;;  %v1878_v44 = vadd.f32 %v1787_v34, %v1634_v29  ;;  %v1789_v61 = vrot.slane %v2790_v37, 2  ;;  %v2845_v34 = vld [vmem:[%s3539_s2] ss:$0 sm:$0xff] }
  0x99   : > { %v246_v20 = vmul.f32 %v2097_v11, %v2593_v15  ;;  %v880_v54 = vmul.f32 %v2107_v17, %v2715_v23  ;;  %v1546_v7 = vsel %vm395_vm0, %v1544_v21, %v1545_v2  ;;  %v434_v10 = vrot.slane %v322_v5, 1 }
  0x9a   : > { %v1323_v63 = vadd.f32 %v1234_v39, %v1079_v48  ;;  %v679_v26 = vrot.slane %v567_v35, 2  ;;  %v1917_v55 = vadd.f32 %v2214_v49, %v1878_v44  ;;  %v804_v59 = vmul.f32 %v2105_v16, %v2681_v58 }
  0x9b   : > { %v991_v50 = vrot.slane %v880_v54, 1  ;;  %v1124_v62 = vmul.f32 %v2109_v18, %v2715_v23  ;;  %v435_v31 = vsel %vm395_vm0, %v432_v47, %v434_v10  ;;  %v1436_v41 = vmul.f32 %v2122_v25, %v2808_v36 }
  0x9c   : > { %v1391_v15 = vadd.f32 %v1359_v0, %v1323_v63  ;;  %v680_v1 = vsel %vm640_vm1, %v677_v6, %v679_v26  ;;  %1950 = vst.msk [vmem:[%s2229_s27 + $0x68] sm:$0xff] %vm1936_vm2, %v1917_v55  ;;  %v1790_v49 = vsel %vm640_vm1, %v1788_v52, %v1789_v61  ;;  %v523_v60 = vadd.f32 %v435_v31, %v246_v20  ;;  %v2863_v63 = vld [vmem:[%s2095_s19 + $0xf0] sm:$0xff]  ;;  %v2867_v26 = vld [vmem:[%s2095_s19 + $0xf8] sm:$0xff] }
  0x9d   : > { %v1235_v3 = vrot.slane %v1124_v62, 2  ;;  %v1680_v14 = vmul.f32 %v2733_v46, %v2808_v36  ;;  %v992_v42 = vsel %vm395_vm0, %v989_v45, %v991_v50  ;;  %v1360_v47 = vmul.f32 %v2111_v19, %v2774_v43 }
  0x9e   : > { %v1635_v38 = vadd.f32 %v1546_v7, %v1391_v15  ;;  %v323_v6 = vmul.f32 %v2099_v12, %v2677_v56  ;;  %v768_v9 = vadd.f32 %v680_v1, %v523_v60  ;;  %v1547_v8 = vrot.slane %v1436_v41, 1 }
  0x9f   : > { %v247_v24 = vmul.f32 %v2097_v11, %v2677_v56  ;;  %v2834_v30 = vmul.f32 %v2099_v12, %v2681_v58  ;;  %v1236_v27 = vsel %vm640_vm1, %v1233_v33, %v1235_v3  ;;  %v568_v40 = vmul.f32 %v2101_v13, %v2677_v56 }
  0xa0   : > { %v1879_v32 = vadd.f32 %v1790_v49, %v1635_v38  ;;  %v436_v45 = vrot.slane %v323_v6, 1  ;;  %v836_v51 = vadd.f32 %v804_v59, %v768_v9  ;;  %v1791_v28 = vrot.slane %v1680_v14, 2 }
  0xa1   : > { %v437_v57 = vrot.slane %v2834_v30, 1  ;;  %v569_v22 = vmul.f32 %v2101_v13, %v2681_v58  ;;  %v681_v4 = vrot.slane %v568_v40, 2  ;;  %v805_v21 = vmul.f32 %v2105_v16, %v2770_v53 }
  0xa2   : > { %v1918_v33 = vadd.f32 %v2845_v34, %v1879_v32  ;;  %v881_v56 = vmul.f32 %v2107_v17, %v2770_v53  ;;  %v1080_v29 = vadd.f32 %v992_v42, %v836_v51  ;;  %v882_v48 = vmul.f32 %v2107_v17, %v2774_v43 }
  0xa3   : > { %v438_v39 = vsel %vm395_vm0, %v436_v45, %v437_v57  ;;  %v682_v0 = vrot.slane %v569_v22, 2  ;;  %v1125_v35 = vmul.f32 %v2109_v18, %v2770_v53  ;;  %v1126_v44 = vmul.f32 %v2109_v18, %v2774_v43  ;;  %v2901_v22 = vld [vmem:[%s2095_s19 + $0x100] sm:$0x3] }
  0xa4   : > { %1951 = vst.msk [vmem:[%s2229_s27 + $0x70] sm:$0xff] %vm1936_vm2, %v1918_v33  ;;  %v524_v52 = vadd.f32 %v438_v39, %v247_v24  ;;  %v993_v5 = vrot.slane %v881_v56, 1  ;;  %v1324_v20 = vadd.f32 %v1236_v27, %v1080_v29  ;;  %v1548_v54 = vsel %vm395_vm0, %v1545_v2, %v1547_v8 }
  0xa5   : > { %v683_v7 = vsel %vm640_vm1, %v681_v4, %v682_v0  ;;  %v994_v10 = vrot.slane %v882_v48, 1  ;;  %v1237_v59 = vrot.slane %v1125_v35, 2  ;;  %v1238_v50 = vrot.slane %v1126_v44, 2 }
  0xa6   : > { %v769_v55 = vadd.f32 %v683_v7, %v524_v52  ;;  %v1437_v62 = vmul.f32 %v2122_v25, %v2863_v63  ;;  %v1392_v15 = vadd.f32 %v1360_v47, %v1324_v20  ;;  %v2874_v1 = vmul.f32 %v2122_v25, %v2867_v26 }
  0xa7   : > { %v995_v31 = vsel %vm395_vm0, %v993_v5, %v994_v10  ;;  %v1681_v2 = vmul.f32 %v2733_v46, %v2863_v63  ;;  %v1792_v41 = vsel %vm640_vm1, %v1789_v61, %v1791_v28  ;;  %v2883_v3 = vmul.f32 %v2733_v46, %v2867_v26 }
  0xa8   : > { %v837_v49 = vadd.f32 %v805_v21, %v769_v55  ;;  %v1549_v60 = vrot.slane %v1437_v62, 1  ;;  %v1636_v14 = vadd.f32 %v1548_v54, %v1392_v15  ;;  %v1239_v38 = vsel %vm640_vm1, %v1237_v59, %v1238_v50 }
  0xa9   : > { %v1361_v42 = vmul.f32 %v2111_v19, %v2863_v63  ;;  %v1550_v47 = vrot.slane %v2874_v1, 1  ;;  %v1793_v9 = vrot.slane %v1681_v2, 2  ;;  %v325_v37 = vmul.f32 %v2099_v12, %v2715_v23 }
  0xaa   : > { %v1081_v6 = vadd.f32 %v995_v31, %v837_v49  ;;  %v570_v61 = vmul.f32 %v2101_v13, %v2715_v23  ;;  %v1880_v8 = vadd.f32 %v1792_v41, %v1636_v14  ;;  %v1794_v24 = vrot.slane %v2883_v3, 2 }
  0xab   : > { %v248_v30 = vmul.f32 %v2097_v11, %v2681_v58  ;;  %v883_v32 = vmul.f32 %v2107_v17, %v2808_v36  ;;  %v1551_v45 = vsel %vm395_vm0, %v1549_v60, %v1550_v47  ;;  %v439_v40 = vrot.slane %v325_v37, 1 }
  0xac   : > { %v1325_v27 = vadd.f32 %v1239_v38, %v1081_v6  ;;  %v684_v51 = vrot.slane %v570_v61, 2  ;;  %v1919_v28 = vadd.f32 %v2845_v34, %v1880_v8  ;;  %v806_v23 = vmul.f32 %v2105_v16, %v2774_v43 }
  0xad   : > { %v996_v33 = vrot.slane %v883_v32, 1  ;;  %v1127_v4 = vmul.f32 %v2109_v18, %v2808_v36  ;;  %v440_v21 = vsel %vm395_vm0, %v437_v57, %v439_v40  ;;  %v1439_v29 = vmul.f32 %v2122_v25, %v2901_v22 }
  0xae   : > { %v1393_v58 = vadd.f32 %v1361_v42, %v1325_v27  ;;  %v685_v56 = vsel %vm640_vm1, %v682_v0, %v684_v51  ;;  %1952 = vst.msk [vmem:[%s2229_s27 + $0x78] sm:$0xff] %vm1936_vm2, %v1919_v28  ;;  %v1795_v39 = vsel %vm640_vm1, %v1793_v9, %v1794_v24  ;;  %v525_v48 = vadd.f32 %v440_v21, %v248_v30  ;;  %v2951_v27 = vld [vmem:[%s2095_s19 + $0x108] sm:$0xff]  ;;  %v2955_v51 = vld [vmem:[%s2095_s19 + $0x110] sm:$0xff] }
  0xaf   : > { %v1240_v52 = vrot.slane %v1127_v4, 2  ;;  %v1683_v5 = vmul.f32 %v2733_v46, %v2901_v22  ;;  %v997_v44 = vsel %vm395_vm0, %v994_v10, %v996_v33  ;;  %v1362_v57 = vmul.f32 %v2111_v19, %v2867_v26 }
  0xb0   : > { %v1637_v35 = vadd.f32 %v1551_v45, %v1393_v58  ;;  %v326_v0 = vmul.f32 %v2099_v12, %v2770_v53  ;;  %v770_v20 = vadd.f32 %v685_v56, %v525_v48  ;;  %v1552_v54 = vrot.slane %v1439_v29, 1 }
  0xb1   : > { %v249_v7 = vmul.f32 %v2097_v11, %v2770_v53  ;;  %v2927_v55 = vmul.f32 %v2099_v12, %v2774_v43  ;;  %v1241_v62 = vsel %vm640_vm1, %v1238_v50, %v1240_v52  ;;  %v571_v15 = vmul.f32 %v2101_v13, %v2770_v53 }
  0xb2   : > { %v1881_v59 = vadd.f32 %v1795_v39, %v1637_v35  ;;  %v441_v10 = vrot.slane %v326_v0, 1  ;;  %v838_v31 = vadd.f32 %v806_v23, %v770_v20  ;;  %v1796_v1 = vrot.slane %v1683_v5, 2 }
  0xb3   : > { %v442_v2 = vrot.slane %v2927_v55, 1  ;;  %v572_v41 = vmul.f32 %v2101_v13, %v2774_v43  ;;  %v686_v60 = vrot.slane %v571_v15, 2  ;;  %v807_v14 = vmul.f32 %v2105_v16, %v2863_v63 }
  0xb4   : > { %v1920_v49 = vadd.f32 %v2845_v34, %v1881_v59  ;;  %v884_v50 = vmul.f32 %v2107_v17, %v2863_v63  ;;  %v1082_v38 = vadd.f32 %v997_v44, %v838_v31  ;;  %v885_v6 = vmul.f32 %v2107_v17, %v2867_v26 }
  0xb5   : > { %v443_v53 = vsel %vm395_vm0, %v441_v10, %v442_v2  ;;  %v687_v42 = vrot.slane %v572_v41, 2  ;;  %v1128_v61 = vmul.f32 %v2109_v18, %v2863_v63  ;;  %v1129_v8 = vmul.f32 %v2109_v18, %v2867_v26  ;;  %v2989_v41 = vld [vmem:[%s2095_s19 + $0x118] sm:$0x3] }
  0xb6   : > { %1953 = vst.msk [vmem:[%s2229_s27 + $0x80] sm:$0xff] %vm1936_vm2, %v1920_v49  ;;  %v526_v9 = vadd.f32 %v443_v53, %v249_v7  ;;  %v998_v37 = vrot.slane %v884_v50, 1  ;;  %v1326_v30 = vadd.f32 %v1241_v62, %v1082_v38  ;;  %v1553_v32 = vsel %vm395_vm0, %v1550_v47, %v1552_v54 }
  0xb7   : > { %v688_v45 = vsel %vm640_vm1, %v686_v60, %v687_v42  ;;  %v999_v40 = vrot.slane %v885_v6, 1  ;;  %v1242_v23 = vrot.slane %v1128_v61, 2  ;;  %v1243_v33 = vrot.slane %v1129_v8, 2 }
  0xb8   : > { %v771_v28 = vadd.f32 %v688_v45, %v526_v9  ;;  %v1440_v4 = vmul.f32 %v2122_v25, %v2951_v27  ;;  %v1394_v58 = vadd.f32 %v1362_v57, %v1326_v30  ;;  %v2962_v56 = vmul.f32 %v2122_v25, %v2955_v51 }
  0xb9   : > { %v1000_v21 = vsel %vm395_vm0, %v998_v37, %v999_v40  ;;  %v1684_v47 = vmul.f32 %v2733_v46, %v2951_v27  ;;  %v1797_v29 = vsel %vm640_vm1, %v1794_v24, %v1796_v1  ;;  %v2971_v52 = vmul.f32 %v2733_v46, %v2955_v51 }
  0xba   : > { %v839_v39 = vadd.f32 %v807_v14, %v771_v28  ;;  %v1554_v48 = vrot.slane %v1440_v4, 1  ;;  %v1638_v5 = vadd.f32 %v1553_v32, %v1394_v58  ;;  %v1244_v35 = vsel %vm640_vm1, %v1242_v23, %v1243_v33 }
  0xbb   : > { %v1363_v44 = vmul.f32 %v2111_v19, %v2951_v27  ;;  %v1555_v57 = vrot.slane %v2962_v56, 1  ;;  %v1798_v20 = vrot.slane %v1684_v47, 2  ;;  %v328_v3 = vmul.f32 %v2099_v12, %v2808_v36 }
  0xbc   : > { %v1083_v0 = vadd.f32 %v1000_v21, %v839_v39  ;;  %v573_v24 = vmul.f32 %v2101_v13, %v2808_v36  ;;  %v1882_v54 = vadd.f32 %v1797_v29, %v1638_v5  ;;  %v1799_v7 = vrot.slane %v2971_v52, 2 }
  0xbd   : > { %v250_v55 = vmul.f32 %v2097_v11, %v2774_v43  ;;  %v886_v59 = vmul.f32 %v2107_v17, %v2901_v22  ;;  %v1556_v10 = vsel %vm395_vm0, %v1554_v48, %v1555_v57  ;;  %v444_v15 = vrot.slane %v328_v3, 1 }
  0xbe   : > { %v1327_v62 = vadd.f32 %v1244_v35, %v1083_v0  ;;  %v689_v31 = vrot.slane %v573_v24, 2  ;;  %v1921_v1 = vadd.f32 %v2845_v34, %v1882_v54  ;;  %v808_v36 = vmul.f32 %v2105_v16, %v2867_v26 }
  0xbf   : > { %v1001_v49 = vrot.slane %v886_v59, 1  ;;  %v1130_v60 = vmul.f32 %v2109_v18, %v2901_v22  ;;  %v445_v14 = vsel %vm395_vm0, %v442_v2, %v444_v15  ;;  %v1442_v38 = vmul.f32 %v2122_v25, %v2989_v41 }
  0xc0   : > { %v1395_v43 = vadd.f32 %v1363_v44, %v1327_v62  ;;  %v690_v50 = vsel %vm640_vm1, %v687_v42, %v689_v31  ;;  %1954 = vst.msk [vmem:[%s2229_s27 + $0x88] sm:$0xff] %vm1936_vm2, %v1921_v1  ;;  %v1800_v53 = vsel %vm640_vm1, %v1798_v20, %v1799_v7  ;;  %v527_v6 = vadd.f32 %v445_v14, %v250_v55  ;;  %v3039_v62 = vld [vmem:[%s2095_s19 + $0x120] sm:$0xff]  ;;  %v3043_v31 = vld [vmem:[%s2095_s19 + $0x128] sm:$0xff] }
  0xc1   : > { %v1245_v9 = vrot.slane %v1130_v60, 2  ;;  %v1686_v37 = vmul.f32 %v2733_v46, %v2989_v41  ;;  %v1002_v8 = vsel %vm395_vm0, %v999_v40, %v1001_v49  ;;  %v1364_v2 = vmul.f32 %v2111_v19, %v2955_v51 }
  0xc2   : > { %v1639_v61 = vadd.f32 %v1556_v10, %v1395_v43  ;;  %v329_v42 = vmul.f32 %v2099_v12, %v2863_v63  ;;  %v772_v30 = vadd.f32 %v690_v50, %v527_v6  ;;  %v1557_v32 = vrot.slane %v1442_v38, 1 }
  0xc3   : > { %v251_v45 = vmul.f32 %v2097_v11, %v2863_v63  ;;  %v3015_v28 = vmul.f32 %v2099_v12, %v2867_v26  ;;  %v1246_v4 = vsel %vm640_vm1, %v1243_v33, %v1245_v9  ;;  %v574_v58 = vmul.f32 %v2101_v13, %v2863_v63 }
  0xc4   : > { %v1883_v23 = vadd.f32 %v1800_v53, %v1639_v61  ;;  %v446_v40 = vrot.slane %v329_v42, 1  ;;  %v840_v21 = vadd.f32 %v808_v36, %v772_v30  ;;  %v1801_v56 = vrot.slane %v1686_v37, 2 }
  0xc5   : > { %v447_v47 = vrot.slane %v3015_v28, 1  ;;  %v575_v29 = vmul.f32 %v2101_v13, %v2867_v26  ;;  %v691_v48 = vrot.slane %v574_v58, 2  ;;  %v809_v5 = vmul.f32 %v2105_v16, %v2951_v27 }
  0xc6   : > { %v1922_v39 = vadd.f32 %v2845_v34, %v1883_v23  ;;  %v887_v33 = vmul.f32 %v2107_v17, %v2951_v27  ;;  %v1084_v35 = vadd.f32 %v1002_v8, %v840_v21  ;;  %v888_v0 = vmul.f32 %v2107_v17, %v2955_v51 }
  0xc7   : > { %v448_v63 = vsel %vm395_vm0, %v446_v40, %v447_v47  ;;  %v692_v44 = vrot.slane %v575_v29, 2  ;;  %v1131_v24 = vmul.f32 %v2109_v18, %v2951_v27  ;;  %v1132_v54 = vmul.f32 %v2109_v18, %v2955_v51  ;;  %v3077_v29 = vld [vmem:[%s2095_s19 + $0x130] sm:$0x3] }
  0xc8   : > { %1955 = vst.msk [vmem:[%s2229_s27 + $0x90] sm:$0xff] %vm1936_vm2, %v1922_v39  ;;  %v528_v20 = vadd.f32 %v448_v63, %v251_v45  ;;  %v1003_v3 = vrot.slane %v887_v33, 1  ;;  %v1328_v55 = vadd.f32 %v1246_v4, %v1084_v35  ;;  %v1558_v59 = vsel %vm395_vm0, %v1555_v57, %v1557_v32 }
  0xc9   : > { %v693_v10 = vsel %vm640_vm1, %v691_v48, %v692_v44  ;;  %v1004_v15 = vrot.slane %v888_v0, 1  ;;  %v1247_v36 = vrot.slane %v1131_v24, 2  ;;  %v1248_v49 = vrot.slane %v1132_v54, 2 }
  0xca   : > { %v773_v1 = vadd.f32 %v693_v10, %v528_v20  ;;  %v1443_v60 = vmul.f32 %v2122_v25, %v3039_v62  ;;  %v1396_v43 = vadd.f32 %v1364_v2, %v1328_v55  ;;  %v3050_v50 = vmul.f32 %v2122_v25, %v3043_v31 }
  0xcb   : > { %v1005_v14 = vsel %vm395_vm0, %v1003_v3, %v1004_v15  ;;  %v1687_v57 = vmul.f32 %v2733_v46, %v3039_v62  ;;  %v1802_v38 = vsel %vm640_vm1, %v1799_v7, %v1801_v56  ;;  %v3059_v9 = vmul.f32 %v2733_v46, %v3043_v31 }
  0xcc   : > { %v841_v53 = vadd.f32 %v809_v5, %v773_v1  ;;  %v1559_v6 = vrot.slane %v1443_v60, 1  ;;  %v1640_v37 = vadd.f32 %v1558_v59, %v1396_v43  ;;  %v1249_v61 = vsel %vm640_vm1, %v1247_v36, %v1248_v49 }
  0xcd   : > { %v1365_v8 = vmul.f32 %v2111_v19, %v3039_v62  ;;  %v1560_v2 = vrot.slane %v3050_v50, 1  ;;  %v1803_v30 = vrot.slane %v1687_v57, 2  ;;  %v331_v52 = vmul.f32 %v2099_v12, %v2901_v22 }
  0xce   : > { %v1085_v42 = vadd.f32 %v1005_v14, %v841_v53  ;;  %v576_v7 = vmul.f32 %v2101_v13, %v2901_v22  ;;  %v1884_v32 = vadd.f32 %v1802_v38, %v1640_v37  ;;  %v1804_v45 = vrot.slane %v3059_v9, 2 }
  0xcf   : > { %v252_v28 = vmul.f32 %v2097_v11, %v2867_v26  ;;  %v889_v23 = vmul.f32 %v2107_v17, %v2989_v41  ;;  %v1561_v40 = vsel %vm395_vm0, %v1559_v6, %v1560_v2  ;;  %v449_v58 = vrot.slane %v331_v52, 1 }
  0xd0   : > { %v1329_v4 = vadd.f32 %v1249_v61, %v1085_v42  ;;  %v694_v21 = vrot.slane %v576_v7, 2  ;;  %v1923_v56 = vadd.f32 %v2845_v34, %v1884_v32  ;;  %v810_v22 = vmul.f32 %v2105_v16, %v2955_v51 }
  0xd1   : > { %v1006_v39 = vrot.slane %v889_v23, 1  ;;  %v1133_v48 = vmul.f32 %v2109_v18, %v2989_v41  ;;  %v450_v5 = vsel %vm395_vm0, %v447_v47, %v449_v58  ;;  %v1445_v35 = vmul.f32 %v2122_v25, %v3077_v29 }
  0xd2   : > { %v1397_v26 = vadd.f32 %v1365_v8, %v1329_v4  ;;  %v695_v33 = vsel %vm640_vm1, %v692_v44, %v694_v21  ;;  %1956 = vst.msk [vmem:[%s2229_s27 + $0x98] sm:$0xff] %vm1936_vm2, %v1923_v56  ;;  %v1805_v63 = vsel %vm640_vm1, %v1803_v30, %v1804_v45  ;;  %v529_v0 = vadd.f32 %v450_v5, %v252_v28  ;;  %v3127_v4 = vld [vmem:[%s2095_s19 + $0x138] sm:$0xff]  ;;  %v3131_v21 = vld [vmem:[%s2095_s19 + $0x140] sm:$0xff] }
  0xd3   : > { %v1250_v20 = vrot.slane %v1133_v48, 2  ;;  %v1689_v3 = vmul.f32 %v2733_v46, %v3077_v29  ;;  %v1007_v54 = vsel %vm395_vm0, %v1004_v15, %v1006_v39  ;;  %v1366_v47 = vmul.f32 %v2111_v19, %v3043_v31 }
  0xd4   : > { %v1641_v24 = vadd.f32 %v1561_v40, %v1397_v26  ;;  %v332_v44 = vmul.f32 %v2099_v12, %v2951_v27  ;;  %v774_v55 = vadd.f32 %v695_v33, %v529_v0  ;;  %v1562_v59 = vrot.slane %v1445_v35, 1 }
  0xd5   : > { %v253_v10 = vmul.f32 %v2097_v11, %v2951_v27  ;;  %v3103_v1 = vmul.f32 %v2099_v12, %v2955_v51  ;;  %v1251_v60 = vsel %vm640_vm1, %v1248_v49, %v1250_v20  ;;  %v577_v43 = vmul.f32 %v2101_v13, %v2951_v27 }
  0xd6   : > { %v1885_v36 = vadd.f32 %v1805_v63, %v1641_v24  ;;  %v451_v15 = vrot.slane %v332_v44, 1  ;;  %v842_v14 = vadd.f32 %v810_v22, %v774_v55  ;;  %v1806_v50 = vrot.slane %v1689_v3, 2 }
  0xd7   : > { %v452_v57 = vrot.slane %v3103_v1, 1  ;;  %v578_v38 = vmul.f32 %v2101_v13, %v2955_v51  ;;  %v696_v6 = vrot.slane %v577_v43, 2  ;;  %v811_v37 = vmul.f32 %v2105_v16, %v3039_v62 }
  0xd8   : > { %v1924_v53 = vadd.f32 %v2845_v34, %v1885_v36  ;;  %v890_v49 = vmul.f32 %v2107_v17, %v3039_v62  ;;  %v1086_v61 = vadd.f32 %v1007_v54, %v842_v14  ;;  %v891_v42 = vmul.f32 %v2107_v17, %v3043_v31 }
  0xd9   : > { %v453_v27 = vsel %vm395_vm0, %v451_v15, %v452_v57  ;;  %v697_v8 = vrot.slane %v578_v38, 2  ;;  %v1134_v7 = vmul.f32 %v2109_v18, %v3039_v62  ;;  %v1135_v32 = vmul.f32 %v2109_v18, %v3043_v31  ;;  %v3165_v38 = vld [vmem:[%s2095_s19 + $0x148] sm:$0x3] }
  0xda   : > { %1957 = vst.msk [vmem:[%s2229_s27 + $0xa0] sm:$0xff] %vm1936_vm2, %v1924_v53  ;;  %v530_v30 = vadd.f32 %v453_v27, %v253_v10  ;;  %v1008_v52 = vrot.slane %v890_v49, 1  ;;  %v1330_v28 = vadd.f32 %v1251_v60, %v1086_v61  ;;  %v1563_v23 = vsel %vm395_vm0, %v1560_v2, %v1562_v59 }
  0xdb   : > { %v698_v40 = vsel %vm640_vm1, %v696_v6, %v697_v8  ;;  %v1009_v58 = vrot.slane %v891_v42, 1  ;;  %v1252_v22 = vrot.slane %v1134_v7, 2  ;;  %v1253_v39 = vrot.slane %v1135_v32, 2 }
  0xdc   : > { %v775_v56 = vadd.f32 %v698_v40, %v530_v30  ;;  %v1446_v48 = vmul.f32 %v2122_v25, %v3127_v4  ;;  %v1398_v26 = vadd.f32 %v1366_v47, %v1330_v28  ;;  %v3138_v33 = vmul.f32 %v2122_v25, %v3131_v21 }
  0xdd   : > { %v1010_v5 = vsel %vm395_vm0, %v1008_v52, %v1009_v58  ;;  %v1690_v2 = vmul.f32 %v2733_v46, %v3127_v4  ;;  %v1807_v35 = vsel %vm640_vm1, %v1804_v45, %v1806_v50  ;;  %v3147_v20 = vmul.f32 %v2733_v46, %v3131_v21 }
  0xde   : > { %v843_v63 = vadd.f32 %v811_v37, %v775_v56  ;;  %v1564_v0 = vrot.slane %v1446_v48, 1  ;;  %v1642_v3 = vadd.f32 %v1563_v23, %v1398_v26  ;;  %v1254_v24 = vsel %vm640_vm1, %v1252_v22, %v1253_v39 }
  0xdf   : > { %v1367_v54 = vmul.f32 %v2111_v19, %v3127_v4  ;;  %v1565_v47 = vrot.slane %v3138_v33, 1  ;;  %v1808_v55 = vrot.slane %v1690_v2, 2  ;;  %v334_v9 = vmul.f32 %v2099_v12, %v2989_v41 }
  0xe0   : > { %v1087_v44 = vadd.f32 %v1010_v5, %v843_v63  ;;  %v579_v45 = vmul.f32 %v2101_v13, %v2989_v41  ;;  %v1886_v59 = vadd.f32 %v1807_v35, %v1642_v3  ;;  %v1809_v10 = vrot.slane %v3147_v20, 2 }
  0xe1   : > { %v254_v1 = vmul.f32 %v2097_v11, %v2955_v51  ;;  %v892_v36 = vmul.f32 %v2107_v17, %v3077_v29  ;;  %v1566_v15 = vsel %vm395_vm0, %v1564_v0, %v1565_v47  ;;  %v454_v43 = vrot.slane %v334_v9, 1 }
  0xe2   : > { %v1331_v60 = vadd.f32 %v1254_v24, %v1087_v44  ;;  %v699_v14 = vrot.slane %v579_v45, 2  ;;  %v1925_v50 = vadd.f32 %v2845_v34, %v1886_v59  ;;  %v812_v41 = vmul.f32 %v2105_v16, %v3043_v31 }
  0xe3   : > { %v1011_v53 = vrot.slane %v892_v36, 1  ;;  %v1136_v6 = vmul.f32 %v2109_v18, %v3077_v29  ;;  %v455_v37 = vsel %vm395_vm0, %v452_v57, %v454_v43  ;;  %v1448_v61 = vmul.f32 %v2122_v25, %v3165_v38 }
  0xe4   : > { %v1399_v51 = vadd.f32 %v1367_v54, %v1331_v60  ;;  %v700_v49 = vsel %vm640_vm1, %v697_v8, %v699_v14  ;;  %1958 = vst.msk [vmem:[%s2229_s27 + $0xa8] sm:$0xff] %vm1936_vm2, %v1925_v50  ;;  %v1810_v27 = vsel %vm640_vm1, %v1808_v55, %v1809_v10  ;;  %v531_v42 = vadd.f32 %v455_v37, %v254_v1  ;;  %v3215_v60 = vld [vmem:[%s2095_s19 + $0x150] sm:$0xff]  ;;  %v3219_v14 = vld [vmem:[%s2095_s19 + $0x158] sm:$0xff] }
  0xe5   : > { %v1255_v30 = vrot.slane %v1136_v6, 2  ;;  %v1692_v52 = vmul.f32 %v2733_v46, %v3165_v38  ;;  %v1012_v32 = vsel %vm395_vm0, %v1009_v58, %v1011_v53  ;;  %v1368_v57 = vmul.f32 %v2111_v19, %v3131_v21 }
  0xe6   : > { %v1643_v7 = vadd.f32 %v1566_v15, %v1399_v51  ;;  %v335_v8 = vmul.f32 %v2099_v12, %v3039_v62  ;;  %v776_v28 = vadd.f32 %v700_v49, %v531_v42  ;;  %v1567_v23 = vrot.slane %v1448_v61, 1 }
  0xe7   : > { %v255_v40 = vmul.f32 %v2097_v11, %v3039_v62  ;;  %v3191_v56 = vmul.f32 %v2099_v12, %v3043_v31  ;;  %v1256_v48 = vsel %vm640_vm1, %v1253_v39, %v1255_v30  ;;  %v580_v26 = vmul.f32 %v2101_v13, %v3039_v62 }
  0xe8   : > { %v1887_v22 = vadd.f32 %v1810_v27, %v1643_v7  ;;  %v456_v58 = vrot.slane %v335_v8, 1  ;;  %v844_v5 = vadd.f32 %v812_v41, %v776_v28  ;;  %v1811_v33 = vrot.slane %v1692_v52, 2 }
  0xe9   : > { %v457_v2 = vrot.slane %v3191_v56, 1  ;;  %v581_v35 = vmul.f32 %v2101_v13, %v3043_v31  ;;  %v701_v0 = vrot.slane %v580_v26, 2  ;;  %v813_v3 = vmul.f32 %v2105_v16, %v3127_v4 }
  0xea   : > { %v1926_v63 = vadd.f32 %v2845_v34, %v1887_v22  ;;  %v893_v39 = vmul.f32 %v2107_v17, %v3127_v4  ;;  %v1088_v24 = vadd.f32 %v1012_v32, %v844_v5  ;;  %v894_v44 = vmul.f32 %v2107_v17, %v3131_v21 }
  0xeb   : > { %v458_v62 = vsel %vm395_vm0, %v456_v58, %v457_v2  ;;  %v702_v54 = vrot.slane %v581_v35, 2  ;;  %v1137_v45 = vmul.f32 %v2109_v18, %v3127_v4  ;;  %v1138_v59 = vmul.f32 %v2109_v18, %v3131_v21  ;;  %v3253_v35 = vld [vmem:[%s2095_s19 + $0x160] sm:$0x3] }
  0xec   : > { %1959 = vst.msk [vmem:[%s2229_s27 + $0xb0] sm:$0xff] %vm1936_vm2, %v1926_v63  ;;  %v532_v55 = vadd.f32 %v458_v62, %v255_v40  ;;  %v1013_v9 = vrot.slane %v893_v39, 1  ;;  %v1332_v1 = vadd.f32 %v1256_v48, %v1088_v24  ;;  %v1568_v36 = vsel %vm395_vm0, %v1565_v47, %v1567_v23 }
  0xed   : > { %v703_v15 = vsel %vm640_vm1, %v701_v0, %v702_v54  ;;  %v1014_v43 = vrot.slane %v894_v44, 1  ;;  %v1257_v41 = vrot.slane %v1137_v45, 2  ;;  %v1258_v53 = vrot.slane %v1138_v59, 2 }
  0xee   : > { %v777_v50 = vadd.f32 %v703_v15, %v532_v55  ;;  %v1449_v6 = vmul.f32 %v2122_v25, %v3215_v60  ;;  %v1400_v51 = vadd.f32 %v1368_v57, %v1332_v1  ;;  %v3226_v49 = vmul.f32 %v2122_v25, %v3219_v14 }
  0xef   : > { %v1015_v37 = vsel %vm395_vm0, %v1013_v9, %v1014_v43  ;;  %v1693_v47 = vmul.f32 %v2733_v46, %v3215_v60  ;;  %v1812_v61 = vsel %vm640_vm1, %v1809_v10, %v1811_v33  ;;  %v3235_v30 = vmul.f32 %v2733_v46, %v3219_v14 }
  0xf0   : > { %v845_v27 = vadd.f32 %v813_v3, %v777_v50  ;;  %v1569_v42 = vrot.slane %v1449_v6, 1  ;;  %v1644_v52 = vadd.f32 %v1568_v36, %v1400_v51  ;;  %v1259_v7 = vsel %vm640_vm1, %v1257_v41, %v1258_v53 }
  0xf1   : > { %v1369_v32 = vmul.f32 %v2111_v19, %v3215_v60  ;;  %v1570_v57 = vrot.slane %v3226_v49, 1  ;;  %v1813_v28 = vrot.slane %v1693_v47, 2  ;;  %v337_v20 = vmul.f32 %v2099_v12, %v3077_v29 }
  0xf2   : > { %v1089_v8 = vadd.f32 %v1015_v37, %v845_v27  ;;  %v582_v10 = vmul.f32 %v2101_v13, %v3077_v29  ;;  %v1888_v23 = vadd.f32 %v1812_v61, %v1644_v52  ;;  %v1814_v40 = vrot.slane %v3235_v30, 2 }
  0xf3   : > { %v256_v56 = vmul.f32 %v2097_v11, %v3043_v31  ;;  %v895_v22 = vmul.f32 %v2107_v17, %v3165_v38  ;;  %v1571_v58 = vsel %vm395_vm0, %v1569_v42, %v1570_v57  ;;  %v459_v26 = vrot.slane %v337_v20, 1 }
  0xf4   : > { %v1333_v48 = vadd.f32 %v1259_v7, %v1089_v8  ;;  %v704_v5 = vrot.slane %v582_v10, 2  ;;  %v1927_v33 = vadd.f32 %v2845_v34, %v1888_v23  ;;  %v814_v29 = vmul.f32 %v2105_v16, %v3131_v21 }
  0xf5   : > { %v1016_v63 = vrot.slane %v895_v22, 1  ;;  %v1139_v0 = vmul.f32 %v2109_v18, %v3165_v38  ;;  %v460_v3 = vsel %vm395_vm0, %v457_v2, %v459_v26  ;;  %v1451_v24 = vmul.f32 %v2122_v25, %v3253_v35 }
  0xf6   : > { %v1401_v31 = vadd.f32 %v1369_v32, %v1333_v48  ;;  %v705_v39 = vsel %vm640_vm1, %v702_v54, %v704_v5  ;;  %1960 = vst.msk [vmem:[%s2229_s27 + $0xb8] sm:$0xff] %vm1936_vm2, %v1927_v33  ;;  %v1815_v62 = vsel %vm640_vm1, %v1813_v28, %v1814_v40  ;;  %v533_v44 = vadd.f32 %v460_v3, %v256_v56  ;;  %v3303_v48 = vld [vmem:[%s2095_s19 + $0x168] sm:$0xff]  ;;  %v3307_v5 = vld [vmem:[%s2095_s19 + $0x170] sm:$0xff] }
  0xf7   : > { %v1260_v55 = vrot.slane %v1139_v0, 2  ;;  %v1695_v9 = vmul.f32 %v2733_v46, %v3253_v35  ;;  %v1017_v59 = vsel %vm395_vm0, %v1014_v43, %v1016_v63  ;;  %v1370_v2 = vmul.f32 %v2111_v19, %v3219_v14 }
  0xf8   : > { %v1645_v45 = vadd.f32 %v1571_v58, %v1401_v31  ;;  %v338_v54 = vmul.f32 %v2099_v12, %v3127_v4  ;;  %v778_v1 = vadd.f32 %v705_v39, %v533_v44  ;;  %v1572_v36 = vrot.slane %v1451_v24, 1 }
  0xf9   : > { %v257_v15 = vmul.f32 %v2097_v11, %v3127_v4  ;;  %v3279_v50 = vmul.f32 %v2099_v12, %v3131_v21  ;;  %v1261_v6 = vsel %vm640_vm1, %v1258_v53, %v1260_v55  ;;  %v583_v51 = vmul.f32 %v2101_v13, %v3127_v4 }
  0xfa   : > { %v1889_v41 = vadd.f32 %v1815_v62, %v1645_v45  ;;  %v461_v43 = vrot.slane %v338_v54, 1  ;;  %v846_v37 = vadd.f32 %v814_v29, %v778_v1  ;;  %v1816_v49 = vrot.slane %v1695_v9, 2 }
  0xfb   : > { %v462_v47 = vrot.slane %v3279_v50, 1  ;;  %v584_v61 = vmul.f32 %v2101_v13, %v3131_v21  ;;  %v706_v42 = vrot.slane %v583_v51, 2  ;;  %v815_v52 = vmul.f32 %v2105_v16, %v3215_v60 }
  0xfc   : > { %v1928_v27 = vadd.f32 %v2845_v34, %v1889_v41  ;;  %v896_v53 = vmul.f32 %v2107_v17, %v3215_v60  ;;  %v1090_v7 = vadd.f32 %v1017_v59, %v846_v37  ;;  %v897_v8 = vmul.f32 %v2107_v17, %v3219_v14 }
  0xfd   : > { %v463_v4 = vsel %vm395_vm0, %v461_v43, %v462_v47  ;;  %v707_v32 = vrot.slane %v584_v61, 2  ;;  %v1140_v10 = vmul.f32 %v2109_v18, %v3215_v60  ;;  %v1141_v23 = vmul.f32 %v2109_v18, %v3219_v14 }
  0xfe   : > { %1961 = vst.msk [vmem:[%s2229_s27 + $0xc0] sm:$0xff] %vm1936_vm2, %v1928_v27  ;;  %v534_v28 = vadd.f32 %v463_v4, %v257_v15  ;;  %v1018_v20 = vrot.slane %v896_v53, 1  ;;  %v1334_v56 = vadd.f32 %v1261_v6, %v1090_v7  ;;  %v1573_v22 = vsel %vm395_vm0, %v1570_v57, %v1572_v36 }
  0xff   : > { %v708_v58 = vsel %vm640_vm1, %v706_v42, %v707_v32  ;;  %v1019_v26 = vrot.slane %v897_v8, 1  ;;  %v1262_v29 = vrot.slane %v1140_v10, 2  ;;  %v1263_v63 = vrot.slane %v1141_v23, 2 }
 0x100   : > { %v779_v33 = vadd.f32 %v708_v58, %v534_v28  ;;  %v1452_v0 = vmul.f32 %v2122_v25, %v3303_v48  ;;  %v1402_v31 = vadd.f32 %v1370_v2, %v1334_v56  ;;  %v3314_v39 = vmul.f32 %v2122_v25, %v3307_v5  ;;  %v3359_v28 = vld [vmem:[%s3538_s1 + $0x8] ss:$0 sm:$0xff] }
 0x101   : > { %v1020_v3 = vsel %vm395_vm0, %v1018_v20, %v1019_v26  ;;  %v1696_v57 = vmul.f32 %v2733_v46, %v3303_v48  ;;  %v1817_v24 = vsel %vm640_vm1, %v1814_v40, %v1816_v49  ;;  %v3323_v55 = vmul.f32 %v2733_v46, %v3307_v5  ;;  %v3341_v49 = vld [vmem:[%s2095_s19 + $0x178] sm:$0x3] }
 0x102   : > { %v847_v62 = vadd.f32 %v815_v52, %v779_v33  ;;  %v1574_v44 = vrot.slane %v1452_v0, 1  ;;  %v1646_v9 = vadd.f32 %v1573_v22, %v1402_v31  ;;  %v1264_v45 = vsel %vm640_vm1, %v1262_v29, %v1263_v63 }
 0x103   : > { %v1371_v59 = vmul.f32 %v2111_v19, %v3303_v48  ;;  %v1575_v2 = vrot.slane %v3314_v39, 1  ;;  %v1818_v1 = vrot.slane %v1696_v57, 2  ;;  %v340_v30 = vmul.f32 %v2099_v12, %v3165_v38 }
 0x104   : > { %v1091_v54 = vadd.f32 %v1020_v3, %v847_v62  ;;  %v585_v40 = vmul.f32 %v2101_v13, %v3165_v38  ;;  %v1890_v36 = vadd.f32 %v1817_v24, %v1646_v9  ;;  %v1819_v46 = vrot.slane %v3323_v55, 2 }
 0x105   : > { %v258_v15 = vmul.f32 %v2097_v11, %v3131_v21  ;;  %v898_v50 = vmul.f32 %v2107_v17, %v3253_v35  ;;  %v1576_v6 = vsel %vm395_vm0, %v1574_v44, %v1575_v2  ;;  %v464_v43 = vrot.slane %v340_v30, 1 }
 0x106   : > { %v1335_v41 = vadd.f32 %v1264_v45, %v1091_v54  ;;  %v709_v51 = vrot.slane %v585_v40, 2  ;;  %v1929_v37 = vadd.f32 %v2845_v34, %v1890_v36  ;;  %v816_v38 = vmul.f32 %v2105_v16, %v3219_v14 }
 0x107   : > { %v1021_v61 = vrot.slane %v898_v50, 1  ;;  %v1142_v27 = vmul.f32 %v2109_v18, %v3253_v35  ;;  %v465_v42 = vsel %vm395_vm0, %v462_v47, %v464_v43  ;;  %v1454_v53 = vmul.f32 %v2122_v25, %v3341_v49 }
 0x108   : > { %v1403_v21 = vadd.f32 %v1371_v59, %v1335_v41  ;;  %v710_v52 = vsel %vm640_vm1, %v707_v32, %v709_v51  ;;  %1962 = vst.msk [vmem:[%s2229_s27 + $0xc8] sm:$0xff] %vm1936_vm2, %v1929_v37  ;;  %v1820_v7 = vsel %vm640_vm1, %v1818_v1, %v1819_v46  ;;  %v535_v4 = vadd.f32 %v465_v42, %v258_v15  ;;  %v3396_v41 = vld [vmem:[%s2095_s19 + $0x180] sm:$0xff]  ;;  %v3400_v51 = vld [vmem:[%s2095_s19 + $0x188] sm:$0xff] }
 0x109   : > { %v1265_v8 = vrot.slane %v1142_v27, 2  ;;  %v1698_v47 = vmul.f32 %v3359_v28, %v3341_v49  ;;  %v1022_v20 = vsel %vm395_vm0, %v1019_v26, %v1021_v61  ;;  %v1372_v10 = vmul.f32 %v2111_v19, %v3307_v5 }
 0x10a   : > { %v1647_v32 = vadd.f32 %v1576_v6, %v1403_v21  ;;  %v341_v23 = vmul.f32 %v2099_v12, %v3215_v60  ;;  %v780_v56 = vadd.f32 %v710_v52, %v535_v4  ;;  %v1577_v22 = vrot.slane %v1454_v53, 1 }
 0x10b   : > { %v259_v58 = vmul.f32 %v2097_v11, %v3215_v60  ;;  %v3372_v33 = vmul.f32 %v2099_v12, %v3219_v14  ;;  %v1266_v0 = vsel %vm640_vm1, %v1263_v63, %v1265_v8  ;;  %v586_v31 = vmul.f32 %v2101_v13, %v3215_v60 }
 0x10c   : > { %v1891_v29 = vadd.f32 %v1820_v7, %v1647_v32  ;;  %v466_v26 = vrot.slane %v341_v23, 1  ;;  %v848_v3 = vadd.f32 %v816_v38, %v780_v56  ;;  %v1821_v39 = vrot.slane %v1698_v47, 2 }
 0x10d   : > { %v467_v57 = vrot.slane %v3372_v33, 1  ;;  %v587_v24 = vmul.f32 %v2101_v13, %v3219_v14  ;;  %v711_v44 = vrot.slane %v586_v31, 2  ;;  %v817_v9 = vmul.f32 %v2105_v16, %v3303_v48 }
 0x10e   : > { %v1930_v62 = vadd.f32 %v2845_v34, %v1891_v29  ;;  %v899_v63 = vmul.f32 %v2107_v17, %v3303_v48  ;;  %v1092_v45 = vadd.f32 %v1022_v20, %v848_v3  ;;  %v900_v54 = vmul.f32 %v2107_v17, %v3307_v5 }
 0x10f   : > { %v468_v60 = vsel %vm395_vm0, %v466_v26, %v467_v57  ;;  %v712_v59 = vrot.slane %v587_v24, 2  ;;  %v1143_v40 = vmul.f32 %v2109_v18, %v3303_v48  ;;  %v1144_v36 = vmul.f32 %v2109_v18, %v3307_v5  ;;  %v3434_v24 = vld [vmem:[%s2095_s19 + $0x190] sm:$0x3] }
 0x110   : > { %1963 = vst.msk [vmem:[%s2229_s27 + $0xd0] sm:$0xff] %vm1936_vm2, %v1930_v62  ;;  %v536_v1 = vadd.f32 %v468_v60, %v259_v58  ;;  %v1023_v30 = vrot.slane %v899_v63, 1  ;;  %v1336_v15 = vadd.f32 %v1266_v0, %v1092_v45  ;;  %v1578_v50 = vsel %vm395_vm0, %v1575_v2, %v1577_v22 }
 0x111   : > { %v713_v6 = vsel %vm640_vm1, %v711_v44, %v712_v59  ;;  %v1024_v43 = vrot.slane %v900_v54, 1  ;;  %v1267_v38 = vrot.slane %v1143_v40, 2  ;;  %v1268_v61 = vrot.slane %v1144_v36, 2 }
 0x112   : > { %v781_v37 = vadd.f32 %v713_v6, %v536_v1  ;;  %v1455_v27 = vmul.f32 %v2122_v25, %v3396_v41  ;;  %v1404_v21 = vadd.f32 %v1372_v10, %v1336_v15  ;;  %v3407_v52 = vmul.f32 %v2122_v25, %v3400_v51 }
 0x113   : > { %v1025_v42 = vsel %vm395_vm0, %v1023_v30, %v1024_v43  ;;  %v1699_v2 = vmul.f32 %v3359_v28, %v3396_v41  ;;  %v1822_v53 = vsel %vm640_vm1, %v1819_v46, %v1821_v39  ;;  %v3416_v8 = vmul.f32 %v3359_v28, %v3400_v51 }
 0x114   : > { %v849_v7 = vadd.f32 %v817_v9, %v781_v37  ;;  %v1579_v4 = vrot.slane %v1455_v27, 1  ;;  %v1648_v47 = vadd.f32 %v1578_v50, %v1404_v21  ;;  %v1269_v32 = vsel %vm640_vm1, %v1267_v38, %v1268_v61 }
 0x115   : > { %v1373_v20 = vmul.f32 %v2111_v19, %v3396_v41  ;;  %v1580_v10 = vrot.slane %v3407_v52, 1  ;;  %v1823_v56 = vrot.slane %v1699_v2, 2  ;;  %v343_v55 = vmul.f32 %v2099_v12, %v3253_v35 }
 0x116   : > { %v1093_v23 = vadd.f32 %v1025_v42, %v849_v7  ;;  %v588_v46 = vmul.f32 %v2101_v13, %v3253_v35  ;;  %v1892_v22 = vadd.f32 %v1822_v53, %v1648_v47  ;;  %v1824_v58 = vrot.slane %v3416_v8, 2  ;;  %v3471_v53 = vld [vmem:[%s3539_s2] ss:$0 sm:$0xff] }
 0x117   : > { %v260_v33 = vmul.f32 %v2097_v11, %v3219_v14  ;;  %v901_v29 = vmul.f32 %v2107_v17, %v3341_v49  ;;  %v1581_v26 = vsel %vm395_vm0, %v1579_v4, %v1580_v10  ;;  %v469_v31 = vrot.slane %v343_v55, 1  ;;  %v223_v55 = vld [vmem:[%s2095_s19 + $0x1a0] sm:$0xff] }
 0x118   : > { %v1337_v0 = vadd.f32 %v1269_v32, %v1093_v23  ;;  %v714_v3 = vrot.slane %v588_v46, 2  ;;  %v1931_v39 = vadd.f32 %v2845_v34, %v1892_v22  ;;  %v818_v35 = vmul.f32 %v2105_v16, %v3307_v5  ;;  %v222_v32 = vld [vmem:[%s2095_s19 + $0x198] sm:$0xff] }
 0x119   : > { %v1026_v62 = vrot.slane %v901_v29, 1  ;;  %v1145_v44 = vmul.f32 %v2109_v18, %v3341_v49  ;;  %v470_v9 = vsel %vm395_vm0, %v467_v57, %v469_v31  ;;  %v1457_v45 = vmul.f32 %v2122_v25, %v3434_v24 }
 0x11a   : > { %v1405_v14 = vadd.f32 %v1373_v20, %v1337_v0  ;;  %v715_v63 = vsel %vm640_vm1, %v712_v59, %v714_v3  ;;  %1964 = vst.msk [vmem:[%s2229_s27 + $0xd8] sm:$0xff] %vm1936_vm2, %v1931_v39  ;;  %v1825_v34 = vsel %vm640_vm1, %v1823_v56, %v1824_v58  ;;  %v537_v60 = vadd.f32 %v470_v9, %v260_v33 }
 0x11b   : > { %v1270_v54 = vrot.slane %v1145_v44, 2  ;;  %v1701_v1 = vmul.f32 %v3359_v28, %v3434_v24  ;;  %v1027_v40 = vsel %vm395_vm0, %v1024_v43, %v1026_v62  ;;  %v1374_v57 = vmul.f32 %v2111_v19, %v3400_v51 }
 0x11c   : > { %v1649_v30 = vadd.f32 %v1581_v26, %v1405_v14  ;;  %v344_v59 = vmul.f32 %v2099_v12, %v3303_v48  ;;  %v782_v36 = vadd.f32 %v715_v63, %v537_v60  ;;  %v1582_v15 = vrot.slane %v1457_v45, 1 }
 0x11d   : > { %v261_v50 = vmul.f32 %v2097_v11, %v3303_v48  ;;  %v3460_v6 = vmul.f32 %v2099_v12, %v3307_v5  ;;  %v1271_v38 = vsel %vm640_vm1, %v1268_v61, %v1270_v54  ;;  %v589_v27 = vmul.f32 %v2101_v13, %v3303_v48 }
 0x11e   : > { %v1893_v37 = vadd.f32 %v1825_v34, %v1649_v30  ;;  %v471_v43 = vrot.slane %v344_v59, 1  ;;  %v850_v21 = vadd.f32 %v818_v35, %v782_v36  ;;  %v1826_v42 = vrot.slane %v1701_v1, 2 }
 0x11f   : > { %v472_v52 = vrot.slane %v3460_v6, 1  ;;  %v590_v2 = vmul.f32 %v2101_v13, %v3307_v5  ;;  %v716_v7 = vrot.slane %v589_v27, 2  ;;  %v819_v4 = vmul.f32 %v2105_v16, %v3396_v41 }
 0x120   : > { %v1932_v61 = vadd.f32 %v3471_v53, %v1893_v37  ;;  %v902_v48 = vmul.f32 %v2107_v17, %v3396_v41  ;;  %v1094_v47 = vadd.f32 %v1027_v40, %v850_v21  ;;  %v903_v56 = vmul.f32 %v2107_v17, %v3400_v51 }
 0x121   : > { %v473_v20 = vsel %vm395_vm0, %v471_v43, %v472_v52  ;;  %v717_v23 = vrot.slane %v590_v2, 2  ;;  %v1146_v33 = vmul.f32 %v2109_v18, %v3396_v41  ;;  %v1147_v29 = vmul.f32 %v2109_v18, %v3400_v51 }
 0x122   : > { %1965 = vst.msk [vmem:[%s2229_s27 + $0xe0] sm:$0xff] %vm1936_vm2, %v1932_v61  ;;  %v538_v46 = vadd.f32 %v473_v20, %v261_v50  ;;  %v1028_v22 = vrot.slane %v902_v48, 1  ;;  %v1338_v0 = vadd.f32 %v1271_v38, %v1094_v47  ;;  %v1583_v26 = vsel %vm395_vm0, %v1580_v10, %v1582_v15 }
 0x123   : > { %v718_v31 = vsel %vm640_vm1, %v716_v7, %v717_v23  ;;  %v1029_v3 = vrot.slane %v903_v56, 1  ;;  %v1272_v35 = vrot.slane %v1146_v33, 2  ;;  %v1273_v62 = vrot.slane %v1147_v29, 2 }
 0x124   : > { %v783_v39 = vadd.f32 %v718_v31, %v538_v46  ;;  %v1458_v44 = vmul.f32 %v2122_v25, %v222_v32  ;;  %v1406_v14 = vadd.f32 %v1374_v57, %v1338_v0  ;;  %v1459_v63 = vmul.f32 %v2122_v25, %v223_v55 }
 0x125   : > { %v1030_v9 = vsel %vm395_vm0, %v1028_v22, %v1029_v3  ;;  %v1702_v41 = vmul.f32 %v3359_v28, %v222_v32  ;;  %v1827_v45 = vsel %vm640_vm1, %v1824_v58, %v1826_v42  ;;  %v1375_v34 = vmul.f32 %v2111_v19, %v222_v32 }
 0x126   : > { %v851_v10 = vadd.f32 %v819_v4, %v783_v39  ;;  %v1703_v60 = vmul.f32 %v3359_v28, %v223_v55  ;;  %v1650_v54 = vadd.f32 %v1583_v26, %v1406_v14  ;;  %v1274_v1 = vsel %vm640_vm1, %v1272_v35, %v1273_v62 }
 0x127   : > { %v1584_v30 = vrot.slane %v1458_v44, 1  ;;  %v1585_v40 = vrot.slane %v1459_v63, 1  ;;  %v1828_v59 = vrot.slane %v1702_v41, 2  ;;  %v346_v36 = vmul.f32 %v2099_v12, %v3341_v49  ;;  %v224_v12 = vld [vmem:[%s2095_s19 + $0x1a8] sm:$0x3] }
 0x128   : > { %v1095_v57 = vadd.f32 %v1030_v9, %v851_v10  ;;  %v591_v8 = vmul.f32 %v2101_v13, %v3341_v49  ;;  %v1894_v58 = vadd.f32 %v1827_v45, %v1650_v54  ;;  %v1829_v15 = vrot.slane %v1703_v60, 2 }
 0x129   : > { %v262_v50 = vmul.f32 %v2097_v11, %v3307_v5  ;;  %v904_v6 = vmul.f32 %v2107_v17, %v3434_v24  ;;  %v474_v38 = vrot.slane %v346_v36, 1  ;;  %v1586_v21 = vsel %vm395_vm0, %v1584_v30, %v1585_v40 }
 0x12a   : > { %v1339_v37 = vadd.f32 %v1274_v1, %v1095_v57  ;;  %v719_v43 = vrot.slane %v591_v8, 2  ;;  %v1933_v27 = vadd.f32 %v3471_v53, %v1894_v58  ;;  %v1148_v13 = vmul.f32 %v2109_v18, %v3434_v24 }
 0x12b   : > { %v475_v42 = vsel %vm395_vm0, %v472_v52, %v474_v38  ;;  %v1031_v11 = vrot.slane %v904_v6, 1  ;;  %v1830_v17 = vsel %vm640_vm1, %v1828_v59, %v1829_v15  ;;  %v820_v61 = vmul.f32 %v2105_v16, %v3400_v51 }
 0x12c   : > { %v1407_v49 = vadd.f32 %v1375_v34, %v1339_v37  ;;  %v720_v2 = vsel %vm640_vm1, %v717_v23, %v719_v43  ;;  %1966 = vst.msk [vmem:[%s2229_s27 + $0xe8] sm:$0xff] %vm1936_vm2, %v1933_v27  ;;  %v539_v5 = vadd.f32 %v475_v42, %v262_v50  ;;  %v1275_v4 = vrot.slane %v1148_v13, 2 }
 0x12d   : > { %v1460_v48 = vmul.f32 %v2122_v25, %v224_v12  ;;  %v1032_v52 = vsel %vm395_vm0, %v1029_v3, %v1031_v11  ;;  %v1704_v47 = vmul.f32 %v3359_v28, %v224_v12  ;;  %v1376_v16 = vmul.f32 %v2111_v19, %v223_v55 }
 0x12e   : > { %v1651_v7 = vadd.f32 %v1586_v21, %v1407_v49  ;;  %v784_v18 = vadd.f32 %v720_v2, %v539_v5  ;;  %v1276_v23 = vsel %vm640_vm1, %v1273_v62, %v1275_v4 }
 0x12f   : > { %v1587_v56 = vrot.slane %v1460_v48, 1  ;;  %v1831_v51 = vrot.slane %v1704_v47, 2 }
 0x130   : > { %v1895_v24 = vadd.f32 %v1830_v17, %v1651_v7  ;;  %v852_v32 = vadd.f32 %v820_v61, %v784_v18 }
 0x131   : > { %v1588_v22 = vsel %vm395_vm0, %v1585_v40, %v1587_v56  ;;  %v1832_v29 = vsel %vm640_vm1, %v1829_v15, %v1831_v51 }
 0x132   : > { %v1934_v20 = vadd.f32 %v3471_v53, %v1895_v24  ;;  %v1096_v46 = vadd.f32 %v1032_v52, %v852_v32 }
 0x134   : > { %1967 = vst.msk [vmem:[%s2229_s27 + $0xf0] sm:$0xff] %vm1936_vm2, %v1934_v20  ;;  %v1340_v25 = vadd.f32 %v1276_v23, %v1096_v46 }
 0x136   : > { %v1408_v33 = vadd.f32 %v1376_v16, %v1340_v25 }
 0x138   : > { %v1652_v28 = vadd.f32 %v1588_v22, %v1408_v33 }
 0x13a   : > { %v1896_v0 = vadd.f32 %v1832_v29, %v1652_v28 }
 0x13c   : > { %v1935_v26 = vadd.f32 %v3471_v53, %v1896_v0 }
 0x13e   : > { %1968 = vst.msk [vmem:[%s2229_s27 + $0xf8] sm:$0xff] %vm1936_vm2, %v1935_v26 }
 0x13f PF: > { %s13_s12 = sadd.s32 1, %s2056_s12  }
 0x140   : > { %p10_p4 = scmp.ge.s32.totalorder %s13_s12, 4  }
 0x142   :  { %12 = sbr.rel (!%p10_p4) target bundleno = 1 (0x1), region = 62 }

// kernel: res_transformer_group_forward.21
= control target key start
LH: loop header
LB: loop body
LE: loop exit
PB: predicated region body
PF: predicated region fallthrough
CT: control target
= control target key end

     0   :  { %s1043_s15 = smov 0   ;;  %s1045_s16 = smov 0   ;;  %s1228_s0 = inlined_call_operand.vmem [shape: bf16[512,32], index: 0, kind: input, shape index: {}]   ;;  %s1229_s1 = inlined_call_operand.vmem [shape: bf16[32,128], index: 1, kind: input, shape index: {}]   ;;  %s1230_s2 = inlined_call_operand.vmem [shape: f32[1,128], index: 2, kind: input, shape index: {}]   ;;  %s1231_s3 = inlined_call_operand.vmem [shape: f32[512,128], index: 3, kind: input, shape index: {}]   ;;  %s1232_s4 = inlined_call_operand.vmem [shape: f32[512,128], index: 4, kind: output, shape index: {}]  }
   0x1   :  { %s1047_s17 = smov 0  }
   0x2 LB: > { %s26_s18 = sadd.s32 1, %s1012_s16  ;;  %p850_p0 = scmp.ge.s32.totalorder %s1016_s17, 1  ;;  %s1016_s17 = sphi %s1047_s17, %s14_s17   ;;  %s1012_s16 = sphi %s1045_s16, %s1234_s16   ;;  %s1008_s15 = sphi %s1043_s15, %s1233_s15  }
   0x3   : > { %p28_p1 = scmp.ge.s32.totalorder %s26_s18, 2  ;;  %p210_p2 = scmp.lt.s32.totalorder %s1016_s17, 3 }
   0x5   : > { %s1236_s18 = smov (%p28_p1, %s26_s18), 0  ;;  %p211_p3 = pnand %p850_p0, %p210_p2 }
   0x6   : > { %v976_v0 = vld [vmem:[%s1229_s1] sm:$0xff] (!%p211_p3)   ;;  %s851_s21 = sshll.u32 (!%p211_p3), %s1008_s15, 5  ;;  %v977_v1 = vld [vmem:[%s1229_s1 + $0x8] sm:$0xff] (!%p211_p3)   ;;  %vm421_vm0 = vcmask (!%p211_p3), 261120  }
   0x7   : > { %214 = sbr.rel (%p211_p3) target bundleno = 264 (0x108), region = 36  ;;  %p255_p4 = scmp.lt.s32.totalorder (!%p211_p3), %s851_s21, 63  ;;  %912 = vmatprep.subr.bf16.mxu0 (!%p211_p3), %v976_v0  ;;  %948 = vmatprep.subr.bf16.mxu1 (!%p211_p3), %v976_v0  ;;  %v1116_v18 = vld [vmem:[%s1230_s2] ss:$0 sm:$0xff] (!%p211_p3) }
   0x8   : > { %913 = vmatpush3.bf16.msra.mxu0 (!%p211_p3), %v976_v0  ;;  %950 = vmatpush3.bf16.msra.mxu1 (!%p211_p3), %v976_v0 }
   0x9   : > { %914 = vmatprep.subr.bf16.mxu0 (!%p211_p3), %v977_v1  ;;  %949 = vmatprep.subr.bf16.mxu1 (!%p211_p3), %v977_v1 }
   0xc   : > { %915 = vmatpush3.bf16.msra.mxu0 (!%p211_p3), %v977_v1  ;;  %951 = vmatpush3.bf16.msra.mxu1 (!%p211_p3), %v977_v1 }
   0xe   : > { %s1238_s21 = smov (!%p255_p4, %s851_s21), 63 }
   0xf   : > { %s852_s24 = sshll.u32 %s1238_s21, 2  ;;  %s854_s28 = sshll.u32 %s1238_s21, 3 }
  0x10   : > { %s1073_s27 = scalar_lea.vmem %s1228_s0, %s852_s24  ;;  %s1111_s5 = scalar_lea.vmem %s1231_s3, %s854_s28 }
  0x11   : > { %v978_v2 = vld [vmem:[%s1073_s27] sm:$0xff]   ;;  %v980_v4 = vld [vmem:[%s1073_s27 + $0x8] sm:$0xff]   ;;  %v982_v6 = vld [vmem:[%s1073_s27 + $0x10] sm:$0xff]   ;;  %s1125_s10 = scalar_lea.vmem %s1232_s4, %s854_s28 }
  0x12   : > { %v979_v3 = vld [vmem:[%s1073_s27 + $0x40] sm:$0xff]   ;;  %916 = vmatprep.mubr.msk.bf16.mxu0 %vm421_vm0, %v978_v2  ;;  %v981_v5 = vld [vmem:[%s1073_s27 + $0x48] sm:$0xff]   ;;  %v983_v7 = vld [vmem:[%s1073_s27 + $0x50] sm:$0xff]  }
  0x13   : > { %932 = vmatprep.mubr.msk.bf16.mxu1 %vm421_vm0, %v979_v3  ;;  %917 = vmatmul.mubr.msk.bf16.vlgmr.msra.gmra.mrb[0].mxu0 %vm421_vm0, %v980_v4  ;;  %v984_v8 = vld [vmem:[%s1073_s27 + $0x18] sm:$0xff]   ;;  %v986_v10 = vld [vmem:[%s1073_s27 + $0x20] sm:$0xff]   ;;  %v988_v12 = vld [vmem:[%s1073_s27 + $0x28] sm:$0xff]  }
  0x14   : > { %933 = vmatmul.mubr.msk.bf16.vlgmr.msra.gmra.mrb[0].mxu1 %vm421_vm0, %v981_v5  ;;  %920 = vmatprep.mubr.msk.bf16.mxu0 %vm421_vm0, %v982_v6  ;;  %v985_v9 = vld [vmem:[%s1073_s27 + $0x58] sm:$0xff]   ;;  %v987_v11 = vld [vmem:[%s1073_s27 + $0x60] sm:$0xff]   ;;  %v989_v13 = vld [vmem:[%s1073_s27 + $0x68] sm:$0xff]  }
  0x15   : > { %936 = vmatprep.mubr.msk.bf16.mxu1 %vm421_vm0, %v983_v7  ;;  %v990_v14 = vld [vmem:[%s1073_s27 + $0x30] sm:$0xff]   ;;  %v992_v16 = vld [vmem:[%s1073_s27 + $0x38] sm:$0xff]   ;;  %v631_v25 = vld [vmem:[%s1111_s5] sm:$0xff] }
  0x16   : > { %v991_v15 = vld [vmem:[%s1073_s27 + $0x70] sm:$0xff]   ;;  %v993_v17 = vld [vmem:[%s1073_s27 + $0x78] sm:$0xff]   ;;  %v647_v29 = vld [vmem:[%s1111_s5 + $0x80] sm:$0xff] }
  0x17   : > { %v633_v20 = vld [vmem:[%s1111_s5 + $0x10] sm:$0xff]  ;;  %v634_v31 = vld [vmem:[%s1111_s5 + $0x18] sm:$0xff]  ;;  %v632_v38 = vld [vmem:[%s1111_s5 + $0x8] sm:$0xff] }
  0x18   : > { %v649_v23 = vld [vmem:[%s1111_s5 + $0x90] sm:$0xff]  ;;  %v650_v36 = vld [vmem:[%s1111_s5 + $0x98] sm:$0xff]  ;;  %v648_v44 = vld [vmem:[%s1111_s5 + $0x88] sm:$0xff] }
  0x19   : > { %v637_v52 = vld [vmem:[%s1111_s5 + $0x30] sm:$0xff]  ;;  %v635_v57 = vld [vmem:[%s1111_s5 + $0x20] sm:$0xff]  ;;  %v638_v63 = vld [vmem:[%s1111_s5 + $0x38] sm:$0xff] }
  0x1a   : > { %v653_v55 = vld [vmem:[%s1111_s5 + $0xb0] sm:$0xff]  ;;  %v651_v61 = vld [vmem:[%s1111_s5 + $0xa0] sm:$0xff]  ;;  %v654_v4 = vld [vmem:[%s1111_s5 + $0xb8] sm:$0xff] }
  0x1b   : > { %921 = vmatmul.mubr.msk.bf16.gmra.mrb[4].mxu0 %vm421_vm0, %v984_v8  ;;  %v636_v6 = vld [vmem:[%s1111_s5 + $0x28] sm:$0xff] }
  0x1c   : > { %937 = vmatmul.mubr.msk.bf16.gmra.mrb[4].mxu1 %vm421_vm0, %v985_v9  ;;  %924 = vmatprep.mubr.msk.bf16.mxu0 %vm421_vm0, %v986_v10 }
  0x1d   : > { %940 = vmatprep.mubr.msk.bf16.mxu1 %vm421_vm0, %v987_v11 }
  0x23   : > { %925 = vmatmul.mubr.msk.bf16.gmra.mrb[8].mxu0 %vm421_vm0, %v988_v12  ;;  %v652_v12 = vld [vmem:[%s1111_s5 + $0xa8] sm:$0xff] }
  0x24   : > { %941 = vmatmul.mubr.msk.bf16.gmra.mrb[8].mxu1 %vm421_vm0, %v989_v13  ;;  %928 = vmatprep.mubr.msk.bf16.mxu0 %vm421_vm0, %v990_v14 }
  0x25   : > { %944 = vmatprep.mubr.msk.bf16.mxu1 %vm421_vm0, %v991_v15 }
  0x2b   : > { %929 = vmatmul.mubr.msk.bf16.gmra.mrb[12].mxu0 %vm421_vm0, %v992_v16 }
  0x2c   : > { %945 = vmatmul.mubr.msk.bf16.gmra.mrb[12].mxu1 %vm421_vm0, %v993_v17 }
  0xe6   : > { %v918_v19 = vpop.f32.mrb[0].mxu0 }
  0xe7   : > { %v513_v21 = vadd.f32 %v918_v19, %v1116_v18  ;;  %v934_v22 = vpop.f32.mrb[0].mxu1  ;;  %v504_v24 = vpop.f32.mrb[1].mxu0 }
  0xe8   : > { %v577_v26 = vadd.f32 %v934_v22, %v1116_v18  ;;  %v505_v27 = vadd.f32 %v1116_v18, %v504_v24  ;;  %v568_v28 = vpop.f32.mrb[1].mxu1  ;;  %v919_v30 = vpop.f32.mrb[2].mxu0  ;;  %v657_v24 = vld [vmem:[%s1111_s5 + $0xd0] sm:$0xff] }
  0xe9   : > { %v665_v32 = vadd.f32 %v633_v20, %v513_v21  ;;  %v569_v33 = vadd.f32 %v1116_v18, %v568_v28  ;;  %v516_v34 = vadd.f32 %v919_v30, %v1116_v18  ;;  %v935_v35 = vpop.f32.mrb[2].mxu1  ;;  %v507_v37 = vpop.f32.mrb[3].mxu0  ;;  %v641_v21 = vld [vmem:[%s1111_s5 + $0x50] sm:$0xff]  ;;  %v655_v30 = vld [vmem:[%s1111_s5 + $0xc0] sm:$0xff] }
  0xea   : > { %v681_v39 = vadd.f32 %v649_v23, %v577_v26  ;;  %v663_v40 = vadd.f32 %v631_v25, %v505_v27  ;;  %v580_v41 = vadd.f32 %v935_v35, %v1116_v18  ;;  %v508_v42 = vadd.f32 %v1116_v18, %v507_v37  ;;  %v571_v43 = vpop.f32.mrb[3].mxu1  ;;  %v639_v26 = vld [vmem:[%s1111_s5 + $0x40] sm:$0xff]  ;;  %v658_v37 = vld [vmem:[%s1111_s5 + $0xd8] sm:$0xff] }
  0xeb   : > { %697 = vst [vmem:[%s1125_s10 + $0x10] sm:$0xff] %v665_v32  ;;  %v679_v45 = vadd.f32 %v647_v29, %v569_v33  ;;  %v666_v46 = vadd.f32 %v634_v31, %v516_v34  ;;  %v572_v47 = vadd.f32 %v1116_v18, %v571_v43  ;;  %v642_v32 = vld [vmem:[%s1111_s5 + $0x58] sm:$0xff] }
  0xec   : > { %713 = vst [vmem:[%s1125_s10 + $0x90] sm:$0xff] %v681_v39  ;;  %695 = vst [vmem:[%s1125_s10] sm:$0xff] %v663_v40  ;;  %v682_v48 = vadd.f32 %v650_v36, %v580_v41  ;;  %v664_v49 = vadd.f32 %v632_v38, %v508_v42  ;;  %v640_v39 = vld [vmem:[%s1111_s5 + $0x48] sm:$0xff] }
  0xed   : > { %711 = vst [vmem:[%s1125_s10 + $0x80] sm:$0xff] %v679_v45  ;;  %698 = vst [vmem:[%s1125_s10 + $0x18] sm:$0xff] %v666_v46  ;;  %v680_v50 = vadd.f32 %v648_v44, %v572_v47  ;;  %v656_v45 = vld [vmem:[%s1111_s5 + $0xc8] sm:$0xff] }
  0xee   : > { %714 = vst [vmem:[%s1125_s10 + $0x98] sm:$0xff] %v682_v48  ;;  %696 = vst [vmem:[%s1125_s10 + $0x8] sm:$0xff] %v664_v49  ;;  %v922_v51 = vpop.f32.mrb[4].mxu0 }
  0xef   : > { %712 = vst [vmem:[%s1125_s10 + $0x88] sm:$0xff] %v680_v50  ;;  %v529_v53 = vadd.f32 %v922_v51, %v1116_v18  ;;  %v938_v54 = vpop.f32.mrb[4].mxu1  ;;  %v520_v56 = vpop.f32.mrb[5].mxu0 }
  0xf0   : > { %v593_v58 = vadd.f32 %v938_v54, %v1116_v18  ;;  %v521_v59 = vadd.f32 %v1116_v18, %v520_v56  ;;  %v584_v60 = vpop.f32.mrb[5].mxu1  ;;  %v923_v62 = vpop.f32.mrb[6].mxu0  ;;  %v661_v56 = vld [vmem:[%s1111_s5 + $0xf0] sm:$0xff] }
  0xf1   : > { %v669_v0 = vadd.f32 %v637_v52, %v529_v53  ;;  %v585_v1 = vadd.f32 %v1116_v18, %v584_v60  ;;  %v532_v2 = vadd.f32 %v923_v62, %v1116_v18  ;;  %v939_v3 = vpop.f32.mrb[6].mxu1  ;;  %v523_v5 = vpop.f32.mrb[7].mxu0  ;;  %v645_v53 = vld [vmem:[%s1111_s5 + $0x70] sm:$0xff]  ;;  %v659_v62 = vld [vmem:[%s1111_s5 + $0xe0] sm:$0xff] }
  0xf2   : > { %v685_v7 = vadd.f32 %v653_v55, %v593_v58  ;;  %v667_v8 = vadd.f32 %v635_v57, %v521_v59  ;;  %v596_v9 = vadd.f32 %v939_v3, %v1116_v18  ;;  %v524_v10 = vadd.f32 %v1116_v18, %v523_v5  ;;  %v587_v11 = vpop.f32.mrb[7].mxu1  ;;  %v643_v58 = vld [vmem:[%s1111_s5 + $0x60] sm:$0xff]  ;;  %v662_v5 = vld [vmem:[%s1111_s5 + $0xf8] sm:$0xff] }
  0xf3   : > { %701 = vst [vmem:[%s1125_s10 + $0x30] sm:$0xff] %v669_v0  ;;  %v683_v13 = vadd.f32 %v651_v61, %v585_v1  ;;  %v670_v14 = vadd.f32 %v638_v63, %v532_v2  ;;  %v588_v15 = vadd.f32 %v1116_v18, %v587_v11  ;;  %v646_v0 = vld [vmem:[%s1111_s5 + $0x78] sm:$0xff] }
  0xf4   : > { %717 = vst [vmem:[%s1125_s10 + $0xb0] sm:$0xff] %v685_v7  ;;  %699 = vst [vmem:[%s1125_s10 + $0x20] sm:$0xff] %v667_v8  ;;  %v686_v16 = vadd.f32 %v654_v4, %v596_v9  ;;  %v668_v17 = vadd.f32 %v636_v6, %v524_v10  ;;  %v644_v7 = vld [vmem:[%s1111_s5 + $0x68] sm:$0xff] }
  0xf5   : > { %715 = vst [vmem:[%s1125_s10 + $0xa0] sm:$0xff] %v683_v13  ;;  %702 = vst [vmem:[%s1125_s10 + $0x38] sm:$0xff] %v670_v14  ;;  %v684_v19 = vadd.f32 %v652_v12, %v588_v15  ;;  %v660_v13 = vld [vmem:[%s1111_s5 + $0xe8] sm:$0xff] }
  0xf6   : > { %718 = vst [vmem:[%s1125_s10 + $0xb8] sm:$0xff] %v686_v16  ;;  %700 = vst [vmem:[%s1125_s10 + $0x28] sm:$0xff] %v668_v17  ;;  %v926_v20 = vpop.f32.mrb[8].mxu0 }
  0xf7   : > { %716 = vst [vmem:[%s1125_s10 + $0xa8] sm:$0xff] %v684_v19  ;;  %v545_v22 = vadd.f32 %v926_v20, %v1116_v18  ;;  %v942_v23 = vpop.f32.mrb[8].mxu1  ;;  %v536_v25 = vpop.f32.mrb[9].mxu0 }
  0xf8   : > { %v609_v27 = vadd.f32 %v942_v23, %v1116_v18  ;;  %v537_v28 = vadd.f32 %v1116_v18, %v536_v25  ;;  %v600_v29 = vpop.f32.mrb[9].mxu1  ;;  %v927_v31 = vpop.f32.mrb[10].mxu0 }
  0xf9   : > { %v673_v33 = vadd.f32 %v641_v21, %v545_v22  ;;  %v601_v34 = vadd.f32 %v1116_v18, %v600_v29  ;;  %v548_v35 = vadd.f32 %v927_v31, %v1116_v18  ;;  %v943_v36 = vpop.f32.mrb[10].mxu1  ;;  %v539_v38 = vpop.f32.mrb[11].mxu0 }
  0xfa   : > { %v689_v40 = vadd.f32 %v657_v24, %v609_v27  ;;  %v671_v41 = vadd.f32 %v639_v26, %v537_v28  ;;  %v612_v42 = vadd.f32 %v943_v36, %v1116_v18  ;;  %v540_v43 = vadd.f32 %v1116_v18, %v539_v38  ;;  %v603_v44 = vpop.f32.mrb[11].mxu1 }
  0xfb   : > { %705 = vst [vmem:[%s1125_s10 + $0x50] sm:$0xff] %v673_v33  ;;  %v687_v46 = vadd.f32 %v655_v30, %v601_v34  ;;  %v674_v47 = vadd.f32 %v642_v32, %v548_v35  ;;  %v604_v48 = vadd.f32 %v1116_v18, %v603_v44 }
  0xfc   : > { %721 = vst [vmem:[%s1125_s10 + $0xd0] sm:$0xff] %v689_v40  ;;  %703 = vst [vmem:[%s1125_s10 + $0x40] sm:$0xff] %v671_v41  ;;  %v690_v49 = vadd.f32 %v658_v37, %v612_v42  ;;  %v672_v50 = vadd.f32 %v640_v39, %v540_v43 }
  0xfd   : > { %719 = vst [vmem:[%s1125_s10 + $0xc0] sm:$0xff] %v687_v46  ;;  %706 = vst [vmem:[%s1125_s10 + $0x58] sm:$0xff] %v674_v47  ;;  %v688_v51 = vadd.f32 %v656_v45, %v604_v48 }
  0xfe   : > { %722 = vst [vmem:[%s1125_s10 + $0xd8] sm:$0xff] %v690_v49  ;;  %704 = vst [vmem:[%s1125_s10 + $0x48] sm:$0xff] %v672_v50  ;;  %v930_v52 = vpop.f32.mrb[12].mxu0 }
  0xff   : > { %720 = vst [vmem:[%s1125_s10 + $0xc8] sm:$0xff] %v688_v51  ;;  %v561_v54 = vadd.f32 %v930_v52, %v1116_v18  ;;  %v946_v55 = vpop.f32.mrb[12].mxu1  ;;  %v552_v57 = vpop.f32.mrb[13].mxu0 }
 0x100   : > { %v625_v59 = vadd.f32 %v946_v55, %v1116_v18  ;;  %v553_v60 = vadd.f32 %v1116_v18, %v552_v57  ;;  %v616_v61 = vpop.f32.mrb[13].mxu1  ;;  %v931_v63 = vpop.f32.mrb[14].mxu0 }
 0x101   : > { %v677_v1 = vadd.f32 %v645_v53, %v561_v54  ;;  %v617_v2 = vadd.f32 %v1116_v18, %v616_v61  ;;  %v564_v3 = vadd.f32 %v931_v63, %v1116_v18  ;;  %v947_v4 = vpop.f32.mrb[14].mxu1  ;;  %v555_v6 = vpop.f32.mrb[15].mxu0 }
 0x102   : > { %v693_v8 = vadd.f32 %v661_v56, %v625_v59  ;;  %v675_v9 = vadd.f32 %v643_v58, %v553_v60  ;;  %v628_v10 = vadd.f32 %v947_v4, %v1116_v18  ;;  %v556_v11 = vadd.f32 %v1116_v18, %v555_v6  ;;  %v619_v12 = vpop.f32.mrb[15].mxu1 }
 0x103   : > { %709 = vst [vmem:[%s1125_s10 + $0x70] sm:$0xff] %v677_v1  ;;  %v691_v14 = vadd.f32 %v659_v62, %v617_v2  ;;  %v678_v15 = vadd.f32 %v646_v0, %v564_v3  ;;  %v620_v16 = vadd.f32 %v1116_v18, %v619_v12 }
 0x104   : > { %725 = vst [vmem:[%s1125_s10 + $0xf0] sm:$0xff] %v693_v8  ;;  %707 = vst [vmem:[%s1125_s10 + $0x60] sm:$0xff] %v675_v9  ;;  %v694_v17 = vadd.f32 %v662_v5, %v628_v10  ;;  %v676_v19 = vadd.f32 %v644_v7, %v556_v11 }
 0x105   : > { %723 = vst [vmem:[%s1125_s10 + $0xe0] sm:$0xff] %v691_v14  ;;  %710 = vst [vmem:[%s1125_s10 + $0x78] sm:$0xff] %v678_v15  ;;  %v692_v20 = vadd.f32 %v660_v13, %v620_v16 }
 0x106   : > { %726 = vst [vmem:[%s1125_s10 + $0xf8] sm:$0xff] %v694_v17  ;;  %708 = vst [vmem:[%s1125_s10 + $0x68] sm:$0xff] %v676_v19 }
 0x107   : > { %724 = vst [vmem:[%s1125_s10 + $0xe8] sm:$0xff] %v692_v20 }
 0x108 PF: > { %s14_s17 = sadd.s32 1, %s1016_s17   ;;  %s1233_s15 = smov %s1012_s16 }
 0x109   : > { %p11_p5 = scmp.ge.s32.totalorder %s14_s17, 4   ;;  %s1234_s16 = smov %s1236_s18 }
 0x10b   :  { %13 = sbr.rel (!%p11_p5) target bundleno = 2 (0x2), region = 75 }

// kernel: res_transformer_group_forward.29
= control target key start
LH: loop header
LB: loop body
LE: loop exit
PB: predicated region body
PF: predicated region fallthrough
CT: control target
= control target key end

     0   :  { %s1192_s15 = smov 0   ;;  %s1194_s16 = smov 0   ;;  %s1415_s0 = inlined_call_operand.vmem [shape: bf16[512,144], index: 0, kind: input, shape index: {}]   ;;  %s1416_s1 = inlined_call_operand.vmem [shape: bf16[144,128], index: 1, kind: input, shape index: {}]   ;;  %s1417_s2 = inlined_call_operand.vmem [shape: f32[1,128], index: 2, kind: input, shape index: {}]   ;;  %s1418_s3 = inlined_call_operand.vmem [shape: f32[512,128], index: 3, kind: input, shape index: {}]   ;;  %s1419_s4 = inlined_call_operand.vmem [shape: f32[512,128], index: 4, kind: output, shape index: {}]  }
   0x1   :  { %s1196_s17 = smov 0  }
   0x2 LB: > { %s26_s18 = sadd.s32 1, %s1160_s16  ;;  %p973_p0 = scmp.ge.s32.totalorder %s1164_s17, 1  ;;  %s1164_s17 = sphi %s1196_s17, %s14_s17   ;;  %s1160_s16 = sphi %s1194_s16, %s1421_s16   ;;  %s1156_s15 = sphi %s1192_s15, %s1420_s15  }
   0x3   : > { %p28_p1 = scmp.ge.s32.totalorder %s26_s18, 2  ;;  %p211_p2 = scmp.lt.s32.totalorder %s1164_s17, 3 }
   0x5   : > { %s1423_s18 = smov (%p28_p1, %s26_s18), 0  ;;  %p212_p3 = pnand %p973_p0, %p211_p2 }
   0x6   : > { %v1085_v0 = vld [vmem:[%s1416_s1] sm:$0xff] (!%p212_p3)   ;;  %v1166_v1 = vmov (!%p212_p3), 0   ;;  %s974_s21 = sshll.u32 (!%p212_p3), %s1156_s15, 5  ;;  %v1086_v2 = vld [vmem:[%s1416_s1 + $0x8] sm:$0xff] (!%p212_p3)   ;;  %v1087_v3 = vld [vmem:[%s1416_s1 + $0x10] sm:$0xff] (!%p212_p3)   ;;  %vm544_vm0 = vcmask (!%p212_p3), 130048  }
   0x7   : > { %215 = sbr.rel (%p212_p3) target bundleno = 318 (0x13e), region = 36  ;;  %593 = vmatprep.subr.bf16.mxu0 (!%p212_p3), %v1166_v1  ;;  %1042 = vmatprep.subr.bf16.mxu1 (!%p212_p3), %v1166_v1  ;;  %p257_p4 = scmp.lt.s32.totalorder (!%p212_p3), %s974_s21, 63  ;;  %v1088_v4 = vld [vmem:[%s1416_s1 + $0x18] sm:$0xff] (!%p212_p3)   ;;  %v1089_v7 = vld [vmem:[%s1416_s1 + $0x20] sm:$0xff] (!%p212_p3)   ;;  %v1090_v8 = vld [vmem:[%s1416_s1 + $0x28] sm:$0xff] (!%p212_p3)  }
   0x8   : > { %594 = vmatpush1.bf16.msra.mxu0 (!%p212_p3), %v1085_v0  ;;  %1051 = vmatpush1.bf16.msra.mxu1 (!%p212_p3), %v1085_v0  ;;  %v1091_v9 = vld [vmem:[%s1416_s1 + $0x30] sm:$0xff] (!%p212_p3)   ;;  %v1092_v10 = vld [vmem:[%s1416_s1 + $0x38] sm:$0xff] (!%p212_p3)   ;;  %v1093_v11 = vld [vmem:[%s1416_s1 + $0x40] sm:$0xff] (!%p212_p3)  }
   0x9   : > { %595 = vmatprep.subr.bf16.mxu0 (!%p212_p3), %v1166_v1  ;;  %1043 = vmatprep.subr.bf16.mxu1 (!%p212_p3), %v1166_v1  ;;  %v1302_v42 = vld [vmem:[%s1417_s2] ss:$0 sm:$0xff] (!%p212_p3) }
   0xc   : > { %596 = vmatpush1.bf16.msra.mxu0 (!%p212_p3), %v1086_v2  ;;  %1052 = vmatpush1.bf16.msra.mxu1 (!%p212_p3), %v1086_v2 }
   0xd   : > { %597 = vmatprep.subr.bf16.mxu0 (!%p212_p3), %v1166_v1  ;;  %1044 = vmatprep.subr.bf16.mxu1 (!%p212_p3), %v1166_v1 }
   0xe   : > { %s1425_s21 = smov (!%p257_p4, %s974_s21), 63 }
   0xf   : > { %s1219_s26 = sshll.u32 %s1425_s21, 3 }
  0x10   : > { %s1225_s29 = scalar_lea.vmem %s1415_s0, %s1219_s26  ;;  %598 = vmatpush1.bf16.msra.mxu0 %v1087_v3  ;;  %1053 = vmatpush1.bf16.msra.mxu1 %v1087_v3  ;;  %s1297_s21 = scalar_lea.vmem %s1418_s3, %s1219_s26 }
  0x11   : > { %v1096_v5 = vld [vmem:[%s1225_s29 + $0x4] ss:$8 sps:$4 sm:$0xff]   ;;  %599 = vmatprep.subr.bf16.mxu0 %v1166_v1  ;;  %1045 = vmatprep.subr.bf16.mxu1 %v1166_v1  ;;  %v1094_v12 = vld [vmem:[%s1225_s29] ss:$8 sps:$4 sm:$0xff]   ;;  %v1100_v14 = vld [vmem:[%s1225_s29 + $0x14] ss:$8 sps:$4 sm:$0xff]   ;;  %s1312_s27 = scalar_lea.vmem %s1419_s4, %s1219_s26 }
  0x12   : > { %v1099_v6 = vld [vmem:[%s1225_s29 + $0x84] ss:$8 sps:$4 sm:$0xff]   ;;  %1023 = vmatprep.mubr.msk.bf16.mxu0 %vm544_vm0, %v1096_v5  ;;  %v1097_v13 = vld [vmem:[%s1225_s29 + $0x80] ss:$8 sps:$4 sm:$0xff]   ;;  %v1102_v15 = vld [vmem:[%s1225_s29 + $0x94] ss:$8 sps:$4 sm:$0xff]  }
  0x13   : > { %1031 = vmatprep.mubr.msk.bf16.mxu1 %vm544_vm0, %v1099_v6  ;;  %v1104_v16 = vld [vmem:[%s1225_s29 + $0x10] ss:$8 sps:$4 sm:$0xff]   ;;  %v1106_v18 = vld [vmem:[%s1225_s29 + $0x24] ss:$8 sps:$4 sm:$0xff]   ;;  %v1110_v20 = vld [vmem:[%s1225_s29 + $0x20] ss:$8 sps:$4 sm:$0xff]  }
  0x14   : > { %600 = vmatpush1.bf16.msra.mxu0 %v1088_v4  ;;  %1054 = vmatpush1.bf16.msra.mxu1 %v1088_v4  ;;  %v1105_v17 = vld [vmem:[%s1225_s29 + $0x90] ss:$8 sps:$4 sm:$0xff]   ;;  %v1108_v19 = vld [vmem:[%s1225_s29 + $0xa4] ss:$8 sps:$4 sm:$0xff]   ;;  %v1111_v21 = vld [vmem:[%s1225_s29 + $0xa0] ss:$8 sps:$4 sm:$0xff]  }
  0x15   : > { %601 = vmatprep.subr.bf16.mxu0 %v1166_v1  ;;  %1046 = vmatprep.subr.bf16.mxu1 %v1166_v1  ;;  %v1112_v22 = vld [vmem:[%s1225_s29 + $0x34] ss:$8 sps:$4 sm:$0xff]   ;;  %v1116_v24 = vld [vmem:[%s1225_s29 + $0x30] ss:$8 sps:$4 sm:$0xff]   ;;  %v1118_v26 = vld [vmem:[%s1225_s29 + $0x44] ss:$8 sps:$4 sm:$0xff]  }
  0x16   : > { %v1114_v23 = vld [vmem:[%s1225_s29 + $0xb4] ss:$8 sps:$4 sm:$0xff]   ;;  %v1117_v25 = vld [vmem:[%s1225_s29 + $0xb0] ss:$8 sps:$4 sm:$0xff]   ;;  %v1120_v27 = vld [vmem:[%s1225_s29 + $0xc4] ss:$8 sps:$4 sm:$0xff]  }
  0x17   : > { %v1122_v28 = vld [vmem:[%s1225_s29 + $0x40] ss:$8 sps:$4 sm:$0xff]   ;;  %v1124_v30 = vld [vmem:[%s1225_s29 + $0x54] ss:$8 sps:$4 sm:$0xff]   ;;  %v1128_v32 = vld [vmem:[%s1225_s29 + $0x50] ss:$8 sps:$4 sm:$0xff]  }
  0x18   : > { %602 = vmatpush1.bf16.msra.mxu0 %v1089_v7  ;;  %1055 = vmatpush1.bf16.msra.mxu1 %v1089_v7  ;;  %v1123_v29 = vld [vmem:[%s1225_s29 + $0xc0] ss:$8 sps:$4 sm:$0xff]   ;;  %v1126_v31 = vld [vmem:[%s1225_s29 + $0xd4] ss:$8 sps:$4 sm:$0xff]   ;;  %v1129_v33 = vld [vmem:[%s1225_s29 + $0xd0] ss:$8 sps:$4 sm:$0xff]  }
  0x19   : > { %603 = vmatprep.subr.bf16.mxu0 %v1166_v1  ;;  %1047 = vmatprep.subr.bf16.mxu1 %v1166_v1  ;;  %v1130_v34 = vld [vmem:[%s1225_s29 + $0x64] ss:$8 sps:$4 sm:$0xff]   ;;  %v1134_v36 = vld [vmem:[%s1225_s29 + $0x60] ss:$8 sps:$4 sm:$0xff]   ;;  %v1136_v38 = vld [vmem:[%s1225_s29 + $0x74] ss:$8 sps:$4 sm:$0xff]  }
  0x1a   : > { %v1132_v35 = vld [vmem:[%s1225_s29 + $0xe4] ss:$8 sps:$4 sm:$0xff]   ;;  %v1135_v37 = vld [vmem:[%s1225_s29 + $0xe0] ss:$8 sps:$4 sm:$0xff]   ;;  %v1138_v39 = vld [vmem:[%s1225_s29 + $0xf4] ss:$8 sps:$4 sm:$0xff]  }
  0x1b   : > { %v1140_v40 = vld [vmem:[%s1225_s29 + $0x70] ss:$8 sps:$4 sm:$0xff]   ;;  %v754_v44 = vld [vmem:[%s1297_s21] sm:$0xff]  ;;  %v755_v52 = vld [vmem:[%s1297_s21 + $0x8] sm:$0xff] }
  0x1c   : > { %604 = vmatpush1.bf16.msra.mxu0 %v1090_v8  ;;  %1056 = vmatpush1.bf16.msra.mxu1 %v1090_v8  ;;  %v1141_v41 = vld [vmem:[%s1225_s29 + $0xf0] ss:$8 sps:$4 sm:$0xff]   ;;  %v770_v46 = vld [vmem:[%s1297_s21 + $0x80] sm:$0xff]  ;;  %v771_v54 = vld [vmem:[%s1297_s21 + $0x88] sm:$0xff] }
  0x1d   : > { %605 = vmatprep.subr.bf16.mxu0 %v1166_v1  ;;  %1048 = vmatprep.subr.bf16.mxu1 %v1166_v1  ;;  %v756_v0 = vld [vmem:[%s1297_s21 + $0x10] sm:$0xff]  ;;  %v757_v8 = vld [vmem:[%s1297_s21 + $0x18] sm:$0xff] }
  0x1e   : > { %v772_v2 = vld [vmem:[%s1297_s21 + $0x90] sm:$0xff] }
  0x20   : > { %606 = vmatpush1.bf16.msra.mxu0 %v1091_v9  ;;  %1057 = vmatpush1.bf16.msra.mxu1 %v1091_v9 }
  0x21   : > { %607 = vmatprep.subr.bf16.mxu0 %v1166_v1  ;;  %1049 = vmatprep.subr.bf16.mxu1 %v1166_v1 }
  0x24   : > { %608 = vmatpush1.bf16.msra.mxu0 %v1092_v10  ;;  %1058 = vmatpush1.bf16.msra.mxu1 %v1092_v10  ;;  %v773_v10 = vld [vmem:[%s1297_s21 + $0x98] sm:$0xff] }
  0x25   : > { %609 = vmatprep.subr.bf16.mxu0 %v1166_v1  ;;  %1050 = vmatprep.subr.bf16.mxu1 %v1166_v1 }
  0x28   : > { %610 = vmatpush1.bf16.msra.mxu0 %v1093_v11  ;;  %1059 = vmatpush1.bf16.msra.mxu1 %v1093_v11 }
  0x2b   : > { %626 = vmatmul.mubr.bf16.vlgmr.msra.gmra.mrb[0].mxu0 %v1094_v12  ;;  %690 = vmatmul.mubr.bf16.vlgmr.msra.gmra.mrb[0].mxu1 %v1097_v13 }
  0x2c   : > { %1024 = vmatprep.mubr.msk.bf16.mxu0 %vm544_vm0, %v1100_v14  ;;  %1032 = vmatprep.mubr.msk.bf16.mxu1 %vm544_vm0, %v1102_v15 }
  0x33   : > { %634 = vmatmul.mubr.bf16.gmra.mrb[4].mxu0 %v1104_v16  ;;  %698 = vmatmul.mubr.bf16.gmra.mrb[4].mxu1 %v1105_v17 }
  0x34   : > { %1025 = vmatprep.mubr.msk.bf16.mxu0 %vm544_vm0, %v1106_v18  ;;  %1033 = vmatprep.mubr.msk.bf16.mxu1 %vm544_vm0, %v1108_v19 }
  0x3b   : > { %642 = vmatmul.mubr.bf16.gmra.mrb[8].mxu0 %v1110_v20  ;;  %706 = vmatmul.mubr.bf16.gmra.mrb[8].mxu1 %v1111_v21  ;;  %v758_v20 = vld [vmem:[%s1297_s21 + $0x20] sm:$0xff] }
  0x3c   : > { %1026 = vmatprep.mubr.msk.bf16.mxu0 %vm544_vm0, %v1112_v22  ;;  %1034 = vmatprep.mubr.msk.bf16.mxu1 %vm544_vm0, %v1114_v23  ;;  %v774_v22 = vld [vmem:[%s1297_s21 + $0xa0] sm:$0xff] }
  0x43   : > { %650 = vmatmul.mubr.bf16.gmra.mrb[12].mxu0 %v1116_v24  ;;  %714 = vmatmul.mubr.bf16.gmra.mrb[12].mxu1 %v1117_v25 }
  0x44   : > { %1027 = vmatprep.mubr.msk.bf16.mxu0 %vm544_vm0, %v1118_v26  ;;  %1035 = vmatprep.mubr.msk.bf16.mxu1 %vm544_vm0, %v1120_v27 }
  0x4b   : > { %658 = vmatmul.mubr.bf16.gmra.mrb[16].mxu0 %v1122_v28  ;;  %722 = vmatmul.mubr.bf16.gmra.mrb[16].mxu1 %v1123_v29  ;;  %v759_v28 = vld [vmem:[%s1297_s21 + $0x28] sm:$0xff] }
  0x4c   : > { %1028 = vmatprep.mubr.msk.bf16.mxu0 %vm544_vm0, %v1124_v30  ;;  %1036 = vmatprep.mubr.msk.bf16.mxu1 %vm544_vm0, %v1126_v31  ;;  %v775_v30 = vld [vmem:[%s1297_s21 + $0xa8] sm:$0xff] }
  0x53   : > { %666 = vmatmul.mubr.bf16.gmra.mrb[20].mxu0 %v1128_v32  ;;  %730 = vmatmul.mubr.bf16.gmra.mrb[20].mxu1 %v1129_v33 }
  0x54   : > { %1029 = vmatprep.mubr.msk.bf16.mxu0 %vm544_vm0, %v1130_v34  ;;  %1037 = vmatprep.mubr.msk.bf16.mxu1 %vm544_vm0, %v1132_v35 }
  0x5b   : > { %674 = vmatmul.mubr.bf16.gmra.mrb[24].mxu0 %v1134_v36  ;;  %738 = vmatmul.mubr.bf16.gmra.mrb[24].mxu1 %v1135_v37 }
  0x5c   : > { %1030 = vmatprep.mubr.msk.bf16.mxu0 %vm544_vm0, %v1136_v38  ;;  %1038 = vmatprep.mubr.msk.bf16.mxu1 %vm544_vm0, %v1138_v39 }
  0x63   : > { %682 = vmatmul.mubr.bf16.gmra.mrb[28].mxu0 %v1140_v40  ;;  %746 = vmatmul.mubr.bf16.gmra.mrb[28].mxu1 %v1141_v41  ;;  %v760_v40 = vld [vmem:[%s1297_s21 + $0x30] sm:$0xff] }
  0xfe   : > { %v627_v43 = vpop.f32.mrb[0].mxu0  ;;  %v691_v45 = vpop.f32.mrb[0].mxu1 }
  0xff   : > { %v628_v47 = vadd.f32 %v1302_v42, %v627_v43  ;;  %v692_v48 = vadd.f32 %v1302_v42, %v691_v45  ;;  %v629_v49 = vpop.f32.mrb[1].mxu0  ;;  %v693_v50 = vpop.f32.mrb[1].mxu1  ;;  %v776_v43 = vld [vmem:[%s1297_s21 + $0xb0] sm:$0xff] }
 0x100   : > { %v630_v51 = vpop.f32.mrb[2].mxu0  ;;  %v694_v53 = vpop.f32.mrb[2].mxu1  ;;  %v761_v49 = vld [vmem:[%s1297_s21 + $0x38] sm:$0xff] }
 0x101   : > { %v786_v55 = vadd.f32 %v754_v44, %v628_v47  ;;  %v802_v56 = vadd.f32 %v770_v46, %v692_v48  ;;  %v631_v57 = vadd.f32 %v1302_v42, %v630_v51  ;;  %v695_v58 = vadd.f32 %v1302_v42, %v694_v53  ;;  %v632_v59 = vpop.f32.mrb[3].mxu0  ;;  %v696_v60 = vpop.f32.mrb[3].mxu1  ;;  %v777_v51 = vld [vmem:[%s1297_s21 + $0xb8] sm:$0xff] }
 0x103   : > { %818 = vst [vmem:[%s1312_s27] sm:$0xff] %v786_v55  ;;  %834 = vst [vmem:[%s1312_s27 + $0x80] sm:$0xff] %v802_v56  ;;  %v787_v61 = vadd.f32 %v755_v52, %v631_v57  ;;  %v803_v62 = vadd.f32 %v771_v54, %v695_v58 }
 0x105   : > { %819 = vst [vmem:[%s1312_s27 + $0x8] sm:$0xff] %v787_v61  ;;  %835 = vst [vmem:[%s1312_s27 + $0x88] sm:$0xff] %v803_v62  ;;  %v762_v61 = vld [vmem:[%s1297_s21 + $0x40] sm:$0xff] }
 0x106   : > { %v635_v63 = vpop.f32.mrb[4].mxu0  ;;  %v699_v1 = vpop.f32.mrb[4].mxu1 }
 0x107   : > { %v636_v3 = vadd.f32 %v1302_v42, %v635_v63  ;;  %v700_v4 = vadd.f32 %v1302_v42, %v699_v1  ;;  %v637_v5 = vpop.f32.mrb[5].mxu0  ;;  %v701_v6 = vpop.f32.mrb[5].mxu1  ;;  %v778_v63 = vld [vmem:[%s1297_s21 + $0xc0] sm:$0xff] }
 0x108   : > { %v638_v7 = vpop.f32.mrb[6].mxu0  ;;  %v702_v9 = vpop.f32.mrb[6].mxu1  ;;  %v763_v5 = vld [vmem:[%s1297_s21 + $0x48] sm:$0xff] }
 0x109   : > { %v788_v11 = vadd.f32 %v756_v0, %v636_v3  ;;  %v804_v12 = vadd.f32 %v772_v2, %v700_v4  ;;  %v639_v13 = vadd.f32 %v1302_v42, %v638_v7  ;;  %v703_v14 = vadd.f32 %v1302_v42, %v702_v9  ;;  %v640_v15 = vpop.f32.mrb[7].mxu0  ;;  %v704_v16 = vpop.f32.mrb[7].mxu1  ;;  %v779_v7 = vld [vmem:[%s1297_s21 + $0xc8] sm:$0xff] }
 0x10b   : > { %820 = vst [vmem:[%s1312_s27 + $0x10] sm:$0xff] %v788_v11  ;;  %836 = vst [vmem:[%s1312_s27 + $0x90] sm:$0xff] %v804_v12  ;;  %v789_v17 = vadd.f32 %v757_v8, %v639_v13  ;;  %v805_v18 = vadd.f32 %v773_v10, %v703_v14 }
 0x10d   : > { %821 = vst [vmem:[%s1312_s27 + $0x18] sm:$0xff] %v789_v17  ;;  %837 = vst [vmem:[%s1312_s27 + $0x98] sm:$0xff] %v805_v18  ;;  %v764_v17 = vld [vmem:[%s1297_s21 + $0x50] sm:$0xff] }
 0x10e   : > { %v643_v19 = vpop.f32.mrb[8].mxu0  ;;  %v707_v21 = vpop.f32.mrb[8].mxu1 }
 0x10f   : > { %v644_v23 = vadd.f32 %v1302_v42, %v643_v19  ;;  %v708_v24 = vadd.f32 %v1302_v42, %v707_v21  ;;  %v645_v25 = vpop.f32.mrb[9].mxu0  ;;  %v709_v26 = vpop.f32.mrb[9].mxu1  ;;  %v780_v19 = vld [vmem:[%s1297_s21 + $0xd0] sm:$0xff] }
 0x110   : > { %v646_v27 = vpop.f32.mrb[10].mxu0  ;;  %v710_v29 = vpop.f32.mrb[10].mxu1  ;;  %v765_v25 = vld [vmem:[%s1297_s21 + $0x58] sm:$0xff] }
 0x111   : > { %v790_v31 = vadd.f32 %v758_v20, %v644_v23  ;;  %v806_v32 = vadd.f32 %v774_v22, %v708_v24  ;;  %v647_v33 = vadd.f32 %v1302_v42, %v646_v27  ;;  %v711_v34 = vadd.f32 %v1302_v42, %v710_v29  ;;  %v648_v35 = vpop.f32.mrb[11].mxu0  ;;  %v712_v36 = vpop.f32.mrb[11].mxu1  ;;  %v781_v27 = vld [vmem:[%s1297_s21 + $0xd8] sm:$0xff] }
 0x113   : > { %822 = vst [vmem:[%s1312_s27 + $0x20] sm:$0xff] %v790_v31  ;;  %838 = vst [vmem:[%s1312_s27 + $0xa0] sm:$0xff] %v806_v32  ;;  %v791_v37 = vadd.f32 %v759_v28, %v647_v33  ;;  %v807_v38 = vadd.f32 %v775_v30, %v711_v34 }
 0x115   : > { %823 = vst [vmem:[%s1312_s27 + $0x28] sm:$0xff] %v791_v37  ;;  %839 = vst [vmem:[%s1312_s27 + $0xa8] sm:$0xff] %v807_v38  ;;  %v766_v37 = vld [vmem:[%s1297_s21 + $0x60] sm:$0xff] }
 0x116   : > { %v651_v39 = vpop.f32.mrb[12].mxu0  ;;  %v715_v41 = vpop.f32.mrb[12].mxu1 }
 0x117   : > { %v652_v44 = vadd.f32 %v1302_v42, %v651_v39  ;;  %v716_v45 = vadd.f32 %v1302_v42, %v715_v41  ;;  %v653_v46 = vpop.f32.mrb[13].mxu0  ;;  %v717_v47 = vpop.f32.mrb[13].mxu1  ;;  %v782_v39 = vld [vmem:[%s1297_s21 + $0xe0] sm:$0xff] }
 0x118   : > { %v654_v48 = vpop.f32.mrb[14].mxu0  ;;  %v718_v50 = vpop.f32.mrb[14].mxu1  ;;  %v767_v46 = vld [vmem:[%s1297_s21 + $0x68] sm:$0xff] }
 0x119   : > { %v792_v52 = vadd.f32 %v760_v40, %v652_v44  ;;  %v808_v53 = vadd.f32 %v776_v43, %v716_v45  ;;  %v655_v54 = vadd.f32 %v1302_v42, %v654_v48  ;;  %v719_v55 = vadd.f32 %v1302_v42, %v718_v50  ;;  %v656_v56 = vpop.f32.mrb[15].mxu0  ;;  %v720_v57 = vpop.f32.mrb[15].mxu1  ;;  %v783_v48 = vld [vmem:[%s1297_s21 + $0xe8] sm:$0xff] }
 0x11b   : > { %824 = vst [vmem:[%s1312_s27 + $0x30] sm:$0xff] %v792_v52  ;;  %840 = vst [vmem:[%s1312_s27 + $0xb0] sm:$0xff] %v808_v53  ;;  %v793_v58 = vadd.f32 %v761_v49, %v655_v54  ;;  %v809_v59 = vadd.f32 %v777_v51, %v719_v55 }
 0x11d   : > { %825 = vst [vmem:[%s1312_s27 + $0x38] sm:$0xff] %v793_v58  ;;  %841 = vst [vmem:[%s1312_s27 + $0xb8] sm:$0xff] %v809_v59  ;;  %v768_v58 = vld [vmem:[%s1297_s21 + $0x70] sm:$0xff] }
 0x11e   : > { %v659_v60 = vpop.f32.mrb[16].mxu0  ;;  %v723_v62 = vpop.f32.mrb[16].mxu1 }
 0x11f   : > { %v660_v0 = vadd.f32 %v1302_v42, %v659_v60  ;;  %v724_v1 = vadd.f32 %v1302_v42, %v723_v62  ;;  %v661_v2 = vpop.f32.mrb[17].mxu0  ;;  %v725_v3 = vpop.f32.mrb[17].mxu1  ;;  %v784_v60 = vld [vmem:[%s1297_s21 + $0xf0] sm:$0xff] }
 0x120   : > { %v662_v4 = vpop.f32.mrb[18].mxu0  ;;  %v726_v6 = vpop.f32.mrb[18].mxu1  ;;  %v769_v2 = vld [vmem:[%s1297_s21 + $0x78] sm:$0xff] }
 0x121   : > { %v794_v8 = vadd.f32 %v762_v61, %v660_v0  ;;  %v810_v9 = vadd.f32 %v778_v63, %v724_v1  ;;  %v663_v10 = vadd.f32 %v1302_v42, %v662_v4  ;;  %v727_v11 = vadd.f32 %v1302_v42, %v726_v6  ;;  %v664_v12 = vpop.f32.mrb[19].mxu0  ;;  %v728_v13 = vpop.f32.mrb[19].mxu1  ;;  %v785_v4 = vld [vmem:[%s1297_s21 + $0xf8] sm:$0xff] }
 0x123   : > { %826 = vst [vmem:[%s1312_s27 + $0x40] sm:$0xff] %v794_v8  ;;  %842 = vst [vmem:[%s1312_s27 + $0xc0] sm:$0xff] %v810_v9  ;;  %v795_v14 = vadd.f32 %v763_v5, %v663_v10  ;;  %v811_v15 = vadd.f32 %v779_v7, %v727_v11 }
 0x125   : > { %827 = vst [vmem:[%s1312_s27 + $0x48] sm:$0xff] %v795_v14  ;;  %843 = vst [vmem:[%s1312_s27 + $0xc8] sm:$0xff] %v811_v15 }
 0x126   : > { %v667_v16 = vpop.f32.mrb[20].mxu0  ;;  %v731_v18 = vpop.f32.mrb[20].mxu1 }
 0x127   : > { %v668_v20 = vadd.f32 %v1302_v42, %v667_v16  ;;  %v732_v21 = vadd.f32 %v1302_v42, %v731_v18  ;;  %v669_v22 = vpop.f32.mrb[21].mxu0  ;;  %v733_v23 = vpop.f32.mrb[21].mxu1 }
 0x128   : > { %v670_v24 = vpop.f32.mrb[22].mxu0  ;;  %v734_v26 = vpop.f32.mrb[22].mxu1 }
 0x129   : > { %v796_v28 = vadd.f32 %v764_v17, %v668_v20  ;;  %v812_v29 = vadd.f32 %v780_v19, %v732_v21  ;;  %v671_v30 = vadd.f32 %v1302_v42, %v670_v24  ;;  %v735_v31 = vadd.f32 %v1302_v42, %v734_v26  ;;  %v672_v32 = vpop.f32.mrb[23].mxu0  ;;  %v736_v33 = vpop.f32.mrb[23].mxu1 }
 0x12b   : > { %828 = vst [vmem:[%s1312_s27 + $0x50] sm:$0xff] %v796_v28  ;;  %844 = vst [vmem:[%s1312_s27 + $0xd0] sm:$0xff] %v812_v29  ;;  %v797_v34 = vadd.f32 %v765_v25, %v671_v30  ;;  %v813_v35 = vadd.f32 %v781_v27, %v735_v31 }
 0x12d   : > { %829 = vst [vmem:[%s1312_s27 + $0x58] sm:$0xff] %v797_v34  ;;  %845 = vst [vmem:[%s1312_s27 + $0xd8] sm:$0xff] %v813_v35 }
 0x12e   : > { %v675_v36 = vpop.f32.mrb[24].mxu0  ;;  %v739_v38 = vpop.f32.mrb[24].mxu1 }
 0x12f   : > { %v676_v40 = vadd.f32 %v1302_v42, %v675_v36  ;;  %v740_v41 = vadd.f32 %v1302_v42, %v739_v38  ;;  %v677_v43 = vpop.f32.mrb[25].mxu0  ;;  %v741_v44 = vpop.f32.mrb[25].mxu1 }
 0x130   : > { %v678_v45 = vpop.f32.mrb[26].mxu0  ;;  %v742_v47 = vpop.f32.mrb[26].mxu1 }
 0x131   : > { %v798_v49 = vadd.f32 %v766_v37, %v676_v40  ;;  %v814_v50 = vadd.f32 %v782_v39, %v740_v41  ;;  %v679_v51 = vadd.f32 %v1302_v42, %v678_v45  ;;  %v743_v52 = vadd.f32 %v1302_v42, %v742_v47  ;;  %v680_v53 = vpop.f32.mrb[27].mxu0  ;;  %v744_v54 = vpop.f32.mrb[27].mxu1 }
 0x133   : > { %830 = vst [vmem:[%s1312_s27 + $0x60] sm:$0xff] %v798_v49  ;;  %846 = vst [vmem:[%s1312_s27 + $0xe0] sm:$0xff] %v814_v50  ;;  %v799_v55 = vadd.f32 %v767_v46, %v679_v51  ;;  %v815_v56 = vadd.f32 %v783_v48, %v743_v52 }
 0x135   : > { %831 = vst [vmem:[%s1312_s27 + $0x68] sm:$0xff] %v799_v55  ;;  %847 = vst [vmem:[%s1312_s27 + $0xe8] sm:$0xff] %v815_v56 }
 0x136   : > { %v683_v57 = vpop.f32.mrb[28].mxu0  ;;  %v747_v59 = vpop.f32.mrb[28].mxu1 }
 0x137   : > { %v684_v61 = vadd.f32 %v1302_v42, %v683_v57  ;;  %v748_v62 = vadd.f32 %v1302_v42, %v747_v59  ;;  %v685_v63 = vpop.f32.mrb[29].mxu0  ;;  %v749_v0 = vpop.f32.mrb[29].mxu1 }
 0x138   : > { %v686_v1 = vpop.f32.mrb[30].mxu0  ;;  %v750_v3 = vpop.f32.mrb[30].mxu1 }
 0x139   : > { %v800_v5 = vadd.f32 %v768_v58, %v684_v61  ;;  %v816_v6 = vadd.f32 %v784_v60, %v748_v62  ;;  %v687_v7 = vadd.f32 %v1302_v42, %v686_v1  ;;  %v751_v8 = vadd.f32 %v1302_v42, %v750_v3  ;;  %v688_v9 = vpop.f32.mrb[31].mxu0  ;;  %v752_v10 = vpop.f32.mrb[31].mxu1 }
 0x13b   : > { %832 = vst [vmem:[%s1312_s27 + $0x70] sm:$0xff] %v800_v5  ;;  %848 = vst [vmem:[%s1312_s27 + $0xf0] sm:$0xff] %v816_v6  ;;  %v801_v11 = vadd.f32 %v769_v2, %v687_v7  ;;  %v817_v12 = vadd.f32 %v785_v4, %v751_v8 }
 0x13d   : > { %833 = vst [vmem:[%s1312_s27 + $0x78] sm:$0xff] %v801_v11  ;;  %849 = vst [vmem:[%s1312_s27 + $0xf8] sm:$0xff] %v817_v12 }
 0x13e PF: > { %s14_s17 = sadd.s32 1, %s1164_s17   ;;  %s1420_s15 = smov %s1160_s16 }
 0x13f   : > { %p11_p5 = scmp.ge.s32.totalorder %s14_s17, 4   ;;  %s1421_s16 = smov %s1423_s18 }
 0x141   :  { %13 = sbr.rel (!%p11_p5) target bundleno = 2 (0x2), region = 75 }

</bundles_post_ra>
